<compile_context>
chip_gen: v7x
topology: tpu7x:2x2x1
jax: 0.10.0
libtpu: 0.0.40
codegen_flags: <defaults>
</compile_context>

<pallas_src>
import functools

import jax
import jax.numpy as jnp
from jax.experimental import pallas as pl
from jax.experimental.pallas import tpu as pltpu


def _round_up(x, m):
    return ((x + m - 1) // m) * m


# ----------------------------- Pallas kernels --------------------------------
def _conv_kernel(a_ref, w_ref, bias_ref, o_ref, *, apply_act, neg_slope):
    """o = act(A @ W + bias).  Single K step -> output written exactly once."""
    out = jnp.dot(a_ref[...], w_ref[...], preferred_element_type=jnp.float32)
    out = out + bias_ref[...]
    if apply_act:
        out = jnp.where(out >= 0, out, neg_slope * out)
    o_ref[...] = out.astype(o_ref.dtype)


def _conv_head_kernel(a_ref, w4_ref, b4_ref, w5_ref, o_ref, *, neg_slope):
    """Layer 4 conv + LeakyReLU, with layer 5 (512->1 full-window conv) fused
    as a per-row multiply-reduce.  Only the per-row partial sums leave VMEM."""
    act = jnp.dot(a_ref[...], w4_ref[...], preferred_element_type=jnp.float32)
    act = act + b4_ref[...]
    act = jnp.where(act >= 0, act, neg_slope * act)
    # Row r of `act` is layer-4's activation at one (n, oh, ow); w5_ref carries
    # the matching layer-5 tap weights.  Final per-batch sum is done outside.
    o_ref[...] = jnp.sum(act * w5_ref[...], axis=-1, keepdims=True)


# ------------------------------- glue: im2col -------------------------------
def _im2col_nhwc(x, k, stride, pad):
    """x: (N, H, W, C) -> patches (N*OH*OW, k*k*C), ordered (kh, kw, cin)."""
    N, H, W, C = x.shape
    xp = jnp.pad(x, ((0, 0), (pad, pad), (pad, pad), (0, 0)))
    OH = (H + 2 * pad - k) // stride + 1
    OW = (W + 2 * pad - k) // stride + 1
    pieces = []
    for kh in range(k):
        for kw in range(k):
            pieces.append(xp[:, kh:kh + stride * OH:stride,
                              kw:kw + stride * OW:stride, :])
    p = jnp.concatenate(pieces, axis=-1)              # (N, OH, OW, k*k*C)
    return p.reshape(N * OH * OW, k * k * C), OH, OW


_COMPILER_PARAMS = dict(vmem_limit_bytes=32 * 1024 * 1024)


# --------------------------- conv layer wrapper ------------------------------
def conv2d_pallas(x, w, b, *, stride, pad, neg_slope=0.2,
                  apply_act=True, out_dtype=jnp.bfloat16):
    """Conv2d (PyTorch weight layout) on NHWC bf16 activations.

    x: (N, H, W, Cin) bf16, w: (Cout, Cin, KH, KW), b: (Cout,).
    Returns (N, OH, OW, Cout) in `out_dtype`.
    """
    Cout, Cin, KH, KW = w.shape
    N = x.shape[0]

    patches, OH, OW = _im2col_nhwc(x, KH, stride, pad)       # (M, K) bf16
    M, K = patches.shape

    Kp = _round_up(K, 128)
    Cp = _round_up(Cout, 128)
    tm = min(_round_up(M, 8), 1024)
    Mp = _round_up(M, tm)
    ni = Mp // tm
    # Single M tile -> split Cout in two so both v7x TensorCores get work.
    nj = 2 if (ni == 1 and Cp >= 256 and Cp % 256 == 0) else 1
    tn = Cp // nj

    a = patches
    if (Mp, Kp) != (M, K):
        a = jnp.pad(a, ((0, Mp - M), (0, Kp - K)))
    a = a.astype(jnp.bfloat16)

    wmat = w.transpose(2, 3, 1, 0).reshape(K, Cout)          # (kh,kw,cin) x Cout
    if (Kp, Cp) != (K, Cout):
        wmat = jnp.pad(wmat, ((0, Kp - K), (0, Cp - Cout)))
    wmat = wmat.astype(jnp.bfloat16)
    bias = jnp.pad(b, (0, Cp - Cout)).reshape(1, Cp).astype(jnp.float32)

    kernel = functools.partial(_conv_kernel,
                               apply_act=apply_act, neg_slope=neg_slope)

    out = pl.pallas_call(
        kernel,
        out_shape=jax.ShapeDtypeStruct((Mp, Cp), out_dtype),
        grid_spec=pltpu.PrefetchScalarGridSpec(
            num_scalar_prefetch=0,
            grid=(ni, nj),
            in_specs=[
                pl.BlockSpec((tm, Kp), lambda i, j: (i, 0)),
                # constant across M tiles -> weights/bias DMA'd once, resident
                pl.BlockSpec((Kp, tn), lambda i, j: (0, j)),
                pl.BlockSpec((1, tn), lambda i, j: (0, j)),
            ],
            out_specs=pl.BlockSpec((tm, tn), lambda i, j: (i, j)),
        ),
        compiler_params=pltpu.CompilerParams(
            dimension_semantics=("parallel", "parallel"), **_COMPILER_PARAMS),
    )(a, wmat, bias)

    return out[:M, :Cout].reshape(N, OH, OW, Cout)


# ----------------------- fused layer4 + layer5 head --------------------------
def conv_head_pallas(x, w4, b4, w5, b5, *, stride=2, pad=1, neg_slope=0.2):
    """Fused Conv2d(256->512,k4,s2,p1) + LeakyReLU + Conv2d(512->1,k4,s1,p0).

    The final conv's single 4x4 output window covers layer 4's whole spatial
    map, so it is a per-batch matvec folded into layer 4's epilogue.
    x: (N, H, W, Cin) bf16.  Returns (N,) f32 logits.
    """
    N = x.shape[0]
    Cout4, Cin4, KH, KW = w4.shape
    patches, OH, OW = _im2col_nhwc(x, KH, stride, pad)       # (M, K) bf16
    M, K = patches.shape
    assert OH == w5.shape[2] and OW == w5.shape[3], "head expects full-window final conv"

    Kp = _round_up(K, 128)
    Cp = _round_up(Cout4, 128)
    Mp = _round_up(M, 8)

    a = patches
    if (Mp, Kp) != (M, K):
        a = jnp.pad(a, ((0, Mp - M), (0, Kp - K)))
    a = a.astype(jnp.bfloat16)

    w4mat = w4.transpose(2, 3, 1, 0).reshape(K, Cout4)
    if (Kp, Cp) != (K, Cout4):
        w4mat = jnp.pad(w4mat, ((0, Kp - K), (0, Cp - Cout4)))
    w4mat = w4mat.astype(jnp.bfloat16)
    bias4 = jnp.pad(b4, (0, Cp - Cout4)).reshape(1, Cp).astype(jnp.float32)

    # w5: (1, 512, KH, KW) -> (OH*OW, 512) in (kh, kw, cin) row order, tiled
    # per batch element so row r lines up with the matmul's row r.
    w5t = jnp.transpose(w5[0], (1, 2, 0)).reshape(OH * OW, Cout4)
    w5t = jnp.tile(w5t, (N, 1))
    if w5t.shape != (Mp, Cp):
        w5t = jnp.pad(w5t, ((0, Mp - M), (0, Cp - Cout4)))
    w5t = w5t.astype(jnp.float32)

    kernel = functools.partial(_conv_head_kernel, neg_slope=neg_slope)

    rowsum = pl.pallas_call(
        kernel,
        out_shape=jax.ShapeDtypeStruct((Mp, 1), jnp.float32),
        grid_spec=pltpu.PrefetchScalarGridSpec(
            num_scalar_prefetch=0,
            grid=(1,),
            in_specs=[
                pl.BlockSpec((Mp, Kp), lambda i: (0, 0)),
                pl.BlockSpec((Kp, Cp), lambda i: (0, 0)),
                pl.BlockSpec((1, Cp), lambda i: (0, 0)),
                pl.BlockSpec((Mp, Cp), lambda i: (0, 0)),
            ],
            out_specs=pl.BlockSpec((Mp, 1), lambda i: (0, 0)),
        ),
        compiler_params=pltpu.CompilerParams(
            dimension_semantics=("arbitrary",), **_COMPILER_PARAMS),
    )(a, w4mat, bias4, w5t)

    # Per-batch sum over the OH*OW window + final bias (tiny (N, 16) XLA op).
    logits = rowsum[:M, 0].reshape(N, OH * OW).sum(axis=1) + b5[0]
    return logits


# ----------------------------- Discriminator --------------------------------
# DCGAN discriminator: 3 -> 64 -> 128 -> 256 -> 512 -> 1.
# convBlock assumed: Conv2d(k=4, stride, padding=1 default) + LeakyReLU(0.2)
# for layers 1-4, bare Conv2d(k=4, s=1, p=0) for layer 5.
_LAYER_CFG = [
    # (cin, cout, k, stride, pad, activation)
    (3,   64,  4, 2, 1, True),
    (64,  128, 4, 2, 1, True),
    (128, 256, 4, 2, 1, True),
    (256, 512, 4, 2, 1, True),
    (512, 1,   4, 1, 0, False),
]


def init_params(key):
    """DCGAN init: conv weights ~ N(0, 0.02), biases = 0. Deterministic."""
    params = []
    for i, (cin, cout, k, _, _, _) in enumerate(_LAYER_CFG):
        wkey = jax.random.fold_in(key, i)
        w = 0.02 * jax.random.normal(wkey, (cout, cin, k, k), dtype=jnp.float32)
        b = jnp.zeros((cout,), dtype=jnp.float32)
        params.append((w, b))
    return params


def discriminator_forward(params, x):
    """x: (N, C, H, W) like the PyTorch module; returns squeezed logits."""
    (w1, b1), (w2, b2), (w3, b3), (w4, b4), (w5, b5) = params
    out = jnp.transpose(x, (0, 2, 3, 1)).astype(jnp.bfloat16)  # NCHW->NHWC once
    out = conv2d_pallas(out, w1, b1, stride=2, pad=1)
    out = conv2d_pallas(out, w2, b2, stride=2, pad=1)
    out = conv2d_pallas(out, w3, b3, stride=2, pad=1)
    logits = conv_head_pallas(out, w4, b4, w5, b5, stride=2, pad=1)
    # Matches PyTorch `out.squeeze()` semantics on the (N,1,1,1) logits.
    return jnp.squeeze(logits.astype(jnp.float32))


# ---------------------------------- main -------------------------------------
if __name__ == "__main__":
    key = jax.random.PRNGKey(0)
    xkey, pkey = jax.random.split(key)

    # DCGAN discriminator geometry requires 64x64 spatial input
    # (64 -> 32 -> 16 -> 8 -> 4 -> 1). Batch kept small.
    x = jax.random.normal(xkey, (2, 3, 64, 64), dtype=jnp.float32)
    params = init_params(pkey)

    fwd = jax.jit(discriminator_forward)
    out = jax.block_until_ready(fwd(params, x))

    assert out.shape == (2,), out.shape
    assert out.dtype == jnp.float32
    assert bool(jnp.all(jnp.isfinite(out)))
    print("KERNEL_OK")
</pallas_src>

<mosaic_0001>
module attributes {stable_mosaic.version = 11 : i64} {
  func.func @_conv_kernel(%arg0: i32, %arg1: i32, %arg2: memref<1024x128xbf16, #tpu.memory_space<vmem>>, %arg3: memref<128x128xbf16, #tpu.memory_space<vmem>>, %arg4: memref<1x128xf32, #tpu.memory_space<vmem>>, %arg5: memref<1024x128xbf16, #tpu.memory_space<vmem>>) attributes {dimension_semantics = [#tpu.dimension_semantics<parallel>, #tpu.dimension_semantics<parallel>], iteration_bounds = array<i64: 2, 1>, scalar_prefetch = 0 : i64, scratch_operands = 0 : i64, tpu.core_type = #tpu.core_type<tc>, window_params = [{transform_indices = @transform_0, window_bounds = array<i64: 1024, 128>}, {transform_indices = @transform_1, window_bounds = array<i64: 128, 128>}, {transform_indices = @transform_2, window_bounds = array<i64: 1, 128>}, {transform_indices = @transform_3, window_bounds = array<i64: 1024, 128>}]} {
    %c0 = arith.constant 0 : index
    %c0_0 = arith.constant 0 : index
    %0 = vector.load %arg2[%c0, %c0_0] : memref<1024x128xbf16, #tpu.memory_space<vmem>>, vector<1024x128xbf16>
    %c0_1 = arith.constant 0 : index
    %c0_2 = arith.constant 0 : index
    %1 = vector.load %arg3[%c0_1, %c0_2] : memref<128x128xbf16, #tpu.memory_space<vmem>>, vector<128x128xbf16>
    %cst = arith.constant dense<0.000000e+00> : vector<1024x128xf32>
    %2 = tpu.matmul %0, %1, %cst {dimension_numbers = #tpu.dot_dimension_numbers<[1], [0], [0], [1], [0, 0, 1, 1], [], []>} : vector<1024x128xbf16>, vector<128x128xbf16>, vector<1024x128xf32> -> vector<1024x128xf32>
    %c0_3 = arith.constant 0 : index
    %c0_4 = arith.constant 0 : index
    %3 = vector.load %arg4[%c0_3, %c0_4] : memref<1x128xf32, #tpu.memory_space<vmem>>, vector<1x128xf32>
    %4 = vector.broadcast %3 : vector<1x128xf32> to vector<1024x128xf32>
    %5 = arith.addf %2, %4 : vector<1024x128xf32>
    %cst_5 = arith.constant 0.000000e+00 : f32
    %6 = vector.broadcast %cst_5 : f32 to vector<1024x128xf32>
    %7 = arith.cmpf oge, %5, %6 : vector<1024x128xf32>
    %cst_6 = arith.constant 2.000000e-01 : f32
    %8 = vector.broadcast %cst_6 : f32 to vector<1024x128xf32>
    %9 = arith.mulf %8, %5 : vector<1024x128xf32>
    %10 = arith.select %7, %5, %9 : vector<1024x128xi1>, vector<1024x128xf32>
    %11 = arith.truncf %10 : vector<1024x128xf32> to vector<1024x128xbf16>
    %c0_7 = arith.constant 0 : index
    %c0_8 = arith.constant 0 : index
    %12 = vector.load %arg5[%c0_7, %c0_8] : memref<1024x128xbf16, #tpu.memory_space<vmem>>, vector<1024x128xbf16>
    tpu.vector_store %arg5[%c0_7, %c0_8], %11 {strides = array<i32>} : memref<1024x128xbf16, #tpu.memory_space<vmem>>, vector<1024x128xbf16>,
    return
  }
  func.func @transform_0(%arg0: i32, %arg1: i32) -> (i32, i32) {
    %c0_i32 = arith.constant 0 : i32
    %c0_i32_0 = arith.constant 0 : i32
    return %arg0, %c0_i32 : i32, i32
  }
  func.func @transform_1(%arg0: i32, %arg1: i32) -> (i32, i32) {
    %c0_i32 = arith.constant 0 : i32
    %c0_i32_0 = arith.constant 0 : i32
    return %c0_i32, %arg1 : i32, i32
  }
  func.func @transform_2(%arg0: i32, %arg1: i32) -> (i32, i32) {
    %c0_i32 = arith.constant 0 : i32
    %c0_i32_0 = arith.constant 0 : i32
    return %c0_i32, %arg1 : i32, i32
  }
  func.func @transform_3(%arg0: i32, %arg1: i32) -> (i32, i32) {
    %c0_i32 = arith.constant 0 : i32
    return %arg0, %arg1 : i32, i32
  }
}

module attributes {stable_mosaic.version = 11 : i64} {
  func.func @_conv_kernel(%arg0: i32, %arg1: i32, %arg2: memref<512x1024xbf16, #tpu.memory_space<vmem>>, %arg3: memref<1024x128xbf16, #tpu.memory_space<vmem>>, %arg4: memref<1x128xf32, #tpu.memory_space<vmem>>, %arg5: memref<512x128xbf16, #tpu.memory_space<vmem>>) attributes {dimension_semantics = [#tpu.dimension_semantics<parallel>, #tpu.dimension_semantics<parallel>], iteration_bounds = array<i64: 1, 1>, scalar_prefetch = 0 : i64, scratch_operands = 0 : i64, tpu.core_type = #tpu.core_type<tc>, window_params = [{transform_indices = @transform_0, window_bounds = array<i64: 512, 1024>}, {transform_indices = @transform_1, window_bounds = array<i64: 1024, 128>}, {transform_indices = @transform_2, window_bounds = array<i64: 1, 128>}, {transform_indices = @transform_3, window_bounds = array<i64: 512, 128>}]} {
    %c0 = arith.constant 0 : index
    %c0_0 = arith.constant 0 : index
    %0 = vector.load %arg2[%c0, %c0_0] : memref<512x1024xbf16, #tpu.memory_space<vmem>>, vector<512x1024xbf16>
    %c0_1 = arith.constant 0 : index
    %c0_2 = arith.constant 0 : index
    %1 = vector.load %arg3[%c0_1, %c0_2] : memref<1024x128xbf16, #tpu.memory_space<vmem>>, vector<1024x128xbf16>
    %cst = arith.constant dense<0.000000e+00> : vector<512x128xf32>
    %2 = tpu.matmul %0, %1, %cst {dimension_numbers = #tpu.dot_dimension_numbers<[1], [0], [0], [1], [0, 0, 1, 1], [], []>} : vector<512x1024xbf16>, vector<1024x128xbf16>, vector<512x128xf32> -> vector<512x128xf32>
    %c0_3 = arith.constant 0 : index
    %c0_4 = arith.constant 0 : index
    %3 = vector.load %arg4[%c0_3, %c0_4] : memref<1x128xf32, #tpu.memory_space<vmem>>, vector<1x128xf32>
    %4 = vector.broadcast %3 : vector<1x128xf32> to vector<512x128xf32>
    %5 = arith.addf %2, %4 : vector<512x128xf32>
    %cst_5 = arith.constant 0.000000e+00 : f32
    %6 = vector.broadcast %cst_5 : f32 to vector<512x128xf32>
    %7 = arith.cmpf oge, %5, %6 : vector<512x128xf32>
    %cst_6 = arith.constant 2.000000e-01 : f32
    %8 = vector.broadcast %cst_6 : f32 to vector<512x128xf32>
    %9 = arith.mulf %8, %5 : vector<512x128xf32>
    %10 = arith.select %7, %5, %9 : vector<512x128xi1>, vector<512x128xf32>
    %11 = arith.truncf %10 : vector<512x128xf32> to vector<512x128xbf16>
    %c0_7 = arith.constant 0 : index
    %c0_8 = arith.constant 0 : index
    %12 = vector.load %arg5[%c0_7, %c0_8] : memref<512x128xbf16, #tpu.memory_space<vmem>>, vector<512x128xbf16>
    tpu.vector_store %arg5[%c0_7, %c0_8], %11 {strides = array<i32>} : memref<512x128xbf16, #tpu.memory_space<vmem>>, vector<512x128xbf16>,
    return
  }
  func.func @transform_0(%arg0: i32, %arg1: i32) -> (i32, i32) {
    %c0_i32 = arith.constant 0 : i32
    %c0_i32_0 = arith.constant 0 : i32
    return %arg0, %c0_i32 : i32, i32
  }
  func.func @transform_1(%arg0: i32, %arg1: i32) -> (i32, i32) {
    %c0_i32 = arith.constant 0 : i32
    %c0_i32_0 = arith.constant 0 : i32
    return %c0_i32, %arg1 : i32, i32
  }
  func.func @transform_2(%arg0: i32, %arg1: i32) -> (i32, i32) {
    %c0_i32 = arith.constant 0 : i32
    %c0_i32_0 = arith.constant 0 : i32
    return %c0_i32, %arg1 : i32, i32
  }
  func.func @transform_3(%arg0: i32, %arg1: i32) -> (i32, i32) {
    %c0_i32 = arith.constant 0 : i32
    return %arg0, %arg1 : i32, i32
  }
}

module attributes {stable_mosaic.version = 11 : i64} {
  func.func @_conv_kernel(%arg0: i32, %arg1: i32, %arg2: memref<128x2048xbf16, #tpu.memory_space<vmem>>, %arg3: memref<2048x128xbf16, #tpu.memory_space<vmem>>, %arg4: memref<1x128xf32, #tpu.memory_space<vmem>>, %arg5: memref<128x128xbf16, #tpu.memory_space<vmem>>) attributes {dimension_semantics = [#tpu.dimension_semantics<parallel>, #tpu.dimension_semantics<parallel>], iteration_bounds = array<i64: 1, 2>, scalar_prefetch = 0 : i64, scratch_operands = 0 : i64, tpu.core_type = #tpu.core_type<tc>, window_params = [{transform_indices = @transform_0, window_bounds = array<i64: 128, 2048>}, {transform_indices = @transform_1, window_bounds = array<i64: 2048, 128>}, {transform_indices = @transform_2, window_bounds = array<i64: 1, 128>}, {transform_indices = @transform_3, window_bounds = array<i64: 128, 128>}]} {
    %c0 = arith.constant 0 : index
    %c0_0 = arith.constant 0 : index
    %0 = vector.load %arg2[%c0, %c0_0] : memref<128x2048xbf16, #tpu.memory_space<vmem>>, vector<128x2048xbf16>
    %c0_1 = arith.constant 0 : index
    %c0_2 = arith.constant 0 : index
    %1 = vector.load %arg3[%c0_1, %c0_2] : memref<2048x128xbf16, #tpu.memory_space<vmem>>, vector<2048x128xbf16>
    %cst = arith.constant dense<0.000000e+00> : vector<128x128xf32>
    %2 = tpu.matmul %0, %1, %cst {dimension_numbers = #tpu.dot_dimension_numbers<[1], [0], [0], [1], [0, 0, 1, 1], [], []>} : vector<128x2048xbf16>, vector<2048x128xbf16>, vector<128x128xf32> -> vector<128x128xf32>
    %c0_3 = arith.constant 0 : index
    %c0_4 = arith.constant 0 : index
    %3 = vector.load %arg4[%c0_3, %c0_4] : memref<1x128xf32, #tpu.memory_space<vmem>>, vector<1x128xf32>
    %4 = vector.broadcast %3 : vector<1x128xf32> to vector<128x128xf32>
    %5 = arith.addf %2, %4 : vector<128x128xf32>
    %cst_5 = arith.constant 0.000000e+00 : f32
    %6 = vector.broadcast %cst_5 : f32 to vector<128x128xf32>
    %7 = arith.cmpf oge, %5, %6 : vector<128x128xf32>
    %cst_6 = arith.constant 2.000000e-01 : f32
    %8 = vector.broadcast %cst_6 : f32 to vector<128x128xf32>
    %9 = arith.mulf %8, %5 : vector<128x128xf32>
    %10 = arith.select %7, %5, %9 : vector<128x128xi1>, vector<128x128xf32>
    %11 = arith.truncf %10 : vector<128x128xf32> to vector<128x128xbf16>
    %c0_7 = arith.constant 0 : index
    %c0_8 = arith.constant 0 : index
    %12 = vector.load %arg5[%c0_7, %c0_8] : memref<128x128xbf16, #tpu.memory_space<vmem>>, vector<128x128xbf16>
    tpu.vector_store %arg5[%c0_7, %c0_8], %11 {strides = array<i32>} : memref<128x128xbf16, #tpu.memory_space<vmem>>, vector<128x128xbf16>,
    return
  }
  func.func @transform_0(%arg0: i32, %arg1: i32) -> (i32, i32) {
    %c0_i32 = arith.constant 0 : i32
    %c0_i32_0 = arith.constant 0 : i32
    return %arg0, %c0_i32 : i32, i32
  }
  func.func @transform_1(%arg0: i32, %arg1: i32) -> (i32, i32) {
    %c0_i32 = arith.constant 0 : i32
    %c0_i32_0 = arith.constant 0 : i32
    return %c0_i32, %arg1 : i32, i32
  }
  func.func @transform_2(%arg0: i32, %arg1: i32) -> (i32, i32) {
    %c0_i32 = arith.constant 0 : i32
    %c0_i32_0 = arith.constant 0 : i32
    return %c0_i32, %arg1 : i32, i32
  }
  func.func @transform_3(%arg0: i32, %arg1: i32) -> (i32, i32) {
    %c0_i32 = arith.constant 0 : i32
    return %arg0, %arg1 : i32, i32
  }
}

module attributes {stable_mosaic.version = 11 : i64} {
  func.func @_conv_head_kernel(%arg0: i32, %arg1: memref<32x4096xbf16, #tpu.memory_space<vmem>>, %arg2: memref<4096x512xbf16, #tpu.memory_space<vmem>>, %arg3: memref<1x512xf32, #tpu.memory_space<vmem>>, %arg4: memref<32x512xf32, #tpu.memory_space<vmem>>, %arg5: memref<32x1xf32, #tpu.memory_space<vmem>>) attributes {dimension_semantics = [#tpu.dimension_semantics<arbitrary>], iteration_bounds = array<i64: 1>, scalar_prefetch = 0 : i64, scratch_operands = 0 : i64, tpu.core_type = #tpu.core_type<tc>, window_params = [{pipeline_mode = #tpu.pipeline_mode<synchronous>, transform_indices = @transform_0, window_bounds = array<i64: 32, 4096>}, {pipeline_mode = #tpu.pipeline_mode<synchronous>, transform_indices = @transform_1, window_bounds = array<i64: 4096, 512>}, {pipeline_mode = #tpu.pipeline_mode<synchronous>, transform_indices = @transform_2, window_bounds = array<i64: 1, 512>}, {pipeline_mode = #tpu.pipeline_mode<synchronous>, transform_indices = @transform_3, window_bounds = array<i64: 32, 512>}, {pipeline_mode = #tpu.pipeline_mode<synchronous>, transform_indices = @transform_4, window_bounds = array<i64: 32, 1>}]} {
    %c0 = arith.constant 0 : index
    %c0_0 = arith.constant 0 : index
    %0 = vector.load %arg1[%c0, %c0_0] : memref<32x4096xbf16, #tpu.memory_space<vmem>>, vector<32x4096xbf16>
    %c0_1 = arith.constant 0 : index
    %c0_2 = arith.constant 0 : index
    %1 = vector.load %arg2[%c0_1, %c0_2] : memref<4096x512xbf16, #tpu.memory_space<vmem>>, vector<4096x512xbf16>
    %cst = arith.constant dense<0.000000e+00> : vector<32x512xf32>
    %2 = tpu.matmul %0, %1, %cst {dimension_numbers = #tpu.dot_dimension_numbers<[1], [0], [0], [1], [0, 0, 1, 1], [], []>} : vector<32x4096xbf16>, vector<4096x512xbf16>, vector<32x512xf32> -> vector<32x512xf32>
    %c0_3 = arith.constant 0 : index
    %c0_4 = arith.constant 0 : index
    %3 = vector.load %arg3[%c0_3, %c0_4] : memref<1x512xf32, #tpu.memory_space<vmem>>, vector<1x512xf32>
    %4 = vector.broadcast %3 : vector<1x512xf32> to vector<32x512xf32>
    %5 = arith.addf %2, %4 : vector<32x512xf32>
    %cst_5 = arith.constant 0.000000e+00 : f32
    %6 = vector.broadcast %cst_5 : f32 to vector<32x512xf32>
    %7 = arith.cmpf oge, %5, %6 : vector<32x512xf32>
    %cst_6 = arith.constant 2.000000e-01 : f32
    %8 = vector.broadcast %cst_6 : f32 to vector<32x512xf32>
    %9 = arith.mulf %8, %5 : vector<32x512xf32>
    %10 = arith.select %7, %5, %9 : vector<32x512xi1>, vector<32x512xf32>
    %c0_7 = arith.constant 0 : index
    %c0_8 = arith.constant 0 : index
    %11 = vector.load %arg4[%c0_7, %c0_8] : memref<32x512xf32, #tpu.memory_space<vmem>>, vector<32x512xf32>
    %12 = arith.mulf %10, %11 : vector<32x512xf32>
    %cst_9 = arith.constant dense<0.000000e+00> : vector<32xf32>
    %13 = vector.multi_reduction <add>, %12, %cst_9 [1] : vector<32x512xf32> to vector<32xf32>
    %14 = vector.shape_cast %13 : vector<32xf32> to vector<32x1xf32>
    %c0_10 = arith.constant 0 : index
    %c0_11 = arith.constant 0 : index
    %15 = vector.load %arg5[%c0_10, %c0_11] : memref<32x1xf32, #tpu.memory_space<vmem>>, vector<32x1xf32>
    tpu.vector_store %arg5[%c0_10, %c0_11], %14 {strides = array<i32>} : memref<32x1xf32, #tpu.memory_space<vmem>>, vector<32x1xf32>,
    return
  }
  func.func @transform_0(%arg0: i32) -> (i32, i32) {
    %c0_i32 = arith.constant 0 : i32
    %c0_i32_0 = arith.constant 0 : i32
    %c0_i32_1 = arith.constant 0 : i32
    return %c0_i32, %c0_i32_0 : i32, i32
  }
  func.func @transform_1(%arg0: i32) -> (i32, i32) {
    %c0_i32 = arith.constant 0 : i32
    %c0_i32_0 = arith.constant 0 : i32
    %c0_i32_1 = arith.constant 0 : i32
    return %c0_i32, %c0_i32_0 : i32, i32
  }
  func.func @transform_2(%arg0: i32) -> (i32, i32) {
    %c0_i32 = arith.constant 0 : i32
    %c0_i32_0 = arith.constant 0 : i32
    %c0_i32_1 = arith.constant 0 : i32
    return %c0_i32, %c0_i32_0 : i32, i32
  }
  func.func @transform_3(%arg0: i32) -> (i32, i32) {
    %c0_i32 = arith.constant 0 : i32
    %c0_i32_0 = arith.constant 0 : i32
    %c0_i32_1 = arith.constant 0 : i32
    return %c0_i32, %c0_i32_0 : i32, i32
  }
  func.func @transform_4(%arg0: i32) -> (i32, i32) {
    %c0_i32 = arith.constant 0 : i32
    %c0_i32_0 = arith.constant 0 : i32
    %c0_i32_1 = arith.constant 0 : i32
    return %c0_i32, %c0_i32_0 : i32, i32
  }
}

</mosaic_0001>

<bundles_post_ra>
// kernel: discriminator_forward.4
= control target key start
LH: loop header
LB: loop body
LE: loop exit
PB: predicated region body
PF: predicated region fallthrough
CT: control target
= control target key end

     0   :  { %s3578_s12 = smov 0   ;;  %s3580_s13 = smov 0   ;;  %s4047_s0 = inlined_call_operand.vmem [shape: bf16[2048,128], index: 0, kind: input, shape index: {}]   ;;  %s4048_s1 = inlined_call_operand.vmem [shape: bf16[128,128], index: 1, kind: input, shape index: {}]   ;;  %s4049_s2 = inlined_call_operand.vmem [shape: f32[1,128], index: 2, kind: input, shape index: {}]   ;;  %s4050_s3 = inlined_call_operand.vmem [shape: bf16[2048,128], index: 3, kind: output, shape index: {}]  }
   0x1   :  { %s3582_s14 = smov 0  }
   0x2 LB: > { %s25_s15 = sadd.s32 1, %s3552_s13  ;;  %p2486_p0 = scmp.ge.s32.totalorder %s3556_s14, 1  ;;  %s3556_s14 = sphi %s3582_s14, %s13_s14   ;;  %s3552_s13 = sphi %s3580_s13, %s4052_s13   ;;  %s3548_s12 = sphi %s3578_s12, %s4051_s12  }
   0x3   : > { %p27_p1 = scmp.ge.s32.totalorder %s25_s15, 2  ;;  %p169_p2 = scmp.lt.s32.totalorder %s3556_s14, 3 }
   0x5   : > { %s4054_s15 = smov (%p27_p1, %s25_s15), 0  ;;  %p170_p3 = pnand %p2486_p0, %p169_p2 }
   0x6   : > { %v3461_v0 = vld [vmem:[%s4048_s1] sm:$0xff] (!%p170_p3)   ;;  %s2487_s18 = sshll.u32 (!%p170_p3), %s3548_s12, 7  ;;  %v3462_v1 = vld [vmem:[%s4048_s1 + $0x8] sm:$0xff] (!%p170_p3)   ;;  %v3463_v2 = vld [vmem:[%s4048_s1 + $0x10] sm:$0xff] (!%p170_p3)  }
   0x7   : > { %173 = sbr.rel (%p170_p3) target bundleno = 400 (0x190), region = 32  ;;  %p204_p4 = scmp.lt.s32.totalorder (!%p170_p3), %s2487_s18, 255  ;;  %3277 = vmatprep.subr.bf16.mxu0 (!%p170_p3), %v3461_v0  ;;  %3421 = vmatprep.subr.bf16.mxu1 (!%p170_p3), %v3461_v0  ;;  %v3464_v3 = vld [vmem:[%s4048_s1 + $0x18] sm:$0xff] (!%p170_p3)   ;;  %v3465_v6 = vld [vmem:[%s4048_s1 + $0x20] sm:$0xff] (!%p170_p3)   ;;  %v3466_v7 = vld [vmem:[%s4048_s1 + $0x28] sm:$0xff] (!%p170_p3)  }
   0x8   : > { %3278 = vmatpush3.bf16.msra.mxu0 (!%p170_p3), %v3461_v0  ;;  %3429 = vmatpush3.bf16.msra.mxu1 (!%p170_p3), %v3461_v0  ;;  %v3467_v8 = vld [vmem:[%s4048_s1 + $0x30] sm:$0xff] (!%p170_p3)   ;;  %v3468_v9 = vld [vmem:[%s4048_s1 + $0x38] sm:$0xff] (!%p170_p3)  }
   0x9   : > { %3279 = vmatprep.subr.bf16.mxu0 (!%p170_p3), %v3462_v1  ;;  %3422 = vmatprep.subr.bf16.mxu1 (!%p170_p3), %v3462_v1 }
   0xc   : > { %3280 = vmatpush3.bf16.msra.mxu0 (!%p170_p3), %v3462_v1  ;;  %3430 = vmatpush3.bf16.msra.mxu1 (!%p170_p3), %v3462_v1 }
   0xd   : > { %3281 = vmatprep.subr.bf16.mxu0 (!%p170_p3), %v3463_v2  ;;  %3423 = vmatprep.subr.bf16.mxu1 (!%p170_p3), %v3463_v2 }
   0xe   : > { %s4056_s18 = smov (!%p204_p4, %s2487_s18), 255 }
   0xf   : > { %s2488_s23 = sshll.u32 %s4056_s18, 2 }
  0x10   : > { %s3613_s26 = scalar_lea.vmem %s4047_s0, %s2488_s23  ;;  %3282 = vmatpush3.bf16.msra.mxu0 %v3463_v2  ;;  %3431 = vmatpush3.bf16.msra.mxu1 %v3463_v2  ;;  %s3714_s17 = scalar_lea.vmem %s4050_s3, %s2488_s23 }
  0x11   : > { %v3469_v4 = vld [vmem:[%s3613_s26] sm:$0xff]   ;;  %3283 = vmatprep.subr.bf16.mxu0 %v3464_v3  ;;  %3424 = vmatprep.subr.bf16.mxu1 %v3464_v3  ;;  %v3471_v10 = vld [vmem:[%s3613_s26 + $0x8] sm:$0xff]   ;;  %v3473_v12 = vld [vmem:[%s3613_s26 + $0x10] sm:$0xff]  }
  0x12   : > { %v3470_v5 = vld [vmem:[%s3613_s26 + $0x100] sm:$0xff]   ;;  %3293 = vmatprep.mubr.bf16.mxu0 %v3469_v4  ;;  %v3472_v11 = vld [vmem:[%s3613_s26 + $0x108] sm:$0xff]   ;;  %v3474_v13 = vld [vmem:[%s3613_s26 + $0x110] sm:$0xff]  }
  0x13   : > { %3357 = vmatprep.mubr.bf16.mxu1 %v3470_v5  ;;  %v3475_v14 = vld [vmem:[%s3613_s26 + $0x18] sm:$0xff]   ;;  %v3477_v16 = vld [vmem:[%s3613_s26 + $0x20] sm:$0xff]   ;;  %v3479_v18 = vld [vmem:[%s3613_s26 + $0x28] sm:$0xff]  }
  0x14   : > { %3284 = vmatpush3.bf16.msra.mxu0 %v3464_v3  ;;  %3432 = vmatpush3.bf16.msra.mxu1 %v3464_v3  ;;  %v3476_v15 = vld [vmem:[%s3613_s26 + $0x118] sm:$0xff]   ;;  %v3478_v17 = vld [vmem:[%s3613_s26 + $0x120] sm:$0xff]   ;;  %v3480_v19 = vld [vmem:[%s3613_s26 + $0x128] sm:$0xff]  }
  0x15   : > { %3285 = vmatprep.subr.bf16.mxu0 %v3465_v6  ;;  %3425 = vmatprep.subr.bf16.mxu1 %v3465_v6  ;;  %v3481_v20 = vld [vmem:[%s3613_s26 + $0x30] sm:$0xff]   ;;  %v3483_v22 = vld [vmem:[%s3613_s26 + $0x38] sm:$0xff]   ;;  %v3485_v24 = vld [vmem:[%s3613_s26 + $0x40] sm:$0xff]  }
  0x16   : > { %v3482_v21 = vld [vmem:[%s3613_s26 + $0x130] sm:$0xff]   ;;  %v3484_v23 = vld [vmem:[%s3613_s26 + $0x138] sm:$0xff]   ;;  %v3486_v25 = vld [vmem:[%s3613_s26 + $0x140] sm:$0xff]  }
  0x17   : > { %v3487_v26 = vld [vmem:[%s3613_s26 + $0x48] sm:$0xff]   ;;  %v3489_v28 = vld [vmem:[%s3613_s26 + $0x50] sm:$0xff]   ;;  %v3491_v30 = vld [vmem:[%s3613_s26 + $0x58] sm:$0xff]  }
  0x18   : > { %3286 = vmatpush3.bf16.msra.mxu0 %v3465_v6  ;;  %3433 = vmatpush3.bf16.msra.mxu1 %v3465_v6  ;;  %v3488_v27 = vld [vmem:[%s3613_s26 + $0x148] sm:$0xff]   ;;  %v3490_v29 = vld [vmem:[%s3613_s26 + $0x150] sm:$0xff]   ;;  %v3492_v31 = vld [vmem:[%s3613_s26 + $0x158] sm:$0xff]  }
  0x19   : > { %3287 = vmatprep.subr.bf16.mxu0 %v3466_v7  ;;  %3426 = vmatprep.subr.bf16.mxu1 %v3466_v7  ;;  %v3493_v32 = vld [vmem:[%s3613_s26 + $0x60] sm:$0xff]   ;;  %v3495_v34 = vld [vmem:[%s3613_s26 + $0x68] sm:$0xff]   ;;  %v3497_v36 = vld [vmem:[%s3613_s26 + $0x70] sm:$0xff]  }
  0x1a   : > { %v3494_v33 = vld [vmem:[%s3613_s26 + $0x160] sm:$0xff]   ;;  %v3496_v35 = vld [vmem:[%s3613_s26 + $0x168] sm:$0xff]   ;;  %v3498_v37 = vld [vmem:[%s3613_s26 + $0x170] sm:$0xff]  }
  0x1b   : > { %v3499_v38 = vld [vmem:[%s3613_s26 + $0x78] sm:$0xff]   ;;  %v3501_v40 = vld [vmem:[%s3613_s26 + $0x80] sm:$0xff]   ;;  %v3503_v42 = vld [vmem:[%s3613_s26 + $0x88] sm:$0xff]  }
  0x1c   : > { %3288 = vmatpush3.bf16.msra.mxu0 %v3466_v7  ;;  %3434 = vmatpush3.bf16.msra.mxu1 %v3466_v7  ;;  %v3500_v39 = vld [vmem:[%s3613_s26 + $0x178] sm:$0xff]   ;;  %v3502_v41 = vld [vmem:[%s3613_s26 + $0x180] sm:$0xff]   ;;  %v3504_v43 = vld [vmem:[%s3613_s26 + $0x188] sm:$0xff]  }
  0x1d   : > { %3289 = vmatprep.subr.bf16.mxu0 %v3467_v8  ;;  %3427 = vmatprep.subr.bf16.mxu1 %v3467_v8  ;;  %v3505_v44 = vld [vmem:[%s3613_s26 + $0x90] sm:$0xff]   ;;  %v3507_v46 = vld [vmem:[%s3613_s26 + $0x98] sm:$0xff]   ;;  %v3509_v48 = vld [vmem:[%s3613_s26 + $0xa0] sm:$0xff]  }
  0x1e   : > { %v3506_v45 = vld [vmem:[%s3613_s26 + $0x190] sm:$0xff]   ;;  %v3508_v47 = vld [vmem:[%s3613_s26 + $0x198] sm:$0xff]   ;;  %v3510_v49 = vld [vmem:[%s3613_s26 + $0x1a0] sm:$0xff]  }
  0x1f   : > { %v3511_v50 = vld [vmem:[%s3613_s26 + $0xa8] sm:$0xff]   ;;  %v3513_v52 = vld [vmem:[%s3613_s26 + $0xb0] sm:$0xff]   ;;  %v3515_v54 = vld [vmem:[%s3613_s26 + $0xb8] sm:$0xff]  }
  0x20   : > { %3290 = vmatpush3.bf16.msra.mxu0 %v3467_v8  ;;  %3435 = vmatpush3.bf16.msra.mxu1 %v3467_v8  ;;  %v3512_v51 = vld [vmem:[%s3613_s26 + $0x1a8] sm:$0xff]   ;;  %v3514_v53 = vld [vmem:[%s3613_s26 + $0x1b0] sm:$0xff]   ;;  %v3516_v55 = vld [vmem:[%s3613_s26 + $0x1b8] sm:$0xff]  }
  0x21   : > { %3291 = vmatprep.subr.bf16.mxu0 %v3468_v9  ;;  %3428 = vmatprep.subr.bf16.mxu1 %v3468_v9  ;;  %v3517_v56 = vld [vmem:[%s3613_s26 + $0xc0] sm:$0xff]   ;;  %v3519_v58 = vld [vmem:[%s3613_s26 + $0xc8] sm:$0xff]   ;;  %v3521_v60 = vld [vmem:[%s3613_s26 + $0xd0] sm:$0xff]  }
  0x22   : > { %v3518_v57 = vld [vmem:[%s3613_s26 + $0x1c0] sm:$0xff]   ;;  %v3520_v59 = vld [vmem:[%s3613_s26 + $0x1c8] sm:$0xff]   ;;  %v3522_v61 = vld [vmem:[%s3613_s26 + $0x1d0] sm:$0xff]  }
  0x23   : > { %v3523_v62 = vld [vmem:[%s3613_s26 + $0xd8] sm:$0xff]   ;;  %v3525_v0 = vld [vmem:[%s3613_s26 + $0xe0] sm:$0xff]   ;;  %v3527_v2 = vld [vmem:[%s3613_s26 + $0xe8] sm:$0xff]  }
  0x24   : > { %3292 = vmatpush3.bf16.msra.mxu0 %v3468_v9  ;;  %3436 = vmatpush3.bf16.msra.mxu1 %v3468_v9  ;;  %v3524_v63 = vld [vmem:[%s3613_s26 + $0x1d8] sm:$0xff]   ;;  %v3526_v1 = vld [vmem:[%s3613_s26 + $0x1e0] sm:$0xff]   ;;  %v3528_v3 = vld [vmem:[%s3613_s26 + $0x1e8] sm:$0xff]  }
  0x25   : > { %v3529_v4 = vld [vmem:[%s3613_s26 + $0xf0] sm:$0xff]   ;;  %v3531_v6 = vld [vmem:[%s3613_s26 + $0xf8] sm:$0xff]   ;;  %v3697_v8 = vld [vmem:[%s4049_s2] ss:$0 sm:$0xff] }
  0x26   : > { %v3530_v5 = vld [vmem:[%s3613_s26 + $0x1f0] sm:$0xff]   ;;  %v3532_v7 = vld [vmem:[%s3613_s26 + $0x1f8] sm:$0xff]  }
  0x27   : > { %3294 = vmatmul.mubr.bf16.vlgmr.msra.gmra.mrb[0].mxu0 %v3471_v10  ;;  %3358 = vmatmul.mubr.bf16.vlgmr.msra.gmra.mrb[0].mxu1 %v3472_v11 }
  0x28   : > { %3297 = vmatprep.mubr.bf16.mxu0 %v3473_v12  ;;  %3361 = vmatprep.mubr.bf16.mxu1 %v3474_v13 }
  0x2f   : > { %3298 = vmatmul.mubr.bf16.gmra.mrb[4].mxu0 %v3475_v14  ;;  %3362 = vmatmul.mubr.bf16.gmra.mrb[4].mxu1 %v3476_v15 }
  0x30   : > { %3301 = vmatprep.mubr.bf16.mxu0 %v3477_v16  ;;  %3365 = vmatprep.mubr.bf16.mxu1 %v3478_v17 }
  0x37   : > { %3302 = vmatmul.mubr.bf16.gmra.mrb[8].mxu0 %v3479_v18  ;;  %3366 = vmatmul.mubr.bf16.gmra.mrb[8].mxu1 %v3480_v19 }
  0x38   : > { %3305 = vmatprep.mubr.bf16.mxu0 %v3481_v20  ;;  %3369 = vmatprep.mubr.bf16.mxu1 %v3482_v21 }
  0x3f   : > { %3306 = vmatmul.mubr.bf16.gmra.mrb[12].mxu0 %v3483_v22  ;;  %3370 = vmatmul.mubr.bf16.gmra.mrb[12].mxu1 %v3484_v23 }
  0x40   : > { %3309 = vmatprep.mubr.bf16.mxu0 %v3485_v24  ;;  %3373 = vmatprep.mubr.bf16.mxu1 %v3486_v25 }
  0x47   : > { %3310 = vmatmul.mubr.bf16.gmra.mrb[16].mxu0 %v3487_v26  ;;  %3374 = vmatmul.mubr.bf16.gmra.mrb[16].mxu1 %v3488_v27 }
  0x48   : > { %3313 = vmatprep.mubr.bf16.mxu0 %v3489_v28  ;;  %3377 = vmatprep.mubr.bf16.mxu1 %v3490_v29 }
  0x4f   : > { %3314 = vmatmul.mubr.bf16.gmra.mrb[20].mxu0 %v3491_v30  ;;  %3378 = vmatmul.mubr.bf16.gmra.mrb[20].mxu1 %v3492_v31 }
  0x50   : > { %3317 = vmatprep.mubr.bf16.mxu0 %v3493_v32  ;;  %3381 = vmatprep.mubr.bf16.mxu1 %v3494_v33 }
  0x57   : > { %3318 = vmatmul.mubr.bf16.gmra.mrb[24].mxu0 %v3495_v34  ;;  %3382 = vmatmul.mubr.bf16.gmra.mrb[24].mxu1 %v3496_v35 }
  0x58   : > { %3321 = vmatprep.mubr.bf16.mxu0 %v3497_v36  ;;  %3385 = vmatprep.mubr.bf16.mxu1 %v3498_v37 }
  0x5f   : > { %3322 = vmatmul.mubr.bf16.gmra.mrb[28].mxu0 %v3499_v38  ;;  %3386 = vmatmul.mubr.bf16.gmra.mrb[28].mxu1 %v3500_v39 }
  0x60   : > { %3325 = vmatprep.mubr.bf16.mxu0 %v3501_v40  ;;  %3389 = vmatprep.mubr.bf16.mxu1 %v3502_v41 }
  0x67   : > { %3326 = vmatmul.mubr.bf16.gmra.mrb[32].mxu0 %v3503_v42  ;;  %3390 = vmatmul.mubr.bf16.gmra.mrb[32].mxu1 %v3504_v43 }
  0x68   : > { %3329 = vmatprep.mubr.bf16.mxu0 %v3505_v44  ;;  %3393 = vmatprep.mubr.bf16.mxu1 %v3506_v45 }
  0x6f   : > { %3330 = vmatmul.mubr.bf16.gmra.mrb[36].mxu0 %v3507_v46  ;;  %3394 = vmatmul.mubr.bf16.gmra.mrb[36].mxu1 %v3508_v47 }
  0x70   : > { %3333 = vmatprep.mubr.bf16.mxu0 %v3509_v48  ;;  %3397 = vmatprep.mubr.bf16.mxu1 %v3510_v49 }
  0x77   : > { %3334 = vmatmul.mubr.bf16.gmra.mrb[40].mxu0 %v3511_v50  ;;  %3398 = vmatmul.mubr.bf16.gmra.mrb[40].mxu1 %v3512_v51 }
  0x78   : > { %3337 = vmatprep.mubr.bf16.mxu0 %v3513_v52  ;;  %3401 = vmatprep.mubr.bf16.mxu1 %v3514_v53 }
  0x7f   : > { %3338 = vmatmul.mubr.bf16.gmra.mrb[44].mxu0 %v3515_v54  ;;  %3402 = vmatmul.mubr.bf16.gmra.mrb[44].mxu1 %v3516_v55 }
  0x80   : > { %3341 = vmatprep.mubr.bf16.mxu0 %v3517_v56  ;;  %3405 = vmatprep.mubr.bf16.mxu1 %v3518_v57 }
  0x87   : > { %3342 = vmatmul.mubr.bf16.gmra.mrb[48].mxu0 %v3519_v58  ;;  %3406 = vmatmul.mubr.bf16.gmra.mrb[48].mxu1 %v3520_v59 }
  0x88   : > { %3345 = vmatprep.mubr.bf16.mxu0 %v3521_v60  ;;  %3409 = vmatprep.mubr.bf16.mxu1 %v3522_v61 }
  0x8f   : > { %3346 = vmatmul.mubr.bf16.gmra.mrb[52].mxu0 %v3523_v62  ;;  %3410 = vmatmul.mubr.bf16.gmra.mrb[52].mxu1 %v3524_v63 }
  0x90   : > { %3349 = vmatprep.mubr.bf16.mxu0 %v3525_v0  ;;  %3413 = vmatprep.mubr.bf16.mxu1 %v3526_v1 }
  0x97   : > { %3350 = vmatmul.mubr.bf16.gmra.mrb[56].mxu0 %v3527_v2  ;;  %3414 = vmatmul.mubr.bf16.gmra.mrb[56].mxu1 %v3528_v3 }
  0x98   : > { %3353 = vmatprep.mubr.bf16.mxu0 %v3529_v4  ;;  %3417 = vmatprep.mubr.bf16.mxu1 %v3530_v5 }
  0x9f   : > { %3354 = vmatmul.mubr.bf16.gmra.mrb[60].mxu0 %v3531_v6  ;;  %3418 = vmatmul.mubr.bf16.gmra.mrb[60].mxu1 %v3532_v7 }
  0xfa   : > { %v3295_v9 = vpop.f32.mrb[0].mxu0  ;;  %v3359_v10 = vpop.f32.mrb[0].mxu1 }
  0xfb   : > { %v852_v11 = vadd.f32 %v3295_v9, %v3697_v8  ;;  %v1108_v12 = vadd.f32 %v3359_v10, %v3697_v8  ;;  %v843_v13 = vpop.f32.mrb[1].mxu0  ;;  %v1099_v14 = vpop.f32.mrb[1].mxu1 }
  0xfc   : > { %v844_v15 = vadd.f32 %v3697_v8, %v843_v13  ;;  %v1100_v16 = vadd.f32 %v3697_v8, %v1099_v14  ;;  %v3296_v17 = vpop.f32.mrb[2].mxu0  ;;  %v3360_v18 = vpop.f32.mrb[2].mxu1 }
  0xfd   : > { %vm1356_vm0 = vcmp.ge.f32.partialorder %v852_v11, 0.0  ;;  %v1484_v19 = vmul.f32 0.2, %v852_v11  ;;  %vm1420_vm1 = vcmp.ge.f32.partialorder %v1108_v12, 0.0  ;;  %v1548_v20 = vmul.f32 0.2, %v1108_v12 }
  0xfe   : > { %vm1354_vm2 = vcmp.ge.f32.partialorder %v844_v15, 0.0  ;;  %v1482_v21 = vmul.f32 0.2, %v844_v15  ;;  %vm1418_vm3 = vcmp.ge.f32.partialorder %v1100_v16, 0.0  ;;  %v1546_v22 = vmul.f32 0.2, %v1100_v16 }
  0xff   : > { %v855_v23 = vadd.f32 %v3296_v17, %v3697_v8  ;;  %v1111_v24 = vadd.f32 %v3360_v18, %v3697_v8  ;;  %v846_v25 = vpop.f32.mrb[3].mxu0  ;;  %v1102_v26 = vpop.f32.mrb[3].mxu1  ;;  %v1612_v27 = vsel %vm1356_vm0, %v852_v11, %v1484_v19  ;;  %v1676_v28 = vsel %vm1420_vm1, %v1108_v12, %v1548_v20 }
 0x100   : > { %v847_v29 = vadd.f32 %v3697_v8, %v846_v25  ;;  %v1103_v30 = vadd.f32 %v3697_v8, %v1102_v26  ;;  %v1610_v35 = vsel %vm1354_vm2, %v844_v15, %v1482_v21  ;;  %v1674_v36 = vsel %vm1418_vm3, %v1100_v16, %v1546_v22 }
 0x101   : > { %vm1357_vm4 = vcmp.ge.f32.partialorder %v855_v23, 0.0  ;;  %v1485_v31 = vmul.f32 0.2, %v855_v23  ;;  %vm1421_vm5 = vcmp.ge.f32.partialorder %v1111_v24, 0.0  ;;  %v1549_v32 = vmul.f32 0.2, %v1111_v24 }
 0x102   : > { %vm1355_vm6 = vcmp.ge.f32.partialorder %v847_v29, 0.0  ;;  %v1483_v33 = vmul.f32 0.2, %v847_v29  ;;  %vm1419_vm7 = vcmp.ge.f32.partialorder %v1103_v30, 0.0  ;;  %v1547_v34 = vmul.f32 0.2, %v1103_v30 }
 0x103   : > { %v1613_v37 = vsel %vm1357_vm4, %v855_v23, %v1485_v31  ;;  %v1677_v38 = vsel %vm1421_vm5, %v1111_v24, %v1549_v32  ;;  %v3299_v39 = vpop.f32.mrb[4].mxu0  ;;  %v3363_v40 = vpop.f32.mrb[4].mxu1 }
 0x104   : > { %v2830_v41 = vpack.c.bf16 %v1613_v37, %v1612_v27  ;;  %v2990_v42 = vpack.c.bf16 %v1677_v38, %v1676_v28  ;;  %v1611_v43 = vsel %vm1355_vm6, %v847_v29, %v1483_v33  ;;  %v1675_v44 = vsel %vm1419_vm7, %v1103_v30, %v1547_v34  ;;  %v859_v45 = vpop.f32.mrb[5].mxu0  ;;  %v1115_v46 = vpop.f32.mrb[5].mxu1 }
 0x105   : > { %v2825_v47 = vpack.c.bf16 %v1611_v43, %v1610_v35  ;;  %v2985_v48 = vpack.c.bf16 %v1675_v44, %v1674_v36  ;;  %v868_v49 = vadd.f32 %v3299_v39, %v3697_v8  ;;  %v1124_v50 = vadd.f32 %v3363_v40, %v3697_v8  ;;  %v3300_v51 = vpop.f32.mrb[6].mxu0  ;;  %v3364_v52 = vpop.f32.mrb[6].mxu1 }
 0x106   : > { %3142 = vst [vmem:[%s3714_s17 + $0x8] sm:$0xff] %v2830_v41   ;;  %3174 = vst [vmem:[%s3714_s17 + $0x108] sm:$0xff] %v2990_v42   ;;  %v860_v53 = vadd.f32 %v3697_v8, %v859_v45  ;;  %v1116_v54 = vadd.f32 %v3697_v8, %v1115_v46  ;;  %v871_v55 = vadd.f32 %v3300_v51, %v3697_v8  ;;  %v862_v57 = vpop.f32.mrb[7].mxu0  ;;  %v1118_v58 = vpop.f32.mrb[7].mxu1 }
 0x107   : > { %v1127_v56 = vadd.f32 %v3364_v52, %v3697_v8  ;;  %2826 = vst [vmem:[%s3714_s17] sm:$0xff] %v2825_v47   ;;  %3173 = vst [vmem:[%s3714_s17 + $0x100] sm:$0xff] %v2985_v48   ;;  %vm1360_vm8 = vcmp.ge.f32.partialorder %v868_v49, 0.0  ;;  %v1488_v59 = vmul.f32 0.2, %v868_v49  ;;  %vm1424_vm9 = vcmp.ge.f32.partialorder %v1124_v50, 0.0 }
 0x108   : > { %v1552_v60 = vmul.f32 0.2, %v1124_v50  ;;  %vm1358_vm10 = vcmp.ge.f32.partialorder %v860_v53, 0.0  ;;  %v1486_v61 = vmul.f32 0.2, %v860_v53  ;;  %vm1422_vm11 = vcmp.ge.f32.partialorder %v1116_v54, 0.0 }
 0x109   : > { %v1550_v62 = vmul.f32 0.2, %v1116_v54  ;;  %v1616_v63 = vsel %vm1360_vm8, %v868_v49, %v1488_v59  ;;  %vm1361_vm12 = vcmp.ge.f32.partialorder %v871_v55, 0.0  ;;  %v1489_v1 = vmul.f32 0.2, %v871_v55 }
 0x10a   : > { %v1680_v0 = vsel %vm1424_vm9, %v1124_v50, %v1552_v60  ;;  %v1614_v2 = vsel %vm1358_vm10, %v860_v53, %v1486_v61  ;;  %vm1425_vm13 = vcmp.ge.f32.partialorder %v1127_v56, 0.0  ;;  %v1553_v4 = vmul.f32 0.2, %v1127_v56  ;;  %v3303_v5 = vpop.f32.mrb[8].mxu0  ;;  %v3367_v6 = vpop.f32.mrb[8].mxu1 }
 0x10b   : > { %v1678_v3 = vsel %vm1422_vm11, %v1116_v54, %v1550_v62  ;;  %v1617_v7 = vsel %vm1361_vm12, %v871_v55, %v1489_v1  ;;  %v863_v9 = vadd.f32 %v3697_v8, %v862_v57  ;;  %v1119_v10 = vadd.f32 %v3697_v8, %v1118_v58  ;;  %v875_v12 = vpop.f32.mrb[9].mxu0  ;;  %v1131_v13 = vpop.f32.mrb[9].mxu1 }
 0x10c   : > { %v884_v11 = vadd.f32 %v3303_v5, %v3697_v8  ;;  %v2840_v14 = vpack.c.bf16 %v1617_v7, %v1616_v63  ;;  %v1681_v15 = vsel %vm1425_vm13, %v1127_v56, %v1553_v4  ;;  %v1140_v16 = vadd.f32 %v3367_v6, %v3697_v8  ;;  %v3304_v18 = vpop.f32.mrb[10].mxu0  ;;  %v3368_v19 = vpop.f32.mrb[10].mxu1 }
 0x10d   : > { %v876_v17 = vadd.f32 %v3697_v8, %v875_v12  ;;  %v3000_v20 = vpack.c.bf16 %v1681_v15, %v1680_v0  ;;  %vm1359_vm14 = vcmp.ge.f32.partialorder %v863_v9, 0.0  ;;  %v1487_v21 = vmul.f32 0.2, %v863_v9  ;;  %v878_v22 = vpop.f32.mrb[11].mxu0  ;;  %v1134_v23 = vpop.f32.mrb[11].mxu1 }
 0x10e   : > { %vm1423_vm15 = vcmp.ge.f32.partialorder %v1119_v10, 0.0  ;;  %3144 = vst [vmem:[%s3714_s17 + $0x18] sm:$0xff] %v2840_v14   ;;  %v1551_v24 = vmul.f32 0.2, %v1119_v10  ;;  %vm1364_vm0 = vcmp.ge.f32.partialorder %v884_v11, 0.0  ;;  %vm1428_vm1 = vcmp.ge.f32.partialorder %v1140_v16, 0.0 }
 0x10f   : > { %v1492_v25 = vmul.f32 0.2, %v884_v11  ;;  %3176 = vst [vmem:[%s3714_s17 + $0x118] sm:$0xff] %v3000_v20   ;;  %v1615_v26 = vsel %vm1359_vm14, %v863_v9, %v1487_v21  ;;  %v1556_v27 = vmul.f32 0.2, %v1140_v16  ;;  %vm1362_vm2 = vcmp.ge.f32.partialorder %v876_v17, 0.0 }
 0x110   : > { %v1490_v28 = vmul.f32 0.2, %v876_v17  ;;  %v2835_v29 = vpack.c.bf16 %v1615_v26, %v1614_v2  ;;  %v1679_v30 = vsel %vm1423_vm15, %v1119_v10, %v1551_v24  ;;  %v1132_v32 = vadd.f32 %v3697_v8, %v1131_v13 }
 0x111   : > { %v1620_v31 = vsel %vm1364_vm0, %v884_v11, %v1492_v25  ;;  %v2995_v33 = vpack.c.bf16 %v1679_v30, %v1678_v3  ;;  %v1684_v34 = vsel %vm1428_vm1, %v1140_v16, %v1556_v27  ;;  %v887_v36 = vadd.f32 %v3304_v18, %v3697_v8 }
 0x112   : > { %v1618_v35 = vsel %vm1362_vm2, %v876_v17, %v1490_v28  ;;  %3143 = vst [vmem:[%s3714_s17 + $0x10] sm:$0xff] %v2835_v29   ;;  %vm1426_vm3 = vcmp.ge.f32.partialorder %v1132_v32, 0.0  ;;  %v1554_v37 = vmul.f32 0.2, %v1132_v32  ;;  %v1143_v38 = vadd.f32 %v3368_v19, %v3697_v8  ;;  %v3307_v40 = vpop.f32.mrb[12].mxu0  ;;  %v3371_v41 = vpop.f32.mrb[12].mxu1 }
 0x113   : > { %v879_v39 = vadd.f32 %v3697_v8, %v878_v22  ;;  %3175 = vst [vmem:[%s3714_s17 + $0x110] sm:$0xff] %v2995_v33   ;;  %vm1365_vm4 = vcmp.ge.f32.partialorder %v887_v36, 0.0  ;;  %v1493_v42 = vmul.f32 0.2, %v887_v36  ;;  %v1135_v43 = vadd.f32 %v3697_v8, %v1134_v23  ;;  %v891_v45 = vpop.f32.mrb[13].mxu0  ;;  %v1147_v46 = vpop.f32.mrb[13].mxu1 }
 0x114   : > { %v900_v44 = vadd.f32 %v3307_v40, %v3697_v8  ;;  %v1682_v47 = vsel %vm1426_vm3, %v1132_v32, %v1554_v37  ;;  %vm1429_vm5 = vcmp.ge.f32.partialorder %v1143_v38, 0.0  ;;  %v1557_v48 = vmul.f32 0.2, %v1143_v38  ;;  %v3308_v49 = vpop.f32.mrb[14].mxu0  ;;  %v3372_v50 = vpop.f32.mrb[14].mxu1 }
 0x115   : > { %vm1363_vm6 = vcmp.ge.f32.partialorder %v879_v39, 0.0  ;;  %v1621_v51 = vsel %vm1365_vm4, %v887_v36, %v1493_v42  ;;  %v1491_v52 = vmul.f32 0.2, %v879_v39  ;;  %vm1427_vm7 = vcmp.ge.f32.partialorder %v1135_v43, 0.0  ;;  %v894_v54 = vpop.f32.mrb[15].mxu0  ;;  %v1150_v58 = vpop.f32.mrb[15].mxu1 }
 0x116   : > { %v1555_v53 = vmul.f32 0.2, %v1135_v43  ;;  %v2850_v55 = vpack.c.bf16 %v1621_v51, %v1620_v31  ;;  %v1685_v56 = vsel %vm1429_vm5, %v1143_v38, %v1557_v48  ;;  %vm1368_vm8 = vcmp.ge.f32.partialorder %v900_v44, 0.0 }
 0x117   : > { %v1496_v57 = vmul.f32 0.2, %v900_v44  ;;  %v3010_v59 = vpack.c.bf16 %v1685_v56, %v1684_v34  ;;  %v1619_v60 = vsel %vm1363_vm6, %v879_v39, %v1491_v52  ;;  %v1156_v62 = vadd.f32 %v3371_v41, %v3697_v8 }
 0x118   : > { %v1683_v61 = vsel %vm1427_vm7, %v1135_v43, %v1555_v53  ;;  %3146 = vst [vmem:[%s3714_s17 + $0x28] sm:$0xff] %v2850_v55   ;;  %v2845_v63 = vpack.c.bf16 %v1619_v60, %v1618_v35  ;;  %v892_v2 = vadd.f32 %v3697_v8, %v891_v45  ;;  %v1148_v4 = vadd.f32 %v3697_v8, %v1147_v46 }
 0x119   : > { %v3005_v0 = vpack.c.bf16 %v1683_v61, %v1682_v47  ;;  %v1624_v1 = vsel %vm1368_vm8, %v900_v44, %v1496_v57  ;;  %3178 = vst [vmem:[%s3714_s17 + $0x128] sm:$0xff] %v3010_v59   ;;  %vm1432_vm9 = vcmp.ge.f32.partialorder %v1156_v62, 0.0  ;;  %v1560_v3 = vmul.f32 0.2, %v1156_v62 }
 0x11a   : > { %v903_v5 = vadd.f32 %v3308_v49, %v3697_v8  ;;  %3145 = vst [vmem:[%s3714_s17 + $0x20] sm:$0xff] %v2845_v63   ;;  %vm1366_vm10 = vcmp.ge.f32.partialorder %v892_v2, 0.0  ;;  %v1494_v6 = vmul.f32 0.2, %v892_v2  ;;  %v1159_v7 = vadd.f32 %v3372_v50, %v3697_v8  ;;  %v3311_v10 = vpop.f32.mrb[16].mxu0  ;;  %v3375_v11 = vpop.f32.mrb[16].mxu1 }
 0x11b   : > { %3177 = vst [vmem:[%s3714_s17 + $0x120] sm:$0xff] %v3005_v0   ;;  %v895_v9 = vadd.f32 %v3697_v8, %v894_v54  ;;  %v1688_v12 = vsel %vm1432_vm9, %v1156_v62, %v1560_v3  ;;  %vm1430_vm11 = vcmp.ge.f32.partialorder %v1148_v4, 0.0  ;;  %v1558_v13 = vmul.f32 0.2, %v1148_v4  ;;  %v907_v14 = vpop.f32.mrb[17].mxu0  ;;  %v1163_v15 = vpop.f32.mrb[17].mxu1 }
 0x11c   : > { %vm1369_vm12 = vcmp.ge.f32.partialorder %v903_v5, 0.0  ;;  %v1622_v16 = vsel %vm1366_vm10, %v892_v2, %v1494_v6  ;;  %v1497_v17 = vmul.f32 0.2, %v903_v5  ;;  %vm1433_vm13 = vcmp.ge.f32.partialorder %v1159_v7, 0.0  ;;  %v3312_v19 = vpop.f32.mrb[18].mxu0  ;;  %v3376_v23 = vpop.f32.mrb[18].mxu1 }
 0x11d   : > { %v1561_v18 = vmul.f32 0.2, %v1159_v7  ;;  %v1686_v20 = vsel %vm1430_vm11, %v1148_v4, %v1558_v13  ;;  %vm1367_vm14 = vcmp.ge.f32.partialorder %v895_v9, 0.0  ;;  %v1495_v21 = vmul.f32 0.2, %v895_v9  ;;  %v910_v24 = vpop.f32.mrb[19].mxu0 }
 0x11e   : > { %v1151_v22 = vadd.f32 %v3697_v8, %v1150_v58  ;;  %v1625_v25 = vsel %vm1369_vm12, %v903_v5, %v1497_v17  ;;  %v916_v27 = vadd.f32 %v3311_v10, %v3697_v8  ;;  %v1172_v28 = vadd.f32 %v3375_v11, %v3697_v8  ;;  %v1166_v29 = vpop.f32.mrb[19].mxu1 }
 0x11f   : > { %v1689_v26 = vsel %vm1433_vm13, %v1159_v7, %v1561_v18  ;;  %v2860_v30 = vpack.c.bf16 %v1625_v25, %v1624_v1  ;;  %v1623_v32 = vsel %vm1367_vm14, %v895_v9, %v1495_v21  ;;  %v908_v37 = vadd.f32 %v3697_v8, %v907_v14 }
 0x120   : > { %v3020_v31 = vpack.c.bf16 %v1689_v26, %v1688_v12  ;;  %vm1431_vm15 = vcmp.ge.f32.partialorder %v1151_v22, 0.0  ;;  %v2855_v33 = vpack.c.bf16 %v1623_v32, %v1622_v16  ;;  %v1559_v34 = vmul.f32 0.2, %v1151_v22 }
 0x121   : > { %vm1372_vm0 = vcmp.ge.f32.partialorder %v916_v27, 0.0  ;;  %v1500_v35 = vmul.f32 0.2, %v916_v27  ;;  %3148 = vst [vmem:[%s3714_s17 + $0x38] sm:$0xff] %v2860_v30   ;;  %vm1436_vm1 = vcmp.ge.f32.partialorder %v1172_v28, 0.0  ;;  %v1164_v38 = vadd.f32 %v3697_v8, %v1163_v15 }
 0x122   : > { %3180 = vst [vmem:[%s3714_s17 + $0x138] sm:$0xff] %v3020_v31   ;;  %v1564_v36 = vmul.f32 0.2, %v1172_v28  ;;  %3147 = vst [vmem:[%s3714_s17 + $0x30] sm:$0xff] %v2855_v33   ;;  %v1687_v39 = vsel %vm1431_vm15, %v1151_v22, %v1559_v34  ;;  %v919_v41 = vadd.f32 %v3312_v19, %v3697_v8  ;;  %v1175_v42 = vadd.f32 %v3376_v23, %v3697_v8  ;;  %v3315_v43 = vpop.f32.mrb[20].mxu0  ;;  %v3379_v44 = vpop.f32.mrb[20].mxu1 }
 0x123   : > { %v1628_v40 = vsel %vm1372_vm0, %v916_v27, %v1500_v35  ;;  %v3015_v45 = vpack.c.bf16 %v1687_v39, %v1686_v20  ;;  %vm1370_vm2 = vcmp.ge.f32.partialorder %v908_v37, 0.0  ;;  %v1498_v47 = vmul.f32 0.2, %v908_v37  ;;  %v923_v48 = vpop.f32.mrb[21].mxu0  ;;  %v1179_v49 = vpop.f32.mrb[21].mxu1 }
 0x124   : > { %v1692_v46 = vsel %vm1436_vm1, %v1172_v28, %v1564_v36  ;;  %vm1434_vm3 = vcmp.ge.f32.partialorder %v1164_v38, 0.0  ;;  %v1562_v50 = vmul.f32 0.2, %v1164_v38  ;;  %vm1373_vm4 = vcmp.ge.f32.partialorder %v919_v41, 0.0  ;;  %v3316_v55 = vpop.f32.mrb[22].mxu0  ;;  %v3380_v56 = vpop.f32.mrb[22].mxu1 }
 0x125   : > { %v1501_v51 = vmul.f32 0.2, %v919_v41  ;;  %3179 = vst [vmem:[%s3714_s17 + $0x130] sm:$0xff] %v3015_v45   ;;  %v1626_v52 = vsel %vm1370_vm2, %v908_v37, %v1498_v47  ;;  %vm1437_vm5 = vcmp.ge.f32.partialorder %v1175_v42, 0.0  ;;  %v1565_v53 = vmul.f32 0.2, %v1175_v42 }
 0x126   : > { %v911_v54 = vadd.f32 %v3697_v8, %v910_v24  ;;  %v1690_v57 = vsel %vm1434_vm3, %v1164_v38, %v1562_v50  ;;  %v1167_v59 = vadd.f32 %v3697_v8, %v1166_v29  ;;  %v932_v60 = vadd.f32 %v3315_v43, %v3697_v8  ;;  %v926_v61 = vpop.f32.mrb[23].mxu0  ;;  %v1182_v62 = vpop.f32.mrb[23].mxu1 }
 0x127   : > { %v1629_v58 = vsel %vm1373_vm4, %v919_v41, %v1501_v51  ;;  %v1693_v0 = vsel %vm1437_vm5, %v1175_v42, %v1565_v53  ;;  %v1188_v6 = vadd.f32 %v3379_v44, %v3697_v8  ;;  %v924_v7 = vadd.f32 %v3697_v8, %v923_v48 }
 0x128   : > { %v2870_v63 = vpack.c.bf16 %v1629_v58, %v1628_v40  ;;  %vm1371_vm6 = vcmp.ge.f32.partialorder %v911_v54, 0.0  ;;  %v1499_v1 = vmul.f32 0.2, %v911_v54  ;;  %v3030_v2 = vpack.c.bf16 %v1693_v0, %v1692_v46 }
 0x129   : > { %vm1435_vm7 = vcmp.ge.f32.partialorder %v1167_v59, 0.0  ;;  %v1563_v3 = vmul.f32 0.2, %v1167_v59  ;;  %vm1376_vm8 = vcmp.ge.f32.partialorder %v932_v60, 0.0  ;;  %v1504_v5 = vmul.f32 0.2, %v932_v60 }
 0x12a   : > { %3150 = vst [vmem:[%s3714_s17 + $0x48] sm:$0xff] %v2870_v63   ;;  %v1627_v4 = vsel %vm1371_vm6, %v911_v54, %v1499_v1  ;;  %3182 = vst [vmem:[%s3714_s17 + $0x148] sm:$0xff] %v3030_v2   ;;  %v1180_v11 = vadd.f32 %v3697_v8, %v1179_v49  ;;  %v935_v12 = vadd.f32 %v3316_v55, %v3697_v8  ;;  %v3319_v13 = vpop.f32.mrb[24].mxu0  ;;  %v3383_v14 = vpop.f32.mrb[24].mxu1  ;;  %vm1440_vm9 = vcmp.ge.f32.partialorder %v1188_v6, 0.0 }
 0x12b   : > { %v2865_v9 = vpack.c.bf16 %v1627_v4, %v1626_v52  ;;  %v1691_v10 = vsel %vm1435_vm7, %v1167_v59, %v1563_v3  ;;  %v1632_v16 = vsel %vm1376_vm8, %v932_v60, %v1504_v5  ;;  %v1568_v17 = vmul.f32 0.2, %v1188_v6  ;;  %v939_v18 = vpop.f32.mrb[25].mxu0  ;;  %v1195_v19 = vpop.f32.mrb[25].mxu1 }
 0x12c   : > { %v3025_v15 = vpack.c.bf16 %v1691_v10, %v1690_v57  ;;  %vm1374_vm10 = vcmp.ge.f32.partialorder %v924_v7, 0.0  ;;  %v1502_v20 = vmul.f32 0.2, %v924_v7  ;;  %vm1438_vm11 = vcmp.ge.f32.partialorder %v1180_v11, 0.0  ;;  %v3320_v25 = vpop.f32.mrb[26].mxu0  ;;  %v3384_v26 = vpop.f32.mrb[26].mxu1 }
 0x12d   : > { %3149 = vst [vmem:[%s3714_s17 + $0x40] sm:$0xff] %v2865_v9   ;;  %v1566_v21 = vmul.f32 0.2, %v1180_v11  ;;  %v1696_v22 = vsel %vm1440_vm9, %v1188_v6, %v1568_v17  ;;  %vm1377_vm12 = vcmp.ge.f32.partialorder %v935_v12, 0.0  ;;  %v1505_v23 = vmul.f32 0.2, %v935_v12 }
 0x12e   : > { %3181 = vst [vmem:[%s3714_s17 + $0x140] sm:$0xff] %v3025_v15   ;;  %v1191_v24 = vadd.f32 %v3380_v56, %v3697_v8  ;;  %v1630_v27 = vsel %vm1374_vm10, %v924_v7, %v1502_v20  ;;  %v927_v29 = vadd.f32 %v3697_v8, %v926_v61  ;;  %v1183_v30 = vadd.f32 %v3697_v8, %v1182_v62  ;;  %v942_v31 = vpop.f32.mrb[27].mxu0  ;;  %v1198_v32 = vpop.f32.mrb[27].mxu1 }
 0x12f   : > { %v1694_v28 = vsel %vm1438_vm11, %v1180_v11, %v1566_v21  ;;  %v1633_v33 = vsel %vm1377_vm12, %v935_v12, %v1505_v23  ;;  %v948_v35 = vadd.f32 %v3319_v13, %v3697_v8  ;;  %v1204_v43 = vadd.f32 %v3383_v14, %v3697_v8 }
 0x130   : > { %vm1441_vm13 = vcmp.ge.f32.partialorder %v1191_v24, 0.0  ;;  %v1569_v34 = vmul.f32 0.2, %v1191_v24  ;;  %v2880_v36 = vpack.c.bf16 %v1633_v33, %v1632_v16  ;;  %vm1375_vm14 = vcmp.ge.f32.partialorder %v927_v29, 0.0 }
 0x131   : > { %v1503_v37 = vmul.f32 0.2, %v927_v29  ;;  %vm1439_vm15 = vcmp.ge.f32.partialorder %v1183_v30, 0.0  ;;  %v1567_v39 = vmul.f32 0.2, %v1183_v30  ;;  %vm1380_vm0 = vcmp.ge.f32.partialorder %v948_v35, 0.0 }
 0x132   : > { %v1697_v38 = vsel %vm1441_vm13, %v1191_v24, %v1569_v34  ;;  %v1508_v40 = vmul.f32 0.2, %v948_v35  ;;  %3152 = vst [vmem:[%s3714_s17 + $0x58] sm:$0xff] %v2880_v36   ;;  %v940_v44 = vadd.f32 %v3697_v8, %v939_v18  ;;  %v3323_v45 = vpop.f32.mrb[28].mxu0  ;;  %v3387_v46 = vpop.f32.mrb[28].mxu1  ;;  %v1196_v50 = vadd.f32 %v3697_v8, %v1195_v19 }
 0x133   : > { %v3040_v41 = vpack.c.bf16 %v1697_v38, %v1696_v22  ;;  %v1631_v42 = vsel %vm1375_vm14, %v927_v29, %v1503_v37  ;;  %v1695_v48 = vsel %vm1439_vm15, %v1183_v30, %v1567_v39  ;;  %v955_v51 = vpop.f32.mrb[29].mxu0  ;;  %v1211_v52 = vpop.f32.mrb[29].mxu1  ;;  %vm1444_vm1 = vcmp.ge.f32.partialorder %v1204_v43, 0.0 }
 0x134   : > { %v2875_v47 = vpack.c.bf16 %v1631_v42, %v1630_v27  ;;  %v1636_v49 = vsel %vm1380_vm0, %v948_v35, %v1508_v40  ;;  %v3035_v53 = vpack.c.bf16 %v1695_v48, %v1694_v28  ;;  %v1572_v54 = vmul.f32 0.2, %v1204_v43  ;;  %v3324_v55 = vpop.f32.mrb[30].mxu0  ;;  %v3388_v56 = vpop.f32.mrb[30].mxu1 }
 0x135   : > { %3184 = vst [vmem:[%s3714_s17 + $0x158] sm:$0xff] %v3040_v41   ;;  %vm1378_vm2 = vcmp.ge.f32.partialorder %v940_v44, 0.0  ;;  %v1506_v57 = vmul.f32 0.2, %v940_v44  ;;  %vm1442_vm3 = vcmp.ge.f32.partialorder %v1196_v50, 0.0  ;;  %v951_v59 = vadd.f32 %v3320_v25, %v3697_v8  ;;  %v958_v60 = vpop.f32.mrb[31].mxu0 }
 0x136   : > { %3151 = vst [vmem:[%s3714_s17 + $0x50] sm:$0xff] %v2875_v47   ;;  %v1570_v58 = vmul.f32 0.2, %v1196_v50  ;;  %3183 = vst [vmem:[%s3714_s17 + $0x150] sm:$0xff] %v3035_v53   ;;  %v1700_v61 = vsel %vm1444_vm1, %v1204_v43, %v1572_v54  ;;  %v1207_v62 = vadd.f32 %v3384_v26, %v3697_v8  ;;  %v943_v63 = vadd.f32 %v3697_v8, %v942_v31  ;;  %v1214_v1 = vpop.f32.mrb[31].mxu1 }
 0x137   : > { %v1199_v0 = vadd.f32 %v3697_v8, %v1198_v32  ;;  %v1634_v2 = vsel %vm1378_vm2, %v940_v44, %v1506_v57  ;;  %vm1381_vm4 = vcmp.ge.f32.partialorder %v951_v59, 0.0  ;;  %v1509_v4 = vmul.f32 0.2, %v951_v59 }
 0x138   : > { %v1698_v3 = vsel %vm1442_vm3, %v1196_v50, %v1570_v58  ;;  %vm1445_vm5 = vcmp.ge.f32.partialorder %v1207_v62, 0.0  ;;  %v1573_v5 = vmul.f32 0.2, %v1207_v62  ;;  %vm1379_vm6 = vcmp.ge.f32.partialorder %v943_v63, 0.0 }
 0x139   : > { %v1507_v6 = vmul.f32 0.2, %v943_v63  ;;  %v1637_v7 = vsel %vm1381_vm4, %v951_v59, %v1509_v4  ;;  %vm1443_vm7 = vcmp.ge.f32.partialorder %v1199_v0, 0.0  ;;  %v1571_v9 = vmul.f32 0.2, %v1199_v0 }
 0x13a   : > { %v964_v10 = vadd.f32 %v3323_v45, %v3697_v8  ;;  %v2890_v11 = vpack.c.bf16 %v1637_v7, %v1636_v49  ;;  %v1701_v12 = vsel %vm1445_vm5, %v1207_v62, %v1573_v5  ;;  %v1220_v14 = vadd.f32 %v3387_v46, %v3697_v8  ;;  %v3327_v15 = vpop.f32.mrb[32].mxu0  ;;  %v3391_v16 = vpop.f32.mrb[32].mxu1 }
 0x13b   : > { %v1635_v13 = vsel %vm1379_vm6, %v943_v63, %v1507_v6  ;;  %v3050_v17 = vpack.c.bf16 %v1701_v12, %v1700_v61  ;;  %v1699_v19 = vsel %vm1443_vm7, %v1199_v0, %v1571_v9  ;;  %v971_v20 = vpop.f32.mrb[33].mxu0  ;;  %v1227_v21 = vpop.f32.mrb[33].mxu1  ;;  %v956_v26 = vadd.f32 %v3697_v8, %v955_v51 }
 0x13c   : > { %v2885_v18 = vpack.c.bf16 %v1635_v13, %v1634_v2  ;;  %vm1384_vm8 = vcmp.ge.f32.partialorder %v964_v10, 0.0  ;;  %3154 = vst [vmem:[%s3714_s17 + $0x68] sm:$0xff] %v2890_v11   ;;  %v3045_v22 = vpack.c.bf16 %v1699_v19, %v1698_v3  ;;  %v1512_v23 = vmul.f32 0.2, %v964_v10  ;;  %v3328_v25 = vpop.f32.mrb[34].mxu0  ;;  %v3392_v30 = vpop.f32.mrb[34].mxu1 }
 0x13d   : > { %vm1448_vm9 = vcmp.ge.f32.partialorder %v1220_v14, 0.0  ;;  %v1576_v24 = vmul.f32 0.2, %v1220_v14  ;;  %3186 = vst [vmem:[%s3714_s17 + $0x168] sm:$0xff] %v3050_v17   ;;  %v1212_v27 = vadd.f32 %v3697_v8, %v1211_v52  ;;  %v967_v28 = vadd.f32 %v3324_v55, %v3697_v8  ;;  %v974_v31 = vpop.f32.mrb[35].mxu0  ;;  %v1230_v36 = vpop.f32.mrb[35].mxu1 }
 0x13e   : > { %3153 = vst [vmem:[%s3714_s17 + $0x60] sm:$0xff] %v2885_v18   ;;  %v1223_v29 = vadd.f32 %v3388_v56, %v3697_v8  ;;  %3185 = vst [vmem:[%s3714_s17 + $0x160] sm:$0xff] %v3045_v22   ;;  %v1640_v32 = vsel %vm1384_vm8, %v964_v10, %v1512_v23  ;;  %v959_v34 = vadd.f32 %v3697_v8, %v958_v60  ;;  %vm1382_vm10 = vcmp.ge.f32.partialorder %v956_v26, 0.0 }
 0x13f   : > { %v1704_v33 = vsel %vm1448_vm9, %v1220_v14, %v1576_v24  ;;  %v1215_v35 = vadd.f32 %v3697_v8, %v1214_v1  ;;  %v1510_v37 = vmul.f32 0.2, %v956_v26  ;;  %vm1446_vm11 = vcmp.ge.f32.partialorder %v1212_v27, 0.0 }
 0x140   : > { %v1574_v38 = vmul.f32 0.2, %v1212_v27  ;;  %vm1385_vm12 = vcmp.ge.f32.partialorder %v967_v28, 0.0  ;;  %v1513_v39 = vmul.f32 0.2, %v967_v28  ;;  %vm1449_vm13 = vcmp.ge.f32.partialorder %v1223_v29, 0.0 }
 0x141   : > { %v1577_v40 = vmul.f32 0.2, %v1223_v29  ;;  %v1638_v41 = vsel %vm1382_vm10, %v956_v26, %v1510_v37  ;;  %vm1383_vm14 = vcmp.ge.f32.partialorder %v959_v34, 0.0  ;;  %v1511_v43 = vmul.f32 0.2, %v959_v34 }
 0x142   : > { %v1702_v42 = vsel %vm1446_vm11, %v1212_v27, %v1574_v38  ;;  %v1641_v44 = vsel %vm1385_vm12, %v967_v28, %v1513_v39  ;;  %vm1447_vm15 = vcmp.ge.f32.partialorder %v1215_v35, 0.0  ;;  %v1575_v46 = vmul.f32 0.2, %v1215_v35  ;;  %v3331_v47 = vpop.f32.mrb[36].mxu0  ;;  %v3395_v48 = vpop.f32.mrb[36].mxu1 }
 0x143   : > { %v1705_v45 = vsel %vm1449_vm13, %v1223_v29, %v1577_v40  ;;  %v2900_v49 = vpack.c.bf16 %v1641_v44, %v1640_v32  ;;  %v1639_v51 = vsel %vm1383_vm14, %v959_v34, %v1511_v43  ;;  %v980_v52 = vadd.f32 %v3327_v15, %v3697_v8  ;;  %v3802_v53 = vpop.f32.mrb[37].mxu0  ;;  %v3804_v54 = vpop.f32.mrb[37].mxu1 }
 0x144   : > { %v3060_v50 = vpack.c.bf16 %v1705_v45, %v1704_v33  ;;  %v2895_v55 = vpack.c.bf16 %v1639_v51, %v1638_v41  ;;  %v1703_v56 = vsel %vm1447_vm15, %v1215_v35, %v1575_v46  ;;  %v1236_v57 = vadd.f32 %v3391_v16, %v3697_v8  ;;  %v3332_v59 = vpop.f32.mrb[38].mxu0  ;;  %v3396_v60 = vpop.f32.mrb[38].mxu1 }
 0x145   : > { %v972_v58 = vadd.f32 %v3697_v8, %v971_v20  ;;  %3156 = vst [vmem:[%s3714_s17 + $0x78] sm:$0xff] %v2900_v49   ;;  %v3055_v61 = vpack.c.bf16 %v1703_v56, %v1702_v42  ;;  %vm1388_vm0 = vcmp.ge.f32.partialorder %v980_v52, 0.0  ;;  %v1516_v62 = vmul.f32 0.2, %v980_v52  ;;  %v990_v0 = vpop.f32.mrb[39].mxu0  ;;  %v1246_v1 = vpop.f32.mrb[39].mxu1 }
 0x146   : > { %3188 = vst [vmem:[%s3714_s17 + $0x178] sm:$0xff] %v3060_v50   ;;  %v1228_v63 = vadd.f32 %v3697_v8, %v1227_v21  ;;  %3155 = vst [vmem:[%s3714_s17 + $0x70] sm:$0xff] %v2895_v55   ;;  %vm1452_vm1 = vcmp.ge.f32.partialorder %v1236_v57, 0.0  ;;  %v1580_v2 = vmul.f32 0.2, %v1236_v57  ;;  %v983_v6 = vadd.f32 %v3328_v25, %v3697_v8 }
 0x147   : > { %vm1386_vm2 = vcmp.ge.f32.partialorder %v972_v58, 0.0  ;;  %v1514_v3 = vmul.f32 0.2, %v972_v58  ;;  %3187 = vst [vmem:[%s3714_s17 + $0x170] sm:$0xff] %v3055_v61   ;;  %v1644_v4 = vsel %vm1388_vm0, %v980_v52, %v1516_v62  ;;  %v1239_v10 = vadd.f32 %v3392_v30, %v3697_v8 }
 0x148   : > { %vm1450_vm3 = vcmp.ge.f32.partialorder %v1228_v63, 0.0  ;;  %v1578_v5 = vmul.f32 0.2, %v1228_v63  ;;  %v1708_v7 = vsel %vm1452_vm1, %v1236_v57, %v1580_v2  ;;  %v975_v11 = vadd.f32 %v3697_v8, %v974_v31 }
 0x149   : > { %v1642_v9 = vsel %vm1386_vm2, %v972_v58, %v1514_v3  ;;  %vm1389_vm4 = vcmp.ge.f32.partialorder %v983_v6, 0.0  ;;  %v1517_v13 = vmul.f32 0.2, %v983_v6  ;;  %v1231_v14 = vadd.f32 %v3697_v8, %v1230_v36 }
 0x14a   : > { %v1706_v12 = vsel %vm1450_vm3, %v1228_v63, %v1578_v5  ;;  %vm1453_vm5 = vcmp.ge.f32.partialorder %v1239_v10, 0.0  ;;  %v1581_v15 = vmul.f32 0.2, %v1239_v10  ;;  %vm1387_vm6 = vcmp.ge.f32.partialorder %v975_v11, 0.0  ;;  %v3335_v20 = vpop.f32.mrb[40].mxu0  ;;  %v3399_v21 = vpop.f32.mrb[40].mxu1 }
 0x14b   : > { %v1515_v16 = vmul.f32 0.2, %v975_v11  ;;  %v1645_v17 = vsel %vm1389_vm4, %v983_v6, %v1517_v13  ;;  %vm1451_vm7 = vcmp.ge.f32.partialorder %v1231_v14, 0.0  ;;  %v1579_v18 = vmul.f32 0.2, %v1231_v14  ;;  %v1003_v26 = vpop.f32.mrb[41].mxu0 }
 0x14c   : > { %v996_v19 = vadd.f32 %v3331_v47, %v3697_v8  ;;  %v2910_v22 = vpack.c.bf16 %v1645_v17, %v1644_v4  ;;  %v1709_v23 = vsel %vm1453_vm5, %v1239_v10, %v1581_v15  ;;  %v1252_v25 = vadd.f32 %v3395_v48, %v3697_v8  ;;  %v1259_v27 = vpop.f32.mrb[41].mxu1  ;;  %v3819_v31 = vpop.f32.mrb[42].mxu0 }
 0x14d   : > { %v1643_v24 = vsel %vm1387_vm6, %v975_v11, %v1515_v16  ;;  %v3070_v28 = vpack.c.bf16 %v1709_v23, %v1708_v7  ;;  %v1707_v30 = vsel %vm1451_vm7, %v1231_v14, %v1579_v18  ;;  %v3821_v32 = vpop.f32.mrb[42].mxu1  ;;  %v3824_v36 = vpop.f32.mrb[43].mxu0  ;;  %v988_v37 = vadd.f32 %v3697_v8, %v3802_v53 }
 0x14e   : > { %v2905_v29 = vpack.c.bf16 %v1643_v24, %v1642_v9  ;;  %vm1392_vm8 = vcmp.ge.f32.partialorder %v996_v19, 0.0  ;;  %3158 = vst [vmem:[%s3714_s17 + $0x88] sm:$0xff] %v2910_v22   ;;  %v3065_v33 = vpack.c.bf16 %v1707_v30, %v1706_v12  ;;  %v1520_v34 = vmul.f32 0.2, %v996_v19  ;;  %v3834_v41 = vpop.f32.mrb[43].mxu1 }
 0x14f   : > { %vm1456_vm9 = vcmp.ge.f32.partialorder %v1252_v25, 0.0  ;;  %v1584_v35 = vmul.f32 0.2, %v1252_v25  ;;  %3190 = vst [vmem:[%s3714_s17 + $0x188] sm:$0xff] %v3070_v28   ;;  %v1244_v38 = vadd.f32 %v3697_v8, %v3804_v54  ;;  %v999_v39 = vadd.f32 %v3332_v59, %v3697_v8 }
 0x150   : > { %3157 = vst [vmem:[%s3714_s17 + $0x80] sm:$0xff] %v2905_v29   ;;  %v1255_v40 = vadd.f32 %v3396_v60, %v3697_v8  ;;  %3189 = vst [vmem:[%s3714_s17 + $0x180] sm:$0xff] %v3065_v33   ;;  %v1648_v42 = vsel %vm1392_vm8, %v996_v19, %v1520_v34  ;;  %v991_v44 = vadd.f32 %v3697_v8, %v990_v0  ;;  %vm1390_vm10 = vcmp.ge.f32.partialorder %v988_v37, 0.0  ;;  %v3865_v19 = vld [vmem:[%s4049_s2] ss:$0 sm:$0xff] }
 0x151   : > { %v1712_v43 = vsel %vm1456_vm9, %v1252_v25, %v1584_v35  ;;  %v1247_v45 = vadd.f32 %v3697_v8, %v1246_v1  ;;  %v1518_v46 = vmul.f32 0.2, %v988_v37  ;;  %vm1454_vm11 = vcmp.ge.f32.partialorder %v1244_v38, 0.0 }
 0x152   : > { %v1582_v47 = vmul.f32 0.2, %v1244_v38  ;;  %vm1393_vm12 = vcmp.ge.f32.partialorder %v999_v39, 0.0  ;;  %v1521_v48 = vmul.f32 0.2, %v999_v39  ;;  %vm1457_vm13 = vcmp.ge.f32.partialorder %v1255_v40, 0.0 }
 0x153   : > { %v1585_v49 = vmul.f32 0.2, %v1255_v40  ;;  %v1646_v50 = vsel %vm1390_vm10, %v988_v37, %v1518_v46  ;;  %vm1391_vm14 = vcmp.ge.f32.partialorder %v991_v44, 0.0  ;;  %v1519_v52 = vmul.f32 0.2, %v991_v44  ;;  %v3339_v53 = vpop.f32.mrb[44].mxu0 }
 0x154   : > { %v1710_v51 = vsel %vm1454_vm11, %v1244_v38, %v1582_v47  ;;  %v3403_v54 = vpop.f32.mrb[44].mxu1  ;;  %v1649_v55 = vsel %vm1393_vm12, %v999_v39, %v1521_v48  ;;  %vm1455_vm15 = vcmp.ge.f32.partialorder %v1247_v45, 0.0  ;;  %v1583_v57 = vmul.f32 0.2, %v1247_v45  ;;  %v3840_v58 = vpop.f32.mrb[45].mxu0 }
 0x155   : > { %v1713_v56 = vsel %vm1457_vm13, %v1255_v40, %v1585_v49  ;;  %v3842_v59 = vpop.f32.mrb[45].mxu1  ;;  %v2920_v60 = vpack.c.bf16 %v1649_v55, %v1648_v42  ;;  %v1647_v62 = vsel %vm1391_vm14, %v991_v44, %v1519_v52  ;;  %v1012_v63 = vadd.f32 %v3335_v20, %v3697_v8  ;;  %v3845_v0 = vpop.f32.mrb[46].mxu0 }
 0x156   : > { %v3080_v61 = vpack.c.bf16 %v1713_v56, %v1712_v43  ;;  %v3847_v1 = vpop.f32.mrb[46].mxu1  ;;  %v2915_v2 = vpack.c.bf16 %v1647_v62, %v1646_v50  ;;  %v1711_v3 = vsel %vm1455_vm15, %v1247_v45, %v1583_v57  ;;  %v1268_v4 = vadd.f32 %v3399_v21, %v3697_v8  ;;  %v3851_v6 = vpop.f32.mrb[47].mxu0 }
 0x157   : > { %v1004_v5 = vadd.f32 %v3697_v8, %v1003_v26  ;;  %v3853_v7 = vpop.f32.mrb[47].mxu1  ;;  %3160 = vst [vmem:[%s3714_s17 + $0x98] sm:$0xff] %v2920_v60   ;;  %v3075_v9 = vpack.c.bf16 %v1711_v3, %v1710_v51  ;;  %vm1396_vm0 = vcmp.ge.f32.partialorder %v1012_v63, 0.0  ;;  %v1524_v10 = vmul.f32 0.2, %v1012_v63 }
 0x158   : > { %3192 = vst [vmem:[%s3714_s17 + $0x198] sm:$0xff] %v3080_v61   ;;  %v1260_v11 = vadd.f32 %v3697_v8, %v1259_v27  ;;  %3159 = vst [vmem:[%s3714_s17 + $0x90] sm:$0xff] %v2915_v2   ;;  %vm1460_vm1 = vcmp.ge.f32.partialorder %v1268_v4, 0.0  ;;  %v1588_v12 = vmul.f32 0.2, %v1268_v4  ;;  %v1015_v16 = vadd.f32 %v3819_v31, %v3697_v8 }
 0x159   : > { %vm1394_vm2 = vcmp.ge.f32.partialorder %v1004_v5, 0.0  ;;  %v1522_v13 = vmul.f32 0.2, %v1004_v5  ;;  %3191 = vst [vmem:[%s3714_s17 + $0x190] sm:$0xff] %v3075_v9   ;;  %v1652_v14 = vsel %vm1396_vm0, %v1012_v63, %v1524_v10  ;;  %v1271_v20 = vadd.f32 %v3865_v19, %v3821_v32 }
 0x15a   : > { %vm1458_vm3 = vcmp.ge.f32.partialorder %v1260_v11, 0.0  ;;  %v1586_v15 = vmul.f32 0.2, %v1260_v11  ;;  %v1716_v17 = vsel %vm1460_vm1, %v1268_v4, %v1588_v12  ;;  %v1007_v21 = vadd.f32 %v3865_v19, %v3824_v36  ;;  %v3871_v22 = vpop.f32.mrb[48].mxu0  ;;  %v3873_v23 = vpop.f32.mrb[48].mxu1 }
 0x15b   : > { %v1650_v18 = vsel %vm1394_vm2, %v1004_v5, %v1522_v13  ;;  %vm1397_vm4 = vcmp.ge.f32.partialorder %v1015_v16, 0.0  ;;  %v1525_v8 = vmul.f32 0.2, %v1015_v16  ;;  %v1263_v25 = vadd.f32 %v3865_v19, %v3834_v41  ;;  %v3877_v26 = vpop.f32.mrb[49].mxu0  ;;  %v3879_v27 = vpop.f32.mrb[49].mxu1 }
 0x15c   : > { %v1714_v24 = vsel %vm1458_vm3, %v1260_v11, %v1586_v15  ;;  %vm1461_vm5 = vcmp.ge.f32.partialorder %v1271_v20, 0.0  ;;  %v1589_v28 = vmul.f32 0.2, %v1271_v20  ;;  %vm1395_vm6 = vcmp.ge.f32.partialorder %v1007_v21, 0.0  ;;  %v3882_v33 = vpop.f32.mrb[50].mxu0  ;;  %v3884_v34 = vpop.f32.mrb[50].mxu1 }
 0x15d   : > { %v1523_v29 = vmul.f32 0.2, %v1007_v21  ;;  %v1653_v30 = vsel %vm1397_vm4, %v1015_v16, %v1525_v8  ;;  %vm1459_vm7 = vcmp.ge.f32.partialorder %v1263_v25, 0.0  ;;  %v1587_v31 = vmul.f32 0.2, %v1263_v25  ;;  %v3887_v39 = vpop.f32.mrb[51].mxu0 }
 0x15e   : > { %v1028_v32 = vadd.f32 %v3865_v19, %v3339_v53  ;;  %v2930_v35 = vpack.c.bf16 %v1653_v30, %v1652_v14  ;;  %v1717_v36 = vsel %vm1461_vm5, %v1271_v20, %v1589_v28  ;;  %v1284_v38 = vadd.f32 %v3865_v19, %v3403_v54  ;;  %v3889_v40 = vpop.f32.mrb[51].mxu1 }
 0x15f   : > { %v1651_v37 = vsel %vm1395_vm6, %v1007_v21, %v1523_v29  ;;  %v3090_v41 = vpack.c.bf16 %v1717_v36, %v1716_v17  ;;  %v1715_v43 = vsel %vm1459_vm7, %v1263_v25, %v1587_v31  ;;  %v1020_v47 = vadd.f32 %v3865_v19, %v3840_v58 }
 0x160   : > { %v2925_v42 = vpack.c.bf16 %v1651_v37, %v1650_v18  ;;  %vm1400_vm8 = vcmp.ge.f32.partialorder %v1028_v32, 0.0  ;;  %3162 = vst [vmem:[%s3714_s17 + $0xa8] sm:$0xff] %v2930_v35   ;;  %v3085_v44 = vpack.c.bf16 %v1715_v43, %v1714_v24  ;;  %v1528_v45 = vmul.f32 0.2, %v1028_v32 }
 0x161   : > { %vm1464_vm9 = vcmp.ge.f32.partialorder %v1284_v38, 0.0  ;;  %v1592_v46 = vmul.f32 0.2, %v1284_v38  ;;  %3194 = vst [vmem:[%s3714_s17 + $0x1a8] sm:$0xff] %v3090_v41   ;;  %v1276_v48 = vadd.f32 %v3865_v19, %v3842_v59  ;;  %v1031_v49 = vadd.f32 %v3865_v19, %v3845_v0 }
 0x162   : > { %3161 = vst [vmem:[%s3714_s17 + $0xa0] sm:$0xff] %v2925_v42   ;;  %v1287_v50 = vadd.f32 %v3865_v19, %v3847_v1  ;;  %3193 = vst [vmem:[%s3714_s17 + $0x1a0] sm:$0xff] %v3085_v44   ;;  %v1656_v51 = vsel %vm1400_vm8, %v1028_v32, %v1528_v45  ;;  %v1023_v53 = vadd.f32 %v3865_v19, %v3851_v6  ;;  %v3907_v55 = vpop.f32.mrb[52].mxu0  ;;  %v3909_v56 = vpop.f32.mrb[52].mxu1  ;;  %vm1398_vm10 = vcmp.ge.f32.partialorder %v1020_v47, 0.0 }
 0x163   : > { %v1720_v52 = vsel %vm1464_vm9, %v1284_v38, %v1592_v46  ;;  %v1279_v54 = vadd.f32 %v3865_v19, %v3853_v7  ;;  %v1526_v57 = vmul.f32 0.2, %v1020_v47  ;;  %vm1462_vm11 = vcmp.ge.f32.partialorder %v1276_v48, 0.0  ;;  %v3911_v0 = vpop.f32.mrb[53].mxu0  ;;  %v3913_v1 = vpop.f32.mrb[53].mxu1 }
 0x164   : > { %v1590_v58 = vmul.f32 0.2, %v1276_v48  ;;  %vm1401_vm12 = vcmp.ge.f32.partialorder %v1031_v49, 0.0  ;;  %v1529_v59 = vmul.f32 0.2, %v1031_v49  ;;  %vm1465_vm13 = vcmp.ge.f32.partialorder %v1287_v50, 0.0 }
 0x165   : > { %v1593_v60 = vmul.f32 0.2, %v1287_v50  ;;  %v1654_v61 = vsel %vm1398_vm10, %v1020_v47, %v1526_v57  ;;  %vm1399_vm14 = vcmp.ge.f32.partialorder %v1023_v53, 0.0  ;;  %v1527_v63 = vmul.f32 0.2, %v1023_v53  ;;  %v3915_v5 = vpop.f32.mrb[54].mxu0 }
 0x166   : > { %v1718_v62 = vsel %vm1462_vm11, %v1276_v48, %v1590_v58  ;;  %v1657_v2 = vsel %vm1401_vm12, %v1031_v49, %v1529_v59  ;;  %vm1463_vm15 = vcmp.ge.f32.partialorder %v1279_v54, 0.0  ;;  %v1591_v4 = vmul.f32 0.2, %v1279_v54  ;;  %v3917_v6 = vpop.f32.mrb[54].mxu1  ;;  %v3921_v12 = vpop.f32.mrb[55].mxu0 }
 0x167   : > { %v1721_v3 = vsel %vm1465_vm13, %v1287_v50, %v1593_v60  ;;  %v2940_v7 = vpack.c.bf16 %v1657_v2, %v1656_v51  ;;  %v1655_v10 = vsel %vm1399_vm14, %v1023_v53, %v1527_v63  ;;  %v1044_v11 = vadd.f32 %v3865_v19, %v3871_v22  ;;  %v3923_v13 = vpop.f32.mrb[55].mxu1 }
 0x168   : > { %v3100_v9 = vpack.c.bf16 %v1721_v3, %v1720_v52  ;;  %v2935_v14 = vpack.c.bf16 %v1655_v10, %v1654_v61  ;;  %v1719_v15 = vsel %vm1463_vm15, %v1279_v54, %v1591_v4  ;;  %v1300_v16 = vadd.f32 %v3865_v19, %v3873_v23 }
 0x169   : > { %v1036_v17 = vadd.f32 %v3865_v19, %v3877_v26  ;;  %3164 = vst [vmem:[%s3714_s17 + $0xb8] sm:$0xff] %v2940_v7   ;;  %v3095_v18 = vpack.c.bf16 %v1719_v15, %v1718_v62  ;;  %vm1404_vm0 = vcmp.ge.f32.partialorder %v1044_v11, 0.0  ;;  %v1532_v20 = vmul.f32 0.2, %v1044_v11 }
 0x16a   : > { %3196 = vst [vmem:[%s3714_s17 + $0x1b8] sm:$0xff] %v3100_v9   ;;  %v1292_v21 = vadd.f32 %v3865_v19, %v3879_v27  ;;  %3163 = vst [vmem:[%s3714_s17 + $0xb0] sm:$0xff] %v2935_v14   ;;  %vm1468_vm1 = vcmp.ge.f32.partialorder %v1300_v16, 0.0  ;;  %v1596_v22 = vmul.f32 0.2, %v1300_v16  ;;  %v1047_v25 = vadd.f32 %v3865_v19, %v3882_v33  ;;  %v3937_v26 = vpop.f32.mrb[56].mxu0 }
 0x16b   : > { %vm1402_vm2 = vcmp.ge.f32.partialorder %v1036_v17, 0.0  ;;  %v1530_v24 = vmul.f32 0.2, %v1036_v17  ;;  %3195 = vst [vmem:[%s3714_s17 + $0x1b0] sm:$0xff] %v3095_v18   ;;  %v1660_v8 = vsel %vm1404_vm0, %v1044_v11, %v1532_v20  ;;  %v3939_v28 = vpop.f32.mrb[56].mxu1  ;;  %v1303_v27 = vadd.f32 %v3865_v19, %v3884_v34  ;;  %v3945_v32 = vpop.f32.mrb[57].mxu0 }
 0x16c   : > { %vm1466_vm3 = vcmp.ge.f32.partialorder %v1292_v21, 0.0  ;;  %v1594_v23 = vmul.f32 0.2, %v1292_v21  ;;  %v1724_v29 = vsel %vm1468_vm1, %v1300_v16, %v1596_v22  ;;  %v1039_v31 = vadd.f32 %v3865_v19, %v3887_v39  ;;  %v3947_v35 = vpop.f32.mrb[57].mxu1  ;;  %v3951_v38 = vpop.f32.mrb[58].mxu0 }
 0x16d   : > { %v1658_v30 = vsel %vm1402_vm2, %v1036_v17, %v1530_v24  ;;  %vm1405_vm4 = vcmp.ge.f32.partialorder %v1047_v25, 0.0  ;;  %v1533_v37 = vmul.f32 0.2, %v1047_v25  ;;  %v1295_v33 = vadd.f32 %v3865_v19, %v3889_v40  ;;  %v3953_v41 = vpop.f32.mrb[58].mxu1  ;;  %v3957_v45 = vpop.f32.mrb[59].mxu0 }
 0x16e   : > { %v1722_v36 = vsel %vm1466_vm3, %v1292_v21, %v1594_v23  ;;  %vm1469_vm5 = vcmp.ge.f32.partialorder %v1303_v27, 0.0  ;;  %v1597_v42 = vmul.f32 0.2, %v1303_v27  ;;  %vm1403_vm6 = vcmp.ge.f32.partialorder %v1039_v31, 0.0  ;;  %v3959_v46 = vpop.f32.mrb[59].mxu1 }
 0x16f   : > { %v1531_v34 = vmul.f32 0.2, %v1039_v31  ;;  %v1661_v39 = vsel %vm1405_vm4, %v1047_v25, %v1533_v37  ;;  %vm1467_vm7 = vcmp.ge.f32.partialorder %v1295_v33, 0.0  ;;  %v1595_v43 = vmul.f32 0.2, %v1295_v33 }
 0x170   : > { %v1060_v44 = vadd.f32 %v3865_v19, %v3907_v55  ;;  %v2950_v40 = vpack.c.bf16 %v1661_v39, %v1660_v8  ;;  %v1725_v47 = vsel %vm1469_vm5, %v1303_v27, %v1597_v42  ;;  %v1316_v49 = vadd.f32 %v3865_v19, %v3909_v56 }
 0x171   : > { %v1659_v48 = vsel %vm1403_vm6, %v1039_v31, %v1531_v34  ;;  %v3110_v50 = vpack.c.bf16 %v1725_v47, %v1724_v29  ;;  %v1723_v52 = vsel %vm1467_vm7, %v1295_v33, %v1595_v43  ;;  %v1052_v58 = vadd.f32 %v3865_v19, %v3911_v0 }
 0x172   : > { %v2945_v51 = vpack.c.bf16 %v1659_v48, %v1658_v30  ;;  %vm1408_vm8 = vcmp.ge.f32.partialorder %v1060_v44, 0.0  ;;  %3166 = vst [vmem:[%s3714_s17 + $0xc8] sm:$0xff] %v2950_v40   ;;  %v3105_v53 = vpack.c.bf16 %v1723_v52, %v1722_v36  ;;  %v1536_v54 = vmul.f32 0.2, %v1060_v44  ;;  %v3964_v57 = vpop.f32.mrb[60].mxu0  ;;  %v3976_v61 = vpop.f32.mrb[60].mxu1 }
 0x173   : > { %vm1472_vm9 = vcmp.ge.f32.partialorder %v1316_v49, 0.0  ;;  %v1600_v55 = vmul.f32 0.2, %v1316_v49  ;;  %3198 = vst [vmem:[%s3714_s17 + $0x1c8] sm:$0xff] %v3110_v50   ;;  %v1308_v56 = vadd.f32 %v3865_v19, %v3913_v1  ;;  %v1063_v59 = vadd.f32 %v3865_v19, %v3915_v5  ;;  %v3978_v62 = vpop.f32.mrb[61].mxu0  ;;  %v3986_v3 = vpop.f32.mrb[61].mxu1 }
 0x174   : > { %3165 = vst [vmem:[%s3714_s17 + $0xc0] sm:$0xff] %v2945_v51   ;;  %v1319_v60 = vadd.f32 %v3865_v19, %v3917_v6  ;;  %3197 = vst [vmem:[%s3714_s17 + $0x1c0] sm:$0xff] %v3105_v53   ;;  %v1664_v63 = vsel %vm1408_vm8, %v1060_v44, %v1536_v54  ;;  %v1055_v0 = vadd.f32 %v3865_v19, %v3921_v12  ;;  %v3988_v4 = vpop.f32.mrb[62].mxu0  ;;  %vm1406_vm10 = vcmp.ge.f32.partialorder %v1052_v58, 0.0  ;;  %v3990_v12 = vpop.f32.mrb[62].mxu1 }
 0x175   : > { %v1728_v2 = vsel %vm1472_vm9, %v1316_v49, %v1600_v55  ;;  %v1311_v1 = vadd.f32 %v3865_v19, %v3923_v13  ;;  %v1534_v5 = vmul.f32 0.2, %v1052_v58  ;;  %vm1470_vm11 = vcmp.ge.f32.partialorder %v1308_v56, 0.0  ;;  %v3992_v13 = vpop.f32.mrb[63].mxu0  ;;  %v1342_v18 = vpop.f32.mrb[63].mxu1 }
 0x176   : > { %v1598_v6 = vmul.f32 0.2, %v1308_v56  ;;  %vm1409_vm12 = vcmp.ge.f32.partialorder %v1063_v59, 0.0  ;;  %v1537_v7 = vmul.f32 0.2, %v1063_v59  ;;  %vm1473_vm13 = vcmp.ge.f32.partialorder %v1319_v60, 0.0 }
 0x177   : > { %v1601_v9 = vmul.f32 0.2, %v1319_v60  ;;  %v1662_v10 = vsel %vm1406_vm10, %v1052_v58, %v1534_v5  ;;  %vm1407_vm14 = vcmp.ge.f32.partialorder %v1055_v0, 0.0  ;;  %v1535_v14 = vmul.f32 0.2, %v1055_v0 }
 0x178   : > { %v1726_v11 = vsel %vm1470_vm11, %v1308_v56, %v1598_v6  ;;  %v1665_v15 = vsel %vm1409_vm12, %v1063_v59, %v1537_v7  ;;  %vm1471_vm15 = vcmp.ge.f32.partialorder %v1311_v1, 0.0  ;;  %v1599_v17 = vmul.f32 0.2, %v1311_v1 }
 0x179   : > { %v1729_v16 = vsel %vm1473_vm13, %v1319_v60, %v1601_v9  ;;  %v2960_v20 = vpack.c.bf16 %v1665_v15, %v1664_v63  ;;  %v1663_v22 = vsel %vm1407_vm14, %v1055_v0, %v1535_v14  ;;  %v1076_v24 = vadd.f32 %v3865_v19, %v3937_v26 }
 0x17a   : > { %v3120_v21 = vpack.c.bf16 %v1729_v16, %v1728_v2  ;;  %v2955_v8 = vpack.c.bf16 %v1663_v22, %v1662_v10  ;;  %v1727_v23 = vsel %vm1471_vm15, %v1311_v1, %v1599_v17  ;;  %v1332_v25 = vadd.f32 %v3865_v19, %v3939_v28 }
 0x17b   : > { %v1068_v29 = vadd.f32 %v3865_v19, %v3945_v32  ;;  %3168 = vst [vmem:[%s3714_s17 + $0xd8] sm:$0xff] %v2960_v20   ;;  %v3115_v30 = vpack.c.bf16 %v1727_v23, %v1726_v11  ;;  %vm1412_vm0 = vcmp.ge.f32.partialorder %v1076_v24, 0.0  ;;  %v1540_v27 = vmul.f32 0.2, %v1076_v24 }
 0x17c   : > { %3200 = vst [vmem:[%s3714_s17 + $0x1d8] sm:$0xff] %v3120_v21   ;;  %v1324_v31 = vadd.f32 %v3865_v19, %v3947_v35  ;;  %3167 = vst [vmem:[%s3714_s17 + $0xd0] sm:$0xff] %v2955_v8   ;;  %vm1476_vm1 = vcmp.ge.f32.partialorder %v1332_v25, 0.0  ;;  %v1604_v26 = vmul.f32 0.2, %v1332_v25  ;;  %v1079_v28 = vadd.f32 %v3865_v19, %v3951_v38 }
 0x17d   : > { %vm1410_vm2 = vcmp.ge.f32.partialorder %v1068_v29, 0.0  ;;  %v1538_v36 = vmul.f32 0.2, %v1068_v29  ;;  %3199 = vst [vmem:[%s3714_s17 + $0x1d0] sm:$0xff] %v3115_v30   ;;  %v1668_v37 = vsel %vm1412_vm0, %v1076_v24, %v1540_v27  ;;  %v1335_v42 = vadd.f32 %v3865_v19, %v3953_v41 }
 0x17e   : > { %vm1474_vm3 = vcmp.ge.f32.partialorder %v1324_v31, 0.0  ;;  %v1732_v32 = vsel %vm1476_vm1, %v1332_v25, %v1604_v26  ;;  %v1602_v33 = vmul.f32 0.2, %v1324_v31  ;;  %v1071_v34 = vadd.f32 %v3865_v19, %v3957_v45 }
 0x17f   : > { %v1666_v35 = vsel %vm1410_vm2, %v1068_v29, %v1538_v36  ;;  %vm1413_vm4 = vcmp.ge.f32.partialorder %v1079_v28, 0.0  ;;  %v1541_v39 = vmul.f32 0.2, %v1079_v28  ;;  %v1327_v43 = vadd.f32 %v3865_v19, %v3959_v46 }
 0x180   : > { %vm1477_vm5 = vcmp.ge.f32.partialorder %v1335_v42, 0.0  ;;  %v1605_v44 = vmul.f32 0.2, %v1335_v42  ;;  %vm1411_vm6 = vcmp.ge.f32.partialorder %v1071_v34, 0.0  ;;  %v1539_v40 = vmul.f32 0.2, %v1071_v34 }
 0x181   : > { %v1669_v38 = vsel %vm1413_vm4, %v1079_v28, %v1541_v39  ;;  %vm1475_vm7 = vcmp.ge.f32.partialorder %v1327_v43, 0.0  ;;  %v1603_v47 = vmul.f32 0.2, %v1327_v43  ;;  %v1092_v41 = vadd.f32 %v3865_v19, %v3964_v57 }
 0x182   : > { %v2970_v45 = vpack.c.bf16 %v1669_v38, %v1668_v37  ;;  %v1733_v48 = vsel %vm1477_vm5, %v1335_v42, %v1605_v44  ;;  %v1667_v49 = vsel %vm1411_vm6, %v1071_v34, %v1539_v40  ;;  %v1348_v50 = vadd.f32 %v3865_v19, %v3976_v61 }
 0x183   : > { %v1730_v46 = vsel %vm1474_vm3, %v1324_v31, %v1602_v33  ;;  %v3130_v51 = vpack.c.bf16 %v1733_v48, %v1732_v32  ;;  %v2965_v52 = vpack.c.bf16 %v1667_v49, %v1666_v35  ;;  %v1731_v53 = vsel %vm1475_vm7, %v1327_v43, %v1603_v47 }
 0x184   : > { %3170 = vst [vmem:[%s3714_s17 + $0xe8] sm:$0xff] %v2970_v45   ;;  %v3125_v54 = vpack.c.bf16 %v1731_v53, %v1730_v46  ;;  %vm1416_vm8 = vcmp.ge.f32.partialorder %v1092_v41, 0.0  ;;  %v1544_v55 = vmul.f32 0.2, %v1092_v41  ;;  %v1608_v58 = vmul.f32 0.2, %v1348_v50 }
 0x185   : > { %3202 = vst [vmem:[%s3714_s17 + $0x1e8] sm:$0xff] %v3130_v51   ;;  %3169 = vst [vmem:[%s3714_s17 + $0xe0] sm:$0xff] %v2965_v52   ;;  %v1084_v57 = vadd.f32 %v3865_v19, %v3978_v62  ;;  %v1340_v56 = vadd.f32 %v3865_v19, %v3986_v3  ;;  %v1095_v59 = vadd.f32 %v3865_v19, %v3988_v4  ;;  %vm1480_vm9 = vcmp.ge.f32.partialorder %v1348_v50, 0.0 }
 0x186   : > { %v1351_v60 = vadd.f32 %v3865_v19, %v3990_v12  ;;  %3201 = vst [vmem:[%s3714_s17 + $0x1e0] sm:$0xff] %v3125_v54   ;;  %v1087_v61 = vadd.f32 %v3865_v19, %v3992_v13  ;;  %v1343_v63 = vadd.f32 %v3865_v19, %v1342_v18  ;;  %v1672_v2 = vsel %vm1416_vm8, %v1092_v41, %v1544_v55 }
 0x187   : > { %vm1414_vm10 = vcmp.ge.f32.partialorder %v1084_v57, 0.0  ;;  %v1542_v0 = vmul.f32 0.2, %v1084_v57  ;;  %v1606_v62 = vmul.f32 0.2, %v1340_v56  ;;  %vm1417_vm11 = vcmp.ge.f32.partialorder %v1095_v59, 0.0 }
 0x188   : > { %v1545_v1 = vmul.f32 0.2, %v1095_v59  ;;  %vm1481_vm12 = vcmp.ge.f32.partialorder %v1351_v60, 0.0  ;;  %v1609_v3 = vmul.f32 0.2, %v1351_v60  ;;  %v1736_v4 = vsel %vm1480_vm9, %v1348_v50, %v1608_v58 }
 0x189   : > { %vm1478_vm13 = vcmp.ge.f32.partialorder %v1340_v56, 0.0  ;;  %vm1415_vm14 = vcmp.ge.f32.partialorder %v1087_v61, 0.0  ;;  %v1543_v5 = vmul.f32 0.2, %v1087_v61  ;;  %vm1479_vm15 = vcmp.ge.f32.partialorder %v1343_v63, 0.0 }
 0x18a   : > { %v1673_v6 = vsel %vm1417_vm11, %v1095_v59, %v1545_v1  ;;  %v1737_v7 = vsel %vm1481_vm12, %v1351_v60, %v1609_v3  ;;  %v1607_v19 = vmul.f32 0.2, %v1343_v63  ;;  %v1670_v9 = vsel %vm1414_vm10, %v1084_v57, %v1542_v0 }
 0x18b   : > { %v2980_v10 = vpack.c.bf16 %v1673_v6, %v1672_v2  ;;  %v3140_v11 = vpack.c.bf16 %v1737_v7, %v1736_v4  ;;  %v1671_v14 = vsel %vm1415_vm14, %v1087_v61, %v1543_v5  ;;  %v1734_v12 = vsel %vm1478_vm13, %v1340_v56, %v1606_v62 }
 0x18c   : > { %v2975_v13 = vpack.c.bf16 %v1671_v14, %v1670_v9  ;;  %v1735_v15 = vsel %vm1479_vm15, %v1343_v63, %v1607_v19 }
 0x18d   : > { %3172 = vst [vmem:[%s3714_s17 + $0xf8] sm:$0xff] %v2980_v10   ;;  %3204 = vst [vmem:[%s3714_s17 + $0x1f8] sm:$0xff] %v3140_v11   ;;  %v3135_v16 = vpack.c.bf16 %v1735_v15, %v1734_v12 }
 0x18e   : > { %3171 = vst [vmem:[%s3714_s17 + $0xf0] sm:$0xff] %v2975_v13  }
 0x18f   : > { %3203 = vst [vmem:[%s3714_s17 + $0x1f0] sm:$0xff] %v3135_v16  }
 0x190 PF: > { %s13_s14 = sadd.s32 1, %s3556_s14   ;;  %s4051_s12 = smov %s3552_s13 }
 0x191   : > { %p10_p5 = scmp.ge.s32.totalorder %s13_s14, 4   ;;  %s4052_s13 = smov %s4054_s15 }
 0x193   :  { %12 = sbr.rel (!%p10_p5) target bundleno = 2 (0x2), region = 68 }

// kernel: discriminator_forward.5
= control target key start
LH: loop header
LB: loop body
LE: loop exit
PB: predicated region body
PF: predicated region fallthrough
CT: control target
= control target key end

     0   :  { %v4832_v0 = vmov 0   ;;  %s6063_s1 = inlined_call_operand.vmem [shape: bf16[1024,128], index: 1, kind: input, shape index: {}]   ;;  %s6064_s0 = inlined_call_operand.vmem [shape: bf16[512,1024], index: 0, kind: input, shape index: {}]   ;;  %s6065_s2 = inlined_call_operand.vmem [shape: f32[1,128], index: 2, kind: input, shape index: {}]   ;;  %s6066_s3 = inlined_call_operand.vmem [shape: bf16[512,128], index: 3, kind: output, shape index: {}]  }
   0x1   :  { %2070 = vmatprep.subr.bf16.mxu1 %v4832_v0  ;;  %2648 = vmatprep.subr.bf16.mxu0 %v4832_v0  ;;  %v4767_v1 = vld [vmem:[%s6063_s1] sm:$0xff]   ;;  %v4769_v3 = vld [vmem:[%s6063_s1 + $0x8] sm:$0xff]   ;;  %v4771_v5 = vld [vmem:[%s6063_s1 + $0x10] sm:$0xff]  }
   0x2   :  { %v4768_v2 = vld [vmem:[%s6063_s1 + $0x100] sm:$0xff]   ;;  %2071 = vmatpush1.bf16.msra.mxu1 %v4767_v1  ;;  %v4770_v4 = vld [vmem:[%s6063_s1 + $0x108] sm:$0xff]   ;;  %v4772_v6 = vld [vmem:[%s6063_s1 + $0x110] sm:$0xff]  }
   0x3   :  { %2649 = vmatpush1.bf16.msra.mxu0 %v4768_v2  ;;  %2072 = vmatprep.subr.bf16.mxu1 %v4832_v0  ;;  %v4773_v7 = vld [vmem:[%s6063_s1 + $0x18] sm:$0xff]   ;;  %v4775_v9 = vld [vmem:[%s6063_s1 + $0x20] sm:$0xff]   ;;  %v4777_v11 = vld [vmem:[%s6063_s1 + $0x28] sm:$0xff]  }
   0x4   :  { %2650 = vmatprep.subr.bf16.mxu0 %v4832_v0  ;;  %v4774_v8 = vld [vmem:[%s6063_s1 + $0x118] sm:$0xff]   ;;  %v4776_v10 = vld [vmem:[%s6063_s1 + $0x120] sm:$0xff]   ;;  %v4778_v12 = vld [vmem:[%s6063_s1 + $0x128] sm:$0xff]  }
   0x5   :  { %v4779_v13 = vld [vmem:[%s6063_s1 + $0x30] sm:$0xff]   ;;  %v4781_v15 = vld [vmem:[%s6063_s1 + $0x38] sm:$0xff]   ;;  %v4783_v17 = vld [vmem:[%s6063_s1 + $0x40] sm:$0xff]  }
   0x6   :  { %2073 = vmatpush1.bf16.msra.mxu1 %v4769_v3  ;;  %v4780_v14 = vld [vmem:[%s6063_s1 + $0x130] sm:$0xff]   ;;  %v4782_v16 = vld [vmem:[%s6063_s1 + $0x138] sm:$0xff]   ;;  %v4784_v18 = vld [vmem:[%s6063_s1 + $0x140] sm:$0xff]  }
   0x7   :  { %2651 = vmatpush1.bf16.msra.mxu0 %v4770_v4  ;;  %2074 = vmatprep.subr.bf16.mxu1 %v4832_v0  ;;  %v4928_v19 = vld [vmem:[%s6064_s0] sm:$0xff]  ;;  %v4938_v21 = vld [vmem:[%s6064_s0 + $0x10] sm:$0xff]  ;;  %v4785_v24 = vld [vmem:[%s6063_s1 + $0x48] sm:$0xff]  }
   0x8   :  { %2652 = vmatprep.subr.bf16.mxu0 %v4832_v0  ;;  %v4933_v20 = vld [vmem:[%s6064_s0 + $0x20] sm:$0xff]  ;;  %v4945_v23 = vld [vmem:[%s6064_s0 + $0x30] sm:$0xff]  ;;  %v4786_v26 = vld [vmem:[%s6063_s1 + $0x148] sm:$0xff]  }
   0x9   :  { %v3744_v22 = vcombine.high %v4928_v19, %v4933_v20  ;;  %v3748_v25 = vcombine.high %v4938_v21, %v4945_v23  ;;  %v4787_v27 = vld [vmem:[%s6063_s1 + $0x50] sm:$0xff]   ;;  %v4789_v29 = vld [vmem:[%s6063_s1 + $0x58] sm:$0xff]   ;;  %v4791_v31 = vld [vmem:[%s6063_s1 + $0x60] sm:$0xff]   ;;  %v3743_v42 = vcombine.low %v4928_v19, %v4933_v20  ;;  %v3747_v44 = vcombine.low %v4938_v21, %v4945_v23 }
   0xa   :  { %2075 = vmatpush1.bf16.msra.mxu1 %v4771_v5  ;;  %v4788_v28 = vld [vmem:[%s6063_s1 + $0x150] sm:$0xff]   ;;  %v4790_v30 = vld [vmem:[%s6063_s1 + $0x158] sm:$0xff]   ;;  %v4792_v32 = vld [vmem:[%s6063_s1 + $0x160] sm:$0xff]  }
   0xb   :  { %2653 = vmatpush1.bf16.msra.mxu0 %v4772_v6  ;;  %2076 = vmatprep.subr.bf16.mxu1 %v4832_v0  ;;  %v4793_v33 = vld [vmem:[%s6063_s1 + $0x68] sm:$0xff]   ;;  %v4795_v35 = vld [vmem:[%s6063_s1 + $0x70] sm:$0xff]   ;;  %v4797_v37 = vld [vmem:[%s6063_s1 + $0x78] sm:$0xff]  }
   0xc   :  { %2654 = vmatprep.subr.bf16.mxu0 %v4832_v0  ;;  %2102 = vmatprep.mubr.bf16.mxu1 %v3744_v22  ;;  %v4794_v34 = vld [vmem:[%s6063_s1 + $0x168] sm:$0xff]   ;;  %v4796_v36 = vld [vmem:[%s6063_s1 + $0x170] sm:$0xff]   ;;  %v4798_v38 = vld [vmem:[%s6063_s1 + $0x178] sm:$0xff]  }
   0xd   :  { %2680 = vmatprep.mubr.bf16.mxu0 %v3748_v25  ;;  %v23_v39 = vld [vmem:[%s6064_s0 + $0x40] sm:$0xff]  ;;  %v25_v41 = vld [vmem:[%s6064_s0 + $0x50] sm:$0xff]  ;;  %v4801_v51 = vld [vmem:[%s6063_s1 + $0x88] sm:$0xff]  }
   0xe   :  { %2077 = vmatpush1.bf16.msra.mxu1 %v4773_v7  ;;  %v27_v40 = vld [vmem:[%s6064_s0 + $0x60] sm:$0xff]  ;;  %v29_v43 = vld [vmem:[%s6064_s0 + $0x70] sm:$0xff]  ;;  %v4802_v52 = vld [vmem:[%s6063_s1 + $0x188] sm:$0xff]  }
   0xf   :  { %2655 = vmatpush1.bf16.msra.mxu0 %v4774_v8  ;;  %2078 = vmatprep.subr.bf16.mxu1 %v4832_v0  ;;  %v4799_v45 = vld [vmem:[%s6063_s1 + $0x80] sm:$0xff]   ;;  %v3752_v47 = vcombine.high %v23_v39, %v27_v40  ;;  %v3756_v48 = vcombine.high %v25_v41, %v29_v43  ;;  %v33_v53 = vld [vmem:[%s6064_s0 + $0x90] sm:$0xff]  ;;  %v3751_v55 = vcombine.low %v23_v39, %v27_v40  ;;  %v4805_v2 = vld [vmem:[%s6063_s1 + $0x98] sm:$0xff]  }
  0x10   :  { %2656 = vmatprep.subr.bf16.mxu0 %v4832_v0  ;;  %v4800_v46 = vld [vmem:[%s6063_s1 + $0x180] sm:$0xff]   ;;  %v37_v54 = vld [vmem:[%s6064_s0 + $0xb0] sm:$0xff]  ;;  %v3755_v56 = vcombine.low %v25_v41, %v29_v43  ;;  %v4806_v3 = vld [vmem:[%s6063_s1 + $0x198] sm:$0xff]  }
  0x11   :  { %v31_v49 = vld [vmem:[%s6064_s0 + $0x80] sm:$0xff]  ;;  %v3764_v58 = vcombine.high %v33_v53, %v37_v54  ;;  %v4803_v59 = vld [vmem:[%s6063_s1 + $0x90] sm:$0xff]   ;;  %v3763_v6 = vcombine.low %v33_v53, %v37_v54  ;;  %v4818_v39 = vld [vmem:[%s6063_s1 + $0x1c8] sm:$0xff]  }
  0x12   :  { %2079 = vmatpush1.bf16.msra.mxu1 %v4775_v9  ;;  %v35_v50 = vld [vmem:[%s6064_s0 + $0xa0] sm:$0xff]  ;;  %v4804_v60 = vld [vmem:[%s6063_s1 + $0x190] sm:$0xff]   ;;  %v4821_v54 = vld [vmem:[%s6063_s1 + $0xd8] sm:$0xff]  }
  0x13   :  { %2657 = vmatpush1.bf16.msra.mxu0 %v4776_v10  ;;  %2080 = vmatprep.subr.bf16.mxu1 %v4832_v0  ;;  %v3760_v57 = vcombine.high %v31_v49, %v35_v50  ;;  %v39_v61 = vld [vmem:[%s6064_s0 + $0xc0] sm:$0xff]  ;;  %v41_v63 = vld [vmem:[%s6064_s0 + $0xd0] sm:$0xff]  ;;  %v3759_v4 = vcombine.low %v31_v49, %v35_v50 }
  0x14   :  { %2658 = vmatprep.subr.bf16.mxu0 %v4832_v0  ;;  %v43_v62 = vld [vmem:[%s6064_s0 + $0xe0] sm:$0xff]  ;;  %v45_v1 = vld [vmem:[%s6064_s0 + $0xf0] sm:$0xff] }
  0x15   :  { %v4807_v5 = vld [vmem:[%s6063_s1 + $0xa0] sm:$0xff]   ;;  %v3768_v7 = vcombine.high %v39_v61, %v43_v62  ;;  %v3772_v9 = vcombine.high %v41_v63, %v45_v1  ;;  %v4811_v20 = vld [vmem:[%s6063_s1 + $0xb0] sm:$0xff]  }
  0x16   :  { %2081 = vmatpush1.bf16.msra.mxu1 %v4777_v11  ;;  %v4808_v8 = vld [vmem:[%s6063_s1 + $0x1a0] sm:$0xff]   ;;  %v4812_v21 = vld [vmem:[%s6063_s1 + $0x1b0] sm:$0xff]  }
  0x17   :  { %2659 = vmatpush1.bf16.msra.mxu0 %v4778_v12  ;;  %2082 = vmatprep.subr.bf16.mxu1 %v4832_v0  ;;  %v47_v10 = vld [vmem:[%s6064_s0 + $0x100] sm:$0xff]  ;;  %v49_v12 = vld [vmem:[%s6064_s0 + $0x110] sm:$0xff] }
  0x18   :  { %2660 = vmatprep.subr.bf16.mxu0 %v4832_v0  ;;  %v51_v11 = vld [vmem:[%s6064_s0 + $0x120] sm:$0xff]  ;;  %v57_v25 = vld [vmem:[%s6064_s0 + $0x150] sm:$0xff] }
  0x19   :  { %v55_v22 = vld [vmem:[%s6064_s0 + $0x140] sm:$0xff]  ;;  %v77_v49 = vld [vmem:[%s6064_s0 + $0x1f0] sm:$0xff] }
  0x1a   :  { %2083 = vmatpush1.bf16.msra.mxu1 %v4779_v13  ;;  %v53_v13 = vld [vmem:[%s6064_s0 + $0x130] sm:$0xff]  ;;  %v59_v23 = vld [vmem:[%s6064_s0 + $0x160] sm:$0xff] }
  0x1b   :  { %2661 = vmatpush1.bf16.msra.mxu0 %v4780_v14  ;;  %2084 = vmatprep.subr.bf16.mxu1 %v4832_v0  ;;  %v4809_v14 = vld [vmem:[%s6063_s1 + $0xa8] sm:$0xff]   ;;  %v3780_v19 = vcombine.high %v49_v12, %v53_v13  ;;  %v3783_v40 = vcombine.low %v55_v22, %v59_v23 }
  0x1c   :  { %2662 = vmatprep.subr.bf16.mxu0 %v4832_v0 }
  0x1e   :  { %2085 = vmatpush1.bf16.msra.mxu1 %v4781_v15  ;;  %v4810_v15 = vld [vmem:[%s6063_s1 + $0x1a8] sm:$0xff]  }
  0x1f   :  { %2663 = vmatpush1.bf16.msra.mxu0 %v4782_v16  ;;  %2086 = vmatprep.subr.bf16.mxu1 %v4832_v0  ;;  %v3767_v16 = vcombine.low %v39_v61, %v43_v62 }
  0x20   :  { %2664 = vmatprep.subr.bf16.mxu0 %v4832_v0 }
  0x22   :  { %2087 = vmatpush1.bf16.msra.mxu1 %v4783_v17  ;;  %v3771_v17 = vcombine.low %v41_v63, %v45_v1  ;;  %v87_v1 = vld [vmem:[%s6064_s0 + $0x240] sm:$0xff] }
  0x23   :  { %2665 = vmatpush1.bf16.msra.mxu0 %v4784_v18  ;;  %2088 = vmatprep.subr.bf16.mxu1 %v4832_v0  ;;  %v3776_v18 = vcombine.high %v47_v10, %v51_v11 }
  0x24   :  { %2666 = vmatprep.subr.bf16.mxu0 %v4832_v0 }
  0x26   :  { %2089 = vmatpush1.bf16.msra.mxu1 %v4785_v24  ;;  %v4813_v24 = vld [vmem:[%s6063_s1 + $0xb8] sm:$0xff]  }
  0x27   :  { %2667 = vmatpush1.bf16.msra.mxu0 %v4786_v26  ;;  %2090 = vmatprep.subr.bf16.mxu1 %v4832_v0  ;;  %v61_v26 = vld [vmem:[%s6064_s0 + $0x170] sm:$0xff] }
  0x28   :  { %2668 = vmatprep.subr.bf16.mxu0 %v4832_v0  ;;  %v3787_v41 = vcombine.low %v57_v25, %v61_v26 }
  0x2a   :  { %2091 = vmatpush1.bf16.msra.mxu1 %v4787_v27  ;;  %v4814_v27 = vld [vmem:[%s6063_s1 + $0x1b8] sm:$0xff]  }
  0x2b   :  { %2669 = vmatpush1.bf16.msra.mxu0 %v4788_v28  ;;  %2092 = vmatprep.subr.bf16.mxu1 %v4832_v0  ;;  %v3775_v28 = vcombine.low %v47_v10, %v51_v11  ;;  %v4824_v10 = vld [vmem:[%s6063_s1 + $0x1e0] sm:$0xff]  }
  0x2c   :  { %2670 = vmatprep.subr.bf16.mxu0 %v4832_v0  ;;  %v95_v11 = vld [vmem:[%s6064_s0 + $0x280] sm:$0xff] }
  0x2e   :  { %2093 = vmatpush1.bf16.msra.mxu1 %v4789_v29  ;;  %v3779_v29 = vcombine.low %v49_v12, %v53_v13  ;;  %v99_v12 = vld [vmem:[%s6064_s0 + $0x2a0] sm:$0xff]  ;;  %v97_v13 = vld [vmem:[%s6064_s0 + $0x290] sm:$0xff] }
  0x2f   :  { %2671 = vmatpush1.bf16.msra.mxu0 %v4790_v30  ;;  %2094 = vmatprep.subr.bf16.mxu1 %v4832_v0  ;;  %v3784_v30 = vcombine.high %v55_v22, %v59_v23  ;;  %v109_v22 = vld [vmem:[%s6064_s0 + $0x2f0] sm:$0xff]  ;;  %v3823_v23 = vcombine.low %v95_v11, %v99_v12 }
  0x30   :  { %2672 = vmatprep.subr.bf16.mxu0 %v4832_v0 }
  0x32   :  { %2095 = vmatpush1.bf16.msra.mxu1 %v4791_v31  ;;  %v3788_v31 = vcombine.high %v57_v25, %v61_v26 }
  0x33   :  { %2673 = vmatpush1.bf16.msra.mxu0 %v4792_v32  ;;  %2096 = vmatprep.subr.bf16.mxu1 %v4832_v0  ;;  %v4815_v32 = vld [vmem:[%s6063_s1 + $0xc0] sm:$0xff]  }
  0x34   :  { %2674 = vmatprep.subr.bf16.mxu0 %v4832_v0 }
  0x36   :  { %2097 = vmatpush1.bf16.msra.mxu1 %v4793_v33  ;;  %v4816_v33 = vld [vmem:[%s6063_s1 + $0x1c0] sm:$0xff]  }
  0x37   :  { %2675 = vmatpush1.bf16.msra.mxu0 %v4794_v34  ;;  %2098 = vmatprep.subr.bf16.mxu1 %v4832_v0  ;;  %v63_v34 = vld [vmem:[%s6064_s0 + $0x180] sm:$0xff] }
  0x38   :  { %2676 = vmatprep.subr.bf16.mxu0 %v4832_v0 }
  0x3a   :  { %2099 = vmatpush1.bf16.msra.mxu1 %v4795_v35  ;;  %v67_v35 = vld [vmem:[%s6064_s0 + $0x1a0] sm:$0xff] }
  0x3b   :  { %2677 = vmatpush1.bf16.msra.mxu0 %v4796_v36  ;;  %2100 = vmatprep.subr.bf16.mxu1 %v4832_v0  ;;  %v4817_v36 = vld [vmem:[%s6063_s1 + $0xc8] sm:$0xff]   ;;  %v3791_v50 = vcombine.low %v63_v34, %v67_v35 }
  0x3c   :  { %2678 = vmatprep.subr.bf16.mxu0 %v4832_v0 }
  0x3e   :  { %2101 = vmatpush1.bf16.msra.mxu1 %v4797_v37  ;;  %v65_v37 = vld [vmem:[%s6064_s0 + $0x190] sm:$0xff] }
  0x3f   :  { %2679 = vmatpush1.bf16.msra.mxu0 %v4798_v38  ;;  %2359 = vmatprep.subr.bf16.mxu1 %v4832_v0  ;;  %v69_v38 = vld [vmem:[%s6064_s0 + $0x1b0] sm:$0xff] }
  0x40   :  { %2937 = vmatprep.subr.bf16.mxu0 %v4832_v0  ;;  %v3796_v43 = vcombine.high %v65_v37, %v69_v38 }
  0x41   :  { %2103 = vmatmul.mubr.bf16.vlgmr.msra.gmra.mrb[0].mxu1 %v3743_v42  ;;  %v3792_v42 = vcombine.high %v63_v34, %v67_v35 }
  0x42   :  { %2681 = vmatmul.mubr.bf16.vlgmr.msra.gmra.mrb[0].mxu0 %v3747_v44  ;;  %2360 = vmatpush1.bf16.msra.mxu1 %v4799_v45  ;;  %v4819_v44 = vld [vmem:[%s6063_s1 + $0xd0] sm:$0xff]  }
  0x43   :  { %2938 = vmatpush1.bf16.msra.mxu0 %v4800_v46  ;;  %2110 = vmatprep.mubr.bf16.mxu1 %v3752_v47  ;;  %v4820_v45 = vld [vmem:[%s6063_s1 + $0x1d0] sm:$0xff]   ;;  %v71_v46 = vld [vmem:[%s6064_s0 + $0x1c0] sm:$0xff] }
  0x44   :  { %2688 = vmatprep.mubr.bf16.mxu0 %v3756_v48  ;;  %2361 = vmatprep.subr.bf16.mxu1 %v4832_v0  ;;  %v75_v47 = vld [vmem:[%s6064_s0 + $0x1e0] sm:$0xff]  ;;  %v73_v48 = vld [vmem:[%s6064_s0 + $0x1d0] sm:$0xff] }
  0x45   :  { %2939 = vmatprep.subr.bf16.mxu0 %v4832_v0  ;;  %v3804_v53 = vcombine.high %v73_v48, %v77_v49  ;;  %v3803_v61 = vcombine.low %v73_v48, %v77_v49  ;;  %v131_v48 = vld [vmem:[%s6064_s0 + $0x3a0] sm:$0xff]  ;;  %v129_v49 = vld [vmem:[%s6064_s0 + $0x390] sm:$0xff] }
  0x46   :  { %2362 = vmatpush1.bf16.msra.mxu1 %v4801_v51  ;;  %v3795_v51 = vcombine.low %v65_v37, %v69_v38  ;;  %v119_v37 = vld [vmem:[%s6064_s0 + $0x340] sm:$0xff] }
  0x47   :  { %2940 = vmatpush1.bf16.msra.mxu0 %v4802_v52  ;;  %2363 = vmatprep.subr.bf16.mxu1 %v4832_v0  ;;  %v3800_v52 = vcombine.high %v71_v46, %v75_v47  ;;  %v123_v38 = vld [vmem:[%s6064_s0 + $0x360] sm:$0xff] }
  0x48   :  { %2941 = vmatprep.subr.bf16.mxu0 %v4832_v0 }
  0x49   :  { %2111 = vmatmul.mubr.bf16.gmra.mrb[4].mxu1 %v3751_v55  ;;  %v4822_v55 = vld [vmem:[%s6063_s1 + $0x1d8] sm:$0xff]  }
  0x4a   :  { %2689 = vmatmul.mubr.bf16.gmra.mrb[4].mxu0 %v3755_v56  ;;  %2118 = vmatprep.mubr.bf16.mxu1 %v3760_v57  ;;  %v79_v56 = vld [vmem:[%s6064_s0 + $0x200] sm:$0xff] }
  0x4b   :  { %2696 = vmatprep.mubr.bf16.mxu0 %v3764_v58  ;;  %2364 = vmatpush1.bf16.msra.mxu1 %v4803_v59  ;;  %v83_v57 = vld [vmem:[%s6064_s0 + $0x220] sm:$0xff]  ;;  %v81_v58 = vld [vmem:[%s6064_s0 + $0x210] sm:$0xff] }
  0x4c   :  { %2942 = vmatpush1.bf16.msra.mxu0 %v4804_v60  ;;  %2365 = vmatprep.subr.bf16.mxu1 %v4832_v0  ;;  %v85_v59 = vld [vmem:[%s6064_s0 + $0x230] sm:$0xff]  ;;  %v3799_v60 = vcombine.low %v71_v46, %v75_v47  ;;  %v3808_v62 = vcombine.high %v79_v56, %v83_v57  ;;  %v127_v47 = vld [vmem:[%s6064_s0 + $0x380] sm:$0xff] }
  0x4d   :  { %2943 = vmatprep.subr.bf16.mxu0 %v4832_v0  ;;  %v3812_v63 = vcombine.high %v81_v58, %v85_v59  ;;  %v4828_v46 = vld [vmem:[%s6063_s1 + $0x1f0] sm:$0xff]  }
  0x4f   :  { %2366 = vmatpush1.bf16.msra.mxu1 %v4805_v2  ;;  %v91_v2 = vld [vmem:[%s6064_s0 + $0x260] sm:$0xff] }
  0x50   :  { %2944 = vmatpush1.bf16.msra.mxu0 %v4806_v3  ;;  %2367 = vmatprep.subr.bf16.mxu1 %v4832_v0  ;;  %v89_v3 = vld [vmem:[%s6064_s0 + $0x250] sm:$0xff] }
  0x51   :  { %2119 = vmatmul.mubr.bf16.gmra.mrb[8].mxu1 %v3759_v4  ;;  %2945 = vmatprep.subr.bf16.mxu0 %v4832_v0  ;;  %v93_v4 = vld [vmem:[%s6064_s0 + $0x270] sm:$0xff] }
  0x52   :  { %2697 = vmatmul.mubr.bf16.gmra.mrb[8].mxu0 %v3763_v6  ;;  %2126 = vmatprep.mubr.bf16.mxu1 %v3768_v7  ;;  %v3811_v6 = vcombine.low %v81_v58, %v85_v59  ;;  %v3816_v7 = vcombine.high %v87_v1, %v91_v2  ;;  %v3855_v58 = vcombine.low %v127_v47, %v131_v48 }
  0x53   :  { %2704 = vmatprep.mubr.bf16.mxu0 %v3772_v9  ;;  %2368 = vmatpush1.bf16.msra.mxu1 %v4807_v5  ;;  %v3807_v5 = vcombine.low %v79_v56, %v83_v57  ;;  %v4823_v9 = vld [vmem:[%s6063_s1 + $0xe0] sm:$0xff]   ;;  %v137_v57 = vld [vmem:[%s6064_s0 + $0x3d0] sm:$0xff] }
  0x54   :  { %2946 = vmatpush1.bf16.msra.mxu0 %v4808_v8  ;;  %2369 = vmatprep.subr.bf16.mxu1 %v4832_v0  ;;  %v3820_v8 = vcombine.high %v89_v3, %v93_v4  ;;  %v139_v56 = vld [vmem:[%s6064_s0 + $0x3e0] sm:$0xff] }
  0x55   :  { %2947 = vmatprep.subr.bf16.mxu0 %v4832_v0 }
  0x57   :  { %2370 = vmatpush1.bf16.msra.mxu1 %v4809_v14  ;;  %v101_v14 = vld [vmem:[%s6064_s0 + $0x2b0] sm:$0xff] }
  0x58   :  { %2948 = vmatpush1.bf16.msra.mxu0 %v4810_v15  ;;  %2371 = vmatprep.subr.bf16.mxu1 %v4832_v0  ;;  %v3815_v15 = vcombine.low %v87_v1, %v91_v2  ;;  %v143_v1 = vld [vmem:[%s6064_s0 + $0x400] sm:$0xff] }
  0x59   :  { %2127 = vmatmul.mubr.bf16.gmra.mrb[12].mxu1 %v3767_v16  ;;  %2949 = vmatprep.subr.bf16.mxu0 %v4832_v0  ;;  %v3819_v16 = vcombine.low %v89_v3, %v93_v4  ;;  %v147_v2 = vld [vmem:[%s6064_s0 + $0x420] sm:$0xff]  ;;  %v145_v3 = vld [vmem:[%s6064_s0 + $0x410] sm:$0xff] }
  0x5a   :  { %2705 = vmatmul.mubr.bf16.gmra.mrb[12].mxu0 %v3771_v17  ;;  %2134 = vmatprep.mubr.bf16.mxu1 %v3776_v18  ;;  %v3824_v17 = vcombine.high %v95_v11, %v99_v12  ;;  %v3828_v18 = vcombine.high %v97_v13, %v101_v14  ;;  %v149_v4 = vld [vmem:[%s6064_s0 + $0x430] sm:$0xff] }
  0x5b   :  { %2712 = vmatprep.mubr.bf16.mxu0 %v3780_v19  ;;  %2372 = vmatpush1.bf16.msra.mxu1 %v4811_v20  ;;  %v103_v19 = vld [vmem:[%s6064_s0 + $0x2c0] sm:$0xff]  ;;  %v153_v11 = vld [vmem:[%s6064_s0 + $0x450] sm:$0xff] }
  0x5c   :  { %2950 = vmatpush1.bf16.msra.mxu0 %v4812_v21  ;;  %2373 = vmatprep.subr.bf16.mxu1 %v4832_v0  ;;  %v107_v20 = vld [vmem:[%s6064_s0 + $0x2e0] sm:$0xff]  ;;  %v105_v21 = vld [vmem:[%s6064_s0 + $0x2d0] sm:$0xff] }
  0x5d   :  { %2951 = vmatprep.subr.bf16.mxu0 %v4832_v0  ;;  %v3832_v25 = vcombine.high %v103_v19, %v107_v20  ;;  %v3836_v26 = vcombine.high %v105_v21, %v109_v22  ;;  %v3835_v34 = vcombine.low %v105_v21, %v109_v22  ;;  %v157_v12 = vld [vmem:[%s6064_s0 + $0x470] sm:$0xff] }
  0x5e   :  { %v3883_v22 = vcombine.low %v153_v11, %v157_v12 }
  0x5f   :  { %2374 = vmatpush1.bf16.msra.mxu1 %v4813_v24  ;;  %v3827_v24 = vcombine.low %v97_v13, %v101_v14  ;;  %v3871_v13 = vcombine.low %v143_v1, %v147_v2  ;;  %v3875_v14 = vcombine.low %v145_v3, %v149_v4 }
  0x60   :  { %2952 = vmatpush1.bf16.msra.mxu0 %v4814_v27  ;;  %2375 = vmatprep.subr.bf16.mxu1 %v4832_v0  ;;  %v4825_v27 = vld [vmem:[%s6063_s1 + $0xe8] sm:$0xff]  }
  0x61   :  { %2135 = vmatmul.mubr.bf16.gmra.mrb[16].mxu1 %v3775_v28  ;;  %2953 = vmatprep.subr.bf16.mxu0 %v4832_v0  ;;  %v4826_v28 = vld [vmem:[%s6063_s1 + $0x1e8] sm:$0xff]  }
  0x62   :  { %2713 = vmatmul.mubr.bf16.gmra.mrb[16].mxu0 %v3779_v29  ;;  %2142 = vmatprep.mubr.bf16.mxu1 %v3784_v30  ;;  %v111_v29 = vld [vmem:[%s6064_s0 + $0x300] sm:$0xff] }
  0x63   :  { %2720 = vmatprep.mubr.bf16.mxu0 %v3788_v31  ;;  %2376 = vmatpush1.bf16.msra.mxu1 %v4815_v32  ;;  %v115_v30 = vld [vmem:[%s6064_s0 + $0x320] sm:$0xff]  ;;  %v113_v31 = vld [vmem:[%s6064_s0 + $0x310] sm:$0xff] }
  0x64   :  { %2954 = vmatpush1.bf16.msra.mxu0 %v4816_v33  ;;  %2377 = vmatprep.subr.bf16.mxu1 %v4832_v0  ;;  %v117_v32 = vld [vmem:[%s6064_s0 + $0x330] sm:$0xff]  ;;  %v3831_v33 = vcombine.low %v103_v19, %v107_v20  ;;  %v3840_v35 = vcombine.high %v111_v29, %v115_v30 }
  0x65   :  { %2955 = vmatprep.subr.bf16.mxu0 %v4832_v0  ;;  %v161_v19 = vld [vmem:[%s6064_s0 + $0x490] sm:$0xff] }
  0x66   :  { %v165_v20 = vld [vmem:[%s6064_s0 + $0x4b0] sm:$0xff] }
  0x67   :  { %2378 = vmatpush1.bf16.msra.mxu1 %v4817_v36  ;;  %v3844_v36 = vcombine.high %v113_v31, %v117_v32 }
  0x68   :  { %2956 = vmatpush1.bf16.msra.mxu0 %v4818_v39  ;;  %2379 = vmatprep.subr.bf16.mxu1 %v4832_v0  ;;  %v121_v39 = vld [vmem:[%s6064_s0 + $0x350] sm:$0xff] }
  0x69   :  { %2143 = vmatmul.mubr.bf16.gmra.mrb[20].mxu1 %v3783_v40  ;;  %2957 = vmatprep.subr.bf16.mxu0 %v4832_v0  ;;  %v125_v40 = vld [vmem:[%s6064_s0 + $0x370] sm:$0xff] }
  0x6a   :  { %2721 = vmatmul.mubr.bf16.gmra.mrb[20].mxu0 %v3787_v41  ;;  %2150 = vmatprep.mubr.bf16.mxu1 %v3792_v42  ;;  %v3839_v41 = vcombine.low %v111_v29, %v115_v30  ;;  %v3843_v42 = vcombine.low %v113_v31, %v117_v32  ;;  %v3891_v30 = vcombine.low %v161_v19, %v165_v20 }
  0x6b   :  { %2728 = vmatprep.mubr.bf16.mxu0 %v3796_v43  ;;  %2380 = vmatpush1.bf16.msra.mxu1 %v4819_v44  ;;  %v3848_v43 = vcombine.high %v119_v37, %v123_v38  ;;  %v3852_v44 = vcombine.high %v121_v39, %v125_v40 }
  0x6c   :  { %2958 = vmatpush1.bf16.msra.mxu0 %v4820_v45  ;;  %2381 = vmatprep.subr.bf16.mxu1 %v4832_v0  ;;  %v4827_v45 = vld [vmem:[%s6063_s1 + $0xf0] sm:$0xff]  }
  0x6d   :  { %2959 = vmatprep.subr.bf16.mxu0 %v4832_v0 }
  0x6f   :  { %2382 = vmatpush1.bf16.msra.mxu1 %v4821_v54 }
  0x70   :  { %2960 = vmatpush1.bf16.msra.mxu0 %v4822_v55  ;;  %2383 = vmatprep.subr.bf16.mxu1 %v4832_v0  ;;  %v135_v55 = vld [vmem:[%s6064_s0 + $0x3c0] sm:$0xff] }
  0x71   :  { %2151 = vmatmul.mubr.bf16.gmra.mrb[24].mxu1 %v3791_v50  ;;  %2961 = vmatprep.subr.bf16.mxu0 %v4832_v0  ;;  %v133_v50 = vld [vmem:[%s6064_s0 + $0x3b0] sm:$0xff] }
  0x72   :  { %2729 = vmatmul.mubr.bf16.gmra.mrb[24].mxu0 %v3795_v51  ;;  %2158 = vmatprep.mubr.bf16.mxu1 %v3800_v52  ;;  %v3847_v51 = vcombine.low %v119_v37, %v123_v38  ;;  %v3851_v52 = vcombine.low %v121_v39, %v125_v40  ;;  %v3860_v54 = vcombine.high %v129_v49, %v133_v50 }
  0x73   :  { %2736 = vmatprep.mubr.bf16.mxu0 %v3804_v53  ;;  %2384 = vmatpush1.bf16.msra.mxu1 %v4823_v9  ;;  %v3856_v53 = vcombine.high %v127_v47, %v131_v48  ;;  %v3859_v59 = vcombine.low %v129_v49, %v133_v50  ;;  %v151_v9 = vld [vmem:[%s6064_s0 + $0x440] sm:$0xff] }
  0x74   :  { %2962 = vmatpush1.bf16.msra.mxu0 %v4824_v10  ;;  %2385 = vmatprep.subr.bf16.mxu1 %v4832_v0  ;;  %v155_v10 = vld [vmem:[%s6064_s0 + $0x460] sm:$0xff] }
  0x75   :  { %2963 = vmatprep.subr.bf16.mxu0 %v4832_v0  ;;  %v3879_v21 = vcombine.low %v151_v9, %v155_v10  ;;  %v191_v49 = vld [vmem:[%s6064_s0 + $0x580] sm:$0xff] }
  0x76   :  { %v195_v50 = vld [vmem:[%s6064_s0 + $0x5a0] sm:$0xff] }
  0x77   :  { %2386 = vmatpush1.bf16.msra.mxu1 %v4825_v27  ;;  %v169_v27 = vld [vmem:[%s6064_s0 + $0x4d0] sm:$0xff] }
  0x78   :  { %2964 = vmatpush1.bf16.msra.mxu0 %v4826_v28  ;;  %2387 = vmatprep.subr.bf16.mxu1 %v4832_v0  ;;  %v173_v28 = vld [vmem:[%s6064_s0 + $0x4f0] sm:$0xff] }
  0x79   :  { %2159 = vmatmul.mubr.bf16.gmra.mrb[28].mxu1 %v3799_v60  ;;  %2965 = vmatprep.subr.bf16.mxu0 %v4832_v0  ;;  %v3864_v60 = vcombine.high %v135_v55, %v139_v56  ;;  %v3900_v32 = vcombine.high %v169_v27, %v173_v28  ;;  %v3899_v38 = vcombine.low %v169_v27, %v173_v28  ;;  %v233_v27 = vld [vmem:[%s6064_s0 + $0x6d0] sm:$0xff] }
  0x7a   :  { %2737 = vmatmul.mubr.bf16.gmra.mrb[28].mxu0 %v3803_v61  ;;  %2166 = vmatprep.mubr.bf16.mxu1 %v3808_v62  ;;  %v4829_v62 = vld [vmem:[%s6063_s1 + $0xf8] sm:$0xff]   ;;  %v237_v28 = vld [vmem:[%s6064_s0 + $0x6f0] sm:$0xff] }
  0x7b   :  { %2744 = vmatprep.mubr.bf16.mxu0 %v3812_v63  ;;  %2388 = vmatpush1.bf16.msra.mxu1 %v4827_v45  ;;  %v4830_v63 = vld [vmem:[%s6063_s1 + $0x1f8] sm:$0xff]  }
  0x7c   :  { %2966 = vmatpush1.bf16.msra.mxu0 %v4828_v46  ;;  %2389 = vmatprep.subr.bf16.mxu1 %v4832_v0 }
  0x7d   :  { %2967 = vmatprep.subr.bf16.mxu0 %v4832_v0  ;;  %v141_v0 = vld [vmem:[%s6064_s0 + $0x3f0] sm:$0xff] }
  0x7e   :  { %v3868_v61 = vcombine.high %v137_v57, %v141_v0 }
  0x7f   :  { %2390 = vmatpush1.bf16.msra.mxu1 %v4829_v62 }
  0x80   :  { %2968 = vmatpush1.bf16.msra.mxu0 %v4830_v63 }
  0x81   :  { %2167 = vmatmul.mubr.bf16.gmra.mrb[32].mxu1 %v3807_v5  ;;  %v3863_v5 = vcombine.low %v135_v55, %v139_v56  ;;  %v3920_v55 = vcombine.high %v191_v49, %v195_v50 }
  0x82   :  { %2745 = vmatmul.mubr.bf16.gmra.mrb[32].mxu0 %v3811_v6  ;;  %2174 = vmatprep.mubr.bf16.mxu1 %v3816_v7  ;;  %v3867_v6 = vcombine.low %v137_v57, %v141_v0  ;;  %v3872_v7 = vcombine.high %v143_v1, %v147_v2  ;;  %v199_v57 = vld [vmem:[%s6064_s0 + $0x5c0] sm:$0xff] }
  0x83   :  { %2752 = vmatprep.mubr.bf16.mxu0 %v3820_v8  ;;  %v3876_v8 = vcombine.high %v145_v3, %v149_v4  ;;  %v203_v0 = vld [vmem:[%s6064_s0 + $0x5e0] sm:$0xff]  ;;  %v209_v3 = vld [vmem:[%s6064_s0 + $0x610] sm:$0xff] }
  0x84   :  { %v3928_v62 = vcombine.high %v199_v57, %v203_v0  ;;  %v207_v1 = vld [vmem:[%s6064_s0 + $0x600] sm:$0xff]  ;;  %v213_v4 = vld [vmem:[%s6064_s0 + $0x630] sm:$0xff] }
  0x85   :  { %v211_v2 = vld [vmem:[%s6064_s0 + $0x620] sm:$0xff] }
  0x89   :  { %2175 = vmatmul.mubr.bf16.gmra.mrb[36].mxu1 %v3815_v15  ;;  %v3880_v15 = vcombine.high %v151_v9, %v155_v10  ;;  %v215_v9 = vld [vmem:[%s6064_s0 + $0x640] sm:$0xff] }
  0x8a   :  { %2753 = vmatmul.mubr.bf16.gmra.mrb[36].mxu0 %v3819_v16  ;;  %2182 = vmatprep.mubr.bf16.mxu1 %v3824_v17  ;;  %v3884_v16 = vcombine.high %v153_v11, %v157_v12  ;;  %v159_v17 = vld [vmem:[%s6064_s0 + $0x480] sm:$0xff]  ;;  %v217_v11 = vld [vmem:[%s6064_s0 + $0x650] sm:$0xff] }
  0x8b   :  { %2760 = vmatprep.mubr.bf16.mxu0 %v3828_v18  ;;  %v163_v18 = vld [vmem:[%s6064_s0 + $0x4a0] sm:$0xff]  ;;  %v221_v12 = vld [vmem:[%s6064_s0 + $0x670] sm:$0xff] }
  0x8c   :  { %v3887_v29 = vcombine.low %v159_v17, %v163_v18  ;;  %v219_v10 = vld [vmem:[%s6064_s0 + $0x660] sm:$0xff] }
  0x91   :  { %2183 = vmatmul.mubr.bf16.gmra.mrb[40].mxu1 %v3823_v23  ;;  %v3888_v23 = vcombine.high %v159_v17, %v163_v18  ;;  %v223_v17 = vld [vmem:[%s6064_s0 + $0x680] sm:$0xff] }
  0x92   :  { %2761 = vmatmul.mubr.bf16.gmra.mrb[40].mxu0 %v3827_v24  ;;  %2190 = vmatprep.mubr.bf16.mxu1 %v3832_v25  ;;  %v3892_v24 = vcombine.high %v161_v19, %v165_v20  ;;  %v167_v25 = vld [vmem:[%s6064_s0 + $0x4c0] sm:$0xff]  ;;  %v225_v19 = vld [vmem:[%s6064_s0 + $0x690] sm:$0xff] }
  0x93   :  { %2768 = vmatprep.mubr.bf16.mxu0 %v3836_v26  ;;  %v171_v26 = vld [vmem:[%s6064_s0 + $0x4e0] sm:$0xff]  ;;  %v229_v20 = vld [vmem:[%s6064_s0 + $0x6b0] sm:$0xff] }
  0x94   :  { %v3896_v31 = vcombine.high %v167_v25, %v171_v26  ;;  %v3895_v37 = vcombine.low %v167_v25, %v171_v26  ;;  %v227_v18 = vld [vmem:[%s6064_s0 + $0x6a0] sm:$0xff] }
  0x95   :  { %v231_v25 = vld [vmem:[%s6064_s0 + $0x6c0] sm:$0xff] }
  0x96   :  { %v235_v26 = vld [vmem:[%s6064_s0 + $0x6e0] sm:$0xff] }
  0x99   :  { %2191 = vmatmul.mubr.bf16.gmra.mrb[44].mxu1 %v3831_v33  ;;  %v175_v33 = vld [vmem:[%s6064_s0 + $0x500] sm:$0xff] }
  0x9a   :  { %2769 = vmatmul.mubr.bf16.gmra.mrb[44].mxu0 %v3835_v34  ;;  %2198 = vmatprep.mubr.bf16.mxu1 %v3840_v35  ;;  %v179_v34 = vld [vmem:[%s6064_s0 + $0x520] sm:$0xff]  ;;  %v177_v35 = vld [vmem:[%s6064_s0 + $0x510] sm:$0xff] }
  0x9b   :  { %2776 = vmatprep.mubr.bf16.mxu0 %v3844_v36  ;;  %v181_v36 = vld [vmem:[%s6064_s0 + $0x530] sm:$0xff]  ;;  %v3904_v39 = vcombine.high %v175_v33, %v179_v34  ;;  %v3903_v45 = vcombine.low %v175_v33, %v179_v34  ;;  %v239_v33 = vld [vmem:[%s6064_s0 + $0x700] sm:$0xff] }
  0x9c   :  { %v3908_v40 = vcombine.high %v177_v35, %v181_v36  ;;  %v3907_v46 = vcombine.low %v177_v35, %v181_v36  ;;  %v243_v34 = vld [vmem:[%s6064_s0 + $0x720] sm:$0xff]  ;;  %v241_v35 = vld [vmem:[%s6064_s0 + $0x710] sm:$0xff] }
  0x9d   :  { %v245_v36 = vld [vmem:[%s6064_s0 + $0x730] sm:$0xff] }
  0xa1   :  { %2199 = vmatmul.mubr.bf16.gmra.mrb[48].mxu1 %v3839_v41  ;;  %v183_v41 = vld [vmem:[%s6064_s0 + $0x540] sm:$0xff] }
  0xa2   :  { %2777 = vmatmul.mubr.bf16.gmra.mrb[48].mxu0 %v3843_v42  ;;  %2206 = vmatprep.mubr.bf16.mxu1 %v3848_v43  ;;  %v187_v42 = vld [vmem:[%s6064_s0 + $0x560] sm:$0xff]  ;;  %v185_v43 = vld [vmem:[%s6064_s0 + $0x550] sm:$0xff] }
  0xa3   :  { %2784 = vmatprep.mubr.bf16.mxu0 %v3852_v44  ;;  %v189_v44 = vld [vmem:[%s6064_s0 + $0x570] sm:$0xff]  ;;  %v3912_v47 = vcombine.high %v183_v41, %v187_v42 }
  0xa4   :  { %v3916_v48 = vcombine.high %v185_v43, %v189_v44 }
  0xa9   :  { %2207 = vmatmul.mubr.bf16.gmra.mrb[52].mxu1 %v3847_v51  ;;  %v193_v51 = vld [vmem:[%s6064_s0 + $0x590] sm:$0xff] }
  0xaa   :  { %2785 = vmatmul.mubr.bf16.gmra.mrb[52].mxu0 %v3851_v52  ;;  %2214 = vmatprep.mubr.bf16.mxu1 %v3856_v53  ;;  %v197_v52 = vld [vmem:[%s6064_s0 + $0x5b0] sm:$0xff]  ;;  %v3911_v53 = vcombine.low %v183_v41, %v187_v42  ;;  %v247_v41 = vld [vmem:[%s6064_s0 + $0x740] sm:$0xff] }
  0xab   :  { %2792 = vmatprep.mubr.bf16.mxu0 %v3860_v54  ;;  %v3915_v54 = vcombine.low %v185_v43, %v189_v44  ;;  %v3924_v56 = vcombine.high %v193_v51, %v197_v52  ;;  %v251_v42 = vld [vmem:[%s6064_s0 + $0x760] sm:$0xff]  ;;  %v249_v43 = vld [vmem:[%s6064_s0 + $0x750] sm:$0xff] }
  0xac   :  { %v253_v44 = vld [vmem:[%s6064_s0 + $0x770] sm:$0xff] }
  0xb1   :  { %2215 = vmatmul.mubr.bf16.gmra.mrb[56].mxu1 %v3855_v58  ;;  %v201_v58 = vld [vmem:[%s6064_s0 + $0x5d0] sm:$0xff] }
  0xb2   :  { %2793 = vmatmul.mubr.bf16.gmra.mrb[56].mxu0 %v3859_v59  ;;  %2222 = vmatprep.mubr.bf16.mxu1 %v3864_v60  ;;  %v205_v59 = vld [vmem:[%s6064_s0 + $0x5f0] sm:$0xff]  ;;  %v3919_v60 = vcombine.low %v191_v49, %v195_v50  ;;  %v255_v49 = vld [vmem:[%s6064_s0 + $0x780] sm:$0xff] }
  0xb3   :  { %2800 = vmatprep.mubr.bf16.mxu0 %v3868_v61  ;;  %v3923_v61 = vcombine.low %v193_v51, %v197_v52  ;;  %v3932_v63 = vcombine.high %v201_v58, %v205_v59  ;;  %v259_v50 = vld [vmem:[%s6064_s0 + $0x7a0] sm:$0xff]  ;;  %v257_v51 = vld [vmem:[%s6064_s0 + $0x790] sm:$0xff] }
  0xb4   :  { %v261_v52 = vld [vmem:[%s6064_s0 + $0x7b0] sm:$0xff] }
  0xb9   :  { %2223 = vmatmul.mubr.bf16.gmra.mrb[60].mxu1 %v3863_v5  ;;  %v3927_v5 = vcombine.low %v199_v57, %v203_v0  ;;  %v263_v57 = vld [vmem:[%s6064_s0 + $0x7c0] sm:$0xff] }
  0xba   :  { %2801 = vmatmul.mubr.bf16.gmra.mrb[60].mxu0 %v3867_v6  ;;  %2230 = vmatprep.mubr.bf16.mxu1 %v3872_v7  ;;  %v3931_v6 = vcombine.low %v201_v58, %v205_v59  ;;  %v3936_v7 = vcombine.high %v207_v1, %v211_v2  ;;  %v267_v0 = vld [vmem:[%s6064_s0 + $0x7e0] sm:$0xff]  ;;  %v265_v58 = vld [vmem:[%s6064_s0 + $0x7d0] sm:$0xff] }
  0xbb   :  { %2808 = vmatprep.mubr.bf16.mxu0 %v3876_v8  ;;  %v3940_v8 = vcombine.high %v209_v3, %v213_v4  ;;  %v269_v59 = vld [vmem:[%s6064_s0 + $0x7f0] sm:$0xff] }
  0xc1   :  { %2231 = vmatmul.mubr.bf16.gmra.mrb[64].mxu1 %v3871_v13  ;;  %v3935_v13 = vcombine.low %v207_v1, %v211_v2  ;;  %v16_v1 = vld [vmem:[%s6064_s0 + $0x8] sm:$0xff] }
  0xc2   :  { %2809 = vmatmul.mubr.bf16.gmra.mrb[64].mxu0 %v3875_v14  ;;  %2238 = vmatprep.mubr.bf16.mxu1 %v3880_v15  ;;  %v3939_v14 = vcombine.low %v209_v3, %v213_v4  ;;  %v3944_v15 = vcombine.high %v215_v9, %v219_v10  ;;  %v20_v2 = vld [vmem:[%s6064_s0 + $0x28] sm:$0xff]  ;;  %v18_v3 = vld [vmem:[%s6064_s0 + $0x18] sm:$0xff] }
  0xc3   :  { %2816 = vmatprep.mubr.bf16.mxu0 %v3884_v16  ;;  %v3948_v16 = vcombine.high %v217_v11, %v221_v12  ;;  %v22_v4 = vld [vmem:[%s6064_s0 + $0x38] sm:$0xff] }
  0xc9   :  { %2239 = vmatmul.mubr.bf16.gmra.mrb[68].mxu1 %v3879_v21  ;;  %v3943_v21 = vcombine.low %v215_v9, %v219_v10  ;;  %v24_v9 = vld [vmem:[%s6064_s0 + $0x48] sm:$0xff] }
  0xca   :  { %2817 = vmatmul.mubr.bf16.gmra.mrb[68].mxu0 %v3883_v22  ;;  %2246 = vmatprep.mubr.bf16.mxu1 %v3888_v23  ;;  %v3947_v22 = vcombine.low %v217_v11, %v221_v12  ;;  %v3952_v23 = vcombine.high %v223_v17, %v227_v18  ;;  %v28_v10 = vld [vmem:[%s6064_s0 + $0x68] sm:$0xff]  ;;  %v26_v11 = vld [vmem:[%s6064_s0 + $0x58] sm:$0xff] }
  0xcb   :  { %2824 = vmatprep.mubr.bf16.mxu0 %v3892_v24  ;;  %v3956_v24 = vcombine.high %v225_v19, %v229_v20  ;;  %v30_v12 = vld [vmem:[%s6064_s0 + $0x78] sm:$0xff] }
  0xd1   :  { %2247 = vmatmul.mubr.bf16.gmra.mrb[72].mxu1 %v3887_v29  ;;  %v3951_v29 = vcombine.low %v223_v17, %v227_v18  ;;  %v32_v17 = vld [vmem:[%s6064_s0 + $0x88] sm:$0xff] }
  0xd2   :  { %2825 = vmatmul.mubr.bf16.gmra.mrb[72].mxu0 %v3891_v30  ;;  %2254 = vmatprep.mubr.bf16.mxu1 %v3896_v31  ;;  %v3955_v30 = vcombine.low %v225_v19, %v229_v20  ;;  %v3960_v31 = vcombine.high %v231_v25, %v235_v26  ;;  %v36_v18 = vld [vmem:[%s6064_s0 + $0xa8] sm:$0xff]  ;;  %v34_v19 = vld [vmem:[%s6064_s0 + $0x98] sm:$0xff] }
  0xd3   :  { %2832 = vmatprep.mubr.bf16.mxu0 %v3900_v32  ;;  %v3964_v32 = vcombine.high %v233_v27, %v237_v28  ;;  %v38_v20 = vld [vmem:[%s6064_s0 + $0xb8] sm:$0xff] }
  0xd9   :  { %2255 = vmatmul.mubr.bf16.gmra.mrb[76].mxu1 %v3895_v37  ;;  %v3959_v37 = vcombine.low %v231_v25, %v235_v26  ;;  %v40_v25 = vld [vmem:[%s6064_s0 + $0xc8] sm:$0xff] }
  0xda   :  { %2833 = vmatmul.mubr.bf16.gmra.mrb[76].mxu0 %v3899_v38  ;;  %2262 = vmatprep.mubr.bf16.mxu1 %v3904_v39  ;;  %v3963_v38 = vcombine.low %v233_v27, %v237_v28  ;;  %v3968_v39 = vcombine.high %v239_v33, %v243_v34  ;;  %v44_v26 = vld [vmem:[%s6064_s0 + $0xe8] sm:$0xff]  ;;  %v42_v27 = vld [vmem:[%s6064_s0 + $0xd8] sm:$0xff] }
  0xdb   :  { %2840 = vmatprep.mubr.bf16.mxu0 %v3908_v40  ;;  %v3972_v40 = vcombine.high %v241_v35, %v245_v36  ;;  %v46_v28 = vld [vmem:[%s6064_s0 + $0xf8] sm:$0xff] }
  0xe1   :  { %2263 = vmatmul.mubr.bf16.gmra.mrb[80].mxu1 %v3903_v45  ;;  %v3967_v45 = vcombine.low %v239_v33, %v243_v34  ;;  %v48_v33 = vld [vmem:[%s6064_s0 + $0x108] sm:$0xff] }
  0xe2   :  { %2841 = vmatmul.mubr.bf16.gmra.mrb[80].mxu0 %v3907_v46  ;;  %2270 = vmatprep.mubr.bf16.mxu1 %v3912_v47  ;;  %v3971_v46 = vcombine.low %v241_v35, %v245_v36  ;;  %v3976_v47 = vcombine.high %v247_v41, %v251_v42  ;;  %v52_v34 = vld [vmem:[%s6064_s0 + $0x128] sm:$0xff]  ;;  %v50_v35 = vld [vmem:[%s6064_s0 + $0x118] sm:$0xff] }
  0xe3   :  { %2848 = vmatprep.mubr.bf16.mxu0 %v3916_v48  ;;  %v3980_v48 = vcombine.high %v249_v43, %v253_v44  ;;  %v54_v36 = vld [vmem:[%s6064_s0 + $0x138] sm:$0xff] }
  0xe9   :  { %2271 = vmatmul.mubr.bf16.gmra.mrb[84].mxu1 %v3911_v53  ;;  %v3975_v53 = vcombine.low %v247_v41, %v251_v42  ;;  %v56_v41 = vld [vmem:[%s6064_s0 + $0x148] sm:$0xff] }
  0xea   :  { %2849 = vmatmul.mubr.bf16.gmra.mrb[84].mxu0 %v3915_v54  ;;  %2278 = vmatprep.mubr.bf16.mxu1 %v3920_v55  ;;  %v3979_v54 = vcombine.low %v249_v43, %v253_v44  ;;  %v3984_v55 = vcombine.high %v255_v49, %v259_v50  ;;  %v60_v42 = vld [vmem:[%s6064_s0 + $0x168] sm:$0xff]  ;;  %v58_v43 = vld [vmem:[%s6064_s0 + $0x158] sm:$0xff] }
  0xeb   :  { %2856 = vmatprep.mubr.bf16.mxu0 %v3924_v56  ;;  %v3988_v56 = vcombine.high %v257_v51, %v261_v52  ;;  %v62_v44 = vld [vmem:[%s6064_s0 + $0x178] sm:$0xff] }
  0xf1   :  { %2279 = vmatmul.mubr.bf16.gmra.mrb[88].mxu1 %v3919_v60  ;;  %v3983_v60 = vcombine.low %v255_v49, %v259_v50  ;;  %v64_v49 = vld [vmem:[%s6064_s0 + $0x188] sm:$0xff] }
  0xf2   :  { %2857 = vmatmul.mubr.bf16.gmra.mrb[88].mxu0 %v3923_v61  ;;  %2286 = vmatprep.mubr.bf16.mxu1 %v3928_v62  ;;  %v3987_v61 = vcombine.low %v257_v51, %v261_v52  ;;  %v3992_v62 = vcombine.high %v263_v57, %v267_v0  ;;  %v68_v50 = vld [vmem:[%s6064_s0 + $0x1a8] sm:$0xff]  ;;  %v66_v51 = vld [vmem:[%s6064_s0 + $0x198] sm:$0xff] }
  0xf3   :  { %2864 = vmatprep.mubr.bf16.mxu0 %v3932_v63  ;;  %v3996_v63 = vcombine.high %v265_v58, %v269_v59  ;;  %v70_v52 = vld [vmem:[%s6064_s0 + $0x1b8] sm:$0xff] }
  0xf9   :  { %2287 = vmatmul.mubr.bf16.gmra.mrb[92].mxu1 %v3927_v5  ;;  %v3991_v5 = vcombine.low %v263_v57, %v267_v0  ;;  %v72_v57 = vld [vmem:[%s6064_s0 + $0x1c8] sm:$0xff] }
  0xfa   :  { %2865 = vmatmul.mubr.bf16.gmra.mrb[92].mxu0 %v3931_v6  ;;  %2294 = vmatprep.mubr.bf16.mxu1 %v3936_v7  ;;  %v3995_v6 = vcombine.low %v265_v58, %v269_v59  ;;  %v3746_v7 = vcombine.high %v16_v1, %v20_v2  ;;  %v76_v0 = vld [vmem:[%s6064_s0 + $0x1e8] sm:$0xff]  ;;  %v74_v58 = vld [vmem:[%s6064_s0 + $0x1d8] sm:$0xff] }
  0xfb   :  { %2872 = vmatprep.mubr.bf16.mxu0 %v3940_v8  ;;  %v3750_v8 = vcombine.high %v18_v3, %v22_v4  ;;  %v78_v59 = vld [vmem:[%s6064_s0 + $0x1f8] sm:$0xff] }
 0x101   :  { %2295 = vmatmul.mubr.bf16.gmra.mrb[96].mxu1 %v3935_v13  ;;  %v3745_v13 = vcombine.low %v16_v1, %v20_v2  ;;  %v80_v1 = vld [vmem:[%s6064_s0 + $0x208] sm:$0xff] }
 0x102   :  { %2873 = vmatmul.mubr.bf16.gmra.mrb[96].mxu0 %v3939_v14  ;;  %2302 = vmatprep.mubr.bf16.mxu1 %v3944_v15  ;;  %v3749_v14 = vcombine.low %v18_v3, %v22_v4  ;;  %v3754_v15 = vcombine.high %v24_v9, %v28_v10  ;;  %v84_v2 = vld [vmem:[%s6064_s0 + $0x228] sm:$0xff]  ;;  %v82_v3 = vld [vmem:[%s6064_s0 + $0x218] sm:$0xff] }
 0x103   :  { %2880 = vmatprep.mubr.bf16.mxu0 %v3948_v16  ;;  %v3758_v16 = vcombine.high %v26_v11, %v30_v12  ;;  %v86_v4 = vld [vmem:[%s6064_s0 + $0x238] sm:$0xff] }
 0x109   :  { %2303 = vmatmul.mubr.bf16.gmra.mrb[100].mxu1 %v3943_v21  ;;  %v3753_v21 = vcombine.low %v24_v9, %v28_v10  ;;  %v88_v9 = vld [vmem:[%s6064_s0 + $0x248] sm:$0xff] }
 0x10a   :  { %2881 = vmatmul.mubr.bf16.gmra.mrb[100].mxu0 %v3947_v22  ;;  %2310 = vmatprep.mubr.bf16.mxu1 %v3952_v23  ;;  %v3757_v22 = vcombine.low %v26_v11, %v30_v12  ;;  %v3762_v23 = vcombine.high %v32_v17, %v36_v18  ;;  %v92_v10 = vld [vmem:[%s6064_s0 + $0x268] sm:$0xff]  ;;  %v90_v11 = vld [vmem:[%s6064_s0 + $0x258] sm:$0xff] }
 0x10b   :  { %2888 = vmatprep.mubr.bf16.mxu0 %v3956_v24  ;;  %v3766_v24 = vcombine.high %v34_v19, %v38_v20  ;;  %v94_v12 = vld [vmem:[%s6064_s0 + $0x278] sm:$0xff] }
 0x111   :  { %2311 = vmatmul.mubr.bf16.gmra.mrb[104].mxu1 %v3951_v29  ;;  %v3761_v29 = vcombine.low %v32_v17, %v36_v18  ;;  %v96_v17 = vld [vmem:[%s6064_s0 + $0x288] sm:$0xff] }
 0x112   :  { %2889 = vmatmul.mubr.bf16.gmra.mrb[104].mxu0 %v3955_v30  ;;  %2318 = vmatprep.mubr.bf16.mxu1 %v3960_v31  ;;  %v3765_v30 = vcombine.low %v34_v19, %v38_v20  ;;  %v3770_v31 = vcombine.high %v40_v25, %v44_v26  ;;  %v100_v18 = vld [vmem:[%s6064_s0 + $0x2a8] sm:$0xff]  ;;  %v98_v19 = vld [vmem:[%s6064_s0 + $0x298] sm:$0xff] }
 0x113   :  { %2896 = vmatprep.mubr.bf16.mxu0 %v3964_v32  ;;  %v3774_v32 = vcombine.high %v42_v27, %v46_v28  ;;  %v102_v20 = vld [vmem:[%s6064_s0 + $0x2b8] sm:$0xff] }
 0x119   :  { %2319 = vmatmul.mubr.bf16.gmra.mrb[108].mxu1 %v3959_v37  ;;  %v3769_v37 = vcombine.low %v40_v25, %v44_v26  ;;  %v104_v25 = vld [vmem:[%s6064_s0 + $0x2c8] sm:$0xff] }
 0x11a   :  { %2897 = vmatmul.mubr.bf16.gmra.mrb[108].mxu0 %v3963_v38  ;;  %2326 = vmatprep.mubr.bf16.mxu1 %v3968_v39  ;;  %v3773_v38 = vcombine.low %v42_v27, %v46_v28  ;;  %v3778_v39 = vcombine.high %v48_v33, %v52_v34  ;;  %v108_v26 = vld [vmem:[%s6064_s0 + $0x2e8] sm:$0xff]  ;;  %v106_v27 = vld [vmem:[%s6064_s0 + $0x2d8] sm:$0xff] }
 0x11b   :  { %2904 = vmatprep.mubr.bf16.mxu0 %v3972_v40  ;;  %v3782_v40 = vcombine.high %v50_v35, %v54_v36  ;;  %v110_v28 = vld [vmem:[%s6064_s0 + $0x2f8] sm:$0xff] }
 0x121   :  { %2327 = vmatmul.mubr.bf16.gmra.mrb[112].mxu1 %v3967_v45  ;;  %v3777_v45 = vcombine.low %v48_v33, %v52_v34  ;;  %v112_v33 = vld [vmem:[%s6064_s0 + $0x308] sm:$0xff] }
 0x122   :  { %2905 = vmatmul.mubr.bf16.gmra.mrb[112].mxu0 %v3971_v46  ;;  %2334 = vmatprep.mubr.bf16.mxu1 %v3976_v47  ;;  %v3781_v46 = vcombine.low %v50_v35, %v54_v36  ;;  %v3786_v47 = vcombine.high %v56_v41, %v60_v42  ;;  %v116_v34 = vld [vmem:[%s6064_s0 + $0x328] sm:$0xff]  ;;  %v114_v35 = vld [vmem:[%s6064_s0 + $0x318] sm:$0xff] }
 0x123   :  { %2912 = vmatprep.mubr.bf16.mxu0 %v3980_v48  ;;  %v3790_v48 = vcombine.high %v58_v43, %v62_v44  ;;  %v118_v36 = vld [vmem:[%s6064_s0 + $0x338] sm:$0xff] }
 0x129   :  { %2335 = vmatmul.mubr.bf16.gmra.mrb[116].mxu1 %v3975_v53  ;;  %v3785_v53 = vcombine.low %v56_v41, %v60_v42  ;;  %v120_v41 = vld [vmem:[%s6064_s0 + $0x348] sm:$0xff] }
 0x12a   :  { %2913 = vmatmul.mubr.bf16.gmra.mrb[116].mxu0 %v3979_v54  ;;  %2342 = vmatprep.mubr.bf16.mxu1 %v3984_v55  ;;  %v3789_v54 = vcombine.low %v58_v43, %v62_v44  ;;  %v3794_v55 = vcombine.high %v64_v49, %v68_v50  ;;  %v124_v42 = vld [vmem:[%s6064_s0 + $0x368] sm:$0xff]  ;;  %v122_v43 = vld [vmem:[%s6064_s0 + $0x358] sm:$0xff] }
 0x12b   :  { %2920 = vmatprep.mubr.bf16.mxu0 %v3988_v56  ;;  %v3798_v56 = vcombine.high %v66_v51, %v70_v52  ;;  %v126_v44 = vld [vmem:[%s6064_s0 + $0x378] sm:$0xff] }
 0x131   :  { %2343 = vmatmul.mubr.bf16.gmra.mrb[120].mxu1 %v3983_v60  ;;  %v3793_v60 = vcombine.low %v64_v49, %v68_v50  ;;  %v128_v49 = vld [vmem:[%s6064_s0 + $0x388] sm:$0xff] }
 0x132   :  { %2921 = vmatmul.mubr.bf16.gmra.mrb[120].mxu0 %v3987_v61  ;;  %2350 = vmatprep.mubr.bf16.mxu1 %v3992_v62  ;;  %v3797_v61 = vcombine.low %v66_v51, %v70_v52  ;;  %v3802_v62 = vcombine.high %v72_v57, %v76_v0  ;;  %v132_v50 = vld [vmem:[%s6064_s0 + $0x3a8] sm:$0xff]  ;;  %v130_v51 = vld [vmem:[%s6064_s0 + $0x398] sm:$0xff] }
 0x133   :  { %2928 = vmatprep.mubr.bf16.mxu0 %v3996_v63  ;;  %v3806_v63 = vcombine.high %v74_v58, %v78_v59  ;;  %v134_v52 = vld [vmem:[%s6064_s0 + $0x3b8] sm:$0xff] }
 0x139   :  { %2351 = vmatmul.mubr.bf16.gmra.mrb[124].mxu1 %v3991_v5  ;;  %v3801_v5 = vcombine.low %v72_v57, %v76_v0  ;;  %v136_v57 = vld [vmem:[%s6064_s0 + $0x3c8] sm:$0xff] }
 0x13a   :  { %2929 = vmatmul.mubr.bf16.gmra.mrb[124].mxu0 %v3995_v6  ;;  %2391 = vmatprep.mubr.bf16.mxu1 %v3746_v7  ;;  %v3805_v6 = vcombine.low %v74_v58, %v78_v59  ;;  %v3810_v7 = vcombine.high %v80_v1, %v84_v2  ;;  %v140_v0 = vld [vmem:[%s6064_s0 + $0x3e8] sm:$0xff]  ;;  %v138_v58 = vld [vmem:[%s6064_s0 + $0x3d8] sm:$0xff] }
 0x13b   :  { %2969 = vmatprep.mubr.bf16.mxu0 %v3750_v8  ;;  %v3814_v8 = vcombine.high %v82_v3, %v86_v4  ;;  %v142_v59 = vld [vmem:[%s6064_s0 + $0x3f8] sm:$0xff] }
 0x141   :  { %2392 = vmatmul.mubr.bf16.vlgmr.msra.gmra.mrb[0].mxu1 %v3745_v13  ;;  %v3809_v13 = vcombine.low %v80_v1, %v84_v2  ;;  %v144_v1 = vld [vmem:[%s6064_s0 + $0x408] sm:$0xff] }
 0x142   :  { %2970 = vmatmul.mubr.bf16.vlgmr.msra.gmra.mrb[0].mxu0 %v3749_v14  ;;  %2399 = vmatprep.mubr.bf16.mxu1 %v3754_v15  ;;  %v3813_v14 = vcombine.low %v82_v3, %v86_v4  ;;  %v3818_v15 = vcombine.high %v88_v9, %v92_v10  ;;  %v148_v2 = vld [vmem:[%s6064_s0 + $0x428] sm:$0xff]  ;;  %v146_v3 = vld [vmem:[%s6064_s0 + $0x418] sm:$0xff] }
 0x143   :  { %2977 = vmatprep.mubr.bf16.mxu0 %v3758_v16  ;;  %v3822_v16 = vcombine.high %v90_v11, %v94_v12  ;;  %v150_v4 = vld [vmem:[%s6064_s0 + $0x438] sm:$0xff] }
 0x149   :  { %2400 = vmatmul.mubr.bf16.gmra.mrb[4].mxu1 %v3753_v21  ;;  %v3817_v21 = vcombine.low %v88_v9, %v92_v10  ;;  %v152_v9 = vld [vmem:[%s6064_s0 + $0x448] sm:$0xff] }
 0x14a   :  { %2978 = vmatmul.mubr.bf16.gmra.mrb[4].mxu0 %v3757_v22  ;;  %2407 = vmatprep.mubr.bf16.mxu1 %v3762_v23  ;;  %v3821_v22 = vcombine.low %v90_v11, %v94_v12  ;;  %v3826_v23 = vcombine.high %v96_v17, %v100_v18  ;;  %v156_v10 = vld [vmem:[%s6064_s0 + $0x468] sm:$0xff]  ;;  %v154_v11 = vld [vmem:[%s6064_s0 + $0x458] sm:$0xff] }
 0x14b   :  { %2985 = vmatprep.mubr.bf16.mxu0 %v3766_v24  ;;  %v3830_v24 = vcombine.high %v98_v19, %v102_v20  ;;  %v158_v12 = vld [vmem:[%s6064_s0 + $0x478] sm:$0xff] }
 0x151   :  { %2408 = vmatmul.mubr.bf16.gmra.mrb[8].mxu1 %v3761_v29  ;;  %v3825_v29 = vcombine.low %v96_v17, %v100_v18  ;;  %v160_v17 = vld [vmem:[%s6064_s0 + $0x488] sm:$0xff] }
 0x152   :  { %2986 = vmatmul.mubr.bf16.gmra.mrb[8].mxu0 %v3765_v30  ;;  %2415 = vmatprep.mubr.bf16.mxu1 %v3770_v31  ;;  %v3829_v30 = vcombine.low %v98_v19, %v102_v20  ;;  %v3834_v31 = vcombine.high %v104_v25, %v108_v26  ;;  %v164_v18 = vld [vmem:[%s6064_s0 + $0x4a8] sm:$0xff]  ;;  %v162_v19 = vld [vmem:[%s6064_s0 + $0x498] sm:$0xff] }
 0x153   :  { %2993 = vmatprep.mubr.bf16.mxu0 %v3774_v32  ;;  %v3838_v32 = vcombine.high %v106_v27, %v110_v28  ;;  %v166_v20 = vld [vmem:[%s6064_s0 + $0x4b8] sm:$0xff] }
 0x159   :  { %2416 = vmatmul.mubr.bf16.gmra.mrb[12].mxu1 %v3769_v37  ;;  %v3833_v37 = vcombine.low %v104_v25, %v108_v26  ;;  %v168_v25 = vld [vmem:[%s6064_s0 + $0x4c8] sm:$0xff] }
 0x15a   :  { %2994 = vmatmul.mubr.bf16.gmra.mrb[12].mxu0 %v3773_v38  ;;  %2423 = vmatprep.mubr.bf16.mxu1 %v3778_v39  ;;  %v3837_v38 = vcombine.low %v106_v27, %v110_v28  ;;  %v3842_v39 = vcombine.high %v112_v33, %v116_v34  ;;  %v172_v26 = vld [vmem:[%s6064_s0 + $0x4e8] sm:$0xff]  ;;  %v170_v27 = vld [vmem:[%s6064_s0 + $0x4d8] sm:$0xff] }
 0x15b   :  { %3001 = vmatprep.mubr.bf16.mxu0 %v3782_v40  ;;  %v3846_v40 = vcombine.high %v114_v35, %v118_v36  ;;  %v174_v28 = vld [vmem:[%s6064_s0 + $0x4f8] sm:$0xff] }
 0x161   :  { %2424 = vmatmul.mubr.bf16.gmra.mrb[16].mxu1 %v3777_v45  ;;  %v3841_v45 = vcombine.low %v112_v33, %v116_v34  ;;  %v176_v33 = vld [vmem:[%s6064_s0 + $0x508] sm:$0xff] }
 0x162   :  { %3002 = vmatmul.mubr.bf16.gmra.mrb[16].mxu0 %v3781_v46  ;;  %2431 = vmatprep.mubr.bf16.mxu1 %v3786_v47  ;;  %v3845_v46 = vcombine.low %v114_v35, %v118_v36  ;;  %v3850_v47 = vcombine.high %v120_v41, %v124_v42  ;;  %v180_v34 = vld [vmem:[%s6064_s0 + $0x528] sm:$0xff]  ;;  %v178_v35 = vld [vmem:[%s6064_s0 + $0x518] sm:$0xff] }
 0x163   :  { %3009 = vmatprep.mubr.bf16.mxu0 %v3790_v48  ;;  %v3854_v48 = vcombine.high %v122_v43, %v126_v44  ;;  %v182_v36 = vld [vmem:[%s6064_s0 + $0x538] sm:$0xff] }
 0x169   :  { %2432 = vmatmul.mubr.bf16.gmra.mrb[20].mxu1 %v3785_v53  ;;  %v3849_v53 = vcombine.low %v120_v41, %v124_v42  ;;  %v184_v41 = vld [vmem:[%s6064_s0 + $0x548] sm:$0xff] }
 0x16a   :  { %3010 = vmatmul.mubr.bf16.gmra.mrb[20].mxu0 %v3789_v54  ;;  %2439 = vmatprep.mubr.bf16.mxu1 %v3794_v55  ;;  %v3853_v54 = vcombine.low %v122_v43, %v126_v44  ;;  %v3858_v55 = vcombine.high %v128_v49, %v132_v50  ;;  %v188_v42 = vld [vmem:[%s6064_s0 + $0x568] sm:$0xff]  ;;  %v186_v43 = vld [vmem:[%s6064_s0 + $0x558] sm:$0xff] }
 0x16b   :  { %3017 = vmatprep.mubr.bf16.mxu0 %v3798_v56  ;;  %v3862_v56 = vcombine.high %v130_v51, %v134_v52  ;;  %v190_v44 = vld [vmem:[%s6064_s0 + $0x578] sm:$0xff] }
 0x171   :  { %2440 = vmatmul.mubr.bf16.gmra.mrb[24].mxu1 %v3793_v60  ;;  %v3857_v60 = vcombine.low %v128_v49, %v132_v50  ;;  %v192_v49 = vld [vmem:[%s6064_s0 + $0x588] sm:$0xff] }
 0x172   :  { %3018 = vmatmul.mubr.bf16.gmra.mrb[24].mxu0 %v3797_v61  ;;  %2447 = vmatprep.mubr.bf16.mxu1 %v3802_v62  ;;  %v3861_v61 = vcombine.low %v130_v51, %v134_v52  ;;  %v3866_v62 = vcombine.high %v136_v57, %v140_v0  ;;  %v196_v50 = vld [vmem:[%s6064_s0 + $0x5a8] sm:$0xff]  ;;  %v194_v51 = vld [vmem:[%s6064_s0 + $0x598] sm:$0xff] }
 0x173   :  { %3025 = vmatprep.mubr.bf16.mxu0 %v3806_v63  ;;  %v3870_v63 = vcombine.high %v138_v58, %v142_v59  ;;  %v198_v52 = vld [vmem:[%s6064_s0 + $0x5b8] sm:$0xff] }
 0x179   :  { %2448 = vmatmul.mubr.bf16.gmra.mrb[28].mxu1 %v3801_v5  ;;  %v3865_v5 = vcombine.low %v136_v57, %v140_v0  ;;  %v200_v57 = vld [vmem:[%s6064_s0 + $0x5c8] sm:$0xff] }
 0x17a   :  { %3026 = vmatmul.mubr.bf16.gmra.mrb[28].mxu0 %v3805_v6  ;;  %2455 = vmatprep.mubr.bf16.mxu1 %v3810_v7  ;;  %v3869_v6 = vcombine.low %v138_v58, %v142_v59  ;;  %v3874_v7 = vcombine.high %v144_v1, %v148_v2  ;;  %v204_v0 = vld [vmem:[%s6064_s0 + $0x5e8] sm:$0xff]  ;;  %v202_v58 = vld [vmem:[%s6064_s0 + $0x5d8] sm:$0xff] }
 0x17b   :  { %3033 = vmatprep.mubr.bf16.mxu0 %v3814_v8  ;;  %v3878_v8 = vcombine.high %v146_v3, %v150_v4  ;;  %v206_v59 = vld [vmem:[%s6064_s0 + $0x5f8] sm:$0xff] }
 0x181   :  { %2456 = vmatmul.mubr.bf16.gmra.mrb[32].mxu1 %v3809_v13  ;;  %v3873_v13 = vcombine.low %v144_v1, %v148_v2  ;;  %v208_v1 = vld [vmem:[%s6064_s0 + $0x608] sm:$0xff] }
 0x182   :  { %3034 = vmatmul.mubr.bf16.gmra.mrb[32].mxu0 %v3813_v14  ;;  %2463 = vmatprep.mubr.bf16.mxu1 %v3818_v15  ;;  %v3877_v14 = vcombine.low %v146_v3, %v150_v4  ;;  %v3882_v15 = vcombine.high %v152_v9, %v156_v10  ;;  %v212_v2 = vld [vmem:[%s6064_s0 + $0x628] sm:$0xff]  ;;  %v210_v3 = vld [vmem:[%s6064_s0 + $0x618] sm:$0xff] }
 0x183   :  { %3041 = vmatprep.mubr.bf16.mxu0 %v3822_v16  ;;  %v3886_v16 = vcombine.high %v154_v11, %v158_v12  ;;  %v214_v4 = vld [vmem:[%s6064_s0 + $0x638] sm:$0xff] }
 0x189   :  { %2464 = vmatmul.mubr.bf16.gmra.mrb[36].mxu1 %v3817_v21  ;;  %v3881_v21 = vcombine.low %v152_v9, %v156_v10  ;;  %v216_v9 = vld [vmem:[%s6064_s0 + $0x648] sm:$0xff] }
 0x18a   :  { %3042 = vmatmul.mubr.bf16.gmra.mrb[36].mxu0 %v3821_v22  ;;  %2471 = vmatprep.mubr.bf16.mxu1 %v3826_v23  ;;  %v3885_v22 = vcombine.low %v154_v11, %v158_v12  ;;  %v3890_v23 = vcombine.high %v160_v17, %v164_v18  ;;  %v220_v10 = vld [vmem:[%s6064_s0 + $0x668] sm:$0xff]  ;;  %v218_v11 = vld [vmem:[%s6064_s0 + $0x658] sm:$0xff] }
 0x18b   :  { %3049 = vmatprep.mubr.bf16.mxu0 %v3830_v24  ;;  %v3894_v24 = vcombine.high %v162_v19, %v166_v20  ;;  %v222_v12 = vld [vmem:[%s6064_s0 + $0x678] sm:$0xff] }
 0x191   :  { %2472 = vmatmul.mubr.bf16.gmra.mrb[40].mxu1 %v3825_v29  ;;  %v3889_v29 = vcombine.low %v160_v17, %v164_v18  ;;  %v224_v17 = vld [vmem:[%s6064_s0 + $0x688] sm:$0xff] }
 0x192   :  { %3050 = vmatmul.mubr.bf16.gmra.mrb[40].mxu0 %v3829_v30  ;;  %2479 = vmatprep.mubr.bf16.mxu1 %v3834_v31  ;;  %v3893_v30 = vcombine.low %v162_v19, %v166_v20  ;;  %v3898_v31 = vcombine.high %v168_v25, %v172_v26  ;;  %v228_v18 = vld [vmem:[%s6064_s0 + $0x6a8] sm:$0xff]  ;;  %v226_v19 = vld [vmem:[%s6064_s0 + $0x698] sm:$0xff] }
 0x193   :  { %3057 = vmatprep.mubr.bf16.mxu0 %v3838_v32  ;;  %v3902_v32 = vcombine.high %v170_v27, %v174_v28  ;;  %v230_v20 = vld [vmem:[%s6064_s0 + $0x6b8] sm:$0xff] }
 0x199   :  { %2480 = vmatmul.mubr.bf16.gmra.mrb[44].mxu1 %v3833_v37  ;;  %v3897_v37 = vcombine.low %v168_v25, %v172_v26  ;;  %v232_v25 = vld [vmem:[%s6064_s0 + $0x6c8] sm:$0xff] }
 0x19a   :  { %3058 = vmatmul.mubr.bf16.gmra.mrb[44].mxu0 %v3837_v38  ;;  %2487 = vmatprep.mubr.bf16.mxu1 %v3842_v39  ;;  %v3901_v38 = vcombine.low %v170_v27, %v174_v28  ;;  %v3906_v39 = vcombine.high %v176_v33, %v180_v34  ;;  %v236_v26 = vld [vmem:[%s6064_s0 + $0x6e8] sm:$0xff]  ;;  %v234_v27 = vld [vmem:[%s6064_s0 + $0x6d8] sm:$0xff] }
 0x19b   :  { %3065 = vmatprep.mubr.bf16.mxu0 %v3846_v40  ;;  %v3910_v40 = vcombine.high %v178_v35, %v182_v36  ;;  %v238_v28 = vld [vmem:[%s6064_s0 + $0x6f8] sm:$0xff] }
 0x1a1   :  { %2488 = vmatmul.mubr.bf16.gmra.mrb[48].mxu1 %v3841_v45  ;;  %v3905_v45 = vcombine.low %v176_v33, %v180_v34  ;;  %v5848_v33 = vld [vmem:[%s6065_s2] ss:$0 sm:$0xff]  ;;  %v240_v34 = vld [vmem:[%s6064_s0 + $0x708] sm:$0xff] }
 0x1a2   :  { %3066 = vmatmul.mubr.bf16.gmra.mrb[48].mxu0 %v3845_v46  ;;  %2495 = vmatprep.mubr.bf16.mxu1 %v3850_v47  ;;  %v3909_v46 = vcombine.low %v178_v35, %v182_v36  ;;  %v3914_v47 = vcombine.high %v184_v41, %v188_v42  ;;  %v244_v35 = vld [vmem:[%s6064_s0 + $0x728] sm:$0xff] }
 0x1a3   :  { %3073 = vmatprep.mubr.bf16.mxu0 %v3854_v48  ;;  %v3918_v48 = vcombine.high %v186_v43, %v190_v44 }
 0x1a9   :  { %2496 = vmatmul.mubr.bf16.gmra.mrb[52].mxu1 %v3849_v53  ;;  %v3913_v53 = vcombine.low %v184_v41, %v188_v42  ;;  %v3961_v42 = vcombine.low %v232_v25, %v236_v26 }
 0x1aa   :  { %3074 = vmatmul.mubr.bf16.gmra.mrb[52].mxu0 %v3853_v54  ;;  %2503 = vmatprep.mubr.bf16.mxu1 %v3858_v55  ;;  %v3917_v54 = vcombine.low %v186_v43, %v190_v44  ;;  %v3922_v55 = vcombine.high %v192_v49, %v196_v50 }
 0x1ab   :  { %3081 = vmatprep.mubr.bf16.mxu0 %v3862_v56  ;;  %v3926_v56 = vcombine.high %v194_v51, %v198_v52 }
 0x1b1   :  { %2504 = vmatmul.mubr.bf16.gmra.mrb[56].mxu1 %v3857_v60  ;;  %v3921_v60 = vcombine.low %v192_v49, %v196_v50 }
 0x1b2   :  { %3082 = vmatmul.mubr.bf16.gmra.mrb[56].mxu0 %v3861_v61  ;;  %2511 = vmatprep.mubr.bf16.mxu1 %v3866_v62  ;;  %v3925_v61 = vcombine.low %v194_v51, %v198_v52  ;;  %v3930_v62 = vcombine.high %v200_v57, %v204_v0 }
 0x1b3   :  { %3089 = vmatprep.mubr.bf16.mxu0 %v3870_v63  ;;  %v3934_v63 = vcombine.high %v202_v58, %v206_v59 }
 0x1b9   :  { %2512 = vmatmul.mubr.bf16.gmra.mrb[60].mxu1 %v3865_v5  ;;  %v3929_v5 = vcombine.low %v200_v57, %v204_v0  ;;  %v252_v57 = vld [vmem:[%s6064_s0 + $0x768] sm:$0xff] }
 0x1ba   :  { %3090 = vmatmul.mubr.bf16.gmra.mrb[60].mxu0 %v3869_v6  ;;  %2519 = vmatprep.mubr.bf16.mxu1 %v3874_v7  ;;  %v3933_v6 = vcombine.low %v202_v58, %v206_v59  ;;  %v3938_v7 = vcombine.high %v208_v1, %v212_v2  ;;  %v250_v58 = vld [vmem:[%s6064_s0 + $0x758] sm:$0xff] }
 0x1bb   :  { %3097 = vmatprep.mubr.bf16.mxu0 %v3878_v8  ;;  %v3942_v8 = vcombine.high %v210_v3, %v214_v4  ;;  %v254_v59 = vld [vmem:[%s6064_s0 + $0x778] sm:$0xff] }
 0x1c1   :  { %2520 = vmatmul.mubr.bf16.gmra.mrb[64].mxu1 %v3873_v13  ;;  %v3937_v13 = vcombine.low %v208_v1, %v212_v2  ;;  %v3969_v2 = vcombine.low %v240_v34, %v244_v35 }
 0x1c2   :  { %3098 = vmatmul.mubr.bf16.gmra.mrb[64].mxu0 %v3877_v14  ;;  %2527 = vmatprep.mubr.bf16.mxu1 %v3882_v15  ;;  %v3941_v14 = vcombine.low %v210_v3, %v214_v4  ;;  %v3946_v15 = vcombine.high %v216_v9, %v220_v10 }
 0x1c3   :  { %3105 = vmatprep.mubr.bf16.mxu0 %v3886_v16  ;;  %v3950_v16 = vcombine.high %v218_v11, %v222_v12 }
 0x1c9   :  { %2528 = vmatmul.mubr.bf16.gmra.mrb[68].mxu1 %v3881_v21  ;;  %v3945_v21 = vcombine.low %v216_v9, %v220_v10 }
 0x1ca   :  { %3106 = vmatmul.mubr.bf16.gmra.mrb[68].mxu0 %v3885_v22  ;;  %2535 = vmatprep.mubr.bf16.mxu1 %v3890_v23  ;;  %v3949_v22 = vcombine.low %v218_v11, %v222_v12  ;;  %v3954_v23 = vcombine.high %v224_v17, %v228_v18  ;;  %v3982_v12 = vcombine.high %v250_v58, %v254_v59 }
 0x1cb   :  { %3113 = vmatprep.mubr.bf16.mxu0 %v3894_v24  ;;  %v3958_v24 = vcombine.high %v226_v19, %v230_v20 }
 0x1d1   :  { %2536 = vmatmul.mubr.bf16.gmra.mrb[72].mxu1 %v3889_v29  ;;  %v3953_v29 = vcombine.low %v224_v17, %v228_v18  ;;  %v256_v17 = vld [vmem:[%s6064_s0 + $0x788] sm:$0xff] }
 0x1d2   :  { %3114 = vmatmul.mubr.bf16.gmra.mrb[72].mxu0 %v3893_v30  ;;  %2543 = vmatprep.mubr.bf16.mxu1 %v3898_v31  ;;  %v3957_v30 = vcombine.low %v226_v19, %v230_v20  ;;  %v3962_v31 = vcombine.high %v232_v25, %v236_v26  ;;  %v260_v18 = vld [vmem:[%s6064_s0 + $0x7a8] sm:$0xff]  ;;  %v258_v20 = vld [vmem:[%s6064_s0 + $0x798] sm:$0xff] }
 0x1d3   :  { %3121 = vmatprep.mubr.bf16.mxu0 %v3902_v32  ;;  %v3966_v32 = vcombine.high %v234_v27, %v238_v28 }
 0x1d9   :  { %2544 = vmatmul.mubr.bf16.gmra.mrb[76].mxu1 %v3897_v37  ;;  %v242_v37 = vld [vmem:[%s6064_s0 + $0x718] sm:$0xff] }
 0x1da   :  { %3122 = vmatmul.mubr.bf16.gmra.mrb[76].mxu0 %v3901_v38  ;;  %2551 = vmatprep.mubr.bf16.mxu1 %v3906_v39  ;;  %v246_v38 = vld [vmem:[%s6064_s0 + $0x738] sm:$0xff] }
 0x1db   :  { %3129 = vmatprep.mubr.bf16.mxu0 %v3910_v40  ;;  %v3974_v51 = vcombine.high %v242_v37, %v246_v38 }
 0x1e1   :  { %2552 = vmatmul.mubr.bf16.gmra.mrb[80].mxu1 %v3905_v45  ;;  %v3965_v45 = vcombine.low %v234_v27, %v238_v28 }
 0x1e2   :  { %3130 = vmatmul.mubr.bf16.gmra.mrb[80].mxu0 %v3909_v46  ;;  %2559 = vmatprep.mubr.bf16.mxu1 %v3914_v47  ;;  %v3970_v46 = vcombine.high %v240_v34, %v244_v35 }
 0x1e3   :  { %3137 = vmatprep.mubr.bf16.mxu0 %v3918_v48 }
 0x1e9   :  { %2560 = vmatmul.mubr.bf16.gmra.mrb[84].mxu1 %v3913_v53 }
 0x1ea   :  { %3138 = vmatmul.mubr.bf16.gmra.mrb[84].mxu0 %v3917_v54  ;;  %2567 = vmatprep.mubr.bf16.mxu1 %v3922_v55 }
 0x1eb   :  { %3145 = vmatprep.mubr.bf16.mxu0 %v3926_v56  ;;  %v248_v56 = vld [vmem:[%s6064_s0 + $0x748] sm:$0xff] }
 0x1ec   :  { %v3977_v27 = vcombine.low %v248_v56, %v252_v57 }
 0x1f1   :  { %2568 = vmatmul.mubr.bf16.gmra.mrb[88].mxu1 %v3921_v60 }
 0x1f2   :  { %3146 = vmatmul.mubr.bf16.gmra.mrb[88].mxu0 %v3925_v61  ;;  %2575 = vmatprep.mubr.bf16.mxu1 %v3930_v62 }
 0x1f3   :  { %3153 = vmatprep.mubr.bf16.mxu0 %v3934_v63 }
 0x1f9   :  { %2576 = vmatmul.mubr.bf16.gmra.mrb[92].mxu1 %v3929_v5 }
 0x1fa   :  { %3154 = vmatmul.mubr.bf16.gmra.mrb[92].mxu0 %v3933_v6  ;;  %2583 = vmatprep.mubr.bf16.mxu1 %v3938_v7  ;;  %v3973_v6 = vcombine.low %v242_v37, %v246_v38  ;;  %v3978_v7 = vcombine.high %v248_v56, %v252_v57 }
 0x1fb   :  { %3161 = vmatprep.mubr.bf16.mxu0 %v3942_v8 }
 0x201   :  { %2584 = vmatmul.mubr.bf16.gmra.mrb[96].mxu1 %v3937_v13 }
 0x202   :  { %3162 = vmatmul.mubr.bf16.gmra.mrb[96].mxu0 %v3941_v14  ;;  %2591 = vmatprep.mubr.bf16.mxu1 %v3946_v15 }
 0x203   :  { %3169 = vmatprep.mubr.bf16.mxu0 %v3950_v16 }
 0x209   :  { %2592 = vmatmul.mubr.bf16.gmra.mrb[100].mxu1 %v3945_v21  ;;  %v262_v21 = vld [vmem:[%s6064_s0 + $0x7b8] sm:$0xff] }
 0x20a   :  { %3170 = vmatmul.mubr.bf16.gmra.mrb[100].mxu0 %v3949_v22  ;;  %2599 = vmatprep.mubr.bf16.mxu1 %v3954_v23  ;;  %v3990_v38 = vcombine.high %v258_v20, %v262_v21  ;;  %v3989_v57 = vcombine.low %v258_v20, %v262_v21 }
 0x20b   :  { %3177 = vmatprep.mubr.bf16.mxu0 %v3958_v24 }
 0x211   :  { %2600 = vmatmul.mubr.bf16.gmra.mrb[104].mxu1 %v3953_v29 }
 0x212   :  { %3178 = vmatmul.mubr.bf16.gmra.mrb[104].mxu0 %v3957_v30  ;;  %2607 = vmatprep.mubr.bf16.mxu1 %v3962_v31  ;;  %v3981_v31 = vcombine.low %v250_v58, %v254_v59 }
 0x213   :  { %3185 = vmatprep.mubr.bf16.mxu0 %v3966_v32  ;;  %v3986_v32 = vcombine.high %v256_v17, %v260_v18 }
 0x214   :  { %v2393_v36 = vpop.f32.mrb[0].mxu1 }
 0x215   :  { %v4382_v39 = vadd.f32 %v5848_v33, %v2393_v36  ;;  %v2971_v40 = vpop.f32.mrb[0].mxu0  ;;  %v2395_v41 = vpop.f32.mrb[1].mxu1 }
 0x216   :  { %v2973_v43 = vpop.f32.mrb[1].mxu0  ;;  %v2396_v44 = vpop.f32.mrb[2].mxu1 }
 0x217   :  { %v4383_v47 = vadd.f32 %v4382_v39, %v2971_v40  ;;  %v4384_v48 = vadd.f32 %v5848_v33, %v2396_v44  ;;  %v2974_v49 = vpop.f32.mrb[2].mxu0  ;;  %v2398_v50 = vpop.f32.mrb[3].mxu1  ;;  %v264_v43 = vld [vmem:[%s6064_s0 + $0x7c8] sm:$0xff] }
 0x218   :  { %v2976_v52 = vpop.f32.mrb[3].mxu0  ;;  %v268_v44 = vld [vmem:[%s6064_s0 + $0x7e8] sm:$0xff] }
 0x219   :  { %v3290_v53 = vmul.f32 0.2, %v4383_v47  ;;  %v4385_v54 = vadd.f32 %v4384_v48, %v2974_v49  ;;  %2608 = vmatmul.mubr.bf16.gmra.mrb[108].mxu1 %v3961_v42  ;;  %vm3226_vm0 = vcmp.ge.f32.partialorder %v4383_v47, 0.0 }
 0x21a   :  { %3186 = vmatmul.mubr.bf16.gmra.mrb[108].mxu0 %v3965_v45  ;;  %2615 = vmatprep.mubr.bf16.mxu1 %v3970_v46  ;;  %v266_v46 = vld [vmem:[%s6064_s0 + $0x7d8] sm:$0xff] }
 0x21b   :  { %vm3227_vm1 = vcmp.ge.f32.partialorder %v4385_v54, 0.0  ;;  %v3291_v55 = vmul.f32 0.2, %v4385_v54  ;;  %3193 = vmatprep.mubr.bf16.mxu0 %v3974_v51  ;;  %v3354_v60 = vsel %vm3226_vm0, %v4383_v47, %v3290_v53  ;;  %v270_v47 = vld [vmem:[%s6064_s0 + $0x7f8] sm:$0xff]  ;;  %v3985_v53 = vcombine.low %v256_v17, %v260_v18 }
 0x21c   :  { %v2401_v0 = vpop.f32.mrb[4].mxu1 }
 0x21d   :  { %v3355_v61 = vsel %vm3227_vm1, %v4385_v54, %v3291_v55  ;;  %v4386_v62 = vadd.f32 %v5848_v33, %v2401_v0  ;;  %v2979_v63 = vpop.f32.mrb[4].mxu0  ;;  %v2403_v1 = vpop.f32.mrb[5].mxu1  ;;  %v3994_v0 = vcombine.high %v264_v43, %v268_v44 }
 0x21e   :  { %v4194_v3 = vpack.c.bf16 %v3355_v61, %v3354_v60  ;;  %v2981_v4 = vpop.f32.mrb[5].mxu0  ;;  %v2404_v5 = vpop.f32.mrb[6].mxu1 }
 0x21f   :  { %v4387_v8 = vadd.f32 %v4386_v62, %v2979_v63  ;;  %v4388_v9 = vadd.f32 %v5848_v33, %v2404_v5  ;;  %v2982_v10 = vpop.f32.mrb[6].mxu0  ;;  %v2406_v11 = vpop.f32.mrb[7].mxu1  ;;  %v3998_v62 = vcombine.high %v266_v46, %v270_v47 }
 0x220   :  { %4195 = vst [vmem:[%s6066_s3] sm:$0xff] %v4194_v3   ;;  %v2984_v13 = vpop.f32.mrb[7].mxu0 }
 0x221   :  { %v3292_v14 = vmul.f32 0.2, %v4387_v8  ;;  %v4389_v15 = vadd.f32 %v4388_v9, %v2982_v10  ;;  %2616 = vmatmul.mubr.bf16.gmra.mrb[112].mxu1 %v3969_v2  ;;  %vm3228_vm2 = vcmp.ge.f32.partialorder %v4387_v8, 0.0  ;;  %v3993_v10 = vcombine.low %v264_v43, %v268_v44 }
 0x222   :  { %3194 = vmatmul.mubr.bf16.gmra.mrb[112].mxu0 %v3973_v6  ;;  %2623 = vmatprep.mubr.bf16.mxu1 %v3978_v7 }
 0x223   :  { %vm3229_vm3 = vcmp.ge.f32.partialorder %v4389_v15, 0.0  ;;  %v3293_v16 = vmul.f32 0.2, %v4389_v15  ;;  %3201 = vmatprep.mubr.bf16.mxu0 %v3982_v12  ;;  %v3356_v22 = vsel %vm3228_vm2, %v4387_v8, %v3292_v14  ;;  %v3997_v14 = vcombine.low %v266_v46, %v270_v47 }
 0x224   :  { %v2409_v19 = vpop.f32.mrb[8].mxu1 }
 0x225   :  { %v3357_v23 = vsel %vm3229_vm3, %v4389_v15, %v3293_v16  ;;  %v4390_v24 = vadd.f32 %v5848_v33, %v2409_v19  ;;  %v2987_v25 = vpop.f32.mrb[8].mxu0  ;;  %v2411_v26 = vpop.f32.mrb[9].mxu1 }
 0x226   :  { %v4199_v28 = vpack.c.bf16 %v3357_v23, %v3356_v22  ;;  %v2989_v29 = vpop.f32.mrb[9].mxu0  ;;  %v2412_v30 = vpop.f32.mrb[10].mxu1 }
 0x227   :  { %v4391_v34 = vadd.f32 %v4390_v24, %v2987_v25  ;;  %v4392_v35 = vadd.f32 %v5848_v33, %v2412_v30  ;;  %v2990_v36 = vpop.f32.mrb[10].mxu0  ;;  %v2414_v37 = vpop.f32.mrb[11].mxu1 }
 0x228   :  { %4351 = vst [vmem:[%s6066_s3 + $0x8] sm:$0xff] %v4199_v28   ;;  %v2992_v39 = vpop.f32.mrb[11].mxu0 }
 0x229   :  { %v3294_v40 = vmul.f32 0.2, %v4391_v34  ;;  %v4393_v41 = vadd.f32 %v4392_v35, %v2990_v36  ;;  %2624 = vmatmul.mubr.bf16.gmra.mrb[116].mxu1 %v3977_v27  ;;  %vm3230_vm4 = vcmp.ge.f32.partialorder %v4391_v34, 0.0 }
 0x22a   :  { %3202 = vmatmul.mubr.bf16.gmra.mrb[116].mxu0 %v3981_v31  ;;  %2631 = vmatprep.mubr.bf16.mxu1 %v3986_v32 }
 0x22b   :  { %vm3231_vm5 = vcmp.ge.f32.partialorder %v4393_v41, 0.0  ;;  %v3295_v42 = vmul.f32 0.2, %v4393_v41  ;;  %3209 = vmatprep.mubr.bf16.mxu0 %v3990_v38  ;;  %v3358_v48 = vsel %vm3230_vm4, %v4391_v34, %v3294_v40 }
 0x22c   :  { %v2417_v45 = vpop.f32.mrb[12].mxu1 }
 0x22d   :  { %v3359_v49 = vsel %vm3231_vm5, %v4393_v41, %v3295_v42  ;;  %v4394_v50 = vadd.f32 %v5848_v33, %v2417_v45  ;;  %v2995_v51 = vpop.f32.mrb[12].mxu0  ;;  %v2419_v52 = vpop.f32.mrb[13].mxu1 }
 0x22e   :  { %v4204_v54 = vpack.c.bf16 %v3359_v49, %v3358_v48  ;;  %v2997_v55 = vpop.f32.mrb[13].mxu0  ;;  %v2420_v56 = vpop.f32.mrb[14].mxu1 }
 0x22f   :  { %v4395_v58 = vadd.f32 %v4394_v50, %v2995_v51  ;;  %v4396_v59 = vadd.f32 %v5848_v33, %v2420_v56  ;;  %v2998_v60 = vpop.f32.mrb[14].mxu0  ;;  %v2422_v61 = vpop.f32.mrb[15].mxu1 }
 0x230   :  { %4352 = vst [vmem:[%s6066_s3 + $0x10] sm:$0xff] %v4204_v54   ;;  %v3000_v63 = vpop.f32.mrb[15].mxu0 }
 0x231   :  { %v3296_v1 = vmul.f32 0.2, %v4395_v58  ;;  %v4397_v2 = vadd.f32 %v4396_v59, %v2998_v60  ;;  %2632 = vmatmul.mubr.bf16.gmra.mrb[120].mxu1 %v3985_v53  ;;  %vm3232_vm6 = vcmp.ge.f32.partialorder %v4395_v58, 0.0 }
 0x232   :  { %3210 = vmatmul.mubr.bf16.gmra.mrb[120].mxu0 %v3989_v57  ;;  %2639 = vmatprep.mubr.bf16.mxu1 %v3994_v0 }
 0x233   :  { %vm3233_vm7 = vcmp.ge.f32.partialorder %v4397_v2, 0.0  ;;  %v3297_v3 = vmul.f32 0.2, %v4397_v2  ;;  %3217 = vmatprep.mubr.bf16.mxu0 %v3998_v62  ;;  %v3360_v5 = vsel %vm3232_vm6, %v4395_v58, %v3296_v1 }
 0x234   :  { %v2425_v4 = vpop.f32.mrb[16].mxu1 }
 0x235   :  { %v3361_v6 = vsel %vm3233_vm7, %v4397_v2, %v3297_v3  ;;  %v4398_v7 = vadd.f32 %v5848_v33, %v2425_v4  ;;  %v3003_v8 = vpop.f32.mrb[16].mxu0  ;;  %v2427_v9 = vpop.f32.mrb[17].mxu1 }
 0x236   :  { %v4209_v11 = vpack.c.bf16 %v3361_v6, %v3360_v5  ;;  %v3005_v12 = vpop.f32.mrb[17].mxu0  ;;  %v2428_v13 = vpop.f32.mrb[18].mxu1 }
 0x237   :  { %v4399_v15 = vadd.f32 %v4398_v7, %v3003_v8  ;;  %v4400_v16 = vadd.f32 %v5848_v33, %v2428_v13  ;;  %v3006_v17 = vpop.f32.mrb[18].mxu0  ;;  %v2430_v18 = vpop.f32.mrb[19].mxu1 }
 0x238   :  { %4353 = vst [vmem:[%s6066_s3 + $0x18] sm:$0xff] %v4209_v11   ;;  %v3008_v19 = vpop.f32.mrb[19].mxu0 }
 0x239   :  { %v3298_v20 = vmul.f32 0.2, %v4399_v15  ;;  %v4401_v21 = vadd.f32 %v4400_v16, %v3006_v17  ;;  %2640 = vmatmul.mubr.bf16.gmra.mrb[124].mxu1 %v3993_v10  ;;  %vm3234_vm8 = vcmp.ge.f32.partialorder %v4399_v15, 0.0 }
 0x23a   :  { %3218 = vmatmul.mubr.bf16.gmra.mrb[124].mxu0 %v3997_v14 }
 0x23b   :  { %vm3235_vm9 = vcmp.ge.f32.partialorder %v4401_v21, 0.0  ;;  %v3299_v22 = vmul.f32 0.2, %v4401_v21  ;;  %v3362_v24 = vsel %vm3234_vm8, %v4399_v15, %v3298_v20 }
 0x23c   :  { %v2433_v23 = vpop.f32.mrb[20].mxu1 }
 0x23d   :  { %v3363_v25 = vsel %vm3235_vm9, %v4401_v21, %v3299_v22  ;;  %v4402_v26 = vadd.f32 %v5848_v33, %v2433_v23  ;;  %v3011_v27 = vpop.f32.mrb[20].mxu0  ;;  %v2435_v28 = vpop.f32.mrb[21].mxu1 }
 0x23e   :  { %v4214_v29 = vpack.c.bf16 %v3363_v25, %v3362_v24  ;;  %v3013_v30 = vpop.f32.mrb[21].mxu0  ;;  %v2436_v31 = vpop.f32.mrb[22].mxu1 }
 0x23f   :  { %v4403_v32 = vadd.f32 %v4402_v26, %v3011_v27  ;;  %v4404_v34 = vadd.f32 %v5848_v33, %v2436_v31  ;;  %v3014_v35 = vpop.f32.mrb[22].mxu0  ;;  %v2438_v36 = vpop.f32.mrb[23].mxu1 }
 0x240   :  { %4354 = vst [vmem:[%s6066_s3 + $0x20] sm:$0xff] %v4214_v29   ;;  %v3016_v37 = vpop.f32.mrb[23].mxu0 }
 0x241   :  { %v3300_v38 = vmul.f32 0.2, %v4403_v32  ;;  %v4405_v39 = vadd.f32 %v4404_v34, %v3014_v35  ;;  %vm3236_vm10 = vcmp.ge.f32.partialorder %v4403_v32, 0.0 }
 0x243   :  { %vm3237_vm11 = vcmp.ge.f32.partialorder %v4405_v39, 0.0  ;;  %v3301_v40 = vmul.f32 0.2, %v4405_v39  ;;  %v3364_v42 = vsel %vm3236_vm10, %v4403_v32, %v3300_v38 }
 0x244   :  { %v2441_v41 = vpop.f32.mrb[24].mxu1 }
 0x245   :  { %v3365_v43 = vsel %vm3237_vm11, %v4405_v39, %v3301_v40  ;;  %v4406_v44 = vadd.f32 %v5848_v33, %v2441_v41  ;;  %v3019_v45 = vpop.f32.mrb[24].mxu0  ;;  %v2443_v46 = vpop.f32.mrb[25].mxu1 }
 0x246   :  { %v4219_v47 = vpack.c.bf16 %v3365_v43, %v3364_v42  ;;  %v3021_v48 = vpop.f32.mrb[25].mxu0  ;;  %v2444_v49 = vpop.f32.mrb[26].mxu1 }
 0x247   :  { %v4407_v50 = vadd.f32 %v4406_v44, %v3019_v45  ;;  %v4408_v51 = vadd.f32 %v5848_v33, %v2444_v49  ;;  %v3022_v52 = vpop.f32.mrb[26].mxu0  ;;  %v2446_v53 = vpop.f32.mrb[27].mxu1 }
 0x248   :  { %4355 = vst [vmem:[%s6066_s3 + $0x28] sm:$0xff] %v4219_v47   ;;  %v3024_v54 = vpop.f32.mrb[27].mxu0 }
 0x249   :  { %v3302_v55 = vmul.f32 0.2, %v4407_v50  ;;  %v4409_v56 = vadd.f32 %v4408_v51, %v3022_v52  ;;  %vm3238_vm12 = vcmp.ge.f32.partialorder %v4407_v50, 0.0 }
 0x24b   :  { %vm3239_vm13 = vcmp.ge.f32.partialorder %v4409_v56, 0.0  ;;  %v3303_v57 = vmul.f32 0.2, %v4409_v56  ;;  %v3366_v58 = vsel %vm3238_vm12, %v4407_v50, %v3302_v55 }
 0x24c   :  { %v2449_v0 = vpop.f32.mrb[28].mxu1 }
 0x24d   :  { %v3367_v59 = vsel %vm3239_vm13, %v4409_v56, %v3303_v57  ;;  %v4410_v60 = vadd.f32 %v5848_v33, %v2449_v0  ;;  %v3027_v61 = vpop.f32.mrb[28].mxu0  ;;  %v2451_v62 = vpop.f32.mrb[29].mxu1 }
 0x24e   :  { %v4224_v63 = vpack.c.bf16 %v3367_v59, %v3366_v58  ;;  %v3029_v1 = vpop.f32.mrb[29].mxu0  ;;  %v2452_v2 = vpop.f32.mrb[30].mxu1 }
 0x24f   :  { %v4411_v3 = vadd.f32 %v4410_v60, %v3027_v61  ;;  %v4412_v4 = vadd.f32 %v5848_v33, %v2452_v2  ;;  %v3030_v5 = vpop.f32.mrb[30].mxu0  ;;  %v2454_v6 = vpop.f32.mrb[31].mxu1 }
 0x250   :  { %4356 = vst [vmem:[%s6066_s3 + $0x30] sm:$0xff] %v4224_v63   ;;  %v3032_v7 = vpop.f32.mrb[31].mxu0 }
 0x251   :  { %v3304_v8 = vmul.f32 0.2, %v4411_v3  ;;  %v4413_v9 = vadd.f32 %v4412_v4, %v3030_v5  ;;  %vm3240_vm14 = vcmp.ge.f32.partialorder %v4411_v3, 0.0 }
 0x253   :  { %vm3241_vm15 = vcmp.ge.f32.partialorder %v4413_v9, 0.0  ;;  %v3305_v10 = vmul.f32 0.2, %v4413_v9  ;;  %v3368_v12 = vsel %vm3240_vm14, %v4411_v3, %v3304_v8 }
 0x254   :  { %v2457_v11 = vpop.f32.mrb[32].mxu1 }
 0x255   :  { %v3369_v13 = vsel %vm3241_vm15, %v4413_v9, %v3305_v10  ;;  %v4414_v14 = vadd.f32 %v5848_v33, %v2457_v11  ;;  %v3035_v15 = vpop.f32.mrb[32].mxu0  ;;  %v2459_v16 = vpop.f32.mrb[33].mxu1 }
 0x256   :  { %v4229_v17 = vpack.c.bf16 %v3369_v13, %v3368_v12  ;;  %v3037_v18 = vpop.f32.mrb[33].mxu0  ;;  %v2460_v19 = vpop.f32.mrb[34].mxu1 }
 0x257   :  { %v4415_v20 = vadd.f32 %v4414_v14, %v3035_v15  ;;  %v4416_v21 = vadd.f32 %v5848_v33, %v2460_v19  ;;  %v3038_v22 = vpop.f32.mrb[34].mxu0  ;;  %v2462_v23 = vpop.f32.mrb[35].mxu1 }
 0x258   :  { %4357 = vst [vmem:[%s6066_s3 + $0x38] sm:$0xff] %v4229_v17   ;;  %v3040_v24 = vpop.f32.mrb[35].mxu0 }
 0x259   :  { %v3306_v25 = vmul.f32 0.2, %v4415_v20  ;;  %v4417_v26 = vadd.f32 %v4416_v21, %v3038_v22  ;;  %vm3242_vm0 = vcmp.ge.f32.partialorder %v4415_v20, 0.0 }
 0x25b   :  { %vm3243_vm1 = vcmp.ge.f32.partialorder %v4417_v26, 0.0  ;;  %v3307_v27 = vmul.f32 0.2, %v4417_v26  ;;  %v3370_v29 = vsel %vm3242_vm0, %v4415_v20, %v3306_v25 }
 0x25c   :  { %v2465_v28 = vpop.f32.mrb[36].mxu1 }
 0x25d   :  { %v3371_v30 = vsel %vm3243_vm1, %v4417_v26, %v3307_v27  ;;  %v4418_v31 = vadd.f32 %v5848_v33, %v2465_v28  ;;  %v3043_v32 = vpop.f32.mrb[36].mxu0  ;;  %v2467_v34 = vpop.f32.mrb[37].mxu1 }
 0x25e   :  { %v4234_v35 = vpack.c.bf16 %v3371_v30, %v3370_v29  ;;  %v3045_v36 = vpop.f32.mrb[37].mxu0  ;;  %v2468_v37 = vpop.f32.mrb[38].mxu1 }
 0x25f   :  { %v4419_v38 = vadd.f32 %v4418_v31, %v3043_v32  ;;  %v4420_v39 = vadd.f32 %v5848_v33, %v2468_v37  ;;  %v3046_v40 = vpop.f32.mrb[38].mxu0  ;;  %v2470_v41 = vpop.f32.mrb[39].mxu1 }
 0x260   :  { %4358 = vst [vmem:[%s6066_s3 + $0x40] sm:$0xff] %v4234_v35   ;;  %v3048_v42 = vpop.f32.mrb[39].mxu0 }
 0x261   :  { %v3308_v43 = vmul.f32 0.2, %v4419_v38  ;;  %v4421_v44 = vadd.f32 %v4420_v39, %v3046_v40  ;;  %vm3244_vm2 = vcmp.ge.f32.partialorder %v4419_v38, 0.0 }
 0x263   :  { %vm3245_vm3 = vcmp.ge.f32.partialorder %v4421_v44, 0.0  ;;  %v3309_v45 = vmul.f32 0.2, %v4421_v44  ;;  %v3372_v47 = vsel %vm3244_vm2, %v4419_v38, %v3308_v43 }
 0x264   :  { %v2473_v46 = vpop.f32.mrb[40].mxu1 }
 0x265   :  { %v3373_v48 = vsel %vm3245_vm3, %v4421_v44, %v3309_v45  ;;  %v4422_v49 = vadd.f32 %v5848_v33, %v2473_v46  ;;  %v3051_v50 = vpop.f32.mrb[40].mxu0  ;;  %v2475_v51 = vpop.f32.mrb[41].mxu1 }
 0x266   :  { %v4239_v52 = vpack.c.bf16 %v3373_v48, %v3372_v47  ;;  %v3053_v53 = vpop.f32.mrb[41].mxu0  ;;  %v2476_v54 = vpop.f32.mrb[42].mxu1 }
 0x267   :  { %v4423_v55 = vadd.f32 %v4422_v49, %v3051_v50  ;;  %v4424_v56 = vadd.f32 %v5848_v33, %v2476_v54  ;;  %v3054_v57 = vpop.f32.mrb[42].mxu0  ;;  %v2478_v0 = vpop.f32.mrb[43].mxu1 }
 0x268   :  { %4359 = vst [vmem:[%s6066_s3 + $0x48] sm:$0xff] %v4239_v52   ;;  %v3056_v58 = vpop.f32.mrb[43].mxu0 }
 0x269   :  { %v3310_v59 = vmul.f32 0.2, %v4423_v55  ;;  %v4425_v60 = vadd.f32 %v4424_v56, %v3054_v57  ;;  %vm3246_vm4 = vcmp.ge.f32.partialorder %v4423_v55, 0.0 }
 0x26b   :  { %vm3247_vm5 = vcmp.ge.f32.partialorder %v4425_v60, 0.0  ;;  %v3311_v61 = vmul.f32 0.2, %v4425_v60  ;;  %v3374_v63 = vsel %vm3246_vm4, %v4423_v55, %v3310_v59 }
 0x26c   :  { %v2481_v62 = vpop.f32.mrb[44].mxu1 }
 0x26d   :  { %v3375_v1 = vsel %vm3247_vm5, %v4425_v60, %v3311_v61  ;;  %v4426_v2 = vadd.f32 %v5848_v33, %v2481_v62  ;;  %v3059_v3 = vpop.f32.mrb[44].mxu0  ;;  %v2483_v4 = vpop.f32.mrb[45].mxu1 }
 0x26e   :  { %v4244_v5 = vpack.c.bf16 %v3375_v1, %v3374_v63  ;;  %v3061_v6 = vpop.f32.mrb[45].mxu0  ;;  %v2484_v7 = vpop.f32.mrb[46].mxu1 }
 0x26f   :  { %v4427_v8 = vadd.f32 %v4426_v2, %v3059_v3  ;;  %v4428_v9 = vadd.f32 %v5848_v33, %v2484_v7  ;;  %v3062_v10 = vpop.f32.mrb[46].mxu0  ;;  %v2486_v11 = vpop.f32.mrb[47].mxu1 }
 0x270   :  { %4360 = vst [vmem:[%s6066_s3 + $0x50] sm:$0xff] %v4244_v5   ;;  %v3064_v12 = vpop.f32.mrb[47].mxu0 }
 0x271   :  { %v3312_v13 = vmul.f32 0.2, %v4427_v8  ;;  %v4429_v14 = vadd.f32 %v4428_v9, %v3062_v10  ;;  %vm3248_vm6 = vcmp.ge.f32.partialorder %v4427_v8, 0.0 }
 0x273   :  { %vm3249_vm7 = vcmp.ge.f32.partialorder %v4429_v14, 0.0  ;;  %v3313_v15 = vmul.f32 0.2, %v4429_v14  ;;  %v3376_v17 = vsel %vm3248_vm6, %v4427_v8, %v3312_v13 }
 0x274   :  { %v2489_v16 = vpop.f32.mrb[48].mxu1 }
 0x275   :  { %v3377_v18 = vsel %vm3249_vm7, %v4429_v14, %v3313_v15  ;;  %v4430_v19 = vadd.f32 %v5848_v33, %v2489_v16  ;;  %v3067_v20 = vpop.f32.mrb[48].mxu0  ;;  %v2491_v21 = vpop.f32.mrb[49].mxu1 }
 0x276   :  { %v4249_v22 = vpack.c.bf16 %v3377_v18, %v3376_v17  ;;  %v3069_v23 = vpop.f32.mrb[49].mxu0  ;;  %v2492_v24 = vpop.f32.mrb[50].mxu1 }
 0x277   :  { %v4431_v25 = vadd.f32 %v4430_v19, %v3067_v20  ;;  %v4432_v26 = vadd.f32 %v5848_v33, %v2492_v24  ;;  %v3070_v27 = vpop.f32.mrb[50].mxu0  ;;  %v2494_v28 = vpop.f32.mrb[51].mxu1 }
 0x278   :  { %4361 = vst [vmem:[%s6066_s3 + $0x58] sm:$0xff] %v4249_v22   ;;  %v3072_v29 = vpop.f32.mrb[51].mxu0 }
 0x279   :  { %v3314_v30 = vmul.f32 0.2, %v4431_v25  ;;  %v4433_v31 = vadd.f32 %v4432_v26, %v3070_v27  ;;  %vm3250_vm8 = vcmp.ge.f32.partialorder %v4431_v25, 0.0 }
 0x27b   :  { %vm3251_vm9 = vcmp.ge.f32.partialorder %v4433_v31, 0.0  ;;  %v3315_v32 = vmul.f32 0.2, %v4433_v31  ;;  %v3378_v35 = vsel %vm3250_vm8, %v4431_v25, %v3314_v30 }
 0x27c   :  { %v2497_v34 = vpop.f32.mrb[52].mxu1 }
 0x27d   :  { %v3379_v36 = vsel %vm3251_vm9, %v4433_v31, %v3315_v32  ;;  %v4434_v37 = vadd.f32 %v5848_v33, %v2497_v34  ;;  %v3075_v38 = vpop.f32.mrb[52].mxu0  ;;  %v2499_v39 = vpop.f32.mrb[53].mxu1 }
 0x27e   :  { %v4254_v40 = vpack.c.bf16 %v3379_v36, %v3378_v35  ;;  %v3077_v41 = vpop.f32.mrb[53].mxu0  ;;  %v2500_v42 = vpop.f32.mrb[54].mxu1 }
 0x27f   :  { %v4435_v43 = vadd.f32 %v4434_v37, %v3075_v38  ;;  %v4436_v44 = vadd.f32 %v5848_v33, %v2500_v42  ;;  %v3078_v45 = vpop.f32.mrb[54].mxu0  ;;  %v2502_v46 = vpop.f32.mrb[55].mxu1 }
 0x280   :  { %4362 = vst [vmem:[%s6066_s3 + $0x60] sm:$0xff] %v4254_v40   ;;  %v3080_v47 = vpop.f32.mrb[55].mxu0 }
 0x281   :  { %v3316_v48 = vmul.f32 0.2, %v4435_v43  ;;  %v4437_v49 = vadd.f32 %v4436_v44, %v3078_v45  ;;  %vm3252_vm10 = vcmp.ge.f32.partialorder %v4435_v43, 0.0 }
 0x283   :  { %vm3253_vm11 = vcmp.ge.f32.partialorder %v4437_v49, 0.0  ;;  %v3317_v50 = vmul.f32 0.2, %v4437_v49  ;;  %v3380_v52 = vsel %vm3252_vm10, %v4435_v43, %v3316_v48 }
 0x284   :  { %v2505_v51 = vpop.f32.mrb[56].mxu1 }
 0x285   :  { %v3381_v53 = vsel %vm3253_vm11, %v4437_v49, %v3317_v50  ;;  %v4438_v54 = vadd.f32 %v5848_v33, %v2505_v51  ;;  %v3083_v55 = vpop.f32.mrb[56].mxu0  ;;  %v2507_v56 = vpop.f32.mrb[57].mxu1 }
 0x286   :  { %v4259_v57 = vpack.c.bf16 %v3381_v53, %v3380_v52  ;;  %v3085_v0 = vpop.f32.mrb[57].mxu0  ;;  %v2508_v58 = vpop.f32.mrb[58].mxu1 }
 0x287   :  { %v4439_v59 = vadd.f32 %v4438_v54, %v3083_v55  ;;  %v4440_v60 = vadd.f32 %v5848_v33, %v2508_v58  ;;  %v3086_v61 = vpop.f32.mrb[58].mxu0  ;;  %v2510_v62 = vpop.f32.mrb[59].mxu1 }
 0x288   :  { %4363 = vst [vmem:[%s6066_s3 + $0x68] sm:$0xff] %v4259_v57   ;;  %v3088_v63 = vpop.f32.mrb[59].mxu0 }
 0x289   :  { %v3318_v1 = vmul.f32 0.2, %v4439_v59  ;;  %v4441_v2 = vadd.f32 %v4440_v60, %v3086_v61  ;;  %vm3254_vm12 = vcmp.ge.f32.partialorder %v4439_v59, 0.0 }
 0x28b   :  { %vm3255_vm13 = vcmp.ge.f32.partialorder %v4441_v2, 0.0  ;;  %v3319_v3 = vmul.f32 0.2, %v4441_v2  ;;  %v3382_v5 = vsel %vm3254_vm12, %v4439_v59, %v3318_v1 }
 0x28c   :  { %v2513_v4 = vpop.f32.mrb[60].mxu1 }
 0x28d   :  { %v3383_v6 = vsel %vm3255_vm13, %v4441_v2, %v3319_v3  ;;  %v4442_v7 = vadd.f32 %v5848_v33, %v2513_v4  ;;  %v3091_v8 = vpop.f32.mrb[60].mxu0  ;;  %v2515_v9 = vpop.f32.mrb[61].mxu1 }
 0x28e   :  { %v4264_v10 = vpack.c.bf16 %v3383_v6, %v3382_v5  ;;  %v3093_v11 = vpop.f32.mrb[61].mxu0  ;;  %v2516_v12 = vpop.f32.mrb[62].mxu1 }
 0x28f   :  { %v4443_v13 = vadd.f32 %v4442_v7, %v3091_v8  ;;  %v4444_v14 = vadd.f32 %v5848_v33, %v2516_v12  ;;  %v3094_v15 = vpop.f32.mrb[62].mxu0  ;;  %v2518_v16 = vpop.f32.mrb[63].mxu1 }
 0x290   :  { %4364 = vst [vmem:[%s6066_s3 + $0x70] sm:$0xff] %v4264_v10   ;;  %v3096_v17 = vpop.f32.mrb[63].mxu0 }
 0x291   :  { %v3320_v18 = vmul.f32 0.2, %v4443_v13  ;;  %v4445_v19 = vadd.f32 %v4444_v14, %v3094_v15  ;;  %vm3256_vm14 = vcmp.ge.f32.partialorder %v4443_v13, 0.0 }
 0x293   :  { %vm3257_vm15 = vcmp.ge.f32.partialorder %v4445_v19, 0.0  ;;  %v3321_v20 = vmul.f32 0.2, %v4445_v19  ;;  %v3384_v22 = vsel %vm3256_vm14, %v4443_v13, %v3320_v18 }
 0x294   :  { %v2521_v21 = vpop.f32.mrb[64].mxu1 }
 0x295   :  { %v3385_v23 = vsel %vm3257_vm15, %v4445_v19, %v3321_v20  ;;  %v4446_v24 = vadd.f32 %v5848_v33, %v2521_v21  ;;  %v3099_v25 = vpop.f32.mrb[64].mxu0  ;;  %v2523_v26 = vpop.f32.mrb[65].mxu1 }
 0x296   :  { %v4269_v27 = vpack.c.bf16 %v3385_v23, %v3384_v22  ;;  %v3101_v28 = vpop.f32.mrb[65].mxu0  ;;  %v2524_v29 = vpop.f32.mrb[66].mxu1 }
 0x297   :  { %v4447_v30 = vadd.f32 %v4446_v24, %v3099_v25  ;;  %v4448_v31 = vadd.f32 %v5848_v33, %v2524_v29  ;;  %v3102_v32 = vpop.f32.mrb[66].mxu0  ;;  %v2526_v34 = vpop.f32.mrb[67].mxu1 }
 0x298   :  { %4365 = vst [vmem:[%s6066_s3 + $0x78] sm:$0xff] %v4269_v27   ;;  %v3104_v35 = vpop.f32.mrb[67].mxu0 }
 0x299   :  { %v3322_v36 = vmul.f32 0.2, %v4447_v30  ;;  %v4449_v37 = vadd.f32 %v4448_v31, %v3102_v32  ;;  %vm3258_vm0 = vcmp.ge.f32.partialorder %v4447_v30, 0.0 }
 0x29b   :  { %vm3259_vm1 = vcmp.ge.f32.partialorder %v4449_v37, 0.0  ;;  %v3323_v38 = vmul.f32 0.2, %v4449_v37  ;;  %v3386_v40 = vsel %vm3258_vm0, %v4447_v30, %v3322_v36 }
 0x29c   :  { %v2529_v39 = vpop.f32.mrb[68].mxu1 }
 0x29d   :  { %v3387_v41 = vsel %vm3259_vm1, %v4449_v37, %v3323_v38  ;;  %v4450_v42 = vadd.f32 %v5848_v33, %v2529_v39  ;;  %v3107_v43 = vpop.f32.mrb[68].mxu0  ;;  %v2531_v44 = vpop.f32.mrb[69].mxu1 }
 0x29e   :  { %v4274_v45 = vpack.c.bf16 %v3387_v41, %v3386_v40  ;;  %v3109_v46 = vpop.f32.mrb[69].mxu0  ;;  %v2532_v47 = vpop.f32.mrb[70].mxu1 }
 0x29f   :  { %v4451_v48 = vadd.f32 %v4450_v42, %v3107_v43  ;;  %v4452_v49 = vadd.f32 %v5848_v33, %v2532_v47  ;;  %v3110_v50 = vpop.f32.mrb[70].mxu0  ;;  %v2534_v51 = vpop.f32.mrb[71].mxu1 }
 0x2a0   :  { %4366 = vst [vmem:[%s6066_s3 + $0x80] sm:$0xff] %v4274_v45   ;;  %v3112_v52 = vpop.f32.mrb[71].mxu0 }
 0x2a1   :  { %v3324_v53 = vmul.f32 0.2, %v4451_v48  ;;  %v4453_v54 = vadd.f32 %v4452_v49, %v3110_v50  ;;  %vm3260_vm2 = vcmp.ge.f32.partialorder %v4451_v48, 0.0 }
 0x2a3   :  { %vm3261_vm3 = vcmp.ge.f32.partialorder %v4453_v54, 0.0  ;;  %v3325_v55 = vmul.f32 0.2, %v4453_v54  ;;  %v3388_v57 = vsel %vm3260_vm2, %v4451_v48, %v3324_v53 }
 0x2a4   :  { %v2537_v56 = vpop.f32.mrb[72].mxu1 }
 0x2a5   :  { %v3389_v0 = vsel %vm3261_vm3, %v4453_v54, %v3325_v55  ;;  %v4454_v58 = vadd.f32 %v5848_v33, %v2537_v56  ;;  %v3115_v59 = vpop.f32.mrb[72].mxu0  ;;  %v2539_v60 = vpop.f32.mrb[73].mxu1 }
 0x2a6   :  { %v4279_v61 = vpack.c.bf16 %v3389_v0, %v3388_v57  ;;  %v3117_v62 = vpop.f32.mrb[73].mxu0  ;;  %v2540_v63 = vpop.f32.mrb[74].mxu1 }
 0x2a7   :  { %v4455_v1 = vadd.f32 %v4454_v58, %v3115_v59  ;;  %v4456_v2 = vadd.f32 %v5848_v33, %v2540_v63  ;;  %v3118_v3 = vpop.f32.mrb[74].mxu0  ;;  %v2542_v4 = vpop.f32.mrb[75].mxu1 }
 0x2a8   :  { %4367 = vst [vmem:[%s6066_s3 + $0x88] sm:$0xff] %v4279_v61   ;;  %v3120_v5 = vpop.f32.mrb[75].mxu0 }
 0x2a9   :  { %v3326_v6 = vmul.f32 0.2, %v4455_v1  ;;  %v4457_v7 = vadd.f32 %v4456_v2, %v3118_v3  ;;  %vm3262_vm4 = vcmp.ge.f32.partialorder %v4455_v1, 0.0 }
 0x2ab   :  { %vm3263_vm5 = vcmp.ge.f32.partialorder %v4457_v7, 0.0  ;;  %v3327_v8 = vmul.f32 0.2, %v4457_v7  ;;  %v3390_v10 = vsel %vm3262_vm4, %v4455_v1, %v3326_v6 }
 0x2ac   :  { %v2545_v9 = vpop.f32.mrb[76].mxu1 }
 0x2ad   :  { %v3391_v11 = vsel %vm3263_vm5, %v4457_v7, %v3327_v8  ;;  %v4458_v12 = vadd.f32 %v5848_v33, %v2545_v9  ;;  %v3123_v13 = vpop.f32.mrb[76].mxu0  ;;  %v2547_v14 = vpop.f32.mrb[77].mxu1 }
 0x2ae   :  { %v4284_v15 = vpack.c.bf16 %v3391_v11, %v3390_v10  ;;  %v3125_v16 = vpop.f32.mrb[77].mxu0  ;;  %v2548_v17 = vpop.f32.mrb[78].mxu1 }
 0x2af   :  { %v4459_v18 = vadd.f32 %v4458_v12, %v3123_v13  ;;  %v4460_v19 = vadd.f32 %v5848_v33, %v2548_v17  ;;  %v3126_v20 = vpop.f32.mrb[78].mxu0  ;;  %v2550_v21 = vpop.f32.mrb[79].mxu1  ;;  %v6013_v17 = vld [vmem:[%s6065_s2] ss:$0 sm:$0xff] }
 0x2b0   :  { %4368 = vst [vmem:[%s6066_s3 + $0x90] sm:$0xff] %v4284_v15   ;;  %v3128_v22 = vpop.f32.mrb[79].mxu0 }
 0x2b1   :  { %v3328_v23 = vmul.f32 0.2, %v4459_v18  ;;  %v4461_v24 = vadd.f32 %v4460_v19, %v3126_v20  ;;  %vm3264_vm6 = vcmp.ge.f32.partialorder %v4459_v18, 0.0 }
 0x2b3   :  { %vm3265_vm7 = vcmp.ge.f32.partialorder %v4461_v24, 0.0  ;;  %v3329_v25 = vmul.f32 0.2, %v4461_v24  ;;  %v3392_v27 = vsel %vm3264_vm6, %v4459_v18, %v3328_v23 }
 0x2b4   :  { %v2553_v26 = vpop.f32.mrb[80].mxu1 }
 0x2b5   :  { %v3393_v28 = vsel %vm3265_vm7, %v4461_v24, %v3329_v25  ;;  %v4462_v29 = vadd.f32 %v5848_v33, %v2553_v26  ;;  %v3131_v30 = vpop.f32.mrb[80].mxu0  ;;  %v2555_v31 = vpop.f32.mrb[81].mxu1 }
 0x2b6   :  { %v4289_v32 = vpack.c.bf16 %v3393_v28, %v3392_v27  ;;  %v3133_v34 = vpop.f32.mrb[81].mxu0  ;;  %v2556_v35 = vpop.f32.mrb[82].mxu1 }
 0x2b7   :  { %v4463_v36 = vadd.f32 %v4462_v29, %v3131_v30  ;;  %v4464_v37 = vadd.f32 %v5848_v33, %v2556_v35  ;;  %v3134_v38 = vpop.f32.mrb[82].mxu0  ;;  %v2558_v39 = vpop.f32.mrb[83].mxu1 }
 0x2b8   :  { %4369 = vst [vmem:[%s6066_s3 + $0x98] sm:$0xff] %v4289_v32   ;;  %v3136_v40 = vpop.f32.mrb[83].mxu0 }
 0x2b9   :  { %v3330_v41 = vmul.f32 0.2, %v4463_v36  ;;  %v4465_v42 = vadd.f32 %v4464_v37, %v3134_v38  ;;  %vm3266_vm8 = vcmp.ge.f32.partialorder %v4463_v36, 0.0 }
 0x2bb   :  { %vm3267_vm9 = vcmp.ge.f32.partialorder %v4465_v42, 0.0  ;;  %v3331_v43 = vmul.f32 0.2, %v4465_v42  ;;  %v3394_v45 = vsel %vm3266_vm8, %v4463_v36, %v3330_v41 }
 0x2bc   :  { %v2561_v44 = vpop.f32.mrb[84].mxu1 }
 0x2bd   :  { %v3395_v46 = vsel %vm3267_vm9, %v4465_v42, %v3331_v43  ;;  %v4466_v47 = vadd.f32 %v5848_v33, %v2561_v44  ;;  %v3139_v48 = vpop.f32.mrb[84].mxu0  ;;  %v2563_v49 = vpop.f32.mrb[85].mxu1 }
 0x2be   :  { %v4294_v50 = vpack.c.bf16 %v3395_v46, %v3394_v45  ;;  %v3141_v51 = vpop.f32.mrb[85].mxu0  ;;  %v2564_v52 = vpop.f32.mrb[86].mxu1 }
 0x2bf   :  { %v4467_v53 = vadd.f32 %v4466_v47, %v3139_v48  ;;  %v4468_v54 = vadd.f32 %v5848_v33, %v2564_v52  ;;  %v3142_v55 = vpop.f32.mrb[86].mxu0  ;;  %v2566_v56 = vpop.f32.mrb[87].mxu1 }
 0x2c0   :  { %4370 = vst [vmem:[%s6066_s3 + $0xa0] sm:$0xff] %v4294_v50   ;;  %v3144_v57 = vpop.f32.mrb[87].mxu0 }
 0x2c1   :  { %v3332_v0 = vmul.f32 0.2, %v4467_v53  ;;  %v4469_v58 = vadd.f32 %v4468_v54, %v3142_v55  ;;  %vm3268_vm10 = vcmp.ge.f32.partialorder %v4467_v53, 0.0 }
 0x2c3   :  { %vm3269_vm11 = vcmp.ge.f32.partialorder %v4469_v58, 0.0  ;;  %v3333_v59 = vmul.f32 0.2, %v4469_v58  ;;  %v3396_v61 = vsel %vm3268_vm10, %v4467_v53, %v3332_v0 }
 0x2c4   :  { %v2569_v60 = vpop.f32.mrb[88].mxu1 }
 0x2c5   :  { %v3397_v62 = vsel %vm3269_vm11, %v4469_v58, %v3333_v59  ;;  %v4470_v63 = vadd.f32 %v5848_v33, %v2569_v60  ;;  %v3147_v1 = vpop.f32.mrb[88].mxu0  ;;  %v2571_v2 = vpop.f32.mrb[89].mxu1 }
 0x2c6   :  { %v4299_v3 = vpack.c.bf16 %v3397_v62, %v3396_v61  ;;  %v3149_v4 = vpop.f32.mrb[89].mxu0  ;;  %v2572_v5 = vpop.f32.mrb[90].mxu1 }
 0x2c7   :  { %v4471_v6 = vadd.f32 %v4470_v63, %v3147_v1  ;;  %v4472_v7 = vadd.f32 %v5848_v33, %v2572_v5  ;;  %v3150_v8 = vpop.f32.mrb[90].mxu0  ;;  %v2574_v9 = vpop.f32.mrb[91].mxu1 }
 0x2c8   :  { %4371 = vst [vmem:[%s6066_s3 + $0xa8] sm:$0xff] %v4299_v3   ;;  %v3152_v10 = vpop.f32.mrb[91].mxu0 }
 0x2c9   :  { %v3334_v11 = vmul.f32 0.2, %v4471_v6  ;;  %v4473_v12 = vadd.f32 %v4472_v7, %v3150_v8  ;;  %vm3270_vm12 = vcmp.ge.f32.partialorder %v4471_v6, 0.0 }
 0x2cb   :  { %vm3271_vm13 = vcmp.ge.f32.partialorder %v4473_v12, 0.0  ;;  %v3335_v13 = vmul.f32 0.2, %v4473_v12  ;;  %v3398_v15 = vsel %vm3270_vm12, %v4471_v6, %v3334_v11 }
 0x2cc   :  { %v2577_v14 = vpop.f32.mrb[92].mxu1 }
 0x2cd   :  { %v3399_v16 = vsel %vm3271_vm13, %v4473_v12, %v3335_v13  ;;  %v4474_v33 = vadd.f32 %v6013_v17, %v2577_v14  ;;  %v3155_v18 = vpop.f32.mrb[92].mxu0  ;;  %v2579_v19 = vpop.f32.mrb[93].mxu1 }
 0x2ce   :  { %v4304_v20 = vpack.c.bf16 %v3399_v16, %v3398_v15  ;;  %v3157_v21 = vpop.f32.mrb[93].mxu0  ;;  %v2580_v22 = vpop.f32.mrb[94].mxu1 }
 0x2cf   :  { %v4475_v23 = vadd.f32 %v4474_v33, %v3155_v18  ;;  %v4476_v24 = vadd.f32 %v6013_v17, %v2580_v22  ;;  %v3158_v25 = vpop.f32.mrb[94].mxu0  ;;  %v2582_v26 = vpop.f32.mrb[95].mxu1 }
 0x2d0   :  { %4372 = vst [vmem:[%s6066_s3 + $0xb0] sm:$0xff] %v4304_v20   ;;  %v3160_v27 = vpop.f32.mrb[95].mxu0 }
 0x2d1   :  { %v3336_v28 = vmul.f32 0.2, %v4475_v23  ;;  %v4477_v29 = vadd.f32 %v4476_v24, %v3158_v25  ;;  %vm3272_vm14 = vcmp.ge.f32.partialorder %v4475_v23, 0.0 }
 0x2d3   :  { %vm3273_vm15 = vcmp.ge.f32.partialorder %v4477_v29, 0.0  ;;  %v3337_v30 = vmul.f32 0.2, %v4477_v29  ;;  %v3400_v32 = vsel %vm3272_vm14, %v4475_v23, %v3336_v28 }
 0x2d4   :  { %v2585_v31 = vpop.f32.mrb[96].mxu1 }
 0x2d5   :  { %v3401_v34 = vsel %vm3273_vm15, %v4477_v29, %v3337_v30  ;;  %v4478_v35 = vadd.f32 %v6013_v17, %v2585_v31  ;;  %v3163_v36 = vpop.f32.mrb[96].mxu0  ;;  %v2587_v37 = vpop.f32.mrb[97].mxu1 }
 0x2d6   :  { %v4309_v38 = vpack.c.bf16 %v3401_v34, %v3400_v32  ;;  %v3165_v39 = vpop.f32.mrb[97].mxu0  ;;  %v2588_v40 = vpop.f32.mrb[98].mxu1 }
 0x2d7   :  { %v4479_v41 = vadd.f32 %v4478_v35, %v3163_v36  ;;  %v4480_v42 = vadd.f32 %v6013_v17, %v2588_v40  ;;  %v3166_v43 = vpop.f32.mrb[98].mxu0  ;;  %v2590_v44 = vpop.f32.mrb[99].mxu1 }
 0x2d8   :  { %4373 = vst [vmem:[%s6066_s3 + $0xb8] sm:$0xff] %v4309_v38   ;;  %v3168_v45 = vpop.f32.mrb[99].mxu0 }
 0x2d9   :  { %v3338_v46 = vmul.f32 0.2, %v4479_v41  ;;  %v4481_v47 = vadd.f32 %v4480_v42, %v3166_v43  ;;  %vm3274_vm0 = vcmp.ge.f32.partialorder %v4479_v41, 0.0 }
 0x2db   :  { %vm3275_vm1 = vcmp.ge.f32.partialorder %v4481_v47, 0.0  ;;  %v3339_v48 = vmul.f32 0.2, %v4481_v47  ;;  %v3402_v50 = vsel %vm3274_vm0, %v4479_v41, %v3338_v46 }
 0x2dc   :  { %v2593_v49 = vpop.f32.mrb[100].mxu1 }
 0x2dd   :  { %v3403_v51 = vsel %vm3275_vm1, %v4481_v47, %v3339_v48  ;;  %v4482_v52 = vadd.f32 %v6013_v17, %v2593_v49  ;;  %v3171_v53 = vpop.f32.mrb[100].mxu0  ;;  %v2595_v54 = vpop.f32.mrb[101].mxu1 }
 0x2de   :  { %v4314_v55 = vpack.c.bf16 %v3403_v51, %v3402_v50  ;;  %v3173_v56 = vpop.f32.mrb[101].mxu0  ;;  %v2596_v57 = vpop.f32.mrb[102].mxu1 }
 0x2df   :  { %v4483_v0 = vadd.f32 %v4482_v52, %v3171_v53  ;;  %v4484_v58 = vadd.f32 %v6013_v17, %v2596_v57  ;;  %v3174_v59 = vpop.f32.mrb[102].mxu0  ;;  %v2598_v60 = vpop.f32.mrb[103].mxu1 }
 0x2e0   :  { %4374 = vst [vmem:[%s6066_s3 + $0xc0] sm:$0xff] %v4314_v55   ;;  %v3176_v61 = vpop.f32.mrb[103].mxu0 }
 0x2e1   :  { %v3340_v62 = vmul.f32 0.2, %v4483_v0  ;;  %v4485_v63 = vadd.f32 %v4484_v58, %v3174_v59  ;;  %vm3276_vm2 = vcmp.ge.f32.partialorder %v4483_v0, 0.0 }
 0x2e3   :  { %vm3277_vm3 = vcmp.ge.f32.partialorder %v4485_v63, 0.0  ;;  %v3341_v1 = vmul.f32 0.2, %v4485_v63  ;;  %v3404_v3 = vsel %vm3276_vm2, %v4483_v0, %v3340_v62 }
 0x2e4   :  { %v2601_v2 = vpop.f32.mrb[104].mxu1 }
 0x2e5   :  { %v3405_v4 = vsel %vm3277_vm3, %v4485_v63, %v3341_v1  ;;  %v4486_v5 = vadd.f32 %v6013_v17, %v2601_v2  ;;  %v3179_v6 = vpop.f32.mrb[104].mxu0  ;;  %v2603_v7 = vpop.f32.mrb[105].mxu1 }
 0x2e6   :  { %v4319_v8 = vpack.c.bf16 %v3405_v4, %v3404_v3  ;;  %v3181_v9 = vpop.f32.mrb[105].mxu0  ;;  %v2604_v10 = vpop.f32.mrb[106].mxu1 }
 0x2e7   :  { %v4487_v11 = vadd.f32 %v4486_v5, %v3179_v6  ;;  %v4488_v12 = vadd.f32 %v6013_v17, %v2604_v10  ;;  %v3182_v13 = vpop.f32.mrb[106].mxu0  ;;  %v2606_v14 = vpop.f32.mrb[107].mxu1 }
 0x2e8   :  { %4375 = vst [vmem:[%s6066_s3 + $0xc8] sm:$0xff] %v4319_v8   ;;  %v3184_v15 = vpop.f32.mrb[107].mxu0 }
 0x2e9   :  { %v3342_v16 = vmul.f32 0.2, %v4487_v11  ;;  %v4489_v33 = vadd.f32 %v4488_v12, %v3182_v13  ;;  %vm3278_vm4 = vcmp.ge.f32.partialorder %v4487_v11, 0.0 }
 0x2eb   :  { %vm3279_vm5 = vcmp.ge.f32.partialorder %v4489_v33, 0.0  ;;  %v3343_v18 = vmul.f32 0.2, %v4489_v33  ;;  %v3406_v20 = vsel %vm3278_vm4, %v4487_v11, %v3342_v16 }
 0x2ec   :  { %v2609_v19 = vpop.f32.mrb[108].mxu1 }
 0x2ed   :  { %v3407_v21 = vsel %vm3279_vm5, %v4489_v33, %v3343_v18  ;;  %v4490_v22 = vadd.f32 %v6013_v17, %v2609_v19  ;;  %v3187_v23 = vpop.f32.mrb[108].mxu0  ;;  %v2611_v24 = vpop.f32.mrb[109].mxu1 }
 0x2ee   :  { %v4324_v25 = vpack.c.bf16 %v3407_v21, %v3406_v20  ;;  %v3189_v26 = vpop.f32.mrb[109].mxu0  ;;  %v2612_v27 = vpop.f32.mrb[110].mxu1 }
 0x2ef   :  { %v4491_v28 = vadd.f32 %v4490_v22, %v3187_v23  ;;  %v4492_v29 = vadd.f32 %v6013_v17, %v2612_v27  ;;  %v3190_v30 = vpop.f32.mrb[110].mxu0  ;;  %v2614_v31 = vpop.f32.mrb[111].mxu1 }
 0x2f0   :  { %4376 = vst [vmem:[%s6066_s3 + $0xd0] sm:$0xff] %v4324_v25   ;;  %v3192_v32 = vpop.f32.mrb[111].mxu0 }
 0x2f1   :  { %v3344_v34 = vmul.f32 0.2, %v4491_v28  ;;  %v4493_v35 = vadd.f32 %v4492_v29, %v3190_v30  ;;  %vm3280_vm6 = vcmp.ge.f32.partialorder %v4491_v28, 0.0 }
 0x2f3   :  { %vm3281_vm7 = vcmp.ge.f32.partialorder %v4493_v35, 0.0  ;;  %v3345_v36 = vmul.f32 0.2, %v4493_v35  ;;  %v3408_v38 = vsel %vm3280_vm6, %v4491_v28, %v3344_v34 }
 0x2f4   :  { %v2617_v37 = vpop.f32.mrb[112].mxu1 }
 0x2f5   :  { %v3409_v39 = vsel %vm3281_vm7, %v4493_v35, %v3345_v36  ;;  %v4494_v40 = vadd.f32 %v6013_v17, %v2617_v37  ;;  %v3195_v41 = vpop.f32.mrb[112].mxu0  ;;  %v2619_v42 = vpop.f32.mrb[113].mxu1 }
 0x2f6   :  { %v4329_v43 = vpack.c.bf16 %v3409_v39, %v3408_v38  ;;  %v3197_v44 = vpop.f32.mrb[113].mxu0  ;;  %v2620_v45 = vpop.f32.mrb[114].mxu1 }
 0x2f7   :  { %v4495_v46 = vadd.f32 %v4494_v40, %v3195_v41  ;;  %v4496_v47 = vadd.f32 %v6013_v17, %v2620_v45  ;;  %v3198_v48 = vpop.f32.mrb[114].mxu0  ;;  %v2622_v49 = vpop.f32.mrb[115].mxu1 }
 0x2f8   :  { %4377 = vst [vmem:[%s6066_s3 + $0xd8] sm:$0xff] %v4329_v43   ;;  %v3200_v50 = vpop.f32.mrb[115].mxu0 }
 0x2f9   :  { %v3346_v51 = vmul.f32 0.2, %v4495_v46  ;;  %v4497_v52 = vadd.f32 %v4496_v47, %v3198_v48  ;;  %vm3282_vm8 = vcmp.ge.f32.partialorder %v4495_v46, 0.0 }
 0x2fb   :  { %vm3283_vm9 = vcmp.ge.f32.partialorder %v4497_v52, 0.0  ;;  %v3347_v53 = vmul.f32 0.2, %v4497_v52  ;;  %v3410_v55 = vsel %vm3282_vm8, %v4495_v46, %v3346_v51 }
 0x2fc   :  { %v2625_v54 = vpop.f32.mrb[116].mxu1 }
 0x2fd   :  { %v3411_v56 = vsel %vm3283_vm9, %v4497_v52, %v3347_v53  ;;  %v4498_v57 = vadd.f32 %v6013_v17, %v2625_v54  ;;  %v3203_v0 = vpop.f32.mrb[116].mxu0  ;;  %v2627_v58 = vpop.f32.mrb[117].mxu1 }
 0x2fe   :  { %v4334_v59 = vpack.c.bf16 %v3411_v56, %v3410_v55  ;;  %v3205_v60 = vpop.f32.mrb[117].mxu0  ;;  %v2628_v61 = vpop.f32.mrb[118].mxu1 }
 0x2ff   :  { %v4499_v62 = vadd.f32 %v4498_v57, %v3203_v0  ;;  %v4500_v63 = vadd.f32 %v6013_v17, %v2628_v61  ;;  %v3206_v1 = vpop.f32.mrb[118].mxu0  ;;  %v2630_v2 = vpop.f32.mrb[119].mxu1 }
 0x300   :  { %4378 = vst [vmem:[%s6066_s3 + $0xe0] sm:$0xff] %v4334_v59   ;;  %v3208_v3 = vpop.f32.mrb[119].mxu0 }
 0x301   :  { %v3348_v4 = vmul.f32 0.2, %v4499_v62  ;;  %v4501_v5 = vadd.f32 %v4500_v63, %v3206_v1  ;;  %vm3284_vm10 = vcmp.ge.f32.partialorder %v4499_v62, 0.0 }
 0x303   :  { %vm3285_vm11 = vcmp.ge.f32.partialorder %v4501_v5, 0.0  ;;  %v3349_v6 = vmul.f32 0.2, %v4501_v5  ;;  %v3412_v8 = vsel %vm3284_vm10, %v4499_v62, %v3348_v4 }
 0x304   :  { %v2633_v7 = vpop.f32.mrb[120].mxu1 }
 0x305   :  { %v3413_v9 = vsel %vm3285_vm11, %v4501_v5, %v3349_v6  ;;  %v4502_v10 = vadd.f32 %v6013_v17, %v2633_v7  ;;  %v3211_v11 = vpop.f32.mrb[120].mxu0  ;;  %v2635_v12 = vpop.f32.mrb[121].mxu1 }
 0x306   :  { %v4339_v13 = vpack.c.bf16 %v3413_v9, %v3412_v8  ;;  %v3213_v14 = vpop.f32.mrb[121].mxu0  ;;  %v2636_v15 = vpop.f32.mrb[122].mxu1 }
 0x307   :  { %v4503_v16 = vadd.f32 %v4502_v10, %v3211_v11  ;;  %v4504_v33 = vadd.f32 %v6013_v17, %v2636_v15  ;;  %v3214_v18 = vpop.f32.mrb[122].mxu0  ;;  %v2638_v19 = vpop.f32.mrb[123].mxu1 }
 0x308   :  { %4379 = vst [vmem:[%s6066_s3 + $0xe8] sm:$0xff] %v4339_v13   ;;  %v3216_v20 = vpop.f32.mrb[123].mxu0 }
 0x309   :  { %v3350_v21 = vmul.f32 0.2, %v4503_v16  ;;  %v4505_v22 = vadd.f32 %v4504_v33, %v3214_v18  ;;  %vm3286_vm12 = vcmp.ge.f32.partialorder %v4503_v16, 0.0 }
 0x30b   :  { %vm3287_vm13 = vcmp.ge.f32.partialorder %v4505_v22, 0.0  ;;  %v3351_v23 = vmul.f32 0.2, %v4505_v22  ;;  %v3414_v25 = vsel %vm3286_vm12, %v4503_v16, %v3350_v21 }
 0x30c   :  { %v2641_v24 = vpop.f32.mrb[124].mxu1 }
 0x30d   :  { %v3415_v26 = vsel %vm3287_vm13, %v4505_v22, %v3351_v23  ;;  %v4506_v27 = vadd.f32 %v6013_v17, %v2641_v24  ;;  %v3219_v28 = vpop.f32.mrb[124].mxu0  ;;  %v2643_v29 = vpop.f32.mrb[125].mxu1 }
 0x30e   :  { %v4344_v30 = vpack.c.bf16 %v3415_v26, %v3414_v25  ;;  %v3221_v31 = vpop.f32.mrb[125].mxu0  ;;  %v2644_v32 = vpop.f32.mrb[126].mxu1 }
 0x30f   :  { %v4507_v34 = vadd.f32 %v4506_v27, %v3219_v28  ;;  %v4508_v35 = vadd.f32 %v6013_v17, %v2644_v32  ;;  %v3222_v36 = vpop.f32.mrb[126].mxu0  ;;  %v2646_v37 = vpop.f32.mrb[127].mxu1 }
 0x310   :  { %4380 = vst [vmem:[%s6066_s3 + $0xf0] sm:$0xff] %v4344_v30   ;;  %v3224_v38 = vpop.f32.mrb[127].mxu0 }
 0x311   :  { %v3352_v39 = vmul.f32 0.2, %v4507_v34  ;;  %v4509_v40 = vadd.f32 %v4508_v35, %v3222_v36  ;;  %vm3288_vm14 = vcmp.ge.f32.partialorder %v4507_v34, 0.0 }
 0x313   :  { %vm3289_vm15 = vcmp.ge.f32.partialorder %v4509_v40, 0.0  ;;  %v3353_v41 = vmul.f32 0.2, %v4509_v40  ;;  %v3416_v42 = vsel %vm3288_vm14, %v4507_v34, %v3352_v39 }
 0x315   :  { %v3417_v43 = vsel %vm3289_vm15, %v4509_v40, %v3353_v41 }
 0x316   :  { %v4349_v44 = vpack.c.bf16 %v3417_v43, %v3416_v42 }
 0x318   :  { %4381 = vst [vmem:[%s6066_s3 + $0xf8] sm:$0xff] %v4349_v44  }

// kernel: discriminator_forward.6
= control target key start
LH: loop header
LB: loop body
LE: loop exit
PB: predicated region body
PF: predicated region fallthrough
CT: control target
= control target key end

     0   :  { %s5276_s12 = smov 0   ;;  %s5278_s13 = smov 0   ;;  %s6591_s0 = inlined_call_operand.vmem [shape: bf16[128,2048], index: 0, kind: input, shape index: {}]   ;;  %s6592_s1 = inlined_call_operand.vmem [shape: bf16[2048,256], index: 1, kind: input, shape index: {}]   ;;  %s6593_s2 = inlined_call_operand.vmem [shape: f32[1,256], index: 2, kind: input, shape index: {}]   ;;  %s6594_s3 = inlined_call_operand.vmem [shape: bf16[128,256], index: 3, kind: output, shape index: {}]  }
   0x1   :  { %s5280_s14 = smov 0   ;;  %s5282_s15 = smov 0  }
   0x2   :  { %s5284_s16 = smov 0  }
   0x3 LB: > { %s22_s17 = sadd.s32 1, %s5250_s15  ;;  %s4186_s18 = sadd.s32 4294967295, %s5254_s16   ;;  %s5254_s16 = sphi %s5284_s16, %s13_s16   ;;  %s5250_s15 = sphi %s5282_s15, %s6599_s15   ;;  %s5246_s14 = sphi %s5280_s14, %s6598_s14   ;;  %s5242_s13 = sphi %s5278_s13, %s6597_s13   ;;  %s5238_s12 = sphi %s5276_s12, %s6596_s12  }
   0x4   : > { %p23_p0 = scmp.ge.s32.totalorder %s22_s17, 2  ;;  %p65_p1 = scmp.ne.s32.totalorder %s5242_s13, %s5238_s12 }
   0x5   : > { %p66_p2 = scmp.eq.s32.totalorder %s5254_s16, 0  ;;  %p123_p4 = scmp.eq.s32.totalorder %s4186_s18, 1 }
   0x6   : > { %s6601_s17 = smov (%p23_p0, %s22_s17), 0  ;;  %s58_s20 = sadd.s32 1, %s5242_s13 }
   0x7   : > { %p67_p3 = por %p66_p2, %p65_p1  ;;  %s55_s19 = ssub.s32 %s5250_s15, %s6601_s17 }
   0x8   : > { %p56_p5 = scmp.eq.s32.totalorder %s55_s19, 0  ;;  %p5311_p6 = por %p123_p4, %p65_p1 }
   0x9   : > { %p4190_p7 = scmp.ge.s32.totalorder %s5254_s16, 2 }
   0xa   : > { %s5316_s22 = scalar_select %p56_p5, %s5242_s13, %s58_s20  }
   0xb   : > { %155 = sbr.rel (%p4190_p7) target bundleno = 192 (0xc0), region = 20 }
  0x12   : > { %158 = sbr.rel (!%p67_p3) target bundleno = 192 (0xc0), region = 24  ;;  %s160_s23 = sand.u32 (%p67_p3), 1, %s5242_s13  }
  0x13   : > { %s4192_s24 = sshll.u32 (%p67_p3), %s5250_s15, 2  ;;  %s4191_s25 = sshll.u32 (%p67_p3), %s160_s23, 10 }
  0x14   : > { %s5324_s28 = scalar_lea.vmem (%p67_p3), %s6592_s1, %s4192_s24  ;;  %s5328_s29 = scalar_lea.vmem (%p67_p3), [#allocation2], %s4191_s25 }
  0x15   : > { %v180_v0 = vld [vmem:[%s5324_s28] sm:$0xf] (%p67_p3)  ;;  %v182_v1 = vld [vmem:[%s5324_s28 + $0x8] sm:$0xf] (%p67_p3)  ;;  %v184_v2 = vld [vmem:[%s5324_s28 + $0x10] sm:$0xf] (%p67_p3) }
  0x16   : > { %181 = vst [vmem:[%s5328_s29] sm:$0xf] (%p67_p3), %v180_v0  ;;  %183 = vst [vmem:[%s5328_s29 + $0x4] sm:$0xf] (%p67_p3), %v182_v1  ;;  %v186_v3 = vld [vmem:[%s5324_s28 + $0x18] sm:$0xf] (%p67_p3) }
  0x17   : > { %v188_v4 = vld [vmem:[%s5324_s28 + $0x20] sm:$0xf] (%p67_p3)  ;;  %185 = vst [vmem:[%s5328_s29 + $0x8] sm:$0xf] (%p67_p3), %v184_v2  ;;  %187 = vst [vmem:[%s5328_s29 + $0xc] sm:$0xf] (%p67_p3), %v186_v3 }
  0x18   : > { %189 = vst [vmem:[%s5328_s29 + $0x10] sm:$0xf] (%p67_p3), %v188_v4  ;;  %v190_v5 = vld [vmem:[%s5324_s28 + $0x28] sm:$0xf] (%p67_p3)  ;;  %v192_v6 = vld [vmem:[%s5324_s28 + $0x30] sm:$0xf] (%p67_p3) }
  0x19   : > { %v194_v7 = vld [vmem:[%s5324_s28 + $0x38] sm:$0xf]  ;;  %191 = vst [vmem:[%s5328_s29 + $0x14] sm:$0xf] %v190_v5  ;;  %193 = vst [vmem:[%s5328_s29 + $0x18] sm:$0xf] %v192_v6 }
  0x1a   : > { %195 = vst [vmem:[%s5328_s29 + $0x1c] sm:$0xf] %v194_v7  ;;  %v196_v8 = vld [vmem:[%s5324_s28 + $0x40] sm:$0xf]  ;;  %v198_v9 = vld [vmem:[%s5324_s28 + $0x48] sm:$0xf] }
  0x1b   : > { %v200_v10 = vld [vmem:[%s5324_s28 + $0x50] sm:$0xf]  ;;  %197 = vst [vmem:[%s5328_s29 + $0x20] sm:$0xf] %v196_v8  ;;  %199 = vst [vmem:[%s5328_s29 + $0x24] sm:$0xf] %v198_v9 }
  0x1c   : > { %201 = vst [vmem:[%s5328_s29 + $0x28] sm:$0xf] %v200_v10  ;;  %v202_v11 = vld [vmem:[%s5324_s28 + $0x58] sm:$0xf]  ;;  %v204_v12 = vld [vmem:[%s5324_s28 + $0x60] sm:$0xf] }
  0x1d   : > { %v206_v13 = vld [vmem:[%s5324_s28 + $0x68] sm:$0xf]  ;;  %203 = vst [vmem:[%s5328_s29 + $0x2c] sm:$0xf] %v202_v11  ;;  %205 = vst [vmem:[%s5328_s29 + $0x30] sm:$0xf] %v204_v12 }
  0x1e   : > { %207 = vst [vmem:[%s5328_s29 + $0x34] sm:$0xf] %v206_v13  ;;  %v208_v14 = vld [vmem:[%s5324_s28 + $0x70] sm:$0xf]  ;;  %v210_v15 = vld [vmem:[%s5324_s28 + $0x78] sm:$0xf] }
  0x1f   : > { %v212_v16 = vld [vmem:[%s5324_s28 + $0x80] sm:$0xf]  ;;  %209 = vst [vmem:[%s5328_s29 + $0x38] sm:$0xf] %v208_v14  ;;  %211 = vst [vmem:[%s5328_s29 + $0x3c] sm:$0xf] %v210_v15 }
  0x20   : > { %213 = vst [vmem:[%s5328_s29 + $0x40] sm:$0xf] %v212_v16  ;;  %v214_v17 = vld [vmem:[%s5324_s28 + $0x88] sm:$0xf]  ;;  %v216_v18 = vld [vmem:[%s5324_s28 + $0x90] sm:$0xf] }
  0x21   : > { %v218_v19 = vld [vmem:[%s5324_s28 + $0x98] sm:$0xf]  ;;  %215 = vst [vmem:[%s5328_s29 + $0x44] sm:$0xf] %v214_v17  ;;  %217 = vst [vmem:[%s5328_s29 + $0x48] sm:$0xf] %v216_v18 }
  0x22   : > { %219 = vst [vmem:[%s5328_s29 + $0x4c] sm:$0xf] %v218_v19  ;;  %v220_v20 = vld [vmem:[%s5324_s28 + $0xa0] sm:$0xf]  ;;  %v222_v21 = vld [vmem:[%s5324_s28 + $0xa8] sm:$0xf] }
  0x23   : > { %v224_v22 = vld [vmem:[%s5324_s28 + $0xb0] sm:$0xf]  ;;  %221 = vst [vmem:[%s5328_s29 + $0x50] sm:$0xf] %v220_v20  ;;  %223 = vst [vmem:[%s5328_s29 + $0x54] sm:$0xf] %v222_v21 }
  0x24   : > { %225 = vst [vmem:[%s5328_s29 + $0x58] sm:$0xf] %v224_v22  ;;  %v226_v23 = vld [vmem:[%s5324_s28 + $0xb8] sm:$0xf]  ;;  %v228_v24 = vld [vmem:[%s5324_s28 + $0xc0] sm:$0xf] }
  0x25   : > { %v230_v25 = vld [vmem:[%s5324_s28 + $0xc8] sm:$0xf]  ;;  %227 = vst [vmem:[%s5328_s29 + $0x5c] sm:$0xf] %v226_v23  ;;  %229 = vst [vmem:[%s5328_s29 + $0x60] sm:$0xf] %v228_v24 }
  0x26   : > { %231 = vst [vmem:[%s5328_s29 + $0x64] sm:$0xf] %v230_v25  ;;  %v232_v26 = vld [vmem:[%s5324_s28 + $0xd0] sm:$0xf]  ;;  %v234_v27 = vld [vmem:[%s5324_s28 + $0xd8] sm:$0xf] }
  0x27   : > { %v236_v28 = vld [vmem:[%s5324_s28 + $0xe0] sm:$0xf]  ;;  %233 = vst [vmem:[%s5328_s29 + $0x68] sm:$0xf] %v232_v26  ;;  %235 = vst [vmem:[%s5328_s29 + $0x6c] sm:$0xf] %v234_v27 }
  0x28   : > { %237 = vst [vmem:[%s5328_s29 + $0x70] sm:$0xf] %v236_v28  ;;  %v238_v29 = vld [vmem:[%s5324_s28 + $0xe8] sm:$0xf]  ;;  %v240_v30 = vld [vmem:[%s5324_s28 + $0xf0] sm:$0xf] }
  0x29   : > { %v242_v31 = vld [vmem:[%s5324_s28 + $0xf8] sm:$0xf]  ;;  %239 = vst [vmem:[%s5328_s29 + $0x74] sm:$0xf] %v238_v29  ;;  %241 = vst [vmem:[%s5328_s29 + $0x78] sm:$0xf] %v240_v30 }
  0x2a   : > { %243 = vst [vmem:[%s5328_s29 + $0x7c] sm:$0xf] %v242_v31  ;;  %v244_v32 = vld [vmem:[%s5324_s28 + $0x100] sm:$0xf]  ;;  %v246_v33 = vld [vmem:[%s5324_s28 + $0x108] sm:$0xf] }
  0x2b   : > { %v248_v34 = vld [vmem:[%s5324_s28 + $0x110] sm:$0xf]  ;;  %245 = vst [vmem:[%s5328_s29 + $0x80] sm:$0xf] %v244_v32  ;;  %247 = vst [vmem:[%s5328_s29 + $0x84] sm:$0xf] %v246_v33 }
  0x2c   : > { %249 = vst [vmem:[%s5328_s29 + $0x88] sm:$0xf] %v248_v34  ;;  %v250_v35 = vld [vmem:[%s5324_s28 + $0x118] sm:$0xf]  ;;  %v252_v36 = vld [vmem:[%s5324_s28 + $0x120] sm:$0xf] }
  0x2d   : > { %v254_v37 = vld [vmem:[%s5324_s28 + $0x128] sm:$0xf]  ;;  %251 = vst [vmem:[%s5328_s29 + $0x8c] sm:$0xf] %v250_v35  ;;  %253 = vst [vmem:[%s5328_s29 + $0x90] sm:$0xf] %v252_v36 }
  0x2e   : > { %255 = vst [vmem:[%s5328_s29 + $0x94] sm:$0xf] %v254_v37  ;;  %v256_v38 = vld [vmem:[%s5324_s28 + $0x130] sm:$0xf]  ;;  %v258_v39 = vld [vmem:[%s5324_s28 + $0x138] sm:$0xf] }
  0x2f   : > { %v260_v40 = vld [vmem:[%s5324_s28 + $0x140] sm:$0xf]  ;;  %257 = vst [vmem:[%s5328_s29 + $0x98] sm:$0xf] %v256_v38  ;;  %259 = vst [vmem:[%s5328_s29 + $0x9c] sm:$0xf] %v258_v39 }
  0x30   : > { %261 = vst [vmem:[%s5328_s29 + $0xa0] sm:$0xf] %v260_v40  ;;  %v262_v41 = vld [vmem:[%s5324_s28 + $0x148] sm:$0xf]  ;;  %v264_v42 = vld [vmem:[%s5324_s28 + $0x150] sm:$0xf] }
  0x31   : > { %v266_v43 = vld [vmem:[%s5324_s28 + $0x158] sm:$0xf]  ;;  %263 = vst [vmem:[%s5328_s29 + $0xa4] sm:$0xf] %v262_v41  ;;  %265 = vst [vmem:[%s5328_s29 + $0xa8] sm:$0xf] %v264_v42 }
  0x32   : > { %267 = vst [vmem:[%s5328_s29 + $0xac] sm:$0xf] %v266_v43  ;;  %v268_v44 = vld [vmem:[%s5324_s28 + $0x160] sm:$0xf]  ;;  %v270_v45 = vld [vmem:[%s5324_s28 + $0x168] sm:$0xf] }
  0x33   : > { %v272_v46 = vld [vmem:[%s5324_s28 + $0x170] sm:$0xf]  ;;  %269 = vst [vmem:[%s5328_s29 + $0xb0] sm:$0xf] %v268_v44  ;;  %271 = vst [vmem:[%s5328_s29 + $0xb4] sm:$0xf] %v270_v45 }
  0x34   : > { %273 = vst [vmem:[%s5328_s29 + $0xb8] sm:$0xf] %v272_v46  ;;  %v274_v47 = vld [vmem:[%s5324_s28 + $0x178] sm:$0xf]  ;;  %v276_v48 = vld [vmem:[%s5324_s28 + $0x180] sm:$0xf] }
  0x35   : > { %v278_v49 = vld [vmem:[%s5324_s28 + $0x188] sm:$0xf]  ;;  %275 = vst [vmem:[%s5328_s29 + $0xbc] sm:$0xf] %v274_v47  ;;  %277 = vst [vmem:[%s5328_s29 + $0xc0] sm:$0xf] %v276_v48 }
  0x36   : > { %279 = vst [vmem:[%s5328_s29 + $0xc4] sm:$0xf] %v278_v49  ;;  %v280_v50 = vld [vmem:[%s5324_s28 + $0x190] sm:$0xf]  ;;  %v282_v51 = vld [vmem:[%s5324_s28 + $0x198] sm:$0xf] }
  0x37   : > { %v284_v52 = vld [vmem:[%s5324_s28 + $0x1a0] sm:$0xf]  ;;  %281 = vst [vmem:[%s5328_s29 + $0xc8] sm:$0xf] %v280_v50  ;;  %283 = vst [vmem:[%s5328_s29 + $0xcc] sm:$0xf] %v282_v51 }
  0x38   : > { %285 = vst [vmem:[%s5328_s29 + $0xd0] sm:$0xf] %v284_v52  ;;  %v286_v53 = vld [vmem:[%s5324_s28 + $0x1a8] sm:$0xf]  ;;  %v288_v54 = vld [vmem:[%s5324_s28 + $0x1b0] sm:$0xf] }
  0x39   : > { %v290_v55 = vld [vmem:[%s5324_s28 + $0x1b8] sm:$0xf]  ;;  %287 = vst [vmem:[%s5328_s29 + $0xd4] sm:$0xf] %v286_v53  ;;  %289 = vst [vmem:[%s5328_s29 + $0xd8] sm:$0xf] %v288_v54 }
  0x3a   : > { %291 = vst [vmem:[%s5328_s29 + $0xdc] sm:$0xf] %v290_v55  ;;  %v292_v56 = vld [vmem:[%s5324_s28 + $0x1c0] sm:$0xf]  ;;  %v294_v57 = vld [vmem:[%s5324_s28 + $0x1c8] sm:$0xf] }
  0x3b   : > { %v296_v58 = vld [vmem:[%s5324_s28 + $0x1d0] sm:$0xf]  ;;  %293 = vst [vmem:[%s5328_s29 + $0xe0] sm:$0xf] %v292_v56  ;;  %295 = vst [vmem:[%s5328_s29 + $0xe4] sm:$0xf] %v294_v57 }
  0x3c   : > { %297 = vst [vmem:[%s5328_s29 + $0xe8] sm:$0xf] %v296_v58  ;;  %v298_v59 = vld [vmem:[%s5324_s28 + $0x1d8] sm:$0xf]  ;;  %v300_v60 = vld [vmem:[%s5324_s28 + $0x1e0] sm:$0xf] }
  0x3d   : > { %v302_v61 = vld [vmem:[%s5324_s28 + $0x1e8] sm:$0xf]  ;;  %299 = vst [vmem:[%s5328_s29 + $0xec] sm:$0xf] %v298_v59  ;;  %301 = vst [vmem:[%s5328_s29 + $0xf0] sm:$0xf] %v300_v60 }
  0x3e   : > { %303 = vst [vmem:[%s5328_s29 + $0xf4] sm:$0xf] %v302_v61  ;;  %v304_v62 = vld [vmem:[%s5324_s28 + $0x1f0] sm:$0xf]  ;;  %v306_v63 = vld [vmem:[%s5324_s28 + $0x1f8] sm:$0xf] }
  0x3f   : > { %v308_v0 = vld [vmem:[%s5324_s28 + $0x200] sm:$0xf]  ;;  %305 = vst [vmem:[%s5328_s29 + $0xf8] sm:$0xf] %v304_v62  ;;  %307 = vst [vmem:[%s5328_s29 + $0xfc] sm:$0xf] %v306_v63 }
  0x40   : > { %309 = vst [vmem:[%s5328_s29 + $0x100] sm:$0xf] %v308_v0  ;;  %v310_v1 = vld [vmem:[%s5324_s28 + $0x208] sm:$0xf]  ;;  %v312_v2 = vld [vmem:[%s5324_s28 + $0x210] sm:$0xf] }
  0x41   : > { %v314_v3 = vld [vmem:[%s5324_s28 + $0x218] sm:$0xf]  ;;  %311 = vst [vmem:[%s5328_s29 + $0x104] sm:$0xf] %v310_v1  ;;  %313 = vst [vmem:[%s5328_s29 + $0x108] sm:$0xf] %v312_v2 }
  0x42   : > { %315 = vst [vmem:[%s5328_s29 + $0x10c] sm:$0xf] %v314_v3  ;;  %v316_v4 = vld [vmem:[%s5324_s28 + $0x220] sm:$0xf]  ;;  %v318_v5 = vld [vmem:[%s5324_s28 + $0x228] sm:$0xf] }
  0x43   : > { %v320_v6 = vld [vmem:[%s5324_s28 + $0x230] sm:$0xf]  ;;  %317 = vst [vmem:[%s5328_s29 + $0x110] sm:$0xf] %v316_v4  ;;  %319 = vst [vmem:[%s5328_s29 + $0x114] sm:$0xf] %v318_v5 }
  0x44   : > { %321 = vst [vmem:[%s5328_s29 + $0x118] sm:$0xf] %v320_v6  ;;  %v322_v7 = vld [vmem:[%s5324_s28 + $0x238] sm:$0xf]  ;;  %v324_v8 = vld [vmem:[%s5324_s28 + $0x240] sm:$0xf] }
  0x45   : > { %v326_v9 = vld [vmem:[%s5324_s28 + $0x248] sm:$0xf]  ;;  %323 = vst [vmem:[%s5328_s29 + $0x11c] sm:$0xf] %v322_v7  ;;  %325 = vst [vmem:[%s5328_s29 + $0x120] sm:$0xf] %v324_v8 }
  0x46   : > { %327 = vst [vmem:[%s5328_s29 + $0x124] sm:$0xf] %v326_v9  ;;  %v328_v10 = vld [vmem:[%s5324_s28 + $0x250] sm:$0xf]  ;;  %v330_v11 = vld [vmem:[%s5324_s28 + $0x258] sm:$0xf] }
  0x47   : > { %v332_v12 = vld [vmem:[%s5324_s28 + $0x260] sm:$0xf]  ;;  %329 = vst [vmem:[%s5328_s29 + $0x128] sm:$0xf] %v328_v10  ;;  %331 = vst [vmem:[%s5328_s29 + $0x12c] sm:$0xf] %v330_v11 }
  0x48   : > { %333 = vst [vmem:[%s5328_s29 + $0x130] sm:$0xf] %v332_v12  ;;  %v334_v13 = vld [vmem:[%s5324_s28 + $0x268] sm:$0xf]  ;;  %v336_v14 = vld [vmem:[%s5324_s28 + $0x270] sm:$0xf] }
  0x49   : > { %v338_v15 = vld [vmem:[%s5324_s28 + $0x278] sm:$0xf]  ;;  %335 = vst [vmem:[%s5328_s29 + $0x134] sm:$0xf] %v334_v13  ;;  %337 = vst [vmem:[%s5328_s29 + $0x138] sm:$0xf] %v336_v14 }
  0x4a   : > { %339 = vst [vmem:[%s5328_s29 + $0x13c] sm:$0xf] %v338_v15  ;;  %v340_v16 = vld [vmem:[%s5324_s28 + $0x280] sm:$0xf]  ;;  %v342_v17 = vld [vmem:[%s5324_s28 + $0x288] sm:$0xf] }
  0x4b   : > { %v344_v18 = vld [vmem:[%s5324_s28 + $0x290] sm:$0xf]  ;;  %341 = vst [vmem:[%s5328_s29 + $0x140] sm:$0xf] %v340_v16  ;;  %343 = vst [vmem:[%s5328_s29 + $0x144] sm:$0xf] %v342_v17 }
  0x4c   : > { %345 = vst [vmem:[%s5328_s29 + $0x148] sm:$0xf] %v344_v18  ;;  %v346_v19 = vld [vmem:[%s5324_s28 + $0x298] sm:$0xf]  ;;  %v348_v20 = vld [vmem:[%s5324_s28 + $0x2a0] sm:$0xf] }
  0x4d   : > { %v350_v21 = vld [vmem:[%s5324_s28 + $0x2a8] sm:$0xf]  ;;  %347 = vst [vmem:[%s5328_s29 + $0x14c] sm:$0xf] %v346_v19  ;;  %349 = vst [vmem:[%s5328_s29 + $0x150] sm:$0xf] %v348_v20 }
  0x4e   : > { %351 = vst [vmem:[%s5328_s29 + $0x154] sm:$0xf] %v350_v21  ;;  %v352_v22 = vld [vmem:[%s5324_s28 + $0x2b0] sm:$0xf]  ;;  %v354_v23 = vld [vmem:[%s5324_s28 + $0x2b8] sm:$0xf] }
  0x4f   : > { %v356_v24 = vld [vmem:[%s5324_s28 + $0x2c0] sm:$0xf]  ;;  %353 = vst [vmem:[%s5328_s29 + $0x158] sm:$0xf] %v352_v22  ;;  %355 = vst [vmem:[%s5328_s29 + $0x15c] sm:$0xf] %v354_v23 }
  0x50   : > { %357 = vst [vmem:[%s5328_s29 + $0x160] sm:$0xf] %v356_v24  ;;  %v358_v25 = vld [vmem:[%s5324_s28 + $0x2c8] sm:$0xf]  ;;  %v360_v26 = vld [vmem:[%s5324_s28 + $0x2d0] sm:$0xf] }
  0x51   : > { %v362_v27 = vld [vmem:[%s5324_s28 + $0x2d8] sm:$0xf]  ;;  %359 = vst [vmem:[%s5328_s29 + $0x164] sm:$0xf] %v358_v25  ;;  %361 = vst [vmem:[%s5328_s29 + $0x168] sm:$0xf] %v360_v26 }
  0x52   : > { %363 = vst [vmem:[%s5328_s29 + $0x16c] sm:$0xf] %v362_v27  ;;  %v364_v28 = vld [vmem:[%s5324_s28 + $0x2e0] sm:$0xf]  ;;  %v366_v29 = vld [vmem:[%s5324_s28 + $0x2e8] sm:$0xf] }
  0x53   : > { %v368_v30 = vld [vmem:[%s5324_s28 + $0x2f0] sm:$0xf]  ;;  %365 = vst [vmem:[%s5328_s29 + $0x170] sm:$0xf] %v364_v28  ;;  %367 = vst [vmem:[%s5328_s29 + $0x174] sm:$0xf] %v366_v29 }
  0x54   : > { %369 = vst [vmem:[%s5328_s29 + $0x178] sm:$0xf] %v368_v30  ;;  %v370_v31 = vld [vmem:[%s5324_s28 + $0x2f8] sm:$0xf]  ;;  %v372_v32 = vld [vmem:[%s5324_s28 + $0x300] sm:$0xf] }
  0x55   : > { %v374_v33 = vld [vmem:[%s5324_s28 + $0x308] sm:$0xf]  ;;  %371 = vst [vmem:[%s5328_s29 + $0x17c] sm:$0xf] %v370_v31  ;;  %373 = vst [vmem:[%s5328_s29 + $0x180] sm:$0xf] %v372_v32 }
  0x56   : > { %375 = vst [vmem:[%s5328_s29 + $0x184] sm:$0xf] %v374_v33  ;;  %v376_v34 = vld [vmem:[%s5324_s28 + $0x310] sm:$0xf]  ;;  %v378_v35 = vld [vmem:[%s5324_s28 + $0x318] sm:$0xf] }
  0x57   : > { %v380_v36 = vld [vmem:[%s5324_s28 + $0x320] sm:$0xf]  ;;  %377 = vst [vmem:[%s5328_s29 + $0x188] sm:$0xf] %v376_v34  ;;  %379 = vst [vmem:[%s5328_s29 + $0x18c] sm:$0xf] %v378_v35 }
  0x58   : > { %381 = vst [vmem:[%s5328_s29 + $0x190] sm:$0xf] %v380_v36  ;;  %v382_v37 = vld [vmem:[%s5324_s28 + $0x328] sm:$0xf]  ;;  %v384_v38 = vld [vmem:[%s5324_s28 + $0x330] sm:$0xf] }
  0x59   : > { %v386_v39 = vld [vmem:[%s5324_s28 + $0x338] sm:$0xf]  ;;  %383 = vst [vmem:[%s5328_s29 + $0x194] sm:$0xf] %v382_v37  ;;  %385 = vst [vmem:[%s5328_s29 + $0x198] sm:$0xf] %v384_v38 }
  0x5a   : > { %387 = vst [vmem:[%s5328_s29 + $0x19c] sm:$0xf] %v386_v39  ;;  %v388_v40 = vld [vmem:[%s5324_s28 + $0x340] sm:$0xf]  ;;  %v390_v41 = vld [vmem:[%s5324_s28 + $0x348] sm:$0xf] }
  0x5b   : > { %v392_v42 = vld [vmem:[%s5324_s28 + $0x350] sm:$0xf]  ;;  %389 = vst [vmem:[%s5328_s29 + $0x1a0] sm:$0xf] %v388_v40  ;;  %391 = vst [vmem:[%s5328_s29 + $0x1a4] sm:$0xf] %v390_v41 }
  0x5c   : > { %393 = vst [vmem:[%s5328_s29 + $0x1a8] sm:$0xf] %v392_v42  ;;  %v394_v43 = vld [vmem:[%s5324_s28 + $0x358] sm:$0xf]  ;;  %v396_v44 = vld [vmem:[%s5324_s28 + $0x360] sm:$0xf] }
  0x5d   : > { %v398_v45 = vld [vmem:[%s5324_s28 + $0x368] sm:$0xf]  ;;  %395 = vst [vmem:[%s5328_s29 + $0x1ac] sm:$0xf] %v394_v43  ;;  %397 = vst [vmem:[%s5328_s29 + $0x1b0] sm:$0xf] %v396_v44 }
  0x5e   : > { %399 = vst [vmem:[%s5328_s29 + $0x1b4] sm:$0xf] %v398_v45  ;;  %v400_v46 = vld [vmem:[%s5324_s28 + $0x370] sm:$0xf]  ;;  %v402_v47 = vld [vmem:[%s5324_s28 + $0x378] sm:$0xf] }
  0x5f   : > { %v404_v48 = vld [vmem:[%s5324_s28 + $0x380] sm:$0xf]  ;;  %401 = vst [vmem:[%s5328_s29 + $0x1b8] sm:$0xf] %v400_v46  ;;  %403 = vst [vmem:[%s5328_s29 + $0x1bc] sm:$0xf] %v402_v47 }
  0x60   : > { %405 = vst [vmem:[%s5328_s29 + $0x1c0] sm:$0xf] %v404_v48  ;;  %v406_v49 = vld [vmem:[%s5324_s28 + $0x388] sm:$0xf]  ;;  %v408_v50 = vld [vmem:[%s5324_s28 + $0x390] sm:$0xf] }
  0x61   : > { %v410_v51 = vld [vmem:[%s5324_s28 + $0x398] sm:$0xf]  ;;  %407 = vst [vmem:[%s5328_s29 + $0x1c4] sm:$0xf] %v406_v49  ;;  %409 = vst [vmem:[%s5328_s29 + $0x1c8] sm:$0xf] %v408_v50 }
  0x62   : > { %411 = vst [vmem:[%s5328_s29 + $0x1cc] sm:$0xf] %v410_v51  ;;  %v412_v52 = vld [vmem:[%s5324_s28 + $0x3a0] sm:$0xf]  ;;  %v414_v53 = vld [vmem:[%s5324_s28 + $0x3a8] sm:$0xf] }
  0x63   : > { %v416_v54 = vld [vmem:[%s5324_s28 + $0x3b0] sm:$0xf]  ;;  %413 = vst [vmem:[%s5328_s29 + $0x1d0] sm:$0xf] %v412_v52  ;;  %415 = vst [vmem:[%s5328_s29 + $0x1d4] sm:$0xf] %v414_v53 }
  0x64   : > { %417 = vst [vmem:[%s5328_s29 + $0x1d8] sm:$0xf] %v416_v54  ;;  %v418_v55 = vld [vmem:[%s5324_s28 + $0x3b8] sm:$0xf]  ;;  %v420_v56 = vld [vmem:[%s5324_s28 + $0x3c0] sm:$0xf] }
  0x65   : > { %v422_v57 = vld [vmem:[%s5324_s28 + $0x3c8] sm:$0xf]  ;;  %419 = vst [vmem:[%s5328_s29 + $0x1dc] sm:$0xf] %v418_v55  ;;  %421 = vst [vmem:[%s5328_s29 + $0x1e0] sm:$0xf] %v420_v56 }
  0x66   : > { %423 = vst [vmem:[%s5328_s29 + $0x1e4] sm:$0xf] %v422_v57  ;;  %v424_v58 = vld [vmem:[%s5324_s28 + $0x3d0] sm:$0xf]  ;;  %v426_v59 = vld [vmem:[%s5324_s28 + $0x3d8] sm:$0xf] }
  0x67   : > { %v428_v60 = vld [vmem:[%s5324_s28 + $0x3e0] sm:$0xf]  ;;  %425 = vst [vmem:[%s5328_s29 + $0x1e8] sm:$0xf] %v424_v58  ;;  %427 = vst [vmem:[%s5328_s29 + $0x1ec] sm:$0xf] %v426_v59 }
  0x68   : > { %429 = vst [vmem:[%s5328_s29 + $0x1f0] sm:$0xf] %v428_v60  ;;  %v430_v61 = vld [vmem:[%s5324_s28 + $0x3e8] sm:$0xf]  ;;  %v432_v62 = vld [vmem:[%s5324_s28 + $0x3f0] sm:$0xf] }
  0x69   : > { %v434_v63 = vld [vmem:[%s5324_s28 + $0x3f8] sm:$0xf]  ;;  %431 = vst [vmem:[%s5328_s29 + $0x1f4] sm:$0xf] %v430_v61  ;;  %433 = vst [vmem:[%s5328_s29 + $0x1f8] sm:$0xf] %v432_v62 }
  0x6a   : > { %435 = vst [vmem:[%s5328_s29 + $0x1fc] sm:$0xf] %v434_v63  ;;  %v436_v0 = vld [vmem:[%s5324_s28 + $0x400] sm:$0xf]  ;;  %v438_v1 = vld [vmem:[%s5324_s28 + $0x408] sm:$0xf] }
  0x6b   : > { %v440_v2 = vld [vmem:[%s5324_s28 + $0x410] sm:$0xf]  ;;  %437 = vst [vmem:[%s5328_s29 + $0x200] sm:$0xf] %v436_v0  ;;  %439 = vst [vmem:[%s5328_s29 + $0x204] sm:$0xf] %v438_v1 }
  0x6c   : > { %441 = vst [vmem:[%s5328_s29 + $0x208] sm:$0xf] %v440_v2  ;;  %v442_v3 = vld [vmem:[%s5324_s28 + $0x418] sm:$0xf]  ;;  %v444_v4 = vld [vmem:[%s5324_s28 + $0x420] sm:$0xf] }
  0x6d   : > { %v446_v5 = vld [vmem:[%s5324_s28 + $0x428] sm:$0xf]  ;;  %443 = vst [vmem:[%s5328_s29 + $0x20c] sm:$0xf] %v442_v3  ;;  %445 = vst [vmem:[%s5328_s29 + $0x210] sm:$0xf] %v444_v4 }
  0x6e   : > { %447 = vst [vmem:[%s5328_s29 + $0x214] sm:$0xf] %v446_v5  ;;  %v448_v6 = vld [vmem:[%s5324_s28 + $0x430] sm:$0xf]  ;;  %v450_v7 = vld [vmem:[%s5324_s28 + $0x438] sm:$0xf] }
  0x6f   : > { %v452_v8 = vld [vmem:[%s5324_s28 + $0x440] sm:$0xf]  ;;  %449 = vst [vmem:[%s5328_s29 + $0x218] sm:$0xf] %v448_v6  ;;  %451 = vst [vmem:[%s5328_s29 + $0x21c] sm:$0xf] %v450_v7 }
  0x70   : > { %453 = vst [vmem:[%s5328_s29 + $0x220] sm:$0xf] %v452_v8  ;;  %v454_v9 = vld [vmem:[%s5324_s28 + $0x448] sm:$0xf]  ;;  %v456_v10 = vld [vmem:[%s5324_s28 + $0x450] sm:$0xf] }
  0x71   : > { %v458_v11 = vld [vmem:[%s5324_s28 + $0x458] sm:$0xf]  ;;  %455 = vst [vmem:[%s5328_s29 + $0x224] sm:$0xf] %v454_v9  ;;  %457 = vst [vmem:[%s5328_s29 + $0x228] sm:$0xf] %v456_v10 }
  0x72   : > { %459 = vst [vmem:[%s5328_s29 + $0x22c] sm:$0xf] %v458_v11  ;;  %v460_v12 = vld [vmem:[%s5324_s28 + $0x460] sm:$0xf]  ;;  %v462_v13 = vld [vmem:[%s5324_s28 + $0x468] sm:$0xf] }
  0x73   : > { %v464_v14 = vld [vmem:[%s5324_s28 + $0x470] sm:$0xf]  ;;  %461 = vst [vmem:[%s5328_s29 + $0x230] sm:$0xf] %v460_v12  ;;  %463 = vst [vmem:[%s5328_s29 + $0x234] sm:$0xf] %v462_v13 }
  0x74   : > { %465 = vst [vmem:[%s5328_s29 + $0x238] sm:$0xf] %v464_v14  ;;  %v466_v15 = vld [vmem:[%s5324_s28 + $0x478] sm:$0xf]  ;;  %v468_v16 = vld [vmem:[%s5324_s28 + $0x480] sm:$0xf] }
  0x75   : > { %v470_v17 = vld [vmem:[%s5324_s28 + $0x488] sm:$0xf]  ;;  %467 = vst [vmem:[%s5328_s29 + $0x23c] sm:$0xf] %v466_v15  ;;  %469 = vst [vmem:[%s5328_s29 + $0x240] sm:$0xf] %v468_v16 }
  0x76   : > { %471 = vst [vmem:[%s5328_s29 + $0x244] sm:$0xf] %v470_v17  ;;  %v472_v18 = vld [vmem:[%s5324_s28 + $0x490] sm:$0xf]  ;;  %v474_v19 = vld [vmem:[%s5324_s28 + $0x498] sm:$0xf] }
  0x77   : > { %v476_v20 = vld [vmem:[%s5324_s28 + $0x4a0] sm:$0xf]  ;;  %473 = vst [vmem:[%s5328_s29 + $0x248] sm:$0xf] %v472_v18  ;;  %475 = vst [vmem:[%s5328_s29 + $0x24c] sm:$0xf] %v474_v19 }
  0x78   : > { %477 = vst [vmem:[%s5328_s29 + $0x250] sm:$0xf] %v476_v20  ;;  %v478_v21 = vld [vmem:[%s5324_s28 + $0x4a8] sm:$0xf]  ;;  %v480_v22 = vld [vmem:[%s5324_s28 + $0x4b0] sm:$0xf] }
  0x79   : > { %v482_v23 = vld [vmem:[%s5324_s28 + $0x4b8] sm:$0xf]  ;;  %479 = vst [vmem:[%s5328_s29 + $0x254] sm:$0xf] %v478_v21  ;;  %481 = vst [vmem:[%s5328_s29 + $0x258] sm:$0xf] %v480_v22 }
  0x7a   : > { %483 = vst [vmem:[%s5328_s29 + $0x25c] sm:$0xf] %v482_v23  ;;  %v484_v24 = vld [vmem:[%s5324_s28 + $0x4c0] sm:$0xf]  ;;  %v486_v25 = vld [vmem:[%s5324_s28 + $0x4c8] sm:$0xf] }
  0x7b   : > { %v488_v26 = vld [vmem:[%s5324_s28 + $0x4d0] sm:$0xf]  ;;  %485 = vst [vmem:[%s5328_s29 + $0x260] sm:$0xf] %v484_v24  ;;  %487 = vst [vmem:[%s5328_s29 + $0x264] sm:$0xf] %v486_v25 }
  0x7c   : > { %489 = vst [vmem:[%s5328_s29 + $0x268] sm:$0xf] %v488_v26  ;;  %v490_v27 = vld [vmem:[%s5324_s28 + $0x4d8] sm:$0xf]  ;;  %v492_v28 = vld [vmem:[%s5324_s28 + $0x4e0] sm:$0xf] }
  0x7d   : > { %v494_v29 = vld [vmem:[%s5324_s28 + $0x4e8] sm:$0xf]  ;;  %491 = vst [vmem:[%s5328_s29 + $0x26c] sm:$0xf] %v490_v27  ;;  %493 = vst [vmem:[%s5328_s29 + $0x270] sm:$0xf] %v492_v28 }
  0x7e   : > { %495 = vst [vmem:[%s5328_s29 + $0x274] sm:$0xf] %v494_v29  ;;  %v496_v30 = vld [vmem:[%s5324_s28 + $0x4f0] sm:$0xf]  ;;  %v498_v31 = vld [vmem:[%s5324_s28 + $0x4f8] sm:$0xf] }
  0x7f   : > { %v500_v32 = vld [vmem:[%s5324_s28 + $0x500] sm:$0xf]  ;;  %497 = vst [vmem:[%s5328_s29 + $0x278] sm:$0xf] %v496_v30  ;;  %499 = vst [vmem:[%s5328_s29 + $0x27c] sm:$0xf] %v498_v31 }
  0x80   : > { %501 = vst [vmem:[%s5328_s29 + $0x280] sm:$0xf] %v500_v32  ;;  %v502_v33 = vld [vmem:[%s5324_s28 + $0x508] sm:$0xf]  ;;  %v504_v34 = vld [vmem:[%s5324_s28 + $0x510] sm:$0xf] }
  0x81   : > { %v506_v35 = vld [vmem:[%s5324_s28 + $0x518] sm:$0xf]  ;;  %503 = vst [vmem:[%s5328_s29 + $0x284] sm:$0xf] %v502_v33  ;;  %505 = vst [vmem:[%s5328_s29 + $0x288] sm:$0xf] %v504_v34 }
  0x82   : > { %507 = vst [vmem:[%s5328_s29 + $0x28c] sm:$0xf] %v506_v35  ;;  %v508_v36 = vld [vmem:[%s5324_s28 + $0x520] sm:$0xf]  ;;  %v510_v37 = vld [vmem:[%s5324_s28 + $0x528] sm:$0xf] }
  0x83   : > { %v512_v38 = vld [vmem:[%s5324_s28 + $0x530] sm:$0xf]  ;;  %509 = vst [vmem:[%s5328_s29 + $0x290] sm:$0xf] %v508_v36  ;;  %511 = vst [vmem:[%s5328_s29 + $0x294] sm:$0xf] %v510_v37 }
  0x84   : > { %513 = vst [vmem:[%s5328_s29 + $0x298] sm:$0xf] %v512_v38  ;;  %v514_v39 = vld [vmem:[%s5324_s28 + $0x538] sm:$0xf]  ;;  %v516_v40 = vld [vmem:[%s5324_s28 + $0x540] sm:$0xf] }
  0x85   : > { %v518_v41 = vld [vmem:[%s5324_s28 + $0x548] sm:$0xf]  ;;  %515 = vst [vmem:[%s5328_s29 + $0x29c] sm:$0xf] %v514_v39  ;;  %517 = vst [vmem:[%s5328_s29 + $0x2a0] sm:$0xf] %v516_v40 }
  0x86   : > { %519 = vst [vmem:[%s5328_s29 + $0x2a4] sm:$0xf] %v518_v41  ;;  %v520_v42 = vld [vmem:[%s5324_s28 + $0x550] sm:$0xf]  ;;  %v522_v43 = vld [vmem:[%s5324_s28 + $0x558] sm:$0xf] }
  0x87   : > { %v524_v44 = vld [vmem:[%s5324_s28 + $0x560] sm:$0xf]  ;;  %521 = vst [vmem:[%s5328_s29 + $0x2a8] sm:$0xf] %v520_v42  ;;  %523 = vst [vmem:[%s5328_s29 + $0x2ac] sm:$0xf] %v522_v43 }
  0x88   : > { %525 = vst [vmem:[%s5328_s29 + $0x2b0] sm:$0xf] %v524_v44  ;;  %v526_v45 = vld [vmem:[%s5324_s28 + $0x568] sm:$0xf]  ;;  %v528_v46 = vld [vmem:[%s5324_s28 + $0x570] sm:$0xf] }
  0x89   : > { %v530_v47 = vld [vmem:[%s5324_s28 + $0x578] sm:$0xf]  ;;  %527 = vst [vmem:[%s5328_s29 + $0x2b4] sm:$0xf] %v526_v45  ;;  %529 = vst [vmem:[%s5328_s29 + $0x2b8] sm:$0xf] %v528_v46 }
  0x8a   : > { %531 = vst [vmem:[%s5328_s29 + $0x2bc] sm:$0xf] %v530_v47  ;;  %v532_v48 = vld [vmem:[%s5324_s28 + $0x580] sm:$0xf]  ;;  %v534_v49 = vld [vmem:[%s5324_s28 + $0x588] sm:$0xf] }
  0x8b   : > { %v536_v50 = vld [vmem:[%s5324_s28 + $0x590] sm:$0xf]  ;;  %533 = vst [vmem:[%s5328_s29 + $0x2c0] sm:$0xf] %v532_v48  ;;  %535 = vst [vmem:[%s5328_s29 + $0x2c4] sm:$0xf] %v534_v49 }
  0x8c   : > { %537 = vst [vmem:[%s5328_s29 + $0x2c8] sm:$0xf] %v536_v50  ;;  %v538_v51 = vld [vmem:[%s5324_s28 + $0x598] sm:$0xf]  ;;  %v540_v52 = vld [vmem:[%s5324_s28 + $0x5a0] sm:$0xf] }
  0x8d   : > { %v542_v53 = vld [vmem:[%s5324_s28 + $0x5a8] sm:$0xf]  ;;  %539 = vst [vmem:[%s5328_s29 + $0x2cc] sm:$0xf] %v538_v51  ;;  %541 = vst [vmem:[%s5328_s29 + $0x2d0] sm:$0xf] %v540_v52 }
  0x8e   : > { %543 = vst [vmem:[%s5328_s29 + $0x2d4] sm:$0xf] %v542_v53  ;;  %v544_v54 = vld [vmem:[%s5324_s28 + $0x5b0] sm:$0xf]  ;;  %v546_v55 = vld [vmem:[%s5324_s28 + $0x5b8] sm:$0xf] }
  0x8f   : > { %v548_v56 = vld [vmem:[%s5324_s28 + $0x5c0] sm:$0xf]  ;;  %545 = vst [vmem:[%s5328_s29 + $0x2d8] sm:$0xf] %v544_v54  ;;  %547 = vst [vmem:[%s5328_s29 + $0x2dc] sm:$0xf] %v546_v55 }
  0x90   : > { %549 = vst [vmem:[%s5328_s29 + $0x2e0] sm:$0xf] %v548_v56  ;;  %v550_v57 = vld [vmem:[%s5324_s28 + $0x5c8] sm:$0xf]  ;;  %v552_v58 = vld [vmem:[%s5324_s28 + $0x5d0] sm:$0xf] }
  0x91   : > { %v554_v59 = vld [vmem:[%s5324_s28 + $0x5d8] sm:$0xf]  ;;  %551 = vst [vmem:[%s5328_s29 + $0x2e4] sm:$0xf] %v550_v57  ;;  %553 = vst [vmem:[%s5328_s29 + $0x2e8] sm:$0xf] %v552_v58 }
  0x92   : > { %555 = vst [vmem:[%s5328_s29 + $0x2ec] sm:$0xf] %v554_v59  ;;  %v556_v60 = vld [vmem:[%s5324_s28 + $0x5e0] sm:$0xf]  ;;  %v558_v61 = vld [vmem:[%s5324_s28 + $0x5e8] sm:$0xf] }
  0x93   : > { %v560_v62 = vld [vmem:[%s5324_s28 + $0x5f0] sm:$0xf]  ;;  %557 = vst [vmem:[%s5328_s29 + $0x2f0] sm:$0xf] %v556_v60  ;;  %559 = vst [vmem:[%s5328_s29 + $0x2f4] sm:$0xf] %v558_v61 }
  0x94   : > { %561 = vst [vmem:[%s5328_s29 + $0x2f8] sm:$0xf] %v560_v62  ;;  %v562_v63 = vld [vmem:[%s5324_s28 + $0x5f8] sm:$0xf]  ;;  %v564_v0 = vld [vmem:[%s5324_s28 + $0x600] sm:$0xf] }
  0x95   : > { %v566_v1 = vld [vmem:[%s5324_s28 + $0x608] sm:$0xf]  ;;  %563 = vst [vmem:[%s5328_s29 + $0x2fc] sm:$0xf] %v562_v63  ;;  %565 = vst [vmem:[%s5328_s29 + $0x300] sm:$0xf] %v564_v0 }
  0x96   : > { %567 = vst [vmem:[%s5328_s29 + $0x304] sm:$0xf] %v566_v1  ;;  %v568_v2 = vld [vmem:[%s5324_s28 + $0x610] sm:$0xf]  ;;  %v570_v3 = vld [vmem:[%s5324_s28 + $0x618] sm:$0xf] }
  0x97   : > { %v572_v4 = vld [vmem:[%s5324_s28 + $0x620] sm:$0xf]  ;;  %569 = vst [vmem:[%s5328_s29 + $0x308] sm:$0xf] %v568_v2  ;;  %571 = vst [vmem:[%s5328_s29 + $0x30c] sm:$0xf] %v570_v3 }
  0x98   : > { %573 = vst [vmem:[%s5328_s29 + $0x310] sm:$0xf] %v572_v4  ;;  %v574_v5 = vld [vmem:[%s5324_s28 + $0x628] sm:$0xf]  ;;  %v576_v6 = vld [vmem:[%s5324_s28 + $0x630] sm:$0xf] }
  0x99   : > { %v578_v7 = vld [vmem:[%s5324_s28 + $0x638] sm:$0xf]  ;;  %575 = vst [vmem:[%s5328_s29 + $0x314] sm:$0xf] %v574_v5  ;;  %577 = vst [vmem:[%s5328_s29 + $0x318] sm:$0xf] %v576_v6 }
  0x9a   : > { %579 = vst [vmem:[%s5328_s29 + $0x31c] sm:$0xf] %v578_v7  ;;  %v580_v8 = vld [vmem:[%s5324_s28 + $0x640] sm:$0xf]  ;;  %v582_v9 = vld [vmem:[%s5324_s28 + $0x648] sm:$0xf] }
  0x9b   : > { %v584_v10 = vld [vmem:[%s5324_s28 + $0x650] sm:$0xf]  ;;  %581 = vst [vmem:[%s5328_s29 + $0x320] sm:$0xf] %v580_v8  ;;  %583 = vst [vmem:[%s5328_s29 + $0x324] sm:$0xf] %v582_v9 }
  0x9c   : > { %585 = vst [vmem:[%s5328_s29 + $0x328] sm:$0xf] %v584_v10  ;;  %v586_v11 = vld [vmem:[%s5324_s28 + $0x658] sm:$0xf]  ;;  %v588_v12 = vld [vmem:[%s5324_s28 + $0x660] sm:$0xf] }
  0x9d   : > { %v590_v13 = vld [vmem:[%s5324_s28 + $0x668] sm:$0xf]  ;;  %587 = vst [vmem:[%s5328_s29 + $0x32c] sm:$0xf] %v586_v11  ;;  %589 = vst [vmem:[%s5328_s29 + $0x330] sm:$0xf] %v588_v12 }
  0x9e   : > { %591 = vst [vmem:[%s5328_s29 + $0x334] sm:$0xf] %v590_v13  ;;  %v592_v14 = vld [vmem:[%s5324_s28 + $0x670] sm:$0xf]  ;;  %v594_v15 = vld [vmem:[%s5324_s28 + $0x678] sm:$0xf] }
  0x9f   : > { %v596_v16 = vld [vmem:[%s5324_s28 + $0x680] sm:$0xf]  ;;  %593 = vst [vmem:[%s5328_s29 + $0x338] sm:$0xf] %v592_v14  ;;  %595 = vst [vmem:[%s5328_s29 + $0x33c] sm:$0xf] %v594_v15 }
  0xa0   : > { %597 = vst [vmem:[%s5328_s29 + $0x340] sm:$0xf] %v596_v16  ;;  %v598_v17 = vld [vmem:[%s5324_s28 + $0x688] sm:$0xf]  ;;  %v600_v18 = vld [vmem:[%s5324_s28 + $0x690] sm:$0xf] }
  0xa1   : > { %v602_v19 = vld [vmem:[%s5324_s28 + $0x698] sm:$0xf]  ;;  %599 = vst [vmem:[%s5328_s29 + $0x344] sm:$0xf] %v598_v17  ;;  %601 = vst [vmem:[%s5328_s29 + $0x348] sm:$0xf] %v600_v18 }
  0xa2   : > { %603 = vst [vmem:[%s5328_s29 + $0x34c] sm:$0xf] %v602_v19  ;;  %v604_v20 = vld [vmem:[%s5324_s28 + $0x6a0] sm:$0xf]  ;;  %v606_v21 = vld [vmem:[%s5324_s28 + $0x6a8] sm:$0xf] }
  0xa3   : > { %v608_v22 = vld [vmem:[%s5324_s28 + $0x6b0] sm:$0xf]  ;;  %605 = vst [vmem:[%s5328_s29 + $0x350] sm:$0xf] %v604_v20  ;;  %607 = vst [vmem:[%s5328_s29 + $0x354] sm:$0xf] %v606_v21 }
  0xa4   : > { %609 = vst [vmem:[%s5328_s29 + $0x358] sm:$0xf] %v608_v22  ;;  %v610_v23 = vld [vmem:[%s5324_s28 + $0x6b8] sm:$0xf]  ;;  %v612_v24 = vld [vmem:[%s5324_s28 + $0x6c0] sm:$0xf] }
  0xa5   : > { %v614_v25 = vld [vmem:[%s5324_s28 + $0x6c8] sm:$0xf]  ;;  %611 = vst [vmem:[%s5328_s29 + $0x35c] sm:$0xf] %v610_v23  ;;  %613 = vst [vmem:[%s5328_s29 + $0x360] sm:$0xf] %v612_v24 }
  0xa6   : > { %615 = vst [vmem:[%s5328_s29 + $0x364] sm:$0xf] %v614_v25  ;;  %v616_v26 = vld [vmem:[%s5324_s28 + $0x6d0] sm:$0xf]  ;;  %v618_v27 = vld [vmem:[%s5324_s28 + $0x6d8] sm:$0xf] }
  0xa7   : > { %v620_v28 = vld [vmem:[%s5324_s28 + $0x6e0] sm:$0xf]  ;;  %617 = vst [vmem:[%s5328_s29 + $0x368] sm:$0xf] %v616_v26  ;;  %619 = vst [vmem:[%s5328_s29 + $0x36c] sm:$0xf] %v618_v27 }
  0xa8   : > { %621 = vst [vmem:[%s5328_s29 + $0x370] sm:$0xf] %v620_v28  ;;  %v622_v29 = vld [vmem:[%s5324_s28 + $0x6e8] sm:$0xf]  ;;  %v624_v30 = vld [vmem:[%s5324_s28 + $0x6f0] sm:$0xf] }
  0xa9   : > { %v626_v31 = vld [vmem:[%s5324_s28 + $0x6f8] sm:$0xf]  ;;  %623 = vst [vmem:[%s5328_s29 + $0x374] sm:$0xf] %v622_v29  ;;  %625 = vst [vmem:[%s5328_s29 + $0x378] sm:$0xf] %v624_v30 }
  0xaa   : > { %627 = vst [vmem:[%s5328_s29 + $0x37c] sm:$0xf] %v626_v31  ;;  %v628_v32 = vld [vmem:[%s5324_s28 + $0x700] sm:$0xf]  ;;  %v630_v33 = vld [vmem:[%s5324_s28 + $0x708] sm:$0xf] }
  0xab   : > { %v632_v34 = vld [vmem:[%s5324_s28 + $0x710] sm:$0xf]  ;;  %629 = vst [vmem:[%s5328_s29 + $0x380] sm:$0xf] %v628_v32  ;;  %631 = vst [vmem:[%s5328_s29 + $0x384] sm:$0xf] %v630_v33 }
  0xac   : > { %633 = vst [vmem:[%s5328_s29 + $0x388] sm:$0xf] %v632_v34  ;;  %v634_v35 = vld [vmem:[%s5324_s28 + $0x718] sm:$0xf]  ;;  %v636_v36 = vld [vmem:[%s5324_s28 + $0x720] sm:$0xf] }
  0xad   : > { %v638_v37 = vld [vmem:[%s5324_s28 + $0x728] sm:$0xf]  ;;  %635 = vst [vmem:[%s5328_s29 + $0x38c] sm:$0xf] %v634_v35  ;;  %637 = vst [vmem:[%s5328_s29 + $0x390] sm:$0xf] %v636_v36 }
  0xae   : > { %639 = vst [vmem:[%s5328_s29 + $0x394] sm:$0xf] %v638_v37  ;;  %v640_v38 = vld [vmem:[%s5324_s28 + $0x730] sm:$0xf]  ;;  %v642_v39 = vld [vmem:[%s5324_s28 + $0x738] sm:$0xf] }
  0xaf   : > { %v644_v40 = vld [vmem:[%s5324_s28 + $0x740] sm:$0xf]  ;;  %641 = vst [vmem:[%s5328_s29 + $0x398] sm:$0xf] %v640_v38  ;;  %643 = vst [vmem:[%s5328_s29 + $0x39c] sm:$0xf] %v642_v39 }
  0xb0   : > { %645 = vst [vmem:[%s5328_s29 + $0x3a0] sm:$0xf] %v644_v40  ;;  %v646_v41 = vld [vmem:[%s5324_s28 + $0x748] sm:$0xf]  ;;  %v648_v42 = vld [vmem:[%s5324_s28 + $0x750] sm:$0xf] }
  0xb1   : > { %v650_v43 = vld [vmem:[%s5324_s28 + $0x758] sm:$0xf]  ;;  %647 = vst [vmem:[%s5328_s29 + $0x3a4] sm:$0xf] %v646_v41  ;;  %649 = vst [vmem:[%s5328_s29 + $0x3a8] sm:$0xf] %v648_v42 }
  0xb2   : > { %651 = vst [vmem:[%s5328_s29 + $0x3ac] sm:$0xf] %v650_v43  ;;  %v652_v44 = vld [vmem:[%s5324_s28 + $0x760] sm:$0xf]  ;;  %v654_v45 = vld [vmem:[%s5324_s28 + $0x768] sm:$0xf] }
  0xb3   : > { %v656_v46 = vld [vmem:[%s5324_s28 + $0x770] sm:$0xf]  ;;  %653 = vst [vmem:[%s5328_s29 + $0x3b0] sm:$0xf] %v652_v44  ;;  %655 = vst [vmem:[%s5328_s29 + $0x3b4] sm:$0xf] %v654_v45 }
  0xb4   : > { %657 = vst [vmem:[%s5328_s29 + $0x3b8] sm:$0xf] %v656_v46  ;;  %v658_v47 = vld [vmem:[%s5324_s28 + $0x778] sm:$0xf]  ;;  %v660_v48 = vld [vmem:[%s5324_s28 + $0x780] sm:$0xf] }
  0xb5   : > { %v662_v49 = vld [vmem:[%s5324_s28 + $0x788] sm:$0xf]  ;;  %659 = vst [vmem:[%s5328_s29 + $0x3bc] sm:$0xf] %v658_v47  ;;  %661 = vst [vmem:[%s5328_s29 + $0x3c0] sm:$0xf] %v660_v48 }
  0xb6   : > { %663 = vst [vmem:[%s5328_s29 + $0x3c4] sm:$0xf] %v662_v49  ;;  %v664_v50 = vld [vmem:[%s5324_s28 + $0x790] sm:$0xf]  ;;  %v666_v51 = vld [vmem:[%s5324_s28 + $0x798] sm:$0xf] }
  0xb7   : > { %v668_v52 = vld [vmem:[%s5324_s28 + $0x7a0] sm:$0xf]  ;;  %665 = vst [vmem:[%s5328_s29 + $0x3c8] sm:$0xf] %v664_v50  ;;  %667 = vst [vmem:[%s5328_s29 + $0x3cc] sm:$0xf] %v666_v51 }
  0xb8   : > { %669 = vst [vmem:[%s5328_s29 + $0x3d0] sm:$0xf] %v668_v52  ;;  %v670_v53 = vld [vmem:[%s5324_s28 + $0x7a8] sm:$0xf]  ;;  %v672_v54 = vld [vmem:[%s5324_s28 + $0x7b0] sm:$0xf] }
  0xb9   : > { %v674_v55 = vld [vmem:[%s5324_s28 + $0x7b8] sm:$0xf]  ;;  %671 = vst [vmem:[%s5328_s29 + $0x3d4] sm:$0xf] %v670_v53  ;;  %673 = vst [vmem:[%s5328_s29 + $0x3d8] sm:$0xf] %v672_v54 }
  0xba   : > { %675 = vst [vmem:[%s5328_s29 + $0x3dc] sm:$0xf] %v674_v55  ;;  %v676_v56 = vld [vmem:[%s5324_s28 + $0x7c0] sm:$0xf]  ;;  %v678_v57 = vld [vmem:[%s5324_s28 + $0x7c8] sm:$0xf] }
  0xbb   : > { %v680_v58 = vld [vmem:[%s5324_s28 + $0x7d0] sm:$0xf]  ;;  %677 = vst [vmem:[%s5328_s29 + $0x3e0] sm:$0xf] %v676_v56  ;;  %679 = vst [vmem:[%s5328_s29 + $0x3e4] sm:$0xf] %v678_v57 }
  0xbc   : > { %681 = vst [vmem:[%s5328_s29 + $0x3e8] sm:$0xf] %v680_v58  ;;  %v682_v59 = vld [vmem:[%s5324_s28 + $0x7d8] sm:$0xf]  ;;  %v684_v60 = vld [vmem:[%s5324_s28 + $0x7e0] sm:$0xf] }
  0xbd   : > { %v686_v61 = vld [vmem:[%s5324_s28 + $0x7e8] sm:$0xf]  ;;  %683 = vst [vmem:[%s5328_s29 + $0x3ec] sm:$0xf] %v682_v59  ;;  %685 = vst [vmem:[%s5328_s29 + $0x3f0] sm:$0xf] %v684_v60 }
  0xbe   : > { %687 = vst [vmem:[%s5328_s29 + $0x3f4] sm:$0xf] %v686_v61  ;;  %v688_v62 = vld [vmem:[%s5324_s28 + $0x7f0] sm:$0xf]  ;;  %v690_v63 = vld [vmem:[%s5324_s28 + $0x7f8] sm:$0xf] }
  0xbf   : > { %689 = vst [vmem:[%s5328_s29 + $0x3f8] sm:$0xf] %v688_v62  ;;  %691 = vst [vmem:[%s5328_s29 + $0x3fc] sm:$0xf] %v690_v63 }
  0xc0 PF: > { %p4193_p8 = scmp.ge.s32.totalorder %s5254_s16, 1  ;;  %p1231_p9 = scmp.lt.s32.totalorder %s5254_s16, 3 }
  0xc2   : > { %p1232_p10 = pnand %p4193_p8, %p1231_p9 }
  0xc3   : > { %s1238_s30 = sand.u32 (!%p1232_p10), 1, %s5238_s12   ;;  %v5846_v0 = vld [vmem:[%s6591_s0] sm:$0xff] (!%p1232_p10)  ;;  %v5856_v2 = vld [vmem:[%s6591_s0 + $0x8] sm:$0xff] (!%p1232_p10)  ;;  %p1276_p11 = scmp.lt.s32.totalorder (!%p1232_p10), %s5246_s14, 1 }
  0xc4   : > { %1235 = sbr.rel (%p1232_p10) target bundleno = 715 (0x2cb), region = 69  ;;  %v5851_v1 = vld [vmem:[%s6591_s0 + $0x40] sm:$0xff] (!%p1232_p10)  ;;  %s4194_s10 = sshll.u32 (!%p1232_p10), %s1238_s30, 10  ;;  %v5865_v4 = vld [vmem:[%s6591_s0 + $0x48] sm:$0xff] (!%p1232_p10) }
  0xc5   : > { %v4198_v3 = vcombine.high (!%p1232_p10), %v5846_v0, %v5851_v1  ;;  %v4200_v5 = vcombine.high (!%p1232_p10), %v5856_v2, %v5865_v4  ;;  %s5869_s19 = scalar_lea.vmem (!%p1232_p10), [#allocation2], %s4194_s10  ;;  %v1297_v35 = vld [vmem:[%s6591_s0 + $0x80] sm:$0xff] (!%p1232_p10)  ;;  %v1298_v38 = vld [vmem:[%s6591_s0 + $0x88] sm:$0xff] (!%p1232_p10)  ;;  %v4197_v42 = vcombine.low (!%p1232_p10), %v5846_v0, %v5851_v1  ;;  %v4199_v43 = vcombine.low (!%p1232_p10), %v5856_v2, %v5865_v4 }
  0xc6   : > { %v5088_v6 = vld [vmem:[%s5869_s19 + $0x40] sm:$0xff] (!%p1232_p10)   ;;  %v5092_v10 = vld [vmem:[%s5869_s19 + $0x48] sm:$0xff] (!%p1232_p10)   ;;  %v5096_v14 = vld [vmem:[%s5869_s19 + $0x50] sm:$0xff] (!%p1232_p10)  }
  0xc7   : > { %3112 = vmatprep.mubr.bf16.mxu0 (!%p1232_p10), %v4198_v3  ;;  %v5089_v7 = vld [vmem:[%s5869_s19 + $0xc0] sm:$0xff] (!%p1232_p10)   ;;  %3209 = vmatprep.mubr.bf16.mxu1 (!%p1232_p10), %v4200_v5  ;;  %v5093_v11 = vld [vmem:[%s5869_s19 + $0xc8] sm:$0xff] (!%p1232_p10)   ;;  %v5097_v15 = vld [vmem:[%s5869_s19 + $0xd0] sm:$0xff] (!%p1232_p10)  }
  0xc8   : > { %4536 = vmatprep.subr.bf16.mxu0 (!%p1232_p10), %v5088_v6  ;;  %v5090_v8 = vld [vmem:[%s5869_s19] sm:$0xff] (!%p1232_p10)   ;;  %4600 = vmatprep.subr.bf16.mxu1 (!%p1232_p10), %v5089_v7  ;;  %v5094_v12 = vld [vmem:[%s5869_s19 + $0x8] sm:$0xff] (!%p1232_p10)   ;;  %v5098_v16 = vld [vmem:[%s5869_s19 + $0x10] sm:$0xff] (!%p1232_p10)  }
  0xc9   : > { %v5091_v9 = vld [vmem:[%s5869_s19 + $0x80] sm:$0xff] (!%p1232_p10)   ;;  %4537 = vmatpush3.bf16.msra.mxu0 (!%p1232_p10), %v5090_v8  ;;  %v5095_v13 = vld [vmem:[%s5869_s19 + $0x88] sm:$0xff] (!%p1232_p10)   ;;  %v5099_v17 = vld [vmem:[%s5869_s19 + $0x90] sm:$0xff] (!%p1232_p10)  }
  0xca   : > { %4601 = vmatpush3.bf16.msra.mxu1 (!%p1232_p10), %v5091_v9  ;;  %4538 = vmatprep.subr.bf16.mxu0 (!%p1232_p10), %v5092_v10  ;;  %v5100_v18 = vld [vmem:[%s5869_s19 + $0x58] sm:$0xff] (!%p1232_p10)   ;;  %v5104_v22 = vld [vmem:[%s5869_s19 + $0x60] sm:$0xff] (!%p1232_p10)   ;;  %v5108_v26 = vld [vmem:[%s5869_s19 + $0x68] sm:$0xff] (!%p1232_p10)  }
  0xcb   : > { %4602 = vmatprep.subr.bf16.mxu1 %v5093_v11  ;;  %v5101_v19 = vld [vmem:[%s5869_s19 + $0xd8] sm:$0xff]   ;;  %v5105_v23 = vld [vmem:[%s5869_s19 + $0xe0] sm:$0xff]   ;;  %v5109_v27 = vld [vmem:[%s5869_s19 + $0xe8] sm:$0xff]   ;;  %s1277_s5 = scalar_select %p1276_p11, %s5246_s14, 1 }
  0xcc   : > { %v5102_v20 = vld [vmem:[%s5869_s19 + $0x18] sm:$0xff]   ;;  %v5106_v24 = vld [vmem:[%s5869_s19 + $0x20] sm:$0xff]   ;;  %v5110_v28 = vld [vmem:[%s5869_s19 + $0x28] sm:$0xff]  }
  0xcd   : > { %4539 = vmatpush3.bf16.msra.mxu0 %v5094_v12  ;;  %v5103_v21 = vld [vmem:[%s5869_s19 + $0x98] sm:$0xff]   ;;  %v5107_v25 = vld [vmem:[%s5869_s19 + $0xa0] sm:$0xff]   ;;  %v5111_v29 = vld [vmem:[%s5869_s19 + $0xa8] sm:$0xff]   ;;  %s1278_s8 = scalar_lea.vmem %s6593_s2, %s1277_s5  ;;  %s4195_s5 = sshll.u32 %s1238_s30, 6 }
  0xce   : > { %4603 = vmatpush3.bf16.msra.mxu1 %v5095_v13  ;;  %4540 = vmatprep.subr.bf16.mxu0 %v5096_v14  ;;  %v5112_v30 = vld [vmem:[%s5869_s19 + $0x70] sm:$0xff]   ;;  %v5116_v34 = vld [vmem:[%s5869_s19 + $0x78] sm:$0xff]   ;;  %v1305_v36 = vld [vmem:[%s6591_s0 + $0xc0] sm:$0xff]  ;;  %s6532_s12 = scalar_lea.vmem [#allocation3], %s4195_s5  ;;  %s4470_s30 = sshll.u32 (%p5311_p6), %s5246_s14, 2 }
  0xcf   : > { %4604 = vmatprep.subr.bf16.mxu1 %v5097_v15  ;;  %v5113_v31 = vld [vmem:[%s5869_s19 + $0xf0] sm:$0xff]   ;;  %v5117_v37 = vld [vmem:[%s5869_s19 + $0xf8] sm:$0xff]   ;;  %v1306_v39 = vld [vmem:[%s6591_s0 + $0xc8] sm:$0xff]  ;;  %v4214_v46 = vcombine.high %v1297_v35, %v1305_v36  ;;  %v4213_v54 = vcombine.low %v1297_v35, %v1305_v36 }
  0xd0   : > { %v5114_v32 = vld [vmem:[%s5869_s19 + $0x30] sm:$0xff]   ;;  %v5118_v40 = vld [vmem:[%s5869_s19 + $0x38] sm:$0xff]   ;;  %v5120_v44 = vld [vmem:[%s5869_s19 + $0x140] sm:$0xff]   ;;  %v4216_v48 = vcombine.high %v1298_v38, %v1306_v39  ;;  %v4215_v56 = vcombine.low %v1298_v38, %v1306_v39 }
  0xd1   : > { %4541 = vmatpush3.bf16.msra.mxu0 %v5098_v16  ;;  %v5115_v33 = vld [vmem:[%s5869_s19 + $0xb0] sm:$0xff]   ;;  %v5119_v41 = vld [vmem:[%s5869_s19 + $0xb8] sm:$0xff]   ;;  %v5121_v45 = vld [vmem:[%s5869_s19 + $0x100] sm:$0xff]  }
  0xd2   : > { %4605 = vmatpush3.bf16.msra.mxu1 %v5099_v17  ;;  %4542 = vmatprep.subr.bf16.mxu0 %v5100_v18  ;;  %v5122_v47 = vld [vmem:[%s5869_s19 + $0x1c0] sm:$0xff]   ;;  %v5124_v50 = vld [vmem:[%s5869_s19 + $0x148] sm:$0xff]   ;;  %v5128_v62 = vld [vmem:[%s5869_s19 + $0x150] sm:$0xff]  }
  0xd3   : > { %4606 = vmatprep.subr.bf16.mxu1 %v5101_v19  ;;  %v5123_v49 = vld [vmem:[%s5869_s19 + $0x180] sm:$0xff]   ;;  %v5125_v52 = vld [vmem:[%s5869_s19 + $0x108] sm:$0xff]   ;;  %v5129_v63 = vld [vmem:[%s5869_s19 + $0x110] sm:$0xff]  }
  0xd4   : > { %v1313_v51 = vld [vmem:[%s6591_s0 + $0x100] sm:$0xff]  ;;  %v5126_v53 = vld [vmem:[%s5869_s19 + $0x1c8] sm:$0xff]   ;;  %v5130_v0 = vld [vmem:[%s5869_s19 + $0x1d0] sm:$0xff]  }
  0xd5   : > { %4543 = vmatpush3.bf16.msra.mxu0 %v5102_v20  ;;  %v5127_v55 = vld [vmem:[%s5869_s19 + $0x188] sm:$0xff]   ;;  %v1321_v57 = vld [vmem:[%s6591_s0 + $0x140] sm:$0xff]  ;;  %v5131_v1 = vld [vmem:[%s5869_s19 + $0x190] sm:$0xff]  }
  0xd6   : > { %4607 = vmatpush3.bf16.msra.mxu1 %v5103_v21  ;;  %4544 = vmatprep.subr.bf16.mxu0 %v5104_v22  ;;  %v1314_v58 = vld [vmem:[%s6591_s0 + $0x108] sm:$0xff]  ;;  %v4230_v60 = vcombine.high %v1313_v51, %v1321_v57  ;;  %v1329_v2 = vld [vmem:[%s6591_s0 + $0x180] sm:$0xff]  ;;  %v4229_v6 = vcombine.low %v1313_v51, %v1321_v57  ;;  %v5132_v7 = vld [vmem:[%s5869_s19 + $0x158] sm:$0xff]  }
  0xd7   : > { %4608 = vmatprep.subr.bf16.mxu1 %v5105_v23  ;;  %v1322_v59 = vld [vmem:[%s6591_s0 + $0x148] sm:$0xff]  ;;  %v1337_v3 = vld [vmem:[%s6591_s0 + $0x1c0] sm:$0xff]  ;;  %v5133_v10 = vld [vmem:[%s5869_s19 + $0x118] sm:$0xff]  }
  0xd8   : > { %v4232_v61 = vcombine.high %v1314_v58, %v1322_v59  ;;  %v1330_v4 = vld [vmem:[%s6591_s0 + $0x188] sm:$0xff]  ;;  %v4231_v8 = vcombine.low %v1314_v58, %v1322_v59  ;;  %v4246_v9 = vcombine.high %v1329_v2, %v1337_v3  ;;  %v5134_v12 = vld [vmem:[%s5869_s19 + $0x1d8] sm:$0xff]   ;;  %v1345_v14 = vld [vmem:[%s6591_s0 + $0x200] sm:$0xff]  ;;  %v4245_v21 = vcombine.low %v1329_v2, %v1337_v3 }
  0xd9   : > { %4545 = vmatpush3.bf16.msra.mxu0 %v5106_v24  ;;  %v1338_v5 = vld [vmem:[%s6591_s0 + $0x1c8] sm:$0xff]  ;;  %v5135_v13 = vld [vmem:[%s5869_s19 + $0x198] sm:$0xff]   ;;  %v1353_v15 = vld [vmem:[%s6591_s0 + $0x240] sm:$0xff] }
  0xda   : > { %4609 = vmatpush3.bf16.msra.mxu1 %v5107_v25  ;;  %4546 = vmatprep.subr.bf16.mxu0 %v5108_v26  ;;  %v4248_v11 = vcombine.high %v1330_v4, %v1338_v5  ;;  %v1346_v16 = vld [vmem:[%s6591_s0 + $0x208] sm:$0xff]  ;;  %v5136_v18 = vld [vmem:[%s5869_s19 + $0x160] sm:$0xff]   ;;  %v4247_v23 = vcombine.low %v1330_v4, %v1338_v5  ;;  %v4262_v24 = vcombine.high %v1345_v14, %v1353_v15  ;;  %v5144_v35 = vld [vmem:[%s5869_s19 + $0x170] sm:$0xff]  }
  0xdb   : > { %4610 = vmatprep.subr.bf16.mxu1 %v5109_v27  ;;  %v1354_v17 = vld [vmem:[%s6591_s0 + $0x248] sm:$0xff]  ;;  %v5137_v19 = vld [vmem:[%s5869_s19 + $0x120] sm:$0xff]   ;;  %v5145_v38 = vld [vmem:[%s5869_s19 + $0x130] sm:$0xff]  }
  0xdc   : > { %v5138_v20 = vld [vmem:[%s5869_s19 + $0x1e0] sm:$0xff]   ;;  %v4264_v25 = vcombine.high %v1346_v16, %v1354_v17  ;;  %v5140_v26 = vld [vmem:[%s5869_s19 + $0x168] sm:$0xff]   ;;  %v4263_v36 = vcombine.low %v1346_v16, %v1354_v17  ;;  %v1284_v2 = vld [vmem:[%s6591_s0 + $0x18] sm:$0xff] }
  0xdd   : > { %4547 = vmatpush3.bf16.msra.mxu0 %v5110_v28  ;;  %v5139_v22 = vld [vmem:[%s5869_s19 + $0x1a0] sm:$0xff]   ;;  %v5141_v27 = vld [vmem:[%s5869_s19 + $0x128] sm:$0xff]   ;;  %v1292_v3 = vld [vmem:[%s6591_s0 + $0x58] sm:$0xff] }
  0xde   : > { %4611 = vmatpush3.bf16.msra.mxu1 %v5111_v29  ;;  %4548 = vmatprep.subr.bf16.mxu0 %v5112_v30  ;;  %v5142_v28 = vld [vmem:[%s5869_s19 + $0x1e8] sm:$0xff]   ;;  %v1361_v30 = vld [vmem:[%s6591_s0 + $0x280] sm:$0xff] }
  0xdf   : > { %4612 = vmatprep.subr.bf16.mxu1 %v5113_v31  ;;  %v5143_v29 = vld [vmem:[%s5869_s19 + $0x1a8] sm:$0xff]   ;;  %v1369_v31 = vld [vmem:[%s6591_s0 + $0x2c0] sm:$0xff] }
  0xe0   : > { %v1401_v57 = vld [vmem:[%s6591_s0 + $0x3c0] sm:$0xff]  ;;  %v1394_v58 = vld [vmem:[%s6591_s0 + $0x388] sm:$0xff] }
  0xe1   : > { %4549 = vmatpush3.bf16.msra.mxu0 %v5114_v32  ;;  %v1362_v32 = vld [vmem:[%s6591_s0 + $0x288] sm:$0xff] }
  0xe2   : > { %4613 = vmatpush3.bf16.msra.mxu1 %v5115_v33  ;;  %4550 = vmatprep.subr.bf16.mxu0 %v5116_v34  ;;  %v1370_v33 = vld [vmem:[%s6591_s0 + $0x2c8] sm:$0xff]  ;;  %v4261_v34 = vcombine.low %v1345_v14, %v1353_v15  ;;  %v5153_v14 = vld [vmem:[%s5869_s19 + $0x200] sm:$0xff]  }
  0xe3   : > { %4614 = vmatprep.subr.bf16.mxu1 %v5117_v37  ;;  %v4278_v37 = vcombine.high %v1361_v30, %v1369_v31  ;;  %v4280_v39 = vcombine.high %v1362_v32, %v1370_v33  ;;  %v4279_v51 = vcombine.low %v1362_v32, %v1370_v33  ;;  %v1402_v59 = vld [vmem:[%s6591_s0 + $0x3c8] sm:$0xff]  ;;  %v5155_v15 = vld [vmem:[%s5869_s19 + $0x280] sm:$0xff]   ;;  %v5163_v33 = vld [vmem:[%s5869_s19 + $0x290] sm:$0xff]  }
  0xe4   : > { %v4311_v5 = vcombine.low %v1394_v58, %v1402_v59 }
  0xe5   : > { %4551 = vmatpush3.bf16.msra.mxu0 %v5118_v40  ;;  %v5146_v40 = vld [vmem:[%s5869_s19 + $0x1f0] sm:$0xff]  }
  0xe6   : > { %4615 = vmatpush3.bf16.msra.mxu1 %v5119_v41  ;;  %4664 = vmatprep.subr.bf16.mxu0 %v5120_v44  ;;  %v5147_v41 = vld [vmem:[%s5869_s19 + $0x1b0] sm:$0xff]   ;;  %v1378_v44 = vld [vmem:[%s6591_s0 + $0x308] sm:$0xff] }
  0xe7   : > { %4728 = vmatprep.subr.bf16.mxu1 %v5122_v47  ;;  %v5149_v47 = vld [vmem:[%s5869_s19 + $0x138] sm:$0xff]  }
  0xe8   : > { %3113 = vmatmul.mubr.bf16.vlgmr.msra.gmra.mrb[0].mxu0 %v4197_v42  ;;  %v1377_v42 = vld [vmem:[%s6591_s0 + $0x300] sm:$0xff] }
  0xe9   : > { %3210 = vmatmul.mubr.bf16.vlgmr.msra.gmra.mrb[0].mxu1 %v4199_v43  ;;  %4665 = vmatpush3.bf16.msra.mxu0 %v5121_v45  ;;  %v1385_v43 = vld [vmem:[%s6591_s0 + $0x340] sm:$0xff]  ;;  %v1386_v45 = vld [vmem:[%s6591_s0 + $0x348] sm:$0xff] }
  0xea   : > { %3120 = vmatprep.mubr.bf16.mxu0 %v4214_v46  ;;  %4729 = vmatpush3.bf16.msra.mxu1 %v5123_v49  ;;  %v5148_v46 = vld [vmem:[%s5869_s19 + $0x178] sm:$0xff]   ;;  %v4277_v49 = vcombine.low %v1361_v30, %v1369_v31  ;;  %v5161_v31 = vld [vmem:[%s5869_s19 + $0x210] sm:$0xff]  }
  0xeb   : > { %3217 = vmatprep.mubr.bf16.mxu1 %v4216_v48  ;;  %4666 = vmatprep.subr.bf16.mxu0 %v5124_v50  ;;  %v5150_v48 = vld [vmem:[%s5869_s19 + $0x1f8] sm:$0xff]  }
  0xec   : > { %4730 = vmatprep.subr.bf16.mxu1 %v5126_v53  ;;  %v5151_v50 = vld [vmem:[%s5869_s19 + $0x1b8] sm:$0xff]   ;;  %v4296_v53 = vcombine.high %v1378_v44, %v1386_v45 }
  0xed   : > { %4667 = vmatpush3.bf16.msra.mxu0 %v5125_v52  ;;  %v4294_v52 = vcombine.high %v1377_v42, %v1385_v43 }
  0xee   : > { %4731 = vmatpush3.bf16.msra.mxu1 %v5127_v55  ;;  %4668 = vmatprep.subr.bf16.mxu0 %v5128_v62  ;;  %v5154_v55 = vld [vmem:[%s5869_s19 + $0x2c0] sm:$0xff]  }
  0xef   : > { %4732 = vmatprep.subr.bf16.mxu1 %v5130_v0  ;;  %v1283_v0 = vld [vmem:[%s6591_s0 + $0x10] sm:$0xff] }
  0xf0   : > { %3121 = vmatmul.mubr.bf16.gmra.mrb[4].mxu0 %v4213_v54  ;;  %v5152_v54 = vld [vmem:[%s5869_s19 + $0x240] sm:$0xff]  }
  0xf1   : > { %3218 = vmatmul.mubr.bf16.gmra.mrb[4].mxu1 %v4215_v56  ;;  %3128 = vmatprep.mubr.bf16.mxu0 %v4230_v60  ;;  %v1393_v56 = vld [vmem:[%s6591_s0 + $0x380] sm:$0xff]  ;;  %v4293_v60 = vcombine.low %v1377_v42, %v1385_v43 }
  0xf2   : > { %3225 = vmatprep.mubr.bf16.mxu1 %v4232_v61  ;;  %4669 = vmatpush3.bf16.msra.mxu0 %v5129_v63  ;;  %v4295_v61 = vcombine.low %v1378_v44, %v1386_v45  ;;  %v4310_v62 = vcombine.high %v1393_v56, %v1401_v57  ;;  %v4312_v63 = vcombine.high %v1394_v58, %v1402_v59  ;;  %v5168_v42 = vld [vmem:[%s5869_s19 + $0x260] sm:$0xff]   ;;  %v5176_v58 = vld [vmem:[%s5869_s19 + $0x270] sm:$0xff]  }
  0xf3   : > { %4733 = vmatpush3.bf16.msra.mxu1 %v5131_v1  ;;  %4670 = vmatprep.subr.bf16.mxu0 %v5132_v7  ;;  %v1291_v1 = vld [vmem:[%s6591_s0 + $0x50] sm:$0xff]  ;;  %v4309_v4 = vcombine.low %v1393_v56, %v1401_v57  ;;  %v4204_v7 = vcombine.high %v1284_v2, %v1292_v3  ;;  %v5170_v44 = vld [vmem:[%s5869_s19 + $0x2e0] sm:$0xff]   ;;  %v5173_v56 = vld [vmem:[%s5869_s19 + $0x228] sm:$0xff]  }
  0xf4   : > { %4734 = vmatprep.subr.bf16.mxu1 %v5134_v12  ;;  %v1308_v12 = vld [vmem:[%s6591_s0 + $0xd8] sm:$0xff]  ;;  %v5175_v57 = vld [vmem:[%s5869_s19 + $0x2a8] sm:$0xff]  }
  0xf6   : > { %4671 = vmatpush3.bf16.msra.mxu0 %v5133_v10  ;;  %v1300_v10 = vld [vmem:[%s6591_s0 + $0x98] sm:$0xff] }
  0xf7   : > { %4735 = vmatpush3.bf16.msra.mxu1 %v5135_v13  ;;  %4672 = vmatprep.subr.bf16.mxu0 %v5136_v18  ;;  %v4203_v13 = vcombine.low %v1284_v2, %v1292_v3  ;;  %v4220_v17 = vcombine.high %v1300_v10, %v1308_v12  ;;  %v5156_v18 = vld [vmem:[%s5869_s19 + $0x248] sm:$0xff]   ;;  %v5180_v2 = vld [vmem:[%s5869_s19 + $0x278] sm:$0xff]   ;;  %v1363_v3 = vld [vmem:[%s6591_s0 + $0x290] sm:$0xff] }
  0xf8   : > { %3129 = vmatmul.mubr.bf16.gmra.mrb[8].mxu0 %v4229_v6  ;;  %4736 = vmatprep.subr.bf16.mxu1 %v5138_v20  ;;  %v4202_v6 = vcombine.high %v1283_v0, %v1291_v1  ;;  %v5158_v20 = vld [vmem:[%s5869_s19 + $0x2c8] sm:$0xff]  }
  0xf9   : > { %3226 = vmatmul.mubr.bf16.gmra.mrb[8].mxu1 %v4231_v8  ;;  %3136 = vmatprep.mubr.bf16.mxu0 %v4246_v9  ;;  %v1299_v8 = vld [vmem:[%s6591_s0 + $0x90] sm:$0xff] }
  0xfa   : > { %3233 = vmatprep.mubr.bf16.mxu1 %v4248_v11  ;;  %4673 = vmatpush3.bf16.msra.mxu0 %v5137_v19  ;;  %v1307_v9 = vld [vmem:[%s6591_s0 + $0xd0] sm:$0xff]  ;;  %v4201_v11 = vcombine.low %v1283_v0, %v1291_v1  ;;  %v5157_v19 = vld [vmem:[%s5869_s19 + $0x208] sm:$0xff]  }
  0xfb   : > { %4737 = vmatpush3.bf16.msra.mxu1 %v5139_v22  ;;  %4674 = vmatprep.subr.bf16.mxu0 %v5140_v26  ;;  %v4218_v16 = vcombine.high %v1299_v8, %v1307_v9  ;;  %v1315_v22 = vld [vmem:[%s6591_s0 + $0x110] sm:$0xff] }
  0xfc   : > { %4738 = vmatprep.subr.bf16.mxu1 %v5142_v28  ;;  %v5160_v26 = vld [vmem:[%s5869_s19 + $0x250] sm:$0xff]   ;;  %v4217_v28 = vcombine.low %v1299_v8, %v1307_v9  ;;  %v5181_v8 = vld [vmem:[%s5869_s19 + $0x238] sm:$0xff]  }
  0xfd   : > { %v5179_v1 = vld [vmem:[%s5869_s19 + $0x2b0] sm:$0xff]   ;;  %v5183_v9 = vld [vmem:[%s5869_s19 + $0x2b8] sm:$0xff]  }
  0xfe   : > { %4675 = vmatpush3.bf16.msra.mxu0 %v5141_v27  ;;  %v5162_v27 = vld [vmem:[%s5869_s19 + $0x2d0] sm:$0xff]  }
  0xff   : > { %4739 = vmatpush3.bf16.msra.mxu1 %v5143_v29  ;;  %4676 = vmatprep.subr.bf16.mxu0 %v5144_v35  ;;  %v4219_v29 = vcombine.low %v1300_v10, %v1308_v12  ;;  %v1331_v35 = vld [vmem:[%s6591_s0 + $0x190] sm:$0xff]  ;;  %v5184_v10 = vld [vmem:[%s5869_s19 + $0x340] sm:$0xff]  }
 0x100   : > { %3137 = vmatmul.mubr.bf16.gmra.mrb[12].mxu0 %v4245_v21  ;;  %4740 = vmatprep.subr.bf16.mxu1 %v5146_v40  ;;  %v5159_v21 = vld [vmem:[%s5869_s19 + $0x288] sm:$0xff]   ;;  %v5165_v40 = vld [vmem:[%s5869_s19 + $0x218] sm:$0xff]   ;;  %v5186_v12 = vld [vmem:[%s5869_s19 + $0x3c0] sm:$0xff]  }
 0x101   : > { %3234 = vmatmul.mubr.bf16.gmra.mrb[12].mxu1 %v4247_v23  ;;  %3144 = vmatprep.mubr.bf16.mxu0 %v4262_v24  ;;  %v1323_v23 = vld [vmem:[%s6591_s0 + $0x150] sm:$0xff]  ;;  %v1316_v24 = vld [vmem:[%s6591_s0 + $0x118] sm:$0xff] }
 0x102   : > { %3241 = vmatprep.mubr.bf16.mxu1 %v4264_v25  ;;  %4677 = vmatpush3.bf16.msra.mxu0 %v5145_v38  ;;  %v1324_v25 = vld [vmem:[%s6591_s0 + $0x158] sm:$0xff]  ;;  %v4234_v30 = vcombine.high %v1315_v22, %v1323_v23  ;;  %v4233_v43 = vcombine.low %v1315_v22, %v1323_v23 }
 0x103   : > { %4741 = vmatpush3.bf16.msra.mxu1 %v5147_v41  ;;  %4678 = vmatprep.subr.bf16.mxu0 %v5148_v46  ;;  %v4236_v32 = vcombine.high %v1316_v24, %v1324_v25  ;;  %v1332_v38 = vld [vmem:[%s6591_s0 + $0x198] sm:$0xff]  ;;  %v4235_v45 = vcombine.low %v1316_v24, %v1324_v25  ;;  %v1395_v24 = vld [vmem:[%s6591_s0 + $0x390] sm:$0xff] }
 0x104   : > { %4742 = vmatprep.subr.bf16.mxu1 %v5150_v48  ;;  %v5167_v41 = vld [vmem:[%s5869_s19 + $0x298] sm:$0xff]   ;;  %v5169_v48 = vld [vmem:[%s5869_s19 + $0x220] sm:$0xff]   ;;  %v1403_v25 = vld [vmem:[%s6591_s0 + $0x3d0] sm:$0xff] }
 0x106   : > { %4679 = vmatpush3.bf16.msra.mxu0 %v5149_v47 }
 0x107   : > { %4743 = vmatpush3.bf16.msra.mxu1 %v5151_v50  ;;  %4792 = vmatprep.subr.bf16.mxu0 %v5152_v54  ;;  %v5172_v50 = vld [vmem:[%s5869_s19 + $0x268] sm:$0xff]   ;;  %v1348_v54 = vld [vmem:[%s6591_s0 + $0x218] sm:$0xff] }
 0x108   : > { %3145 = vmatmul.mubr.bf16.gmra.mrb[16].mxu0 %v4261_v34  ;;  %4856 = vmatprep.subr.bf16.mxu1 %v5154_v55  ;;  %v5164_v34 = vld [vmem:[%s5869_s19 + $0x258] sm:$0xff]  }
 0x109   : > { %3242 = vmatmul.mubr.bf16.gmra.mrb[16].mxu1 %v4263_v36  ;;  %3152 = vmatprep.mubr.bf16.mxu0 %v4278_v37  ;;  %v1339_v36 = vld [vmem:[%s6591_s0 + $0x1d0] sm:$0xff]  ;;  %v5166_v37 = vld [vmem:[%s5869_s19 + $0x2d8] sm:$0xff]  }
 0x10a   : > { %3249 = vmatprep.mubr.bf16.mxu1 %v4280_v39  ;;  %v1340_v39 = vld [vmem:[%s6591_s0 + $0x1d8] sm:$0xff]  ;;  %v4250_v46 = vcombine.high %v1331_v35, %v1339_v36  ;;  %v4249_v59 = vcombine.low %v1331_v35, %v1339_v36  ;;  %v1294_v35 = vld [vmem:[%s6591_s0 + $0x68] sm:$0xff]  ;;  %v4313_v36 = vcombine.low %v1395_v24, %v1403_v25 }
 0x10b   : > { %v4252_v47 = vcombine.high %v1332_v38, %v1340_v39  ;;  %v1356_v55 = vld [vmem:[%s6591_s0 + $0x258] sm:$0xff] }
 0x10c   : > { %v4268_v0 = vcombine.high %v1348_v54, %v1356_v55 }
 0x110   : > { %3153 = vmatmul.mubr.bf16.gmra.mrb[20].mxu0 %v4277_v49  ;;  %v5171_v49 = vld [vmem:[%s5869_s19 + $0x2a0] sm:$0xff]  }
 0x111   : > { %3250 = vmatmul.mubr.bf16.gmra.mrb[20].mxu1 %v4279_v51  ;;  %3160 = vmatprep.mubr.bf16.mxu0 %v4294_v52  ;;  %v1347_v51 = vld [vmem:[%s6591_s0 + $0x210] sm:$0xff] }
 0x112   : > { %3257 = vmatprep.mubr.bf16.mxu1 %v4296_v53  ;;  %v1355_v52 = vld [vmem:[%s6591_s0 + $0x250] sm:$0xff]  ;;  %v5174_v53 = vld [vmem:[%s5869_s19 + $0x2e8] sm:$0xff]  }
 0x118   : > { %3161 = vmatmul.mubr.bf16.gmra.mrb[24].mxu0 %v4293_v60  ;;  %v5178_v60 = vld [vmem:[%s5869_s19 + $0x2f0] sm:$0xff]  }
 0x119   : > { %3258 = vmatmul.mubr.bf16.gmra.mrb[24].mxu1 %v4295_v61  ;;  %3168 = vmatprep.mubr.bf16.mxu0 %v4310_v62  ;;  %v4251_v61 = vcombine.low %v1332_v38, %v1340_v39  ;;  %v4266_v62 = vcombine.high %v1347_v51, %v1355_v52 }
 0x11a   : > { %3265 = vmatprep.mubr.bf16.mxu1 %v4312_v63  ;;  %v5177_v63 = vld [vmem:[%s5869_s19 + $0x230] sm:$0xff]  }
 0x120   : > { %3169 = vmatmul.mubr.bf16.gmra.mrb[28].mxu0 %v4309_v4  ;;  %v1371_v4 = vld [vmem:[%s6591_s0 + $0x2d0] sm:$0xff] }
 0x121   : > { %3266 = vmatmul.mubr.bf16.gmra.mrb[28].mxu1 %v4311_v5  ;;  %3306 = vmatprep.mubr.bf16.mxu0 %v4202_v6  ;;  %v5182_v5 = vld [vmem:[%s5869_s19 + $0x2f8] sm:$0xff]  }
 0x122   : > { %3403 = vmatprep.mubr.bf16.mxu1 %v4204_v7  ;;  %v1364_v6 = vld [vmem:[%s6591_s0 + $0x298] sm:$0xff] }
 0x123   : > { %v1372_v7 = vld [vmem:[%s6591_s0 + $0x2d8] sm:$0xff] }
 0x128   : > { %3307 = vmatmul.mubr.bf16.vlgmr.msra.gmra.mrb[32].mxu0 %v4201_v11  ;;  %v4265_v11 = vcombine.low %v1347_v51, %v1355_v52  ;;  %v5190_v51 = vld [vmem:[%s5869_s19 + $0x3c8] sm:$0xff]  }
 0x129   : > { %3404 = vmatmul.mubr.bf16.vlgmr.msra.gmra.mrb[32].mxu1 %v4203_v13  ;;  %4793 = vmatpush3.bf16.msra.mxu0 %v5153_v14  ;;  %v4267_v13 = vcombine.low %v1348_v54, %v1356_v55  ;;  %v4282_v14 = vcombine.high %v1363_v3, %v1371_v4  ;;  %v5189_v52 = vld [vmem:[%s5869_s19 + $0x308] sm:$0xff]   ;;  %v1317_v54 = vld [vmem:[%s6591_s0 + $0x120] sm:$0xff] }
 0x12a   : > { %4857 = vmatpush3.bf16.msra.mxu1 %v5155_v15  ;;  %3314 = vmatprep.mubr.bf16.mxu0 %v4218_v16  ;;  %v4284_v15 = vcombine.high %v1364_v6, %v1372_v7  ;;  %v1379_v16 = vld [vmem:[%s6591_s0 + $0x310] sm:$0xff]  ;;  %v1325_v55 = vld [vmem:[%s6591_s0 + $0x160] sm:$0xff] }
 0x12b   : > { %3411 = vmatprep.mubr.bf16.mxu1 %v4220_v17  ;;  %4794 = vmatprep.subr.bf16.mxu0 %v5156_v18  ;;  %v1387_v17 = vld [vmem:[%s6591_s0 + $0x350] sm:$0xff]  ;;  %v1380_v18 = vld [vmem:[%s6591_s0 + $0x318] sm:$0xff] }
 0x12c   : > { %4858 = vmatprep.subr.bf16.mxu1 %v5158_v20  ;;  %v4281_v20 = vcombine.low %v1363_v3, %v1371_v4  ;;  %v4298_v22 = vcombine.high %v1379_v16, %v1387_v17  ;;  %v5198_v3 = vld [vmem:[%s5869_s19 + $0x3d8] sm:$0xff]   ;;  %v1333_v4 = vld [vmem:[%s6591_s0 + $0x1a0] sm:$0xff] }
 0x12d   : > { %4795 = vmatpush3.bf16.msra.mxu0 %v5157_v19  ;;  %v1388_v19 = vld [vmem:[%s6591_s0 + $0x358] sm:$0xff] }
 0x12e   : > { %4859 = vmatpush3.bf16.msra.mxu1 %v5159_v21  ;;  %4796 = vmatprep.subr.bf16.mxu0 %v5160_v26  ;;  %v4283_v21 = vcombine.low %v1364_v6, %v1372_v7  ;;  %v4300_v23 = vcombine.high %v1380_v18, %v1388_v19  ;;  %v1396_v26 = vld [vmem:[%s6591_s0 + $0x398] sm:$0xff]  ;;  %v1334_v6 = vld [vmem:[%s6591_s0 + $0x1a8] sm:$0xff] }
 0x12f   : > { %4860 = vmatprep.subr.bf16.mxu1 %v5162_v27  ;;  %v1404_v27 = vld [vmem:[%s6591_s0 + $0x3d8] sm:$0xff] }
 0x130   : > { %3315 = vmatmul.mubr.bf16.gmra.mrb[36].mxu0 %v4217_v28  ;;  %v4297_v28 = vcombine.low %v1379_v16, %v1387_v17  ;;  %v5197_v7 = vld [vmem:[%s5869_s19 + $0x318] sm:$0xff]   ;;  %v5201_v16 = vld [vmem:[%s5869_s19 + $0x320] sm:$0xff]  }
 0x131   : > { %3412 = vmatmul.mubr.bf16.gmra.mrb[36].mxu1 %v4219_v29  ;;  %3322 = vmatprep.mubr.bf16.mxu0 %v4234_v30  ;;  %v4299_v29 = vcombine.low %v1380_v18, %v1388_v19  ;;  %v4314_v30 = vcombine.high %v1395_v24, %v1403_v25  ;;  %v5203_v17 = vld [vmem:[%s5869_s19 + $0x3a0] sm:$0xff]   ;;  %v5204_v18 = vld [vmem:[%s5869_s19 + $0x368] sm:$0xff]  }
 0x132   : > { %3419 = vmatprep.mubr.bf16.mxu1 %v4236_v32  ;;  %4797 = vmatpush3.bf16.msra.mxu0 %v5161_v31  ;;  %v4316_v31 = vcombine.high %v1396_v26, %v1404_v27  ;;  %v1285_v32 = vld [vmem:[%s6591_s0 + $0x20] sm:$0xff]  ;;  %v5206_v19 = vld [vmem:[%s5869_s19 + $0x3e8] sm:$0xff]  }
 0x133   : > { %4861 = vmatpush3.bf16.msra.mxu1 %v5163_v33  ;;  %4798 = vmatprep.subr.bf16.mxu0 %v5164_v34  ;;  %v1293_v33 = vld [vmem:[%s6591_s0 + $0x60] sm:$0xff]  ;;  %v1286_v34 = vld [vmem:[%s6591_s0 + $0x28] sm:$0xff] }
 0x134   : > { %4862 = vmatprep.subr.bf16.mxu1 %v5166_v37  ;;  %v4315_v37 = vcombine.low %v1396_v26, %v1404_v27  ;;  %v4206_v38 = vcombine.high %v1285_v32, %v1293_v33  ;;  %v4208_v39 = vcombine.high %v1286_v34, %v1294_v35  ;;  %v1358_v24 = vld [vmem:[%s6591_s0 + $0x268] sm:$0xff]  ;;  %v5208_v26 = vld [vmem:[%s5869_s19 + $0x370] sm:$0xff]  }
 0x135   : > { %v5207_v25 = vld [vmem:[%s5869_s19 + $0x3a8] sm:$0xff]  }
 0x136   : > { %4799 = vmatpush3.bf16.msra.mxu0 %v5165_v40  ;;  %v1301_v40 = vld [vmem:[%s6591_s0 + $0xa0] sm:$0xff] }
 0x137   : > { %4863 = vmatpush3.bf16.msra.mxu1 %v5167_v41  ;;  %4800 = vmatprep.subr.bf16.mxu0 %v5168_v42  ;;  %v1309_v41 = vld [vmem:[%s6591_s0 + $0xe0] sm:$0xff]  ;;  %v4205_v42 = vcombine.low %v1285_v32, %v1293_v33  ;;  %v5209_v32 = vld [vmem:[%s5869_s19 + $0x330] sm:$0xff]  }
 0x138   : > { %3323 = vmatmul.mubr.bf16.gmra.mrb[40].mxu0 %v4233_v43  ;;  %4864 = vmatprep.subr.bf16.mxu1 %v5170_v44  ;;  %v1302_v43 = vld [vmem:[%s6591_s0 + $0xa8] sm:$0xff]  ;;  %v5211_v33 = vld [vmem:[%s5869_s19 + $0x3b0] sm:$0xff]  }
 0x139   : > { %3420 = vmatmul.mubr.bf16.gmra.mrb[40].mxu1 %v4235_v45  ;;  %3330 = vmatprep.mubr.bf16.mxu0 %v4250_v46  ;;  %v1310_v44 = vld [vmem:[%s6591_s0 + $0xe8] sm:$0xff]  ;;  %v4207_v45 = vcombine.low %v1286_v34, %v1294_v35  ;;  %v5185_v46 = vld [vmem:[%s5869_s19 + $0x300] sm:$0xff]   ;;  %v5212_v34 = vld [vmem:[%s5869_s19 + $0x378] sm:$0xff]  }
 0x13a   : > { %3427 = vmatprep.mubr.bf16.mxu1 %v4252_v47  ;;  %4801 = vmatpush3.bf16.msra.mxu0 %v5169_v48  ;;  %v5187_v47 = vld [vmem:[%s5869_s19 + $0x380] sm:$0xff]   ;;  %v4222_v48 = vcombine.high %v1301_v40, %v1309_v41  ;;  %v5214_v35 = vld [vmem:[%s5869_s19 + $0x3f8] sm:$0xff]  }
 0x13b   : > { %4865 = vmatpush3.bf16.msra.mxu1 %v5171_v49  ;;  %4802 = vmatprep.subr.bf16.mxu0 %v5172_v50  ;;  %v4224_v49 = vcombine.high %v1302_v43, %v1310_v44  ;;  %v5188_v50 = vld [vmem:[%s5869_s19 + $0x348] sm:$0xff]  }
 0x13c   : > { %4866 = vmatprep.subr.bf16.mxu1 %v5174_v53  ;;  %v5191_v53 = vld [vmem:[%s5869_s19 + $0x388] sm:$0xff]  }
 0x13e   : > { %4803 = vmatpush3.bf16.msra.mxu0 %v5173_v56  ;;  %v5192_v56 = vld [vmem:[%s5869_s19 + $0x350] sm:$0xff]  }
 0x13f   : > { %4867 = vmatpush3.bf16.msra.mxu1 %v5175_v57  ;;  %4804 = vmatprep.subr.bf16.mxu0 %v5176_v58  ;;  %v1318_v57 = vld [vmem:[%s6591_s0 + $0x128] sm:$0xff] }
 0x140   : > { %3331 = vmatmul.mubr.bf16.gmra.mrb[44].mxu0 %v4249_v59  ;;  %4868 = vmatprep.subr.bf16.mxu1 %v5178_v60  ;;  %v1326_v58 = vld [vmem:[%s6591_s0 + $0x168] sm:$0xff]  ;;  %v5194_v59 = vld [vmem:[%s5869_s19 + $0x3d0] sm:$0xff]   ;;  %v4221_v60 = vcombine.low %v1301_v40, %v1309_v41  ;;  %v5215_v41 = vld [vmem:[%s5869_s19 + $0x3b8] sm:$0xff]  }
 0x141   : > { %3428 = vmatmul.mubr.bf16.gmra.mrb[44].mxu1 %v4251_v61  ;;  %3338 = vmatprep.mubr.bf16.mxu0 %v4266_v62  ;;  %v4223_v61 = vcombine.low %v1302_v43, %v1310_v44  ;;  %v4238_v62 = vcombine.high %v1317_v54, %v1325_v55  ;;  %v1374_v40 = vld [vmem:[%s6591_s0 + $0x2e8] sm:$0xff] }
 0x142   : > { %3435 = vmatprep.mubr.bf16.mxu1 %v4268_v0  ;;  %4805 = vmatpush3.bf16.msra.mxu0 %v5177_v63  ;;  %v4240_v63 = vcombine.high %v1318_v57, %v1326_v58  ;;  %v5193_v0 = vld [vmem:[%s5869_s19 + $0x310] sm:$0xff]  }
 0x143   : > { %4869 = vmatpush3.bf16.msra.mxu1 %v5179_v1  ;;  %4806 = vmatprep.subr.bf16.mxu0 %v5180_v2  ;;  %v5195_v1 = vld [vmem:[%s5869_s19 + $0x390] sm:$0xff]   ;;  %v5196_v2 = vld [vmem:[%s5869_s19 + $0x358] sm:$0xff]  }
 0x144   : > { %4870 = vmatprep.subr.bf16.mxu1 %v5182_v5  ;;  %v1341_v5 = vld [vmem:[%s6591_s0 + $0x1e0] sm:$0xff] }
 0x145   : > { %v4253_v27 = vcombine.low %v1333_v4, %v1341_v5 }
 0x146   : > { %4807 = vmatpush3.bf16.msra.mxu0 %v5181_v8  ;;  %v1342_v8 = vld [vmem:[%s6591_s0 + $0x1e8] sm:$0xff] }
 0x147   : > { %4871 = vmatpush3.bf16.msra.mxu1 %v5183_v9  ;;  %4920 = vmatprep.subr.bf16.mxu0 %v5184_v10  ;;  %v5199_v9 = vld [vmem:[%s5869_s19 + $0x398] sm:$0xff]   ;;  %v5200_v10 = vld [vmem:[%s5869_s19 + $0x360] sm:$0xff]  }
 0x148   : > { %3339 = vmatmul.mubr.bf16.gmra.mrb[48].mxu0 %v4265_v11  ;;  %4984 = vmatprep.subr.bf16.mxu1 %v5186_v12  ;;  %v4237_v11 = vcombine.low %v1317_v54, %v1325_v55  ;;  %v5202_v12 = vld [vmem:[%s5869_s19 + $0x3e0] sm:$0xff]  }
 0x149   : > { %3436 = vmatmul.mubr.bf16.gmra.mrb[48].mxu1 %v4267_v13  ;;  %3346 = vmatprep.mubr.bf16.mxu0 %v4282_v14  ;;  %v4239_v13 = vcombine.low %v1318_v57, %v1326_v58  ;;  %v4254_v14 = vcombine.high %v1333_v4, %v1341_v5  ;;  %v1397_v54 = vld [vmem:[%s6591_s0 + $0x3a0] sm:$0xff]  ;;  %v1406_v57 = vld [vmem:[%s6591_s0 + $0x3e8] sm:$0xff] }
 0x14a   : > { %3443 = vmatprep.mubr.bf16.mxu1 %v4284_v15  ;;  %v4256_v15 = vcombine.high %v1334_v6, %v1342_v8  ;;  %v1405_v55 = vld [vmem:[%s6591_s0 + $0x3e0] sm:$0xff] }
 0x150   : > { %3347 = vmatmul.mubr.bf16.gmra.mrb[52].mxu0 %v4281_v20  ;;  %v1349_v20 = vld [vmem:[%s6591_s0 + $0x220] sm:$0xff] }
 0x151   : > { %3444 = vmatmul.mubr.bf16.gmra.mrb[52].mxu1 %v4283_v21  ;;  %3354 = vmatprep.mubr.bf16.mxu0 %v4298_v22  ;;  %v1357_v21 = vld [vmem:[%s6591_s0 + $0x260] sm:$0xff]  ;;  %v1350_v22 = vld [vmem:[%s6591_s0 + $0x228] sm:$0xff] }
 0x152   : > { %3451 = vmatprep.mubr.bf16.mxu1 %v4300_v23  ;;  %v5205_v23 = vld [vmem:[%s5869_s19 + $0x328] sm:$0xff]   ;;  %v4271_v43 = vcombine.low %v1350_v22, %v1358_v24 }
 0x158   : > { %3355 = vmatmul.mubr.bf16.gmra.mrb[56].mxu0 %v4297_v28  ;;  %v5210_v28 = vld [vmem:[%s5869_s19 + $0x3f0] sm:$0xff]  }
 0x159   : > { %3452 = vmatmul.mubr.bf16.gmra.mrb[56].mxu1 %v4299_v29  ;;  %3362 = vmatprep.mubr.bf16.mxu0 %v4314_v30  ;;  %v4255_v29 = vcombine.low %v1334_v6, %v1342_v8  ;;  %v4270_v30 = vcombine.high %v1349_v20, %v1357_v21  ;;  %v1303_v6 = vld [vmem:[%s6591_s0 + $0xb0] sm:$0xff]  ;;  %v1304_v8 = vld [vmem:[%s6591_s0 + $0xb8] sm:$0xff] }
 0x15a   : > { %3459 = vmatprep.mubr.bf16.mxu1 %v4316_v31  ;;  %v4272_v31 = vcombine.high %v1350_v22, %v1358_v24  ;;  %v1335_v22 = vld [vmem:[%s6591_s0 + $0x1b0] sm:$0xff]  ;;  %v1336_v24 = vld [vmem:[%s6591_s0 + $0x1b8] sm:$0xff] }
 0x160   : > { %3363 = vmatmul.mubr.bf16.gmra.mrb[60].mxu0 %v4313_v36  ;;  %v1365_v36 = vld [vmem:[%s6591_s0 + $0x2a0] sm:$0xff] }
 0x161   : > { %3460 = vmatmul.mubr.bf16.gmra.mrb[60].mxu1 %v4315_v37  ;;  %3500 = vmatprep.mubr.bf16.mxu0 %v4206_v38  ;;  %v1373_v37 = vld [vmem:[%s6591_s0 + $0x2e0] sm:$0xff]  ;;  %v5213_v38 = vld [vmem:[%s5869_s19 + $0x338] sm:$0xff]  }
 0x162   : > { %3597 = vmatprep.mubr.bf16.mxu1 %v4208_v39  ;;  %v1366_v39 = vld [vmem:[%s6591_s0 + $0x2a8] sm:$0xff]  ;;  %v4286_v44 = vcombine.high %v1365_v36, %v1373_v37 }
 0x168   : > { %3501 = vmatmul.mubr.bf16.vlgmr.msra.gmra.mrb[64].mxu0 %v4205_v42  ;;  %v4269_v42 = vcombine.low %v1349_v20, %v1357_v21 }
 0x169   : > { %3598 = vmatmul.mubr.bf16.vlgmr.msra.gmra.mrb[64].mxu1 %v4207_v45  ;;  %4921 = vmatpush3.bf16.msra.mxu0 %v5185_v46  ;;  %v4288_v45 = vcombine.high %v1366_v39, %v1374_v40  ;;  %v1381_v46 = vld [vmem:[%s6591_s0 + $0x320] sm:$0xff] }
 0x16a   : > { %4985 = vmatpush3.bf16.msra.mxu1 %v5187_v47  ;;  %3508 = vmatprep.mubr.bf16.mxu0 %v4222_v48  ;;  %v1389_v47 = vld [vmem:[%s6591_s0 + $0x360] sm:$0xff]  ;;  %v1382_v48 = vld [vmem:[%s6591_s0 + $0x328] sm:$0xff] }
 0x16b   : > { %3605 = vmatprep.mubr.bf16.mxu1 %v4224_v49  ;;  %4922 = vmatprep.subr.bf16.mxu0 %v5188_v50  ;;  %v1390_v49 = vld [vmem:[%s6591_s0 + $0x368] sm:$0xff]  ;;  %v4285_v50 = vcombine.low %v1365_v36, %v1373_v37  ;;  %v4301_v58 = vcombine.low %v1381_v46, %v1389_v47  ;;  %v6344_v36 = vld [vmem:[%s1278_s8] ss:$0 sm:$0xff]  ;;  %s3995_s8 = scalar_lea.vmem (%p5311_p6), %s6594_s3, %s4470_s30 }
 0x16c   : > { %4986 = vmatprep.subr.bf16.mxu1 %v5190_v51  ;;  %v4287_v51 = vcombine.low %v1366_v39, %v1374_v40 }
 0x16d   : > { %4923 = vmatpush3.bf16.msra.mxu0 %v5189_v52  ;;  %v4302_v52 = vcombine.high %v1381_v46, %v1389_v47 }
 0x16e   : > { %4987 = vmatpush3.bf16.msra.mxu1 %v5191_v53  ;;  %4924 = vmatprep.subr.bf16.mxu0 %v5192_v56  ;;  %v4304_v53 = vcombine.high %v1382_v48, %v1390_v49  ;;  %v1398_v56 = vld [vmem:[%s6591_s0 + $0x3a8] sm:$0xff] }
 0x16f   : > { %4988 = vmatprep.subr.bf16.mxu1 %v5194_v59  ;;  %v4303_v59 = vcombine.low %v1382_v48, %v1390_v49 }
 0x170   : > { %3509 = vmatmul.mubr.bf16.gmra.mrb[68].mxu0 %v4221_v60  ;;  %v4318_v60 = vcombine.high %v1397_v54, %v1405_v55 }
 0x171   : > { %3606 = vmatmul.mubr.bf16.gmra.mrb[68].mxu1 %v4223_v61  ;;  %3516 = vmatprep.mubr.bf16.mxu0 %v4238_v62  ;;  %v4320_v61 = vcombine.high %v1398_v56, %v1406_v57  ;;  %v1287_v62 = vld [vmem:[%s6591_s0 + $0x30] sm:$0xff] }
 0x172   : > { %3613 = vmatprep.mubr.bf16.mxu1 %v4240_v63  ;;  %4925 = vmatpush3.bf16.msra.mxu0 %v5193_v0  ;;  %v1295_v63 = vld [vmem:[%s6591_s0 + $0x70] sm:$0xff]  ;;  %v1288_v0 = vld [vmem:[%s6591_s0 + $0x38] sm:$0xff] }
 0x173   : > { %4989 = vmatpush3.bf16.msra.mxu1 %v5195_v1  ;;  %4926 = vmatprep.subr.bf16.mxu0 %v5196_v2  ;;  %v1296_v1 = vld [vmem:[%s6591_s0 + $0x78] sm:$0xff]  ;;  %v4317_v2 = vcombine.low %v1397_v54, %v1405_v55  ;;  %v4210_v4 = vcombine.high %v1287_v62, %v1295_v63  ;;  %v1367_v54 = vld [vmem:[%s6591_s0 + $0x2b0] sm:$0xff] }
 0x174   : > { %4990 = vmatprep.subr.bf16.mxu1 %v5198_v3  ;;  %v4319_v3 = vcombine.low %v1398_v56, %v1406_v57  ;;  %v4212_v5 = vcombine.high %v1288_v0, %v1296_v1  ;;  %v1375_v55 = vld [vmem:[%s6591_s0 + $0x2f0] sm:$0xff] }
 0x176   : > { %4927 = vmatpush3.bf16.msra.mxu0 %v5197_v7  ;;  %v1311_v7 = vld [vmem:[%s6591_s0 + $0xf0] sm:$0xff] }
 0x177   : > { %4991 = vmatpush3.bf16.msra.mxu1 %v5199_v9  ;;  %4928 = vmatprep.subr.bf16.mxu0 %v5200_v10  ;;  %v1312_v9 = vld [vmem:[%s6591_s0 + $0xf8] sm:$0xff]  ;;  %v4209_v10 = vcombine.low %v1287_v62, %v1295_v63 }
 0x178   : > { %3517 = vmatmul.mubr.bf16.gmra.mrb[72].mxu0 %v4237_v11  ;;  %4992 = vmatprep.subr.bf16.mxu1 %v5202_v12  ;;  %v4211_v11 = vcombine.low %v1288_v0, %v1296_v1  ;;  %v4226_v12 = vcombine.high %v1303_v6, %v1311_v7 }
 0x179   : > { %3614 = vmatmul.mubr.bf16.gmra.mrb[72].mxu1 %v4239_v13  ;;  %3524 = vmatprep.mubr.bf16.mxu0 %v4254_v14  ;;  %v4228_v13 = vcombine.high %v1304_v8, %v1312_v9  ;;  %v1319_v14 = vld [vmem:[%s6591_s0 + $0x130] sm:$0xff] }
 0x17a   : > { %3621 = vmatprep.mubr.bf16.mxu1 %v4256_v15  ;;  %4929 = vmatpush3.bf16.msra.mxu0 %v5201_v16  ;;  %v1327_v15 = vld [vmem:[%s6591_s0 + $0x170] sm:$0xff]  ;;  %v1320_v16 = vld [vmem:[%s6591_s0 + $0x138] sm:$0xff] }
 0x17b   : > { %4993 = vmatpush3.bf16.msra.mxu1 %v5203_v17  ;;  %4930 = vmatprep.subr.bf16.mxu0 %v5204_v18  ;;  %v1328_v17 = vld [vmem:[%s6591_s0 + $0x178] sm:$0xff]  ;;  %v4225_v18 = vcombine.low %v1303_v6, %v1311_v7  ;;  %v4242_v20 = vcombine.high %v1319_v14, %v1327_v15 }
 0x17c   : > { %4994 = vmatprep.subr.bf16.mxu1 %v5206_v19  ;;  %v4227_v19 = vcombine.low %v1304_v8, %v1312_v9  ;;  %v4244_v21 = vcombine.high %v1320_v16, %v1328_v17 }
 0x17e   : > { %4931 = vmatpush3.bf16.msra.mxu0 %v5205_v23  ;;  %v1343_v23 = vld [vmem:[%s6591_s0 + $0x1f0] sm:$0xff] }
 0x17f   : > { %4995 = vmatpush3.bf16.msra.mxu1 %v5207_v25  ;;  %4932 = vmatprep.subr.bf16.mxu0 %v5208_v26  ;;  %v1344_v25 = vld [vmem:[%s6591_s0 + $0x1f8] sm:$0xff]  ;;  %v4241_v26 = vcombine.low %v1319_v14, %v1327_v15  ;;  %v1383_v14 = vld [vmem:[%s6591_s0 + $0x330] sm:$0xff] }
 0x180   : > { %3525 = vmatmul.mubr.bf16.gmra.mrb[76].mxu0 %v4253_v27  ;;  %4996 = vmatprep.subr.bf16.mxu1 %v5210_v28  ;;  %v4243_v27 = vcombine.low %v1320_v16, %v1328_v17  ;;  %v4258_v28 = vcombine.high %v1335_v22, %v1343_v23  ;;  %v1391_v15 = vld [vmem:[%s6591_s0 + $0x370] sm:$0xff] }
 0x181   : > { %3622 = vmatmul.mubr.bf16.gmra.mrb[76].mxu1 %v4255_v29  ;;  %3532 = vmatprep.mubr.bf16.mxu0 %v4270_v30  ;;  %v4260_v29 = vcombine.high %v1336_v24, %v1344_v25  ;;  %v1351_v30 = vld [vmem:[%s6591_s0 + $0x230] sm:$0xff] }
 0x182   : > { %3629 = vmatprep.mubr.bf16.mxu1 %v4272_v31  ;;  %4933 = vmatpush3.bf16.msra.mxu0 %v5209_v32  ;;  %v1359_v31 = vld [vmem:[%s6591_s0 + $0x270] sm:$0xff] }
 0x183   : > { %4997 = vmatpush3.bf16.msra.mxu1 %v5211_v33  ;;  %4934 = vmatprep.subr.bf16.mxu0 %v5212_v34  ;;  %v1352_v33 = vld [vmem:[%s6591_s0 + $0x238] sm:$0xff]  ;;  %v4273_v62 = vcombine.low %v1351_v30, %v1359_v31 }
 0x184   : > { %4998 = vmatprep.subr.bf16.mxu1 %v5214_v35  ;;  %v1360_v34 = vld [vmem:[%s6591_s0 + $0x278] sm:$0xff] }
 0x185   : > { %v4276_v47 = vcombine.high %v1352_v33, %v1360_v34 }
 0x186   : > { %4935 = vmatpush3.bf16.msra.mxu0 %v5213_v38  ;;  %v4257_v38 = vcombine.low %v1335_v22, %v1343_v23  ;;  %v4289_v22 = vcombine.low %v1367_v54, %v1375_v55 }
 0x187   : > { %4999 = vmatpush3.bf16.msra.mxu1 %v5215_v41 }
 0x188   : > { %3533 = vmatmul.mubr.bf16.gmra.mrb[80].mxu0 %v4269_v42  ;;  %v4259_v42 = vcombine.low %v1336_v24, %v1344_v25 }
 0x189   : > { %3630 = vmatmul.mubr.bf16.gmra.mrb[80].mxu1 %v4271_v43  ;;  %3540 = vmatprep.mubr.bf16.mxu0 %v4286_v44  ;;  %v4274_v43 = vcombine.high %v1351_v30, %v1359_v31 }
 0x18a   : > { %3637 = vmatprep.mubr.bf16.mxu1 %v4288_v45 }
 0x190   : > { %3541 = vmatmul.mubr.bf16.gmra.mrb[84].mxu0 %v4285_v50 }
 0x191   : > { %3638 = vmatmul.mubr.bf16.gmra.mrb[84].mxu1 %v4287_v51  ;;  %3548 = vmatprep.mubr.bf16.mxu0 %v4302_v52 }
 0x192   : > { %3645 = vmatprep.mubr.bf16.mxu1 %v4304_v53 }
 0x198   : > { %3549 = vmatmul.mubr.bf16.gmra.mrb[88].mxu0 %v4301_v58  ;;  %v1368_v58 = vld [vmem:[%s6591_s0 + $0x2b8] sm:$0xff] }
 0x199   : > { %3646 = vmatmul.mubr.bf16.gmra.mrb[88].mxu1 %v4303_v59  ;;  %3556 = vmatprep.mubr.bf16.mxu0 %v4318_v60  ;;  %v1376_v59 = vld [vmem:[%s6591_s0 + $0x2f8] sm:$0xff] }
 0x19a   : > { %3653 = vmatprep.mubr.bf16.mxu1 %v4320_v61  ;;  %v4292_v7 = vcombine.high %v1368_v58, %v1376_v59 }
 0x1a0   : > { %3557 = vmatmul.mubr.bf16.gmra.mrb[92].mxu0 %v4317_v2  ;;  %v4275_v2 = vcombine.low %v1352_v33, %v1360_v34 }
 0x1a1   : > { %3654 = vmatmul.mubr.bf16.gmra.mrb[92].mxu1 %v4319_v3  ;;  %3694 = vmatprep.mubr.bf16.mxu0 %v4210_v4  ;;  %v4290_v3 = vcombine.high %v1367_v54, %v1375_v55 }
 0x1a2   : > { %3791 = vmatprep.mubr.bf16.mxu1 %v4212_v5 }
 0x1a8   : > { %3695 = vmatmul.mubr.bf16.vlgmr.msra.gmra.mrb[96].mxu0 %v4209_v10 }
 0x1a9   : > { %3792 = vmatmul.mubr.bf16.vlgmr.msra.gmra.mrb[96].mxu1 %v4211_v11  ;;  %3702 = vmatprep.mubr.bf16.mxu0 %v4226_v12 }
 0x1aa   : > { %3799 = vmatprep.mubr.bf16.mxu1 %v4228_v13 }
 0x1b0   : > { %3703 = vmatmul.mubr.bf16.gmra.mrb[100].mxu0 %v4225_v18  ;;  %v1384_v18 = vld [vmem:[%s6591_s0 + $0x338] sm:$0xff] }
 0x1b1   : > { %3800 = vmatmul.mubr.bf16.gmra.mrb[100].mxu1 %v4227_v19  ;;  %3710 = vmatprep.mubr.bf16.mxu0 %v4242_v20  ;;  %v1392_v19 = vld [vmem:[%s6591_s0 + $0x378] sm:$0xff] }
 0x1b2   : > { %3807 = vmatprep.mubr.bf16.mxu1 %v4244_v21  ;;  %v4308_v31 = vcombine.high %v1384_v18, %v1392_v19 }
 0x1b8   : > { %3711 = vmatmul.mubr.bf16.gmra.mrb[104].mxu0 %v4241_v26  ;;  %v4291_v26 = vcombine.low %v1368_v58, %v1376_v59 }
 0x1b9   : > { %3808 = vmatmul.mubr.bf16.gmra.mrb[104].mxu1 %v4243_v27  ;;  %3718 = vmatprep.mubr.bf16.mxu0 %v4258_v28  ;;  %v4306_v27 = vcombine.high %v1383_v14, %v1391_v15 }
 0x1ba   : > { %3815 = vmatprep.mubr.bf16.mxu1 %v4260_v29 }
 0x1bb   : > { %v4552_v32 = vpop.f32.mrb[0].mxu0 }
 0x1bc   : > { %v4616_v35 = vpop.f32.mrb[0].mxu1  ;;  %v4553_v37 = vpop.f32.mrb[1].mxu0 }
 0x1bd   : > { %v4554_v39 = vadd.f32 %v4553_v37, %v4552_v32  ;;  %v4617_v40 = vpop.f32.mrb[1].mxu1  ;;  %v4555_v41 = vpop.f32.mrb[2].mxu0 }
 0x1be   : > { %v4618_v44 = vadd.f32 %v4617_v40, %v4616_v35  ;;  %v4619_v45 = vpop.f32.mrb[2].mxu1  ;;  %v4556_v46 = vpop.f32.mrb[3].mxu0  ;;  %v1407_v40 = vld [vmem:[%s6591_s0 + $0x3f0] sm:$0xff] }
 0x1bf   : > { %v3115_v48 = vadd.f32 %v4554_v39, %v6344_v36  ;;  %v4557_v49 = vadd.f32 %v4556_v46, %v4555_v41  ;;  %v4620_v50 = vpop.f32.mrb[3].mxu1  ;;  %v1399_v39 = vld [vmem:[%s6591_s0 + $0x3b0] sm:$0xff] }
 0x1c0   : > { %v4621_v51 = vadd.f32 %v4620_v50, %v4619_v45  ;;  %3719 = vmatmul.mubr.bf16.gmra.mrb[108].mxu0 %v4257_v38 }
 0x1c1   : > { %v6347_v52 = vadd.f32 %v4618_v44, %v3115_v48  ;;  %v3118_v53 = vadd.f32 %v4557_v49, %v6344_v36  ;;  %3816 = vmatmul.mubr.bf16.gmra.mrb[108].mxu1 %v4259_v42  ;;  %3726 = vmatprep.mubr.bf16.mxu0 %v4274_v43  ;;  %v1400_v43 = vld [vmem:[%s6591_s0 + $0x3b8] sm:$0xff] }
 0x1c2   : > { %3823 = vmatprep.mubr.bf16.mxu1 %v4276_v47  ;;  %v1408_v44 = vld [vmem:[%s6591_s0 + $0x3f8] sm:$0xff]  ;;  %v4305_v47 = vcombine.low %v1383_v14, %v1391_v15 }
 0x1c3   : > { %v6356_v56 = vadd.f32 %v4621_v51, %v3118_v53  ;;  %v4558_v57 = vpop.f32.mrb[4].mxu0  ;;  %v4307_v51 = vcombine.low %v1384_v18, %v1392_v19  ;;  %v4322_v53 = vcombine.high %v1399_v39, %v1407_v40  ;;  %v4324_v58 = vcombine.high %v1400_v43, %v1408_v44 }
 0x1c4   : > { %v4622_v60 = vpop.f32.mrb[4].mxu1  ;;  %v4559_v61 = vpop.f32.mrb[5].mxu0 }
 0x1c5   : > { %v4560_v63 = vadd.f32 %v4559_v61, %v4558_v57  ;;  %v4623_v0 = vpop.f32.mrb[5].mxu1  ;;  %v4561_v1 = vpop.f32.mrb[6].mxu0 }
 0x1c6   : > { %v4624_v4 = vadd.f32 %v4623_v0, %v4622_v60  ;;  %v4625_v5 = vpop.f32.mrb[6].mxu1  ;;  %v4562_v6 = vpop.f32.mrb[7].mxu0 }
 0x1c7   : > { %v3123_v8 = vadd.f32 %v4560_v63, %v6344_v36  ;;  %v4563_v9 = vadd.f32 %v4562_v6, %v4561_v1  ;;  %v4626_v10 = vpop.f32.mrb[7].mxu1 }
 0x1c8   : > { %v4627_v11 = vadd.f32 %v4626_v10, %v4625_v5  ;;  %3727 = vmatmul.mubr.bf16.gmra.mrb[112].mxu0 %v4273_v62  ;;  %v4321_v5 = vcombine.low %v1399_v39, %v1407_v40 }
 0x1c9   : > { %v6365_v12 = vadd.f32 %v4624_v4, %v3123_v8  ;;  %v3126_v13 = vadd.f32 %v4563_v9, %v6344_v36  ;;  %3824 = vmatmul.mubr.bf16.gmra.mrb[112].mxu1 %v4275_v2  ;;  %3734 = vmatprep.mubr.bf16.mxu0 %v4290_v3  ;;  %v4323_v9 = vcombine.low %v1400_v43, %v1408_v44 }
 0x1ca   : > { %3831 = vmatprep.mubr.bf16.mxu1 %v4292_v7 }
 0x1cb   : > { %v6374_v16 = vadd.f32 %v4627_v11, %v3126_v13  ;;  %v4564_v17 = vpop.f32.mrb[8].mxu0 }
 0x1cc   : > { %v4628_v20 = vpop.f32.mrb[8].mxu1  ;;  %v4565_v21 = vpop.f32.mrb[9].mxu0 }
 0x1cd   : > { %v4566_v23 = vadd.f32 %v4565_v21, %v4564_v17  ;;  %v4629_v24 = vpop.f32.mrb[9].mxu1  ;;  %v4567_v25 = vpop.f32.mrb[10].mxu0 }
 0x1ce   : > { %v4630_v28 = vadd.f32 %v4629_v24, %v4628_v20  ;;  %v4631_v29 = vpop.f32.mrb[10].mxu1  ;;  %v4568_v30 = vpop.f32.mrb[11].mxu0 }
 0x1cf   : > { %v3131_v32 = vadd.f32 %v4566_v23, %v6344_v36  ;;  %v4569_v33 = vadd.f32 %v4568_v30, %v4567_v25  ;;  %v4632_v34 = vpop.f32.mrb[11].mxu1 }
 0x1d0   : > { %v4633_v35 = vadd.f32 %v4632_v34, %v4631_v29  ;;  %3735 = vmatmul.mubr.bf16.gmra.mrb[116].mxu0 %v4289_v22 }
 0x1d1   : > { %v6383_v37 = vadd.f32 %v4630_v28, %v3131_v32  ;;  %v3134_v38 = vadd.f32 %v4569_v33, %v6344_v36  ;;  %3832 = vmatmul.mubr.bf16.gmra.mrb[116].mxu1 %v4291_v26  ;;  %3742 = vmatprep.mubr.bf16.mxu0 %v4306_v27 }
 0x1d2   : > { %3839 = vmatprep.mubr.bf16.mxu1 %v4308_v31 }
 0x1d3   : > { %v6392_v41 = vadd.f32 %v4633_v35, %v3134_v38  ;;  %v4570_v42 = vpop.f32.mrb[12].mxu0 }
 0x1d4   : > { %v4634_v45 = vpop.f32.mrb[12].mxu1  ;;  %v4571_v46 = vpop.f32.mrb[13].mxu0 }
 0x1d5   : > { %v4572_v48 = vadd.f32 %v4571_v46, %v4570_v42  ;;  %v4635_v49 = vpop.f32.mrb[13].mxu1  ;;  %v4573_v50 = vpop.f32.mrb[14].mxu0 }
 0x1d6   : > { %v4636_v54 = vadd.f32 %v4635_v49, %v4634_v45  ;;  %v4637_v55 = vpop.f32.mrb[14].mxu1  ;;  %v4574_v57 = vpop.f32.mrb[15].mxu0 }
 0x1d7   : > { %v3139_v59 = vadd.f32 %v4572_v48, %v6344_v36  ;;  %v4575_v60 = vadd.f32 %v4574_v57, %v4573_v50  ;;  %v4638_v61 = vpop.f32.mrb[15].mxu1 }
 0x1d8   : > { %v4639_v62 = vadd.f32 %v4638_v61, %v4637_v55  ;;  %3743 = vmatmul.mubr.bf16.gmra.mrb[120].mxu0 %v4305_v47 }
 0x1d9   : > { %v6401_v63 = vadd.f32 %v4636_v54, %v3139_v59  ;;  %v3142_v0 = vadd.f32 %v4575_v60, %v6344_v36  ;;  %3840 = vmatmul.mubr.bf16.gmra.mrb[120].mxu1 %v4307_v51  ;;  %3750 = vmatprep.mubr.bf16.mxu0 %v4322_v53 }
 0x1da   : > { %3847 = vmatprep.mubr.bf16.mxu1 %v4324_v58 }
 0x1db   : > { %v6404_v1 = vadd.f32 %v4639_v62, %v3142_v0  ;;  %v4576_v2 = vpop.f32.mrb[16].mxu0 }
 0x1dc   : > { %v4640_v3 = vpop.f32.mrb[16].mxu1  ;;  %v4577_v4 = vpop.f32.mrb[17].mxu0 }
 0x1dd   : > { %v4578_v6 = vadd.f32 %v4577_v4, %v4576_v2  ;;  %v4641_v7 = vpop.f32.mrb[17].mxu1  ;;  %v4579_v8 = vpop.f32.mrb[18].mxu0 }
 0x1de   : > { %v4642_v10 = vadd.f32 %v4641_v7, %v4640_v3  ;;  %v4643_v11 = vpop.f32.mrb[18].mxu1  ;;  %v4580_v13 = vpop.f32.mrb[19].mxu0 }
 0x1df   : > { %v3147_v14 = vadd.f32 %v4578_v6, %v6344_v36  ;;  %v4581_v15 = vadd.f32 %v4580_v13, %v4579_v8  ;;  %v4644_v17 = vpop.f32.mrb[19].mxu1 }
 0x1e0   : > { %v4645_v18 = vadd.f32 %v4644_v17, %v4643_v11  ;;  %3751 = vmatmul.mubr.bf16.gmra.mrb[124].mxu0 %v4321_v5 }
 0x1e1   : > { %v6407_v19 = vadd.f32 %v4642_v10, %v3147_v14  ;;  %v3150_v20 = vadd.f32 %v4581_v15, %v6344_v36  ;;  %3848 = vmatmul.mubr.bf16.gmra.mrb[124].mxu1 %v4323_v9 }
 0x1e3   : > { %v6410_v21 = vadd.f32 %v4645_v18, %v3150_v20  ;;  %v4582_v22 = vpop.f32.mrb[20].mxu0 }
 0x1e4   : > { %v4646_v23 = vpop.f32.mrb[20].mxu1  ;;  %v4583_v24 = vpop.f32.mrb[21].mxu0 }
 0x1e5   : > { %v4584_v25 = vadd.f32 %v4583_v24, %v4582_v22  ;;  %v4647_v26 = vpop.f32.mrb[21].mxu1  ;;  %v4585_v27 = vpop.f32.mrb[22].mxu0 }
 0x1e6   : > { %v4648_v28 = vadd.f32 %v4647_v26, %v4646_v23  ;;  %v4649_v29 = vpop.f32.mrb[22].mxu1  ;;  %v4586_v30 = vpop.f32.mrb[23].mxu0 }
 0x1e7   : > { %v3155_v31 = vadd.f32 %v4584_v25, %v6344_v36  ;;  %v4587_v32 = vadd.f32 %v4586_v30, %v4585_v27  ;;  %v4650_v33 = vpop.f32.mrb[23].mxu1 }
 0x1e8   : > { %v4651_v34 = vadd.f32 %v4650_v33, %v4649_v29 }
 0x1e9   : > { %v6413_v35 = vadd.f32 %v4648_v28, %v3155_v31  ;;  %v3158_v38 = vadd.f32 %v4587_v32, %v6344_v36 }
 0x1eb   : > { %v6416_v39 = vadd.f32 %v4651_v34, %v3158_v38  ;;  %v4588_v40 = vpop.f32.mrb[24].mxu0 }
 0x1ec   : > { %v4652_v42 = vpop.f32.mrb[24].mxu1  ;;  %v4589_v43 = vpop.f32.mrb[25].mxu0 }
 0x1ed   : > { %v4590_v44 = vadd.f32 %v4589_v43, %v4588_v40  ;;  %v4653_v45 = vpop.f32.mrb[25].mxu1  ;;  %v4591_v46 = vpop.f32.mrb[26].mxu0 }
 0x1ee   : > { %v4654_v47 = vadd.f32 %v4653_v45, %v4652_v42  ;;  %v4655_v48 = vpop.f32.mrb[26].mxu1  ;;  %v4592_v49 = vpop.f32.mrb[27].mxu0 }
 0x1ef   : > { %v3163_v50 = vadd.f32 %v4590_v44, %v6344_v36  ;;  %v4593_v51 = vadd.f32 %v4592_v49, %v4591_v46  ;;  %v4656_v53 = vpop.f32.mrb[27].mxu1 }
 0x1f0   : > { %v4657_v54 = vadd.f32 %v4656_v53, %v4655_v48 }
 0x1f1   : > { %v6419_v55 = vadd.f32 %v4654_v47, %v3163_v50  ;;  %v3166_v57 = vadd.f32 %v4593_v51, %v6344_v36 }
 0x1f3   : > { %v6422_v58 = vadd.f32 %v4657_v54, %v3166_v57  ;;  %v4594_v59 = vpop.f32.mrb[28].mxu0 }
 0x1f4   : > { %v4658_v60 = vpop.f32.mrb[28].mxu1  ;;  %v4595_v61 = vpop.f32.mrb[29].mxu0 }
 0x1f5   : > { %v4596_v62 = vadd.f32 %v4595_v61, %v4594_v59  ;;  %v4659_v0 = vpop.f32.mrb[29].mxu1  ;;  %v4597_v2 = vpop.f32.mrb[30].mxu0 }
 0x1f6   : > { %v4660_v3 = vadd.f32 %v4659_v0, %v4658_v60  ;;  %v4661_v4 = vpop.f32.mrb[30].mxu1  ;;  %v4598_v5 = vpop.f32.mrb[31].mxu0 }
 0x1f7   : > { %v3171_v6 = vadd.f32 %v4596_v62, %v6344_v36  ;;  %v4599_v7 = vadd.f32 %v4598_v5, %v4597_v2  ;;  %v4662_v8 = vpop.f32.mrb[31].mxu1 }
 0x1f8   : > { %v4663_v9 = vadd.f32 %v4662_v8, %v4661_v4 }
 0x1f9   : > { %v6425_v10 = vadd.f32 %v4660_v3, %v3171_v6  ;;  %v3174_v11 = vadd.f32 %v4599_v7, %v6344_v36 }
 0x1fb   : > { %v6428_v13 = vadd.f32 %v4663_v9, %v3174_v11  ;;  %v4680_v14 = vpop.f32.mrb[32].mxu0 }
 0x1fc   : > { %v4744_v15 = vpop.f32.mrb[32].mxu1  ;;  %v4681_v17 = vpop.f32.mrb[33].mxu0 }
 0x1fd   : > { %v4682_v18 = vadd.f32 %v4681_v17, %v4680_v14  ;;  %v4745_v20 = vpop.f32.mrb[33].mxu1  ;;  %v4683_v22 = vpop.f32.mrb[34].mxu0 }
 0x1fe   : > { %v4746_v23 = vadd.f32 %v4745_v20, %v4744_v15  ;;  %v4747_v24 = vpop.f32.mrb[34].mxu1  ;;  %v4684_v25 = vpop.f32.mrb[35].mxu0 }
 0x1ff   : > { %v3309_v26 = vadd.f32 %v4682_v18, %v6347_v52  ;;  %v4685_v27 = vadd.f32 %v4684_v25, %v4683_v22  ;;  %v4748_v28 = vpop.f32.mrb[35].mxu1 }
 0x200   : > { %v4749_v29 = vadd.f32 %v4748_v28, %v4747_v24 }
 0x201   : > { %v6431_v30 = vadd.f32 %v4746_v23, %v3309_v26  ;;  %v3312_v36 = vadd.f32 %v4685_v27, %v6356_v56 }
 0x203   : > { %v6434_v31 = vadd.f32 %v4749_v29, %v3312_v36  ;;  %v4686_v32 = vpop.f32.mrb[36].mxu0 }
 0x204   : > { %v4750_v33 = vpop.f32.mrb[36].mxu1  ;;  %v4687_v34 = vpop.f32.mrb[37].mxu0 }
 0x205   : > { %v4688_v38 = vadd.f32 %v4687_v34, %v4686_v32  ;;  %v4751_v40 = vpop.f32.mrb[37].mxu1  ;;  %v4689_v42 = vpop.f32.mrb[38].mxu0 }
 0x206   : > { %v4752_v43 = vadd.f32 %v4751_v40, %v4750_v33  ;;  %v4753_v44 = vpop.f32.mrb[38].mxu1  ;;  %v4690_v45 = vpop.f32.mrb[39].mxu0 }
 0x207   : > { %v3317_v52 = vadd.f32 %v4688_v38, %v6365_v12  ;;  %v4691_v46 = vadd.f32 %v4690_v45, %v4689_v42  ;;  %v4754_v47 = vpop.f32.mrb[39].mxu1 }
 0x208   : > { %v4755_v48 = vadd.f32 %v4754_v47, %v4753_v44 }
 0x209   : > { %v6437_v49 = vadd.f32 %v4752_v43, %v3317_v52  ;;  %v3320_v56 = vadd.f32 %v4691_v46, %v6374_v16 }
 0x20b   : > { %v6440_v50 = vadd.f32 %v4755_v48, %v3320_v56  ;;  %v4692_v51 = vpop.f32.mrb[40].mxu0 }
 0x20c   : > { %v4756_v53 = vpop.f32.mrb[40].mxu1  ;;  %v4693_v54 = vpop.f32.mrb[41].mxu0 }
 0x20d   : > { %v4694_v57 = vadd.f32 %v4693_v54, %v4692_v51  ;;  %v4757_v59 = vpop.f32.mrb[41].mxu1  ;;  %v4695_v60 = vpop.f32.mrb[42].mxu0 }
 0x20e   : > { %v4758_v61 = vadd.f32 %v4757_v59, %v4756_v53  ;;  %v4759_v62 = vpop.f32.mrb[42].mxu1  ;;  %v4696_v0 = vpop.f32.mrb[43].mxu0 }
 0x20f   : > { %v3325_v12 = vadd.f32 %v4694_v57, %v6383_v37  ;;  %v4697_v2 = vadd.f32 %v4696_v0, %v4695_v60  ;;  %v4760_v3 = vpop.f32.mrb[43].mxu1 }
 0x210   : > { %v4761_v4 = vadd.f32 %v4760_v3, %v4759_v62 }
 0x211   : > { %v6443_v5 = vadd.f32 %v4758_v61, %v3325_v12  ;;  %v3328_v16 = vadd.f32 %v4697_v2, %v6392_v41 }
 0x213   : > { %v6446_v6 = vadd.f32 %v4761_v4, %v3328_v16  ;;  %v4698_v7 = vpop.f32.mrb[44].mxu0 }
 0x214   : > { %v4762_v8 = vpop.f32.mrb[44].mxu1  ;;  %v4699_v9 = vpop.f32.mrb[45].mxu0 }
 0x215   : > { %v4700_v11 = vadd.f32 %v4699_v9, %v4698_v7  ;;  %v4763_v14 = vpop.f32.mrb[45].mxu1  ;;  %v4701_v15 = vpop.f32.mrb[46].mxu0 }
 0x216   : > { %v4764_v17 = vadd.f32 %v4763_v14, %v4762_v8  ;;  %v4765_v18 = vpop.f32.mrb[46].mxu1  ;;  %v4702_v20 = vpop.f32.mrb[47].mxu0 }
 0x217   : > { %v3333_v37 = vadd.f32 %v4700_v11, %v6401_v63  ;;  %v4703_v22 = vadd.f32 %v4702_v20, %v4701_v15  ;;  %v4766_v23 = vpop.f32.mrb[47].mxu1 }
 0x218   : > { %v4767_v24 = vadd.f32 %v4766_v23, %v4765_v18 }
 0x219   : > { %v6449_v25 = vadd.f32 %v4764_v17, %v3333_v37  ;;  %v3336_v41 = vadd.f32 %v4703_v22, %v6404_v1 }
 0x21b   : > { %v6452_v26 = vadd.f32 %v4767_v24, %v3336_v41  ;;  %v4704_v27 = vpop.f32.mrb[48].mxu0 }
 0x21c   : > { %v4768_v28 = vpop.f32.mrb[48].mxu1  ;;  %v4705_v29 = vpop.f32.mrb[49].mxu0 }
 0x21d   : > { %v4706_v36 = vadd.f32 %v4705_v29, %v4704_v27  ;;  %v4769_v32 = vpop.f32.mrb[49].mxu1  ;;  %v4707_v33 = vpop.f32.mrb[50].mxu0 }
 0x21e   : > { %v4770_v34 = vadd.f32 %v4769_v32, %v4768_v28  ;;  %v4771_v38 = vpop.f32.mrb[50].mxu1  ;;  %v4708_v40 = vpop.f32.mrb[51].mxu0 }
 0x21f   : > { %v3341_v63 = vadd.f32 %v4706_v36, %v6407_v19  ;;  %v4709_v42 = vadd.f32 %v4708_v40, %v4707_v33  ;;  %v4772_v43 = vpop.f32.mrb[51].mxu1 }
 0x220   : > { %v4773_v44 = vadd.f32 %v4772_v43, %v4771_v38 }
 0x221   : > { %v6455_v45 = vadd.f32 %v4770_v34, %v3341_v63  ;;  %v3344_v1 = vadd.f32 %v4709_v42, %v6410_v21 }
 0x223   : > { %v6458_v52 = vadd.f32 %v4773_v44, %v3344_v1  ;;  %v4710_v46 = vpop.f32.mrb[52].mxu0 }
 0x224   : > { %v4774_v47 = vpop.f32.mrb[52].mxu1  ;;  %v4711_v48 = vpop.f32.mrb[53].mxu0 }
 0x225   : > { %v4712_v56 = vadd.f32 %v4711_v48, %v4710_v46  ;;  %v4775_v51 = vpop.f32.mrb[53].mxu1  ;;  %v4713_v53 = vpop.f32.mrb[54].mxu0 }
 0x226   : > { %v4776_v54 = vadd.f32 %v4775_v51, %v4774_v47  ;;  %v4777_v57 = vpop.f32.mrb[54].mxu1  ;;  %v4714_v59 = vpop.f32.mrb[55].mxu0 }
 0x227   : > { %v3349_v19 = vadd.f32 %v4712_v56, %v6413_v35  ;;  %v4715_v60 = vadd.f32 %v4714_v59, %v4713_v53  ;;  %v4778_v61 = vpop.f32.mrb[55].mxu1 }
 0x228   : > { %v4779_v62 = vadd.f32 %v4778_v61, %v4777_v57 }
 0x229   : > { %v6461_v0 = vadd.f32 %v4776_v54, %v3349_v19  ;;  %v3352_v21 = vadd.f32 %v4715_v60, %v6416_v39 }
 0x22b   : > { %v6464_v12 = vadd.f32 %v4779_v62, %v3352_v21  ;;  %v4716_v2 = vpop.f32.mrb[56].mxu0 }
 0x22c   : > { %v4780_v3 = vpop.f32.mrb[56].mxu1  ;;  %v4717_v4 = vpop.f32.mrb[57].mxu0 }
 0x22d   : > { %v4718_v16 = vadd.f32 %v4717_v4, %v4716_v2  ;;  %v4781_v7 = vpop.f32.mrb[57].mxu1  ;;  %v4719_v8 = vpop.f32.mrb[58].mxu0 }
 0x22e   : > { %v4782_v9 = vadd.f32 %v4781_v7, %v4780_v3  ;;  %v4783_v11 = vpop.f32.mrb[58].mxu1  ;;  %v4720_v14 = vpop.f32.mrb[59].mxu0 }
 0x22f   : > { %v3357_v35 = vadd.f32 %v4718_v16, %v6419_v55  ;;  %v4721_v15 = vadd.f32 %v4720_v14, %v4719_v8  ;;  %v4784_v17 = vpop.f32.mrb[59].mxu1 }
 0x230   : > { %v4785_v18 = vadd.f32 %v4784_v17, %v4783_v11 }
 0x231   : > { %v6467_v20 = vadd.f32 %v4782_v9, %v3357_v35  ;;  %v3360_v39 = vadd.f32 %v4721_v15, %v6422_v58 }
 0x233   : > { %v6470_v37 = vadd.f32 %v4785_v18, %v3360_v39  ;;  %v4722_v22 = vpop.f32.mrb[60].mxu0 }
 0x234   : > { %v4786_v23 = vpop.f32.mrb[60].mxu1  ;;  %v4723_v24 = vpop.f32.mrb[61].mxu0 }
 0x235   : > { %v4724_v41 = vadd.f32 %v4723_v24, %v4722_v22  ;;  %v4787_v27 = vpop.f32.mrb[61].mxu1  ;;  %v4725_v28 = vpop.f32.mrb[62].mxu0 }
 0x236   : > { %v4788_v29 = vadd.f32 %v4787_v27, %v4786_v23  ;;  %v4789_v36 = vpop.f32.mrb[62].mxu1  ;;  %v4726_v32 = vpop.f32.mrb[63].mxu0 }
 0x237   : > { %v3365_v55 = vadd.f32 %v4724_v41, %v6425_v10  ;;  %v4727_v33 = vadd.f32 %v4726_v32, %v4725_v28  ;;  %v4790_v34 = vpop.f32.mrb[63].mxu1 }
 0x238   : > { %v4791_v38 = vadd.f32 %v4790_v34, %v4789_v36 }
 0x239   : > { %v6473_v40 = vadd.f32 %v4788_v29, %v3365_v55  ;;  %v3368_v58 = vadd.f32 %v4727_v33, %v6428_v13 }
 0x23b   : > { %v6476_v63 = vadd.f32 %v4791_v38, %v3368_v58  ;;  %v4808_v42 = vpop.f32.mrb[64].mxu0 }
 0x23c   : > { %v4872_v43 = vpop.f32.mrb[64].mxu1  ;;  %v4809_v44 = vpop.f32.mrb[65].mxu0 }
 0x23d   : > { %v4810_v1 = vadd.f32 %v4809_v44, %v4808_v42  ;;  %v4873_v46 = vpop.f32.mrb[65].mxu1  ;;  %v4811_v47 = vpop.f32.mrb[66].mxu0 }
 0x23e   : > { %v4874_v48 = vadd.f32 %v4873_v46, %v4872_v43  ;;  %v4875_v56 = vpop.f32.mrb[66].mxu1  ;;  %v4812_v51 = vpop.f32.mrb[67].mxu0 }
 0x23f   : > { %v3503_v10 = vadd.f32 %v4810_v1, %v6431_v30  ;;  %v4813_v53 = vadd.f32 %v4812_v51, %v4811_v47  ;;  %v4876_v54 = vpop.f32.mrb[67].mxu1 }
 0x240   : > { %v4877_v57 = vadd.f32 %v4876_v54, %v4875_v56 }
 0x241   : > { %v6479_v59 = vadd.f32 %v4874_v48, %v3503_v10  ;;  %v3506_v13 = vadd.f32 %v4813_v53, %v6434_v31 }
 0x243   : > { %v6482_v19 = vadd.f32 %v4877_v57, %v3506_v13  ;;  %v4814_v60 = vpop.f32.mrb[68].mxu0 }
 0x244   : > { %v4878_v61 = vpop.f32.mrb[68].mxu1  ;;  %v4815_v62 = vpop.f32.mrb[69].mxu0 }
 0x245   : > { %v4816_v21 = vadd.f32 %v4815_v62, %v4814_v60  ;;  %v4879_v2 = vpop.f32.mrb[69].mxu1  ;;  %v4817_v3 = vpop.f32.mrb[70].mxu0 }
 0x246   : > { %v4880_v4 = vadd.f32 %v4879_v2, %v4878_v61  ;;  %v4881_v16 = vpop.f32.mrb[70].mxu1  ;;  %v4818_v7 = vpop.f32.mrb[71].mxu0 }
 0x247   : > { %v3511_v30 = vadd.f32 %v4816_v21, %v6437_v49  ;;  %v4819_v8 = vadd.f32 %v4818_v7, %v4817_v3  ;;  %v4882_v9 = vpop.f32.mrb[71].mxu1 }
 0x248   : > { %v4883_v11 = vadd.f32 %v4882_v9, %v4881_v16 }
 0x249   : > { %v6485_v14 = vadd.f32 %v4880_v4, %v3511_v30  ;;  %v3514_v31 = vadd.f32 %v4819_v8, %v6440_v50 }
 0x24b   : > { %v6488_v35 = vadd.f32 %v4883_v11, %v3514_v31  ;;  %v4820_v15 = vpop.f32.mrb[72].mxu0 }
 0x24c   : > { %v4884_v17 = vpop.f32.mrb[72].mxu1  ;;  %v4821_v18 = vpop.f32.mrb[73].mxu0 }
 0x24d   : > { %v4822_v39 = vadd.f32 %v4821_v18, %v4820_v15  ;;  %v4885_v22 = vpop.f32.mrb[73].mxu1  ;;  %v4823_v23 = vpop.f32.mrb[74].mxu0 }
 0x24e   : > { %v4886_v24 = vadd.f32 %v4885_v22, %v4884_v17  ;;  %v4887_v41 = vpop.f32.mrb[74].mxu1  ;;  %v4824_v27 = vpop.f32.mrb[75].mxu0 }
 0x24f   : > { %v3519_v49 = vadd.f32 %v4822_v39, %v6443_v5  ;;  %v4825_v28 = vadd.f32 %v4824_v27, %v4823_v23  ;;  %v4888_v29 = vpop.f32.mrb[75].mxu1 }
 0x250   : > { %v4889_v36 = vadd.f32 %v4888_v29, %v4887_v41 }
 0x251   : > { %v6491_v32 = vadd.f32 %v4886_v24, %v3519_v49  ;;  %v3522_v50 = vadd.f32 %v4825_v28, %v6446_v6 }
 0x253   : > { %v6494_v55 = vadd.f32 %v4889_v36, %v3522_v50  ;;  %v4826_v33 = vpop.f32.mrb[76].mxu0 }
 0x254   : > { %v4890_v34 = vpop.f32.mrb[76].mxu1  ;;  %v4827_v38 = vpop.f32.mrb[77].mxu0 }
 0x255   : > { %v4828_v58 = vadd.f32 %v4827_v38, %v4826_v33  ;;  %v4891_v42 = vpop.f32.mrb[77].mxu1  ;;  %v4829_v43 = vpop.f32.mrb[78].mxu0 }
 0x256   : > { %v4892_v44 = vadd.f32 %v4891_v42, %v4890_v34  ;;  %v4893_v1 = vpop.f32.mrb[78].mxu1  ;;  %v4830_v46 = vpop.f32.mrb[79].mxu0 }
 0x257   : > { %v3527_v5 = vadd.f32 %v4828_v58, %v6449_v25  ;;  %v4831_v47 = vadd.f32 %v4830_v46, %v4829_v43  ;;  %v4894_v48 = vpop.f32.mrb[79].mxu1 }
 0x258   : > { %v4895_v56 = vadd.f32 %v4894_v48, %v4893_v1 }
 0x259   : > { %v6497_v51 = vadd.f32 %v4892_v44, %v3527_v5  ;;  %v3530_v6 = vadd.f32 %v4831_v47, %v6452_v26 }
 0x25b   : > { %v6500_v10 = vadd.f32 %v4895_v56, %v3530_v6  ;;  %v4832_v53 = vpop.f32.mrb[80].mxu0 }
 0x25c   : > { %v4896_v54 = vpop.f32.mrb[80].mxu1  ;;  %v4833_v57 = vpop.f32.mrb[81].mxu0 }
 0x25d   : > { %v4834_v13 = vadd.f32 %v4833_v57, %v4832_v53  ;;  %v4897_v60 = vpop.f32.mrb[81].mxu1  ;;  %v4835_v61 = vpop.f32.mrb[82].mxu0 }
 0x25e   : > { %v4898_v62 = vadd.f32 %v4897_v60, %v4896_v54  ;;  %v4899_v21 = vpop.f32.mrb[82].mxu1  ;;  %v4836_v2 = vpop.f32.mrb[83].mxu0 }
 0x25f   : > { %v3535_v25 = vadd.f32 %v4834_v13, %v6455_v45  ;;  %v4837_v3 = vadd.f32 %v4836_v2, %v4835_v61  ;;  %v4900_v4 = vpop.f32.mrb[83].mxu1 }
 0x260   : > { %v4901_v16 = vadd.f32 %v4900_v4, %v4899_v21 }
 0x261   : > { %v6503_v7 = vadd.f32 %v4898_v62, %v3535_v25  ;;  %v3538_v26 = vadd.f32 %v4837_v3, %v6458_v52 }
 0x263   : > { %v6506_v30 = vadd.f32 %v4901_v16, %v3538_v26  ;;  %v4838_v8 = vpop.f32.mrb[84].mxu0 }
 0x264   : > { %v4902_v9 = vpop.f32.mrb[84].mxu1  ;;  %v4839_v11 = vpop.f32.mrb[85].mxu0 }
 0x265   : > { %v4840_v31 = vadd.f32 %v4839_v11, %v4838_v8  ;;  %v4903_v15 = vpop.f32.mrb[85].mxu1  ;;  %v4841_v17 = vpop.f32.mrb[86].mxu0 }
 0x266   : > { %v4904_v18 = vadd.f32 %v4903_v15, %v4902_v9  ;;  %v4905_v39 = vpop.f32.mrb[86].mxu1  ;;  %v4842_v22 = vpop.f32.mrb[87].mxu0 }
 0x267   : > { %v3543_v45 = vadd.f32 %v4840_v31, %v6461_v0  ;;  %v4843_v23 = vadd.f32 %v4842_v22, %v4841_v17  ;;  %v4906_v24 = vpop.f32.mrb[87].mxu1 }
 0x268   : > { %v4907_v41 = vadd.f32 %v4906_v24, %v4905_v39 }
 0x269   : > { %v6509_v27 = vadd.f32 %v4904_v18, %v3543_v45  ;;  %v3546_v52 = vadd.f32 %v4843_v23, %v6464_v12 }
 0x26b   : > { %v6512_v49 = vadd.f32 %v4907_v41, %v3546_v52  ;;  %v4844_v28 = vpop.f32.mrb[88].mxu0 }
 0x26c   : > { %v4908_v29 = vpop.f32.mrb[88].mxu1  ;;  %v4845_v36 = vpop.f32.mrb[89].mxu0 }
 0x26d   : > { %v4846_v50 = vadd.f32 %v4845_v36, %v4844_v28  ;;  %v4909_v33 = vpop.f32.mrb[89].mxu1  ;;  %v4847_v34 = vpop.f32.mrb[90].mxu0 }
 0x26e   : > { %v4910_v38 = vadd.f32 %v4909_v33, %v4908_v29  ;;  %v4911_v58 = vpop.f32.mrb[90].mxu1  ;;  %v4848_v42 = vpop.f32.mrb[91].mxu0 }
 0x26f   : > { %v3551_v0 = vadd.f32 %v4846_v50, %v6467_v20  ;;  %v4849_v43 = vadd.f32 %v4848_v42, %v4847_v34  ;;  %v4912_v44 = vpop.f32.mrb[91].mxu1 }
 0x270   : > { %v4913_v1 = vadd.f32 %v4912_v44, %v4911_v58 }
 0x271   : > { %v6515_v46 = vadd.f32 %v4910_v38, %v3551_v0  ;;  %v3554_v12 = vadd.f32 %v4849_v43, %v6470_v37 }
 0x273   : > { %v6518_v5 = vadd.f32 %v4913_v1, %v3554_v12  ;;  %v4850_v47 = vpop.f32.mrb[92].mxu0 }
 0x274   : > { %v4914_v48 = vpop.f32.mrb[92].mxu1  ;;  %v4851_v56 = vpop.f32.mrb[93].mxu0 }
 0x275   : > { %v4852_v6 = vadd.f32 %v4851_v56, %v4850_v47  ;;  %v4915_v53 = vpop.f32.mrb[93].mxu1  ;;  %v4853_v54 = vpop.f32.mrb[94].mxu0 }
 0x276   : > { %v4916_v57 = vadd.f32 %v4915_v53, %v4914_v48  ;;  %v4917_v13 = vpop.f32.mrb[94].mxu1  ;;  %v4854_v60 = vpop.f32.mrb[95].mxu0 }
 0x277   : > { %v3559_v20 = vadd.f32 %v4852_v6, %v6473_v40  ;;  %v4855_v61 = vadd.f32 %v4854_v60, %v4853_v54  ;;  %v4918_v62 = vpop.f32.mrb[95].mxu1 }
 0x278   : > { %v4919_v21 = vadd.f32 %v4918_v62, %v4917_v13 }
 0x279   : > { %v6521_v2 = vadd.f32 %v4916_v57, %v3559_v20  ;;  %v3562_v37 = vadd.f32 %v4855_v61, %v6476_v63 }
 0x27b   : > { %v6524_v25 = vadd.f32 %v4919_v21, %v3562_v37  ;;  %v4936_v3 = vpop.f32.mrb[96].mxu0 }
 0x27c   : > { %v5000_v4 = vpop.f32.mrb[96].mxu1  ;;  %v4937_v16 = vpop.f32.mrb[97].mxu0 }
 0x27d   : > { %v4938_v26 = vadd.f32 %v4937_v16, %v4936_v3  ;;  %v5001_v8 = vpop.f32.mrb[97].mxu1  ;;  %v4939_v9 = vpop.f32.mrb[98].mxu0 }
 0x27e   : > { %v5002_v11 = vadd.f32 %v5001_v8, %v5000_v4  ;;  %v5003_v31 = vpop.f32.mrb[98].mxu1  ;;  %v4940_v15 = vpop.f32.mrb[99].mxu0 }
 0x27f   : > { %v3697_v40 = vadd.f32 %v4938_v26, %v6479_v59  ;;  %v4941_v17 = vadd.f32 %v4940_v15, %v4939_v9  ;;  %v5004_v18 = vpop.f32.mrb[99].mxu1 }
 0x280   : > { %v5005_v39 = vadd.f32 %v5004_v18, %v5003_v31 }
 0x281   : > { %v3794_v22 = vadd.f32 %v5002_v11, %v3697_v40  ;;  %v3700_v63 = vadd.f32 %v4941_v17, %v6482_v19 }
 0x283   : > { %v3872_v45 = vmul.f32 0.2, %v3794_v22  ;;  %v3797_v23 = vadd.f32 %v5005_v39, %v3700_v63  ;;  %v4942_v24 = vpop.f32.mrb[100].mxu0  ;;  %vm3856_vm0 = vcmp.ge.f32.partialorder %v3794_v22, 0.0 }
 0x284   : > { %v5006_v41 = vpop.f32.mrb[100].mxu1  ;;  %v4943_v52 = vpop.f32.mrb[101].mxu0 }
 0x285   : > { %vm3857_vm1 = vcmp.ge.f32.partialorder %v3797_v23, 0.0  ;;  %v3873_v28 = vmul.f32 0.2, %v3797_v23  ;;  %v4944_v29 = vadd.f32 %v4943_v52, %v4942_v24  ;;  %v5007_v36 = vpop.f32.mrb[101].mxu1  ;;  %v4945_v50 = vpop.f32.mrb[102].mxu0  ;;  %v3888_v38 = vsel %vm3856_vm0, %v3794_v22, %v3872_v45 }
 0x286   : > { %v5008_v59 = vadd.f32 %v5007_v36, %v5006_v41  ;;  %v5009_v33 = vpop.f32.mrb[102].mxu1  ;;  %v4946_v34 = vpop.f32.mrb[103].mxu0 }
 0x287   : > { %v3889_v58 = vsel %vm3857_vm1, %v3797_v23, %v3873_v28  ;;  %v3705_v19 = vadd.f32 %v4944_v29, %v6485_v14  ;;  %v4947_v42 = vadd.f32 %v4946_v34, %v4945_v50  ;;  %v5010_v0 = vpop.f32.mrb[103].mxu1 }
 0x288   : > { %v4492_v43 = vpack.c.bf16 %v3889_v58, %v3888_v38  ;;  %v5011_v44 = vadd.f32 %v5010_v0, %v5009_v33 }
 0x289   : > { %v3802_v1 = vadd.f32 %v5008_v59, %v3705_v19  ;;  %v3708_v12 = vadd.f32 %v4947_v42, %v6488_v35 }
 0x28a   : > { %4493 = vst [vmem:[%s6532_s12] sm:$0xff] %v4492_v43  }
 0x28b   : > { %v3874_v47 = vmul.f32 0.2, %v3802_v1  ;;  %v3805_v48 = vadd.f32 %v5011_v44, %v3708_v12  ;;  %v4948_v56 = vpop.f32.mrb[104].mxu0  ;;  %vm3858_vm2 = vcmp.ge.f32.partialorder %v3802_v1, 0.0 }
 0x28c   : > { %v5012_v6 = vpop.f32.mrb[104].mxu1  ;;  %v4949_v53 = vpop.f32.mrb[105].mxu0 }
 0x28d   : > { %vm3859_vm3 = vcmp.ge.f32.partialorder %v3805_v48, 0.0  ;;  %v3875_v54 = vmul.f32 0.2, %v3805_v48  ;;  %v4950_v14 = vadd.f32 %v4949_v53, %v4948_v56  ;;  %v5013_v57 = vpop.f32.mrb[105].mxu1  ;;  %v4951_v13 = vpop.f32.mrb[106].mxu0  ;;  %v3890_v35 = vsel %vm3858_vm2, %v3802_v1, %v3874_v47 }
 0x28e   : > { %v5014_v60 = vadd.f32 %v5013_v57, %v5012_v6  ;;  %v5015_v20 = vpop.f32.mrb[106].mxu1  ;;  %v4952_v61 = vpop.f32.mrb[107].mxu0 }
 0x28f   : > { %v3891_v62 = vsel %vm3859_vm3, %v3805_v48, %v3875_v54  ;;  %v3713_v21 = vadd.f32 %v4950_v14, %v6491_v32  ;;  %v4953_v37 = vadd.f32 %v4952_v61, %v4951_v13  ;;  %v5016_v3 = vpop.f32.mrb[107].mxu1 }
 0x290   : > { %v4497_v4 = vpack.c.bf16 %v3891_v62, %v3890_v35  ;;  %v5017_v16 = vadd.f32 %v5016_v3, %v5015_v20 }
 0x291   : > { %v3810_v26 = vadd.f32 %v5014_v60, %v3713_v21  ;;  %v3716_v8 = vadd.f32 %v4953_v37, %v6494_v55 }
 0x292   : > { %4529 = vst [vmem:[%s6532_s12 + $0x8] sm:$0xff] %v4497_v4  }
 0x293   : > { %v3876_v9 = vmul.f32 0.2, %v3810_v26  ;;  %v3813_v11 = vadd.f32 %v5017_v16, %v3716_v8  ;;  %v4954_v31 = vpop.f32.mrb[108].mxu0  ;;  %vm3860_vm4 = vcmp.ge.f32.partialorder %v3810_v26, 0.0 }
 0x294   : > { %v5018_v15 = vpop.f32.mrb[108].mxu1  ;;  %v4955_v40 = vpop.f32.mrb[109].mxu0 }
 0x295   : > { %vm3861_vm5 = vcmp.ge.f32.partialorder %v3813_v11, 0.0  ;;  %v3877_v17 = vmul.f32 0.2, %v3813_v11  ;;  %v4956_v18 = vadd.f32 %v4955_v40, %v4954_v31  ;;  %v5019_v39 = vpop.f32.mrb[109].mxu1  ;;  %v4957_v32 = vpop.f32.mrb[110].mxu0  ;;  %v3892_v23 = vsel %vm3860_vm4, %v3810_v26, %v3876_v9 }
 0x296   : > { %v5020_v22 = vadd.f32 %v5019_v39, %v5018_v15  ;;  %v5021_v63 = vpop.f32.mrb[110].mxu1  ;;  %v4958_v45 = vpop.f32.mrb[111].mxu0 }
 0x297   : > { %v3893_v24 = vsel %vm3861_vm5, %v3813_v11, %v3877_v17  ;;  %v3721_v55 = vadd.f32 %v4956_v18, %v6497_v51  ;;  %v4959_v41 = vadd.f32 %v4958_v45, %v4957_v32  ;;  %v5022_v52 = vpop.f32.mrb[111].mxu1 }
 0x298   : > { %v4502_v28 = vpack.c.bf16 %v3893_v24, %v3892_v23  ;;  %v5023_v29 = vadd.f32 %v5022_v52, %v5021_v63 }
 0x299   : > { %v3818_v36 = vadd.f32 %v5020_v22, %v3721_v55  ;;  %v3724_v50 = vadd.f32 %v4959_v41, %v6500_v10 }
 0x29a   : > { %4530 = vst [vmem:[%s6532_s12 + $0x10] sm:$0xff] %v4502_v28  }
 0x29b   : > { %v3878_v59 = vmul.f32 0.2, %v3818_v36  ;;  %v3821_v33 = vadd.f32 %v5023_v29, %v3724_v50  ;;  %v4960_v34 = vpop.f32.mrb[112].mxu0  ;;  %vm3862_vm6 = vcmp.ge.f32.partialorder %v3818_v36, 0.0 }
 0x29c   : > { %v5024_v38 = vpop.f32.mrb[112].mxu1  ;;  %v4961_v58 = vpop.f32.mrb[113].mxu0 }
 0x29d   : > { %vm3863_vm7 = vcmp.ge.f32.partialorder %v3821_v33, 0.0  ;;  %v3879_v19 = vmul.f32 0.2, %v3821_v33  ;;  %v4962_v42 = vadd.f32 %v4961_v58, %v4960_v34  ;;  %v5025_v0 = vpop.f32.mrb[113].mxu1  ;;  %v4963_v51 = vpop.f32.mrb[114].mxu0  ;;  %v3894_v12 = vsel %vm3862_vm6, %v3818_v36, %v3878_v59 }
 0x29e   : > { %v5026_v43 = vadd.f32 %v5025_v0, %v5024_v38  ;;  %v5027_v44 = vpop.f32.mrb[114].mxu1  ;;  %v4964_v1 = vpop.f32.mrb[115].mxu0 }
 0x29f   : > { %v3895_v47 = vsel %vm3863_vm7, %v3821_v33, %v3879_v19  ;;  %v3729_v10 = vadd.f32 %v4962_v42, %v6503_v7  ;;  %v4965_v48 = vadd.f32 %v4964_v1, %v4963_v51  ;;  %v5028_v56 = vpop.f32.mrb[115].mxu1 }
 0x2a0   : > { %v4507_v6 = vpack.c.bf16 %v3895_v47, %v3894_v12  ;;  %v5029_v53 = vadd.f32 %v5028_v56, %v5027_v44 }
 0x2a1   : > { %v3826_v54 = vadd.f32 %v5026_v43, %v3729_v10  ;;  %v3732_v14 = vadd.f32 %v4965_v48, %v6506_v30 }
 0x2a2   : > { %4531 = vst [vmem:[%s6532_s12 + $0x18] sm:$0xff] %v4507_v6  }
 0x2a3   : > { %v3880_v57 = vmul.f32 0.2, %v3826_v54  ;;  %v3829_v13 = vadd.f32 %v5029_v53, %v3732_v14  ;;  %v4966_v60 = vpop.f32.mrb[116].mxu0  ;;  %vm3864_vm8 = vcmp.ge.f32.partialorder %v3826_v54, 0.0 }
 0x2a4   : > { %v5030_v20 = vpop.f32.mrb[116].mxu1  ;;  %v4967_v61 = vpop.f32.mrb[117].mxu0 }
 0x2a5   : > { %vm3865_vm9 = vcmp.ge.f32.partialorder %v3829_v13, 0.0  ;;  %v3881_v35 = vmul.f32 0.2, %v3829_v13  ;;  %v4968_v62 = vadd.f32 %v4967_v61, %v4966_v60  ;;  %v5031_v21 = vpop.f32.mrb[117].mxu1  ;;  %v4969_v7 = vpop.f32.mrb[118].mxu0  ;;  %v3896_v16 = vsel %vm3864_vm8, %v3826_v54, %v3880_v57 }
 0x2a6   : > { %v5032_v37 = vadd.f32 %v5031_v21, %v5030_v20  ;;  %v5033_v3 = vpop.f32.mrb[118].mxu1  ;;  %v4970_v4 = vpop.f32.mrb[119].mxu0  ;;  %v4015_v21 = vld [vmem:[%s6532_s12 + $0x8] sm:$0xf] (%p5311_p6) }
 0x2a7   : > { %v3897_v26 = vsel %vm3865_vm9, %v3829_v13, %v3881_v35  ;;  %v3737_v30 = vadd.f32 %v4968_v62, %v6509_v27  ;;  %v4971_v8 = vadd.f32 %v4970_v4, %v4969_v7  ;;  %v5034_v9 = vpop.f32.mrb[119].mxu1  ;;  %v4017_v7 = vld [vmem:[%s6532_s12 + $0xc] sm:$0xf] (%p5311_p6)  ;;  %4016 = vst [vmem:[%s3995_s8 + $0x10] sm:$0xf] (%p5311_p6), %v4015_v21 }
 0x2a8   : > { %v4512_v11 = vpack.c.bf16 %v3897_v26, %v3896_v16  ;;  %v5035_v31 = vadd.f32 %v5034_v9, %v5033_v3  ;;  %4018 = vst [vmem:[%s3995_s8 + $0x18] sm:$0xf] (%p5311_p6), %v4017_v7  ;;  %v4021_v3 = vld [vmem:[%s6532_s12 + $0x14] sm:$0xf] (%p5311_p6) }
 0x2a9   : > { %v3834_v15 = vadd.f32 %v5032_v37, %v3737_v30  ;;  %v3740_v40 = vadd.f32 %v4971_v8, %v6512_v49  ;;  %v4019_v37 = vld [vmem:[%s6532_s12 + $0x10] sm:$0xf] (%p5311_p6)  ;;  %v4023_v4 = vld [vmem:[%s6532_s12 + $0x18] sm:$0xf] (%p5311_p6)  ;;  %v4025_v16 = vld [vmem:[%s6532_s12 + $0x1c] sm:$0xf] (%p5311_p6) }
 0x2aa   : > { %4532 = vst [vmem:[%s6532_s12 + $0x20] sm:$0xff] %v4512_v11   ;;  %4020 = vst [vmem:[%s3995_s8 + $0x20] sm:$0xf] (%p5311_p6), %v4019_v37 }
 0x2ab   : > { %v3882_v17 = vmul.f32 0.2, %v3834_v15  ;;  %v3837_v18 = vadd.f32 %v5035_v31, %v3740_v40  ;;  %v4972_v39 = vpop.f32.mrb[120].mxu0  ;;  %vm3866_vm10 = vcmp.ge.f32.partialorder %v3834_v15, 0.0  ;;  %4022 = vst [vmem:[%s3995_s8 + $0x28] sm:$0xf] (%p5311_p6), %v4021_v3 }
 0x2ac   : > { %v5036_v32 = vpop.f32.mrb[120].mxu1  ;;  %v4973_v22 = vpop.f32.mrb[121].mxu0  ;;  %4024 = vst [vmem:[%s3995_s8 + $0x30] sm:$0xf] (%p5311_p6), %v4023_v4  ;;  %4026 = vst [vmem:[%s3995_s8 + $0x38] sm:$0xf] (%p5311_p6), %v4025_v16 }
 0x2ad   : > { %vm3867_vm11 = vcmp.ge.f32.partialorder %v3837_v18, 0.0  ;;  %v3883_v63 = vmul.f32 0.2, %v3837_v18  ;;  %v4974_v45 = vadd.f32 %v4973_v22, %v4972_v39  ;;  %v5037_v23 = vpop.f32.mrb[121].mxu1  ;;  %v4975_v27 = vpop.f32.mrb[122].mxu0  ;;  %v3898_v52 = vsel %vm3866_vm10, %v3834_v15, %v3882_v17 }
 0x2ae   : > { %v5038_v24 = vadd.f32 %v5037_v23, %v5036_v32  ;;  %v5039_v55 = vpop.f32.mrb[122].mxu1  ;;  %v4976_v41 = vpop.f32.mrb[123].mxu0 }
 0x2af   : > { %v3899_v28 = vsel %vm3867_vm11, %v3837_v18, %v3883_v63  ;;  %v3745_v49 = vadd.f32 %v4974_v45, %v6515_v46  ;;  %v4977_v29 = vadd.f32 %v4976_v41, %v4975_v27  ;;  %v5040_v36 = vpop.f32.mrb[123].mxu1 }
 0x2b0   : > { %v4517_v50 = vpack.c.bf16 %v3899_v28, %v3898_v52  ;;  %v5041_v59 = vadd.f32 %v5040_v36, %v5039_v55 }
 0x2b1   : > { %v3842_v33 = vadd.f32 %v5038_v24, %v3745_v49  ;;  %v3748_v34 = vadd.f32 %v4977_v29, %v6518_v5  ;;  %v4027_v26 = vld [vmem:[%s6532_s12 + $0x20] sm:$0xf] (%p5311_p6)  ;;  %v4029_v30 = vld [vmem:[%s6532_s12 + $0x24] sm:$0xf] (%p5311_p6) }
 0x2b2   : > { %4533 = vst [vmem:[%s6532_s12 + $0x28] sm:$0xff] %v4517_v50   ;;  %4028 = vst [vmem:[%s3995_s8 + $0x40] sm:$0xf] (%p5311_p6), %v4027_v26 }
 0x2b3   : > { %v3884_v38 = vmul.f32 0.2, %v3842_v33  ;;  %v3845_v58 = vadd.f32 %v5041_v59, %v3748_v34  ;;  %v4978_v19 = vpop.f32.mrb[124].mxu0  ;;  %vm3868_vm12 = vcmp.ge.f32.partialorder %v3842_v33, 0.0  ;;  %4030 = vst [vmem:[%s3995_s8 + $0x48] sm:$0xf] (%p5311_p6), %v4029_v30 }
 0x2b4   : > { %v5042_v42 = vpop.f32.mrb[124].mxu1  ;;  %v4979_v0 = vpop.f32.mrb[125].mxu0 }
 0x2b5   : > { %vm3869_vm13 = vcmp.ge.f32.partialorder %v3845_v58, 0.0  ;;  %v3885_v51 = vmul.f32 0.2, %v3845_v58  ;;  %v4980_v43 = vadd.f32 %v4979_v0, %v4978_v19  ;;  %v5043_v44 = vpop.f32.mrb[125].mxu1  ;;  %v4981_v46 = vpop.f32.mrb[126].mxu0  ;;  %v3900_v10 = vsel %vm3868_vm12, %v3842_v33, %v3884_v38 }
 0x2b6   : > { %v5044_v1 = vadd.f32 %v5043_v44, %v5042_v42  ;;  %v5045_v12 = vpop.f32.mrb[126].mxu1  ;;  %v4982_v47 = vpop.f32.mrb[127].mxu0 }
 0x2b7   : > { %v3901_v48 = vsel %vm3869_vm13, %v3845_v58, %v3885_v51  ;;  %v3753_v5 = vadd.f32 %v4980_v43, %v6521_v2  ;;  %v4983_v56 = vadd.f32 %v4982_v47, %v4981_v46  ;;  %v5046_v6 = vpop.f32.mrb[127].mxu1  ;;  %v4011_v2 = vld [vmem:[%s6532_s12] sm:$0xf] (%p5311_p6) }
 0x2b8   : > { %v4522_v53 = vpack.c.bf16 %v3901_v48, %v3900_v10  ;;  %v5047_v54 = vadd.f32 %v5046_v6, %v5045_v12  ;;  %4012 = vst [vmem:[%s3995_s8] sm:$0xf] (%p5311_p6), %v4011_v2 }
 0x2b9   : > { %v3850_v14 = vadd.f32 %v5044_v1, %v3753_v5  ;;  %v3756_v57 = vadd.f32 %v4983_v56, %v6524_v25  ;;  %v4013_v25 = vld [vmem:[%s6532_s12 + $0x4] sm:$0xf] (%p5311_p6)  ;;  %v4031_v8 = vld [vmem:[%s6532_s12 + $0x28] sm:$0xf] (%p5311_p6)  ;;  %v4033_v9 = vld [vmem:[%s6532_s12 + $0x2c] sm:$0xf] (%p5311_p6) }
 0x2ba   : > { %4534 = vst [vmem:[%s6532_s12 + $0x30] sm:$0xff] %v4522_v53   ;;  %4014 = vst [vmem:[%s3995_s8 + $0x8] sm:$0xf] (%p5311_p6), %v4013_v25 }
 0x2bb   : > { %v3886_v13 = vmul.f32 0.2, %v3850_v14  ;;  %v3853_v60 = vadd.f32 %v5047_v54, %v3756_v57  ;;  %vm3870_vm14 = vcmp.ge.f32.partialorder %v3850_v14, 0.0  ;;  %4032 = vst [vmem:[%s3995_s8 + $0x50] sm:$0xf] (%p5311_p6), %v4031_v8 }
 0x2bc   : > { %3990 = sbr.rel (!%p5311_p6) target bundleno = 715 (0x2cb), region = 77  ;;  %4034 = vst [vmem:[%s3995_s8 + $0x58] sm:$0xf] (%p5311_p6), %v4033_v9 }
 0x2bd   : > { %vm3871_vm15 = vcmp.ge.f32.partialorder %v3853_v60, 0.0  ;;  %v3887_v20 = vmul.f32 0.2, %v3853_v60  ;;  %v3902_v61 = vsel %vm3870_vm14, %v3850_v14, %v3886_v13 }
 0x2bf   : > { %v3903_v35 = vsel %vm3871_vm15, %v3853_v60, %v3887_v20 }
 0x2c0   : > { %v4527_v62 = vpack.c.bf16 %v3903_v35, %v3902_v61 }
 0x2c1   : > { %v4035_v11 = vld [vmem:[%s6532_s12 + $0x30] sm:$0xf] (%p5311_p6)  ;;  %v4037_v31 = vld [vmem:[%s6532_s12 + $0x34] sm:$0xf] (%p5311_p6) }
 0x2c2   : > { %4535 = vst [vmem:[%s6532_s12 + $0x38] sm:$0xff] %v4527_v62   ;;  %4036 = vst [vmem:[%s3995_s8 + $0x60] sm:$0xf] (%p5311_p6), %v4035_v11 }
 0x2c3   : > { %4038 = vst [vmem:[%s3995_s8 + $0x68] sm:$0xf] %v4037_v31 }
 0x2c9   : > { %v4039_v15 = vld [vmem:[%s6532_s12 + $0x38] sm:$0xf]  ;;  %v4041_v40 = vld [vmem:[%s6532_s12 + $0x3c] sm:$0xf] }
 0x2ca   : > { %4040 = vst [vmem:[%s3995_s8 + $0x70] sm:$0xf] %v4039_v15  ;;  %4042 = vst [vmem:[%s3995_s8 + $0x78] sm:$0xf] %v4041_v40 }
 0x2cb PF: > { %s13_s16 = sadd.s32 1, %s5254_s16   ;;  %s6596_s12 = smov %s5242_s13 }
 0x2cc   : > { %p10_p12 = scmp.ge.s32.totalorder %s13_s16, 4   ;;  %s6597_s13 = smov %s5316_s22 }
 0x2cd   : > { %s6598_s14 = smov %s5250_s15  ;;  %s6599_s15 = smov %s6601_s17 }
 0x2ce   :  { %12 = sbr.rel (!%p10_p12) target bundleno = 3 (0x3), region = 155 }

// kernel: squeeze.4
= control target key start
LH: loop header
LB: loop body
LE: loop exit
PB: predicated region body
PF: predicated region fallthrough
CT: control target
= control target key end

     0   :  { %vm7_vm0 = vcmask 130048   ;;  %s39_s0 = inlined_call_operand.vmem [shape: f32[32], index: 0, kind: input, shape index: {}]   ;;  %s40_s1 = inlined_call_operand.vmem [shape: f32[2,16], index: 1, kind: output, shape index: {}]  }
   0x1   :  { %v4_v0 = vld [vmem:[%s39_s0] sm:$0x1]  ;;  %s22_s0 = smov 112  }
   0x2   :  { %5 = vst [vmem:[#allocation1] sm:$0x1] %v4_v0 }
   0x9   :  { %v9_v1 = vld [vmem:[#allocation1] sm:$0x1]  }
   0xa   :  { %v6_v2 = vld [vmem:[#allocation1] sm:$0x1]   ;;  %10 = vrot.lane.b32.xlu0 %v9_v1, %s22_s0 }
   0xb   :  { %8 = vst.msk [vmem:[#allocation0] sm:$0x1] %vm7_vm0, %v6_v2  }
  0x7c   :  { %v11_v3 = vpop.permute.xlu0 %10  }
  0x7d   :  { %14 = vst.msk [vmem:[#allocation0 + $0x1] sm:$0x1] %vm7_vm0, %v11_v3  }
  0x84   :  { %v18_v4 = vld [vmem:[#allocation0] sm:$0x3] }
  0x85   :  { %20 = vst [vmem:[%s40_s1] sm:$0x3] %v18_v4 }

// kernel: discriminator_forward.7
= control target key start
LH: loop header
LB: loop body
LE: loop exit
PB: predicated region body
PF: predicated region fallthrough
CT: control target
= control target key end

     0   :  { %s14760_s1 = inlined_call_operand.vmem [shape: bf16[4096,512], index: 1, kind: input, shape index: {}]   ;;  %s14761_s0 = inlined_call_operand.vmem [shape: bf16[32,4096], index: 0, kind: input, shape index: {}]   ;;  %s14762_s2 = inlined_call_operand.vmem [shape: f32[1,512], index: 2, kind: input, shape index: {}]   ;;  %s14763_s3 = inlined_call_operand.vmem [shape: f32[32,512], index: 3, kind: input, shape index: {}]   ;;  %s14764_s4 = inlined_call_operand.vmem [shape: f32[32,1], index: 4, kind: output, shape index: {}]  }
   0x1   :  { %v9716_v0 = vld [vmem:[%s14760_s1 + $0x4] ss:$16 sps:$4 sm:$0xff]   ;;  %v9718_v1 = vld [vmem:[%s14760_s1 + $0xc] ss:$16 sps:$4 sm:$0xff]   ;;  %v9720_v2 = vld [vmem:[%s14760_s1] ss:$16 sps:$4 sm:$0xff]  }
   0x2   :  { %6567 = vmatprep.subr.bf16.mxu0 %v9716_v0  ;;  %v9721_v3 = vld [vmem:[%s14760_s1 + $0x8] ss:$16 sps:$4 sm:$0xff]   ;;  %7415 = vmatprep.subr.bf16.mxu1 %v9718_v1  ;;  %v9722_v4 = vld [vmem:[%s14760_s1 + $0x24] ss:$16 sps:$4 sm:$0xff]   ;;  %v9724_v5 = vld [vmem:[%s14760_s1 + $0x2c] ss:$16 sps:$4 sm:$0xff]  }
   0x3   :  { %6568 = vmatpush1.bf16.msra.mxu0 %v9720_v2  ;;  %7416 = vmatpush1.bf16.msra.mxu1 %v9721_v3  ;;  %v9726_v6 = vld [vmem:[%s14760_s1 + $0x20] ss:$16 sps:$4 sm:$0xff]   ;;  %v9727_v7 = vld [vmem:[%s14760_s1 + $0x28] ss:$16 sps:$4 sm:$0xff]   ;;  %v9728_v8 = vld [vmem:[%s14760_s1 + $0x44] ss:$16 sps:$4 sm:$0xff]  }
   0x4   :  { %6569 = vmatprep.subr.bf16.mxu0 %v9722_v4  ;;  %7417 = vmatprep.subr.bf16.mxu1 %v9724_v5  ;;  %v9730_v9 = vld [vmem:[%s14760_s1 + $0x4c] ss:$16 sps:$4 sm:$0xff]   ;;  %v9732_v10 = vld [vmem:[%s14760_s1 + $0x40] ss:$16 sps:$4 sm:$0xff]   ;;  %v9733_v11 = vld [vmem:[%s14760_s1 + $0x48] ss:$16 sps:$4 sm:$0xff]  }
   0x5   :  { %v9734_v12 = vld [vmem:[%s14760_s1 + $0x64] ss:$16 sps:$4 sm:$0xff]   ;;  %v9736_v13 = vld [vmem:[%s14760_s1 + $0x6c] ss:$16 sps:$4 sm:$0xff]   ;;  %v9738_v14 = vld [vmem:[%s14760_s1 + $0x60] ss:$16 sps:$4 sm:$0xff]  }
   0x6   :  { %v9739_v15 = vld [vmem:[%s14760_s1 + $0x68] ss:$16 sps:$4 sm:$0xff]   ;;  %v9740_v16 = vld [vmem:[%s14760_s1 + $0x84] ss:$16 sps:$4 sm:$0xff]   ;;  %v9742_v17 = vld [vmem:[%s14760_s1 + $0x8c] ss:$16 sps:$4 sm:$0xff]  }
   0x7   :  { %6570 = vmatpush1.bf16.msra.mxu0 %v9726_v6  ;;  %7418 = vmatpush1.bf16.msra.mxu1 %v9727_v7  ;;  %v9744_v18 = vld [vmem:[%s14760_s1 + $0x80] ss:$16 sps:$4 sm:$0xff]   ;;  %v9745_v19 = vld [vmem:[%s14760_s1 + $0x88] ss:$16 sps:$4 sm:$0xff]   ;;  %v9746_v20 = vld [vmem:[%s14760_s1 + $0xa4] ss:$16 sps:$4 sm:$0xff]  }
   0x8   :  { %6571 = vmatprep.subr.bf16.mxu0 %v9728_v8  ;;  %7419 = vmatprep.subr.bf16.mxu1 %v9730_v9  ;;  %v9748_v21 = vld [vmem:[%s14760_s1 + $0xac] ss:$16 sps:$4 sm:$0xff]   ;;  %v9750_v22 = vld [vmem:[%s14760_s1 + $0xa0] ss:$16 sps:$4 sm:$0xff]   ;;  %v9751_v23 = vld [vmem:[%s14760_s1 + $0xa8] ss:$16 sps:$4 sm:$0xff]  }
   0x9   :  { %v9752_v24 = vld [vmem:[%s14760_s1 + $0xc4] ss:$16 sps:$4 sm:$0xff]   ;;  %v9754_v25 = vld [vmem:[%s14760_s1 + $0xcc] ss:$16 sps:$4 sm:$0xff]   ;;  %v9756_v26 = vld [vmem:[%s14760_s1 + $0xc0] ss:$16 sps:$4 sm:$0xff]  }
   0xa   :  { %v9757_v27 = vld [vmem:[%s14760_s1 + $0xc8] ss:$16 sps:$4 sm:$0xff]   ;;  %v9758_v28 = vld [vmem:[%s14760_s1 + $0xe4] ss:$16 sps:$4 sm:$0xff]   ;;  %v9760_v29 = vld [vmem:[%s14760_s1 + $0xec] ss:$16 sps:$4 sm:$0xff]  }
   0xb   :  { %6572 = vmatpush1.bf16.msra.mxu0 %v9732_v10  ;;  %7420 = vmatpush1.bf16.msra.mxu1 %v9733_v11  ;;  %v9762_v30 = vld [vmem:[%s14760_s1 + $0xe0] ss:$16 sps:$4 sm:$0xff]   ;;  %v9763_v31 = vld [vmem:[%s14760_s1 + $0xe8] ss:$16 sps:$4 sm:$0xff]   ;;  %v9764_v32 = vld [vmem:[%s14760_s1 + $0x104] ss:$16 sps:$4 sm:$0xff]  }
   0xc   :  { %6573 = vmatprep.subr.bf16.mxu0 %v9734_v12  ;;  %7421 = vmatprep.subr.bf16.mxu1 %v9736_v13  ;;  %v9766_v33 = vld [vmem:[%s14760_s1 + $0x10c] ss:$16 sps:$4 sm:$0xff]   ;;  %v9768_v34 = vld [vmem:[%s14760_s1 + $0x100] ss:$16 sps:$4 sm:$0xff]   ;;  %v9769_v35 = vld [vmem:[%s14760_s1 + $0x108] ss:$16 sps:$4 sm:$0xff]  }
   0xd   :  { %v9770_v36 = vld [vmem:[%s14760_s1 + $0x124] ss:$16 sps:$4 sm:$0xff]   ;;  %v9772_v37 = vld [vmem:[%s14760_s1 + $0x12c] ss:$16 sps:$4 sm:$0xff]   ;;  %v9774_v38 = vld [vmem:[%s14760_s1 + $0x120] ss:$16 sps:$4 sm:$0xff]  }
   0xe   :  { %v9775_v39 = vld [vmem:[%s14760_s1 + $0x128] ss:$16 sps:$4 sm:$0xff]   ;;  %v9776_v40 = vld [vmem:[%s14760_s1 + $0x144] ss:$16 sps:$4 sm:$0xff]   ;;  %v9778_v41 = vld [vmem:[%s14760_s1 + $0x14c] ss:$16 sps:$4 sm:$0xff]  }
   0xf   :  { %6574 = vmatpush1.bf16.msra.mxu0 %v9738_v14  ;;  %7422 = vmatpush1.bf16.msra.mxu1 %v9739_v15  ;;  %v9780_v42 = vld [vmem:[%s14760_s1 + $0x140] ss:$16 sps:$4 sm:$0xff]   ;;  %v9781_v43 = vld [vmem:[%s14760_s1 + $0x148] ss:$16 sps:$4 sm:$0xff]   ;;  %v9782_v44 = vld [vmem:[%s14760_s1 + $0x164] ss:$16 sps:$4 sm:$0xff]  }
  0x10   :  { %6575 = vmatprep.subr.bf16.mxu0 %v9740_v16  ;;  %7423 = vmatprep.subr.bf16.mxu1 %v9742_v17  ;;  %v9784_v45 = vld [vmem:[%s14760_s1 + $0x16c] ss:$16 sps:$4 sm:$0xff]   ;;  %v17_v46 = vld [vmem:[%s14761_s0] sm:$0xff]  ;;  %v9787_v49 = vld [vmem:[%s14760_s1 + $0x168] ss:$16 sps:$4 sm:$0xff]  }
  0x11   :  { %v33_v47 = vld [vmem:[%s14761_s0 + $0x80] sm:$0xff]  ;;  %v9790_v52 = vld [vmem:[%s14760_s1 + $0x18c] ss:$16 sps:$4 sm:$0xff]   ;;  %v9793_v54 = vld [vmem:[%s14760_s1 + $0x188] ss:$16 sps:$4 sm:$0xff]  }
  0x12   :  { %v9786_v48 = vld [vmem:[%s14760_s1 + $0x160] ss:$16 sps:$4 sm:$0xff]   ;;  %v8373_v50 = vcombine.high %v17_v46, %v33_v47  ;;  %v9788_v51 = vld [vmem:[%s14760_s1 + $0x184] ss:$16 sps:$4 sm:$0xff]   ;;  %v9796_v56 = vld [vmem:[%s14760_s1 + $0x1ac] ss:$16 sps:$4 sm:$0xff]   ;;  %v8372_v5 = vcombine.low %v17_v46, %v33_v47 }
  0x13   :  { %6576 = vmatpush1.bf16.msra.mxu0 %v9744_v18  ;;  %7424 = vmatpush1.bf16.msra.mxu1 %v9745_v19  ;;  %v9792_v53 = vld [vmem:[%s14760_s1 + $0x180] ss:$16 sps:$4 sm:$0xff]   ;;  %v9794_v55 = vld [vmem:[%s14760_s1 + $0x1a4] ss:$16 sps:$4 sm:$0xff]   ;;  %v9799_v58 = vld [vmem:[%s14760_s1 + $0x1a8] ss:$16 sps:$4 sm:$0xff]  }
  0x14   :  { %6577 = vmatprep.subr.bf16.mxu0 %v9746_v20  ;;  %7425 = vmatprep.subr.bf16.mxu1 %v9748_v21  ;;  %v9798_v57 = vld [vmem:[%s14760_s1 + $0x1a0] ss:$16 sps:$4 sm:$0xff]   ;;  %v9800_v59 = vld [vmem:[%s14760_s1 + $0x1c4] ss:$16 sps:$4 sm:$0xff]   ;;  %v9802_v60 = vld [vmem:[%s14760_s1 + $0x1cc] ss:$16 sps:$4 sm:$0xff]  }
  0x15   :  { %6599 = vmatprep.mubr.bf16.mxu0 %v8373_v50  ;;  %7447 = vmatprep.mubr.bf16.mxu1 %v8373_v50  ;;  %v9804_v61 = vld [vmem:[%s14760_s1 + $0x1c0] ss:$16 sps:$4 sm:$0xff]   ;;  %v9805_v62 = vld [vmem:[%s14760_s1 + $0x1c8] ss:$16 sps:$4 sm:$0xff]   ;;  %v9806_v63 = vld [vmem:[%s14760_s1 + $0x1e4] ss:$16 sps:$4 sm:$0xff]  }
  0x16   :  { %v9808_v0 = vld [vmem:[%s14760_s1 + $0x1ec] ss:$16 sps:$4 sm:$0xff]   ;;  %v9810_v1 = vld [vmem:[%s14760_s1 + $0x1e0] ss:$16 sps:$4 sm:$0xff]   ;;  %v9811_v2 = vld [vmem:[%s14760_s1 + $0x1e8] ss:$16 sps:$4 sm:$0xff]  }
  0x17   :  { %6578 = vmatpush1.bf16.msra.mxu0 %v9750_v22  ;;  %7426 = vmatpush1.bf16.msra.mxu1 %v9751_v23  ;;  %v9814_v3 = vld [vmem:[%s14760_s1 + $0x204] ss:$16 sps:$4 sm:$0xff]   ;;  %v9817_v4 = vld [vmem:[%s14760_s1 + $0x20c] ss:$16 sps:$4 sm:$0xff]   ;;  %v9812_v6 = vld [vmem:[%s14760_s1 + $0x200] ss:$16 sps:$4 sm:$0xff]  }
  0x18   :  { %6579 = vmatprep.subr.bf16.mxu0 %v9752_v24  ;;  %7427 = vmatprep.subr.bf16.mxu1 %v9754_v25  ;;  %v9815_v7 = vld [vmem:[%s14760_s1 + $0x208] ss:$16 sps:$4 sm:$0xff]   ;;  %v9820_v8 = vld [vmem:[%s14760_s1 + $0x224] ss:$16 sps:$4 sm:$0xff]   ;;  %v9823_v9 = vld [vmem:[%s14760_s1 + $0x22c] ss:$16 sps:$4 sm:$0xff]  }
  0x19   :  { %v9818_v10 = vld [vmem:[%s14760_s1 + $0x220] ss:$16 sps:$4 sm:$0xff]   ;;  %v9821_v11 = vld [vmem:[%s14760_s1 + $0x228] ss:$16 sps:$4 sm:$0xff]   ;;  %v9826_v12 = vld [vmem:[%s14760_s1 + $0x244] ss:$16 sps:$4 sm:$0xff]  }
  0x1a   :  { %v9829_v13 = vld [vmem:[%s14760_s1 + $0x24c] ss:$16 sps:$4 sm:$0xff]   ;;  %v9824_v14 = vld [vmem:[%s14760_s1 + $0x240] ss:$16 sps:$4 sm:$0xff]   ;;  %v9827_v15 = vld [vmem:[%s14760_s1 + $0x248] ss:$16 sps:$4 sm:$0xff]  }
  0x1b   :  { %6580 = vmatpush1.bf16.msra.mxu0 %v9756_v26  ;;  %7428 = vmatpush1.bf16.msra.mxu1 %v9757_v27  ;;  %v9832_v16 = vld [vmem:[%s14760_s1 + $0x264] ss:$16 sps:$4 sm:$0xff]   ;;  %v9835_v17 = vld [vmem:[%s14760_s1 + $0x26c] ss:$16 sps:$4 sm:$0xff]   ;;  %v9830_v18 = vld [vmem:[%s14760_s1 + $0x260] ss:$16 sps:$4 sm:$0xff]  }
  0x1c   :  { %6581 = vmatprep.subr.bf16.mxu0 %v9758_v28  ;;  %7429 = vmatprep.subr.bf16.mxu1 %v9760_v29  ;;  %v9833_v19 = vld [vmem:[%s14760_s1 + $0x268] ss:$16 sps:$4 sm:$0xff]   ;;  %v9838_v20 = vld [vmem:[%s14760_s1 + $0x284] ss:$16 sps:$4 sm:$0xff]   ;;  %v9841_v21 = vld [vmem:[%s14760_s1 + $0x28c] ss:$16 sps:$4 sm:$0xff]  }
  0x1d   :  { %v9836_v22 = vld [vmem:[%s14760_s1 + $0x280] ss:$16 sps:$4 sm:$0xff]   ;;  %v9839_v23 = vld [vmem:[%s14760_s1 + $0x288] ss:$16 sps:$4 sm:$0xff]   ;;  %v9844_v24 = vld [vmem:[%s14760_s1 + $0x2a4] ss:$16 sps:$4 sm:$0xff]  }
  0x1e   :  { %v9847_v25 = vld [vmem:[%s14760_s1 + $0x2ac] ss:$16 sps:$4 sm:$0xff]   ;;  %v49_v26 = vld [vmem:[%s14761_s0 + $0x100] sm:$0xff]  ;;  %v9863_v46 = vld [vmem:[%s14760_s1 + $0x308] ss:$16 sps:$4 sm:$0xff]  }
  0x1f   :  { %6582 = vmatpush1.bf16.msra.mxu0 %v9762_v30  ;;  %7430 = vmatpush1.bf16.msra.mxu1 %v9763_v31  ;;  %v65_v27 = vld [vmem:[%s14761_s0 + $0x180] sm:$0xff]  ;;  %v9845_v30 = vld [vmem:[%s14760_s1 + $0x2a8] ss:$16 sps:$4 sm:$0xff]  }
  0x20   :  { %6583 = vmatprep.subr.bf16.mxu0 %v9764_v32  ;;  %7431 = vmatprep.subr.bf16.mxu1 %v9766_v33  ;;  %v8405_v28 = vcombine.high %v49_v26, %v65_v27  ;;  %v9842_v29 = vld [vmem:[%s14760_s1 + $0x2a0] ss:$16 sps:$4 sm:$0xff]   ;;  %v8404_v31 = vcombine.low %v49_v26, %v65_v27  ;;  %v9850_v32 = vld [vmem:[%s14760_s1 + $0x2c4] ss:$16 sps:$4 sm:$0xff]   ;;  %v9853_v33 = vld [vmem:[%s14760_s1 + $0x2cc] ss:$16 sps:$4 sm:$0xff]  }
  0x21   :  { %v9868_v47 = vld [vmem:[%s14760_s1 + $0x324] ss:$16 sps:$4 sm:$0xff]   ;;  %v9869_v50 = vld [vmem:[%s14760_s1 + $0x328] ss:$16 sps:$4 sm:$0xff]  }
  0x22   :  { %v11731_v27 = vld [vmem:[%s14761_s0 + $0x90] sm:$0xff] }
  0x23   :  { %6584 = vmatpush1.bf16.msra.mxu0 %v9768_v34  ;;  %7432 = vmatpush1.bf16.msra.mxu1 %v9769_v35  ;;  %v11562_v34 = vld [vmem:[%s14761_s0 + $0x8] sm:$0xff] }
  0x24   :  { %6585 = vmatprep.subr.bf16.mxu0 %v9770_v36  ;;  %7433 = vmatprep.subr.bf16.mxu1 %v9772_v37  ;;  %v11567_v35 = vld [vmem:[%s14761_s0 + $0x88] sm:$0xff]  ;;  %v9848_v36 = vld [vmem:[%s14760_s1 + $0x2c0] ss:$16 sps:$4 sm:$0xff]  }
  0x25   :  { %v9851_v37 = vld [vmem:[%s14760_s1 + $0x2c8] ss:$16 sps:$4 sm:$0xff]  }
  0x27   :  { %6586 = vmatpush1.bf16.msra.mxu0 %v9774_v38  ;;  %7434 = vmatpush1.bf16.msra.mxu1 %v9775_v39  ;;  %v8375_v38 = vcombine.high %v11562_v34, %v11567_v35  ;;  %v9856_v39 = vld [vmem:[%s14760_s1 + $0x2e4] ss:$16 sps:$4 sm:$0xff]  }
  0x28   :  { %6587 = vmatprep.subr.bf16.mxu0 %v9776_v40  ;;  %7435 = vmatprep.subr.bf16.mxu1 %v9778_v41  ;;  %v9859_v40 = vld [vmem:[%s14760_s1 + $0x2ec] ss:$16 sps:$4 sm:$0xff]   ;;  %v9854_v41 = vld [vmem:[%s14760_s1 + $0x2e0] ss:$16 sps:$4 sm:$0xff]  }
  0x2b   :  { %6588 = vmatpush1.bf16.msra.mxu0 %v9780_v42  ;;  %7436 = vmatpush1.bf16.msra.mxu1 %v9781_v43  ;;  %v9857_v42 = vld [vmem:[%s14760_s1 + $0x2e8] ss:$16 sps:$4 sm:$0xff]   ;;  %v9862_v43 = vld [vmem:[%s14760_s1 + $0x304] ss:$16 sps:$4 sm:$0xff]  }
  0x2c   :  { %6589 = vmatprep.subr.bf16.mxu0 %v9782_v44  ;;  %7437 = vmatprep.subr.bf16.mxu1 %v9784_v45  ;;  %v9865_v44 = vld [vmem:[%s14760_s1 + $0x30c] ss:$16 sps:$4 sm:$0xff]   ;;  %v9860_v45 = vld [vmem:[%s14760_s1 + $0x300] ss:$16 sps:$4 sm:$0xff]  }
  0x2f   :  { %6590 = vmatpush1.bf16.msra.mxu0 %v9786_v48  ;;  %7438 = vmatpush1.bf16.msra.mxu1 %v9787_v49  ;;  %v9871_v48 = vld [vmem:[%s14760_s1 + $0x32c] ss:$16 sps:$4 sm:$0xff]   ;;  %v9866_v49 = vld [vmem:[%s14760_s1 + $0x320] ss:$16 sps:$4 sm:$0xff]  }
  0x30   :  { %6591 = vmatprep.subr.bf16.mxu0 %v9788_v51  ;;  %7439 = vmatprep.subr.bf16.mxu1 %v9790_v52  ;;  %v9874_v51 = vld [vmem:[%s14760_s1 + $0x344] ss:$16 sps:$4 sm:$0xff]   ;;  %v9877_v52 = vld [vmem:[%s14760_s1 + $0x34c] ss:$16 sps:$4 sm:$0xff]  }
  0x33   :  { %6592 = vmatpush1.bf16.msra.mxu0 %v9792_v53  ;;  %7440 = vmatpush1.bf16.msra.mxu1 %v9793_v54  ;;  %v9872_v53 = vld [vmem:[%s14760_s1 + $0x340] ss:$16 sps:$4 sm:$0xff]   ;;  %v9875_v54 = vld [vmem:[%s14760_s1 + $0x348] ss:$16 sps:$4 sm:$0xff]  }
  0x34   :  { %6593 = vmatprep.subr.bf16.mxu0 %v9794_v55  ;;  %7441 = vmatprep.subr.bf16.mxu1 %v9796_v56  ;;  %v9880_v55 = vld [vmem:[%s14760_s1 + $0x364] ss:$16 sps:$4 sm:$0xff]   ;;  %v9883_v56 = vld [vmem:[%s14760_s1 + $0x36c] ss:$16 sps:$4 sm:$0xff]  }
  0x37   :  { %6594 = vmatpush1.bf16.msra.mxu0 %v9798_v57  ;;  %7442 = vmatpush1.bf16.msra.mxu1 %v9799_v58  ;;  %v9878_v57 = vld [vmem:[%s14760_s1 + $0x360] ss:$16 sps:$4 sm:$0xff]   ;;  %v9881_v58 = vld [vmem:[%s14760_s1 + $0x368] ss:$16 sps:$4 sm:$0xff]  }
  0x38   :  { %6595 = vmatprep.subr.bf16.mxu0 %v9800_v59  ;;  %7443 = vmatprep.subr.bf16.mxu1 %v9802_v60  ;;  %v9886_v59 = vld [vmem:[%s14760_s1 + $0x384] ss:$16 sps:$4 sm:$0xff]   ;;  %v9889_v60 = vld [vmem:[%s14760_s1 + $0x38c] ss:$16 sps:$4 sm:$0xff]  }
  0x3b   :  { %6596 = vmatpush1.bf16.msra.mxu0 %v9804_v61  ;;  %7444 = vmatpush1.bf16.msra.mxu1 %v9805_v62  ;;  %v9884_v61 = vld [vmem:[%s14760_s1 + $0x380] ss:$16 sps:$4 sm:$0xff]   ;;  %v9887_v62 = vld [vmem:[%s14760_s1 + $0x388] ss:$16 sps:$4 sm:$0xff]  }
  0x3c   :  { %6597 = vmatprep.subr.bf16.mxu0 %v9806_v63  ;;  %7445 = vmatprep.subr.bf16.mxu1 %v9808_v0  ;;  %v9892_v63 = vld [vmem:[%s14760_s1 + $0x3a4] ss:$16 sps:$4 sm:$0xff]   ;;  %v9895_v0 = vld [vmem:[%s14760_s1 + $0x3ac] ss:$16 sps:$4 sm:$0xff]  }
  0x3f   :  { %6598 = vmatpush1.bf16.msra.mxu0 %v9810_v1  ;;  %7446 = vmatpush1.bf16.msra.mxu1 %v9811_v2  ;;  %v9890_v1 = vld [vmem:[%s14760_s1 + $0x3a0] ss:$16 sps:$4 sm:$0xff]   ;;  %v9893_v2 = vld [vmem:[%s14760_s1 + $0x3a8] ss:$16 sps:$4 sm:$0xff]  }
  0x40   :  { %6620 = vmatprep.subr.bf16.mxu0 %v9814_v3  ;;  %7468 = vmatprep.subr.bf16.mxu1 %v9817_v4  ;;  %v9898_v3 = vld [vmem:[%s14760_s1 + $0x3c4] ss:$16 sps:$4 sm:$0xff]   ;;  %v9901_v4 = vld [vmem:[%s14760_s1 + $0x3cc] ss:$16 sps:$4 sm:$0xff]  }
  0x42   :  { %6600 = vmatmul.mubr.bf16.vlgmr.msra.gmra.mrb[0].mxu0 %v8372_v5  ;;  %7448 = vmatmul.mubr.bf16.vlgmr.msra.gmra.mrb[0].mxu1 %v8372_v5  ;;  %v9896_v5 = vld [vmem:[%s14760_s1 + $0x3c0] ss:$16 sps:$4 sm:$0xff]  }
  0x43   :  { %6621 = vmatpush1.bf16.msra.mxu0 %v9812_v6  ;;  %7469 = vmatpush1.bf16.msra.mxu1 %v9815_v7  ;;  %v9899_v6 = vld [vmem:[%s14760_s1 + $0x3c8] ss:$16 sps:$4 sm:$0xff]   ;;  %v9904_v7 = vld [vmem:[%s14760_s1 + $0x3e4] ss:$16 sps:$4 sm:$0xff]  }
  0x44   :  { %6622 = vmatprep.subr.bf16.mxu0 %v9820_v8  ;;  %7470 = vmatprep.subr.bf16.mxu1 %v9823_v9  ;;  %v9907_v8 = vld [vmem:[%s14760_s1 + $0x3ec] ss:$16 sps:$4 sm:$0xff]   ;;  %v9902_v9 = vld [vmem:[%s14760_s1 + $0x3e0] ss:$16 sps:$4 sm:$0xff]  }
  0x45   :  { %6609 = vmatprep.mubr.bf16.mxu0 %v8405_v28  ;;  %7457 = vmatprep.mubr.bf16.mxu1 %v8405_v28  ;;  %v9920_v28 = vld [vmem:[%s14760_s1 + $0x440] ss:$16 sps:$4 sm:$0xff]  }
  0x47   :  { %6623 = vmatpush1.bf16.msra.mxu0 %v9818_v10  ;;  %7471 = vmatpush1.bf16.msra.mxu1 %v9821_v11  ;;  %v9905_v10 = vld [vmem:[%s14760_s1 + $0x3e8] ss:$16 sps:$4 sm:$0xff]   ;;  %v9910_v11 = vld [vmem:[%s14760_s1 + $0x404] ss:$16 sps:$4 sm:$0xff]  }
  0x48   :  { %6624 = vmatprep.subr.bf16.mxu0 %v9826_v12  ;;  %7472 = vmatprep.subr.bf16.mxu1 %v9829_v13  ;;  %v9913_v12 = vld [vmem:[%s14760_s1 + $0x40c] ss:$16 sps:$4 sm:$0xff]   ;;  %v9908_v13 = vld [vmem:[%s14760_s1 + $0x400] ss:$16 sps:$4 sm:$0xff]  }
  0x4a   :  { %6610 = vmatmul.mubr.bf16.gmra.mrb[4].mxu0 %v8404_v31  ;;  %7458 = vmatmul.mubr.bf16.gmra.mrb[4].mxu1 %v8404_v31  ;;  %v9931_v31 = vld [vmem:[%s14760_s1 + $0x46c] ss:$16 sps:$4 sm:$0xff]  }
  0x4b   :  { %6625 = vmatpush1.bf16.msra.mxu0 %v9824_v14  ;;  %7473 = vmatpush1.bf16.msra.mxu1 %v9827_v15  ;;  %v9911_v14 = vld [vmem:[%s14760_s1 + $0x408] ss:$16 sps:$4 sm:$0xff]   ;;  %v8374_v15 = vcombine.low %v11562_v34, %v11567_v35  ;;  %v9934_v35 = vld [vmem:[%s14760_s1 + $0x484] ss:$16 sps:$4 sm:$0xff]  }
  0x4c   :  { %6626 = vmatprep.subr.bf16.mxu0 %v9832_v16  ;;  %7474 = vmatprep.subr.bf16.mxu1 %v9835_v17  ;;  %v50_v16 = vld [vmem:[%s14761_s0 + $0x108] sm:$0xff] }
  0x4d   :  { %6652 = vmatprep.mubr.bf16.mxu0 %v8375_v38  ;;  %7500 = vmatprep.mubr.bf16.mxu1 %v8375_v38  ;;  %v66_v17 = vld [vmem:[%s14761_s0 + $0x188] sm:$0xff] }
  0x4e   :  { %v8406_v26 = vcombine.low %v50_v16, %v66_v17  ;;  %v9929_v34 = vld [vmem:[%s14760_s1 + $0x468] ss:$16 sps:$4 sm:$0xff]  }
  0x4f   :  { %6627 = vmatpush1.bf16.msra.mxu0 %v9830_v18  ;;  %7475 = vmatpush1.bf16.msra.mxu1 %v9833_v19  ;;  %v9916_v18 = vld [vmem:[%s14760_s1 + $0x424] ss:$16 sps:$4 sm:$0xff]   ;;  %v9919_v19 = vld [vmem:[%s14760_s1 + $0x42c] ss:$16 sps:$4 sm:$0xff]   ;;  %v9935_v38 = vld [vmem:[%s14760_s1 + $0x488] ss:$16 sps:$4 sm:$0xff]  }
  0x50   :  { %6628 = vmatprep.subr.bf16.mxu0 %v9838_v20  ;;  %7476 = vmatprep.subr.bf16.mxu1 %v9841_v21  ;;  %v8407_v20 = vcombine.high %v50_v16, %v66_v17  ;;  %v9914_v21 = vld [vmem:[%s14760_s1 + $0x420] ss:$16 sps:$4 sm:$0xff]   ;;  %v10003_v16 = vld [vmem:[%s14760_s1 + $0x5ec] ss:$16 sps:$4 sm:$0xff]  }
  0x51   :  { %v9998_v17 = vld [vmem:[%s14760_s1 + $0x5e0] ss:$16 sps:$4 sm:$0xff]  }
  0x53   :  { %6629 = vmatpush1.bf16.msra.mxu0 %v9836_v22  ;;  %7477 = vmatpush1.bf16.msra.mxu1 %v9839_v23  ;;  %v9917_v22 = vld [vmem:[%s14760_s1 + $0x428] ss:$16 sps:$4 sm:$0xff]   ;;  %v9922_v23 = vld [vmem:[%s14760_s1 + $0x444] ss:$16 sps:$4 sm:$0xff]  }
  0x54   :  { %6630 = vmatprep.subr.bf16.mxu0 %v9844_v24  ;;  %7478 = vmatprep.subr.bf16.mxu1 %v9847_v25  ;;  %v9925_v24 = vld [vmem:[%s14760_s1 + $0x44c] ss:$16 sps:$4 sm:$0xff]   ;;  %v11726_v25 = vld [vmem:[%s14761_s0 + $0x10] sm:$0xff] }
  0x57   :  { %6631 = vmatpush1.bf16.msra.mxu0 %v9842_v29  ;;  %7479 = vmatpush1.bf16.msra.mxu1 %v9845_v30  ;;  %v9923_v29 = vld [vmem:[%s14760_s1 + $0x448] ss:$16 sps:$4 sm:$0xff]   ;;  %v9928_v30 = vld [vmem:[%s14760_s1 + $0x464] ss:$16 sps:$4 sm:$0xff]  }
  0x58   :  { %6632 = vmatprep.subr.bf16.mxu0 %v9850_v32  ;;  %7480 = vmatprep.subr.bf16.mxu1 %v9853_v33  ;;  %v8377_v32 = vcombine.high %v11726_v25, %v11731_v27  ;;  %v9926_v33 = vld [vmem:[%s14760_s1 + $0x460] ss:$16 sps:$4 sm:$0xff]  }
  0x5b   :  { %6633 = vmatpush1.bf16.msra.mxu0 %v9848_v36  ;;  %7481 = vmatpush1.bf16.msra.mxu1 %v9851_v37  ;;  %v9937_v36 = vld [vmem:[%s14760_s1 + $0x48c] ss:$16 sps:$4 sm:$0xff]   ;;  %v9932_v37 = vld [vmem:[%s14760_s1 + $0x480] ss:$16 sps:$4 sm:$0xff]  }
  0x5c   :  { %6634 = vmatprep.subr.bf16.mxu0 %v9856_v39  ;;  %7482 = vmatprep.subr.bf16.mxu1 %v9859_v40  ;;  %v9940_v39 = vld [vmem:[%s14760_s1 + $0x4a4] ss:$16 sps:$4 sm:$0xff]   ;;  %v9943_v40 = vld [vmem:[%s14760_s1 + $0x4ac] ss:$16 sps:$4 sm:$0xff]  }
  0x5f   :  { %6635 = vmatpush1.bf16.msra.mxu0 %v9854_v41  ;;  %7483 = vmatpush1.bf16.msra.mxu1 %v9857_v42  ;;  %v9938_v41 = vld [vmem:[%s14760_s1 + $0x4a0] ss:$16 sps:$4 sm:$0xff]   ;;  %v9941_v42 = vld [vmem:[%s14760_s1 + $0x4a8] ss:$16 sps:$4 sm:$0xff]  }
  0x60   :  { %6636 = vmatprep.subr.bf16.mxu0 %v9862_v43  ;;  %7484 = vmatprep.subr.bf16.mxu1 %v9865_v44  ;;  %v9946_v43 = vld [vmem:[%s14760_s1 + $0x4c4] ss:$16 sps:$4 sm:$0xff]   ;;  %v9949_v44 = vld [vmem:[%s14760_s1 + $0x4cc] ss:$16 sps:$4 sm:$0xff]  }
  0x63   :  { %6637 = vmatpush1.bf16.msra.mxu0 %v9860_v45  ;;  %7485 = vmatpush1.bf16.msra.mxu1 %v9863_v46  ;;  %v9944_v45 = vld [vmem:[%s14760_s1 + $0x4c0] ss:$16 sps:$4 sm:$0xff]   ;;  %v9947_v46 = vld [vmem:[%s14760_s1 + $0x4c8] ss:$16 sps:$4 sm:$0xff]  }
  0x64   :  { %6638 = vmatprep.subr.bf16.mxu0 %v9868_v47  ;;  %7486 = vmatprep.subr.bf16.mxu1 %v9871_v48  ;;  %v9952_v47 = vld [vmem:[%s14760_s1 + $0x4e4] ss:$16 sps:$4 sm:$0xff]   ;;  %v9955_v48 = vld [vmem:[%s14760_s1 + $0x4ec] ss:$16 sps:$4 sm:$0xff]  }
  0x67   :  { %6639 = vmatpush1.bf16.msra.mxu0 %v9866_v49  ;;  %7487 = vmatpush1.bf16.msra.mxu1 %v9869_v50  ;;  %v9950_v49 = vld [vmem:[%s14760_s1 + $0x4e0] ss:$16 sps:$4 sm:$0xff]   ;;  %v9953_v50 = vld [vmem:[%s14760_s1 + $0x4e8] ss:$16 sps:$4 sm:$0xff]  }
  0x68   :  { %6640 = vmatprep.subr.bf16.mxu0 %v9874_v51  ;;  %7488 = vmatprep.subr.bf16.mxu1 %v9877_v52  ;;  %v9958_v51 = vld [vmem:[%s14760_s1 + $0x504] ss:$16 sps:$4 sm:$0xff]   ;;  %v9961_v52 = vld [vmem:[%s14760_s1 + $0x50c] ss:$16 sps:$4 sm:$0xff]  }
  0x6b   :  { %6641 = vmatpush1.bf16.msra.mxu0 %v9872_v53  ;;  %7489 = vmatpush1.bf16.msra.mxu1 %v9875_v54  ;;  %v9956_v53 = vld [vmem:[%s14760_s1 + $0x500] ss:$16 sps:$4 sm:$0xff]   ;;  %v9959_v54 = vld [vmem:[%s14760_s1 + $0x508] ss:$16 sps:$4 sm:$0xff]  }
  0x6c   :  { %6642 = vmatprep.subr.bf16.mxu0 %v9880_v55  ;;  %7490 = vmatprep.subr.bf16.mxu1 %v9883_v56  ;;  %v9964_v55 = vld [vmem:[%s14760_s1 + $0x524] ss:$16 sps:$4 sm:$0xff]   ;;  %v9967_v56 = vld [vmem:[%s14760_s1 + $0x52c] ss:$16 sps:$4 sm:$0xff]  }
  0x6f   :  { %6643 = vmatpush1.bf16.msra.mxu0 %v9878_v57  ;;  %7491 = vmatpush1.bf16.msra.mxu1 %v9881_v58  ;;  %v9962_v57 = vld [vmem:[%s14760_s1 + $0x520] ss:$16 sps:$4 sm:$0xff]   ;;  %v9965_v58 = vld [vmem:[%s14760_s1 + $0x528] ss:$16 sps:$4 sm:$0xff]  }
  0x70   :  { %6644 = vmatprep.subr.bf16.mxu0 %v9886_v59  ;;  %7492 = vmatprep.subr.bf16.mxu1 %v9889_v60  ;;  %v9970_v59 = vld [vmem:[%s14760_s1 + $0x544] ss:$16 sps:$4 sm:$0xff]   ;;  %v9973_v60 = vld [vmem:[%s14760_s1 + $0x54c] ss:$16 sps:$4 sm:$0xff]  }
  0x73   :  { %6645 = vmatpush1.bf16.msra.mxu0 %v9884_v61  ;;  %7493 = vmatpush1.bf16.msra.mxu1 %v9887_v62  ;;  %v9968_v61 = vld [vmem:[%s14760_s1 + $0x540] ss:$16 sps:$4 sm:$0xff]   ;;  %v9971_v62 = vld [vmem:[%s14760_s1 + $0x548] ss:$16 sps:$4 sm:$0xff]  }
  0x74   :  { %6646 = vmatprep.subr.bf16.mxu0 %v9892_v63  ;;  %7494 = vmatprep.subr.bf16.mxu1 %v9895_v0  ;;  %v9976_v63 = vld [vmem:[%s14760_s1 + $0x564] ss:$16 sps:$4 sm:$0xff]   ;;  %v9979_v0 = vld [vmem:[%s14760_s1 + $0x56c] ss:$16 sps:$4 sm:$0xff]  }
  0x77   :  { %6647 = vmatpush1.bf16.msra.mxu0 %v9890_v1  ;;  %7495 = vmatpush1.bf16.msra.mxu1 %v9893_v2  ;;  %v9974_v1 = vld [vmem:[%s14760_s1 + $0x560] ss:$16 sps:$4 sm:$0xff]   ;;  %v9977_v2 = vld [vmem:[%s14760_s1 + $0x568] ss:$16 sps:$4 sm:$0xff]  }
  0x78   :  { %6648 = vmatprep.subr.bf16.mxu0 %v9898_v3  ;;  %7496 = vmatprep.subr.bf16.mxu1 %v9901_v4  ;;  %v9982_v3 = vld [vmem:[%s14760_s1 + $0x584] ss:$16 sps:$4 sm:$0xff]   ;;  %v9985_v4 = vld [vmem:[%s14760_s1 + $0x58c] ss:$16 sps:$4 sm:$0xff]  }
  0x7b   :  { %6649 = vmatpush1.bf16.msra.mxu0 %v9896_v5  ;;  %7497 = vmatpush1.bf16.msra.mxu1 %v9899_v6  ;;  %v9980_v5 = vld [vmem:[%s14760_s1 + $0x580] ss:$16 sps:$4 sm:$0xff]   ;;  %v9983_v6 = vld [vmem:[%s14760_s1 + $0x588] ss:$16 sps:$4 sm:$0xff]  }
  0x7c   :  { %6650 = vmatprep.subr.bf16.mxu0 %v9904_v7  ;;  %7498 = vmatprep.subr.bf16.mxu1 %v9907_v8  ;;  %v9988_v7 = vld [vmem:[%s14760_s1 + $0x5a4] ss:$16 sps:$4 sm:$0xff]   ;;  %v9991_v8 = vld [vmem:[%s14760_s1 + $0x5ac] ss:$16 sps:$4 sm:$0xff]  }
  0x7f   :  { %6651 = vmatpush1.bf16.msra.mxu0 %v9902_v9  ;;  %7499 = vmatpush1.bf16.msra.mxu1 %v9905_v10  ;;  %v9986_v9 = vld [vmem:[%s14760_s1 + $0x5a0] ss:$16 sps:$4 sm:$0xff]   ;;  %v9989_v10 = vld [vmem:[%s14760_s1 + $0x5a8] ss:$16 sps:$4 sm:$0xff]  }
  0x80   :  { %6673 = vmatprep.subr.bf16.mxu0 %v9910_v11  ;;  %7521 = vmatprep.subr.bf16.mxu1 %v9913_v12  ;;  %v9994_v11 = vld [vmem:[%s14760_s1 + $0x5c4] ss:$16 sps:$4 sm:$0xff]   ;;  %v9997_v12 = vld [vmem:[%s14760_s1 + $0x5cc] ss:$16 sps:$4 sm:$0xff]  }
  0x82   :  { %6653 = vmatmul.mubr.bf16.vlgmr.msra.gmra.mrb[0].mxu0 %v8374_v15  ;;  %7501 = vmatmul.mubr.bf16.vlgmr.msra.gmra.mrb[0].mxu1 %v8374_v15  ;;  %v10000_v15 = vld [vmem:[%s14760_s1 + $0x5e4] ss:$16 sps:$4 sm:$0xff]  }
  0x83   :  { %6674 = vmatpush1.bf16.msra.mxu0 %v9908_v13  ;;  %7522 = vmatpush1.bf16.msra.mxu1 %v9911_v14  ;;  %v9992_v13 = vld [vmem:[%s14760_s1 + $0x5c0] ss:$16 sps:$4 sm:$0xff]   ;;  %v9995_v14 = vld [vmem:[%s14760_s1 + $0x5c8] ss:$16 sps:$4 sm:$0xff]  }
  0x84   :  { %6675 = vmatprep.subr.bf16.mxu0 %v9916_v18  ;;  %7523 = vmatprep.subr.bf16.mxu1 %v9919_v19  ;;  %v10001_v18 = vld [vmem:[%s14760_s1 + $0x5e8] ss:$16 sps:$4 sm:$0xff]   ;;  %v10006_v19 = vld [vmem:[%s14760_s1 + $0x604] ss:$16 sps:$4 sm:$0xff]  }
  0x85   :  { %6662 = vmatprep.mubr.bf16.mxu0 %v8407_v20  ;;  %7510 = vmatprep.mubr.bf16.mxu1 %v8407_v20  ;;  %v10009_v20 = vld [vmem:[%s14760_s1 + $0x60c] ss:$16 sps:$4 sm:$0xff]  }
  0x87   :  { %6676 = vmatpush1.bf16.msra.mxu0 %v9914_v21  ;;  %7524 = vmatpush1.bf16.msra.mxu1 %v9917_v22  ;;  %v51_v21 = vld [vmem:[%s14761_s0 + $0x110] sm:$0xff]  ;;  %v8376_v22 = vcombine.low %v11726_v25, %v11731_v27  ;;  %v10015_v27 = vld [vmem:[%s14760_s1 + $0x62c] ss:$16 sps:$4 sm:$0xff]  }
  0x88   :  { %6677 = vmatprep.subr.bf16.mxu0 %v9922_v23  ;;  %7525 = vmatprep.subr.bf16.mxu1 %v9925_v24  ;;  %v67_v23 = vld [vmem:[%s14761_s0 + $0x190] sm:$0xff] }
  0x89   :  { %v10004_v24 = vld [vmem:[%s14760_s1 + $0x600] ss:$16 sps:$4 sm:$0xff]   ;;  %v10012_v25 = vld [vmem:[%s14760_s1 + $0x624] ss:$16 sps:$4 sm:$0xff]  }
  0x8a   :  { %6663 = vmatmul.mubr.bf16.gmra.mrb[4].mxu0 %v8406_v26  ;;  %7511 = vmatmul.mubr.bf16.gmra.mrb[4].mxu1 %v8406_v26  ;;  %v10007_v26 = vld [vmem:[%s14760_s1 + $0x608] ss:$16 sps:$4 sm:$0xff]  }
  0x8b   :  { %6678 = vmatpush1.bf16.msra.mxu0 %v9920_v28  ;;  %7526 = vmatpush1.bf16.msra.mxu1 %v9923_v29  ;;  %v8409_v28 = vcombine.high %v51_v21, %v67_v23  ;;  %v10010_v29 = vld [vmem:[%s14760_s1 + $0x620] ss:$16 sps:$4 sm:$0xff]  }
  0x8c   :  { %6679 = vmatprep.subr.bf16.mxu0 %v9928_v30  ;;  %7527 = vmatprep.subr.bf16.mxu1 %v9931_v31  ;;  %v10013_v30 = vld [vmem:[%s14760_s1 + $0x628] ss:$16 sps:$4 sm:$0xff]   ;;  %v10018_v31 = vld [vmem:[%s14760_s1 + $0x644] ss:$16 sps:$4 sm:$0xff]  }
  0x8d   :  { %6705 = vmatprep.mubr.bf16.mxu0 %v8377_v32  ;;  %7553 = vmatprep.mubr.bf16.mxu1 %v8377_v32  ;;  %v10021_v32 = vld [vmem:[%s14760_s1 + $0x64c] ss:$16 sps:$4 sm:$0xff]  }
  0x8f   :  { %6680 = vmatpush1.bf16.msra.mxu0 %v9926_v33  ;;  %7528 = vmatpush1.bf16.msra.mxu1 %v9929_v34  ;;  %v11938_v33 = vld [vmem:[%s14761_s0 + $0x18] sm:$0xff]  ;;  %v8408_v34 = vcombine.low %v51_v21, %v67_v23  ;;  %v10088_v21 = vld [vmem:[%s14760_s1 + $0x7c0] ss:$16 sps:$4 sm:$0xff]   ;;  %v10096_v23 = vld [vmem:[%s14760_s1 + $0x7e4] ss:$16 sps:$4 sm:$0xff]  }
  0x90   :  { %6681 = vmatprep.subr.bf16.mxu0 %v9934_v35  ;;  %7529 = vmatprep.subr.bf16.mxu1 %v9937_v36  ;;  %v11943_v35 = vld [vmem:[%s14761_s0 + $0x98] sm:$0xff]  ;;  %v10016_v36 = vld [vmem:[%s14760_s1 + $0x640] ss:$16 sps:$4 sm:$0xff]  }
  0x93   :  { %6682 = vmatpush1.bf16.msra.mxu0 %v9932_v37  ;;  %7530 = vmatpush1.bf16.msra.mxu1 %v9935_v38  ;;  %v10019_v37 = vld [vmem:[%s14760_s1 + $0x648] ss:$16 sps:$4 sm:$0xff]   ;;  %v10024_v38 = vld [vmem:[%s14760_s1 + $0x664] ss:$16 sps:$4 sm:$0xff]  }
  0x94   :  { %6683 = vmatprep.subr.bf16.mxu0 %v9940_v39  ;;  %7531 = vmatprep.subr.bf16.mxu1 %v9943_v40  ;;  %v10027_v39 = vld [vmem:[%s14760_s1 + $0x66c] ss:$16 sps:$4 sm:$0xff]   ;;  %v8379_v40 = vcombine.high %v11938_v33, %v11943_v35 }
  0x97   :  { %6684 = vmatpush1.bf16.msra.mxu0 %v9938_v41  ;;  %7532 = vmatpush1.bf16.msra.mxu1 %v9941_v42  ;;  %v10022_v41 = vld [vmem:[%s14760_s1 + $0x660] ss:$16 sps:$4 sm:$0xff]   ;;  %v10025_v42 = vld [vmem:[%s14760_s1 + $0x668] ss:$16 sps:$4 sm:$0xff]  }
  0x98   :  { %6685 = vmatprep.subr.bf16.mxu0 %v9946_v43  ;;  %7533 = vmatprep.subr.bf16.mxu1 %v9949_v44  ;;  %v10030_v43 = vld [vmem:[%s14760_s1 + $0x684] ss:$16 sps:$4 sm:$0xff]   ;;  %v10033_v44 = vld [vmem:[%s14760_s1 + $0x68c] ss:$16 sps:$4 sm:$0xff]  }
  0x9b   :  { %6686 = vmatpush1.bf16.msra.mxu0 %v9944_v45  ;;  %7534 = vmatpush1.bf16.msra.mxu1 %v9947_v46  ;;  %v10028_v45 = vld [vmem:[%s14760_s1 + $0x680] ss:$16 sps:$4 sm:$0xff]   ;;  %v10031_v46 = vld [vmem:[%s14760_s1 + $0x688] ss:$16 sps:$4 sm:$0xff]  }
  0x9c   :  { %6687 = vmatprep.subr.bf16.mxu0 %v9952_v47  ;;  %7535 = vmatprep.subr.bf16.mxu1 %v9955_v48  ;;  %v10036_v47 = vld [vmem:[%s14760_s1 + $0x6a4] ss:$16 sps:$4 sm:$0xff]   ;;  %v10039_v48 = vld [vmem:[%s14760_s1 + $0x6ac] ss:$16 sps:$4 sm:$0xff]  }
  0x9f   :  { %6688 = vmatpush1.bf16.msra.mxu0 %v9950_v49  ;;  %7536 = vmatpush1.bf16.msra.mxu1 %v9953_v50  ;;  %v10034_v49 = vld [vmem:[%s14760_s1 + $0x6a0] ss:$16 sps:$4 sm:$0xff]   ;;  %v10037_v50 = vld [vmem:[%s14760_s1 + $0x6a8] ss:$16 sps:$4 sm:$0xff]  }
  0xa0   :  { %6689 = vmatprep.subr.bf16.mxu0 %v9958_v51  ;;  %7537 = vmatprep.subr.bf16.mxu1 %v9961_v52  ;;  %v10042_v51 = vld [vmem:[%s14760_s1 + $0x6c4] ss:$16 sps:$4 sm:$0xff]   ;;  %v10045_v52 = vld [vmem:[%s14760_s1 + $0x6cc] ss:$16 sps:$4 sm:$0xff]  }
  0xa3   :  { %6690 = vmatpush1.bf16.msra.mxu0 %v9956_v53  ;;  %7538 = vmatpush1.bf16.msra.mxu1 %v9959_v54  ;;  %v10040_v53 = vld [vmem:[%s14760_s1 + $0x6c0] ss:$16 sps:$4 sm:$0xff]   ;;  %v10043_v54 = vld [vmem:[%s14760_s1 + $0x6c8] ss:$16 sps:$4 sm:$0xff]  }
  0xa4   :  { %6691 = vmatprep.subr.bf16.mxu0 %v9964_v55  ;;  %7539 = vmatprep.subr.bf16.mxu1 %v9967_v56  ;;  %v10048_v55 = vld [vmem:[%s14760_s1 + $0x6e4] ss:$16 sps:$4 sm:$0xff]   ;;  %v10051_v56 = vld [vmem:[%s14760_s1 + $0x6ec] ss:$16 sps:$4 sm:$0xff]  }
  0xa7   :  { %6692 = vmatpush1.bf16.msra.mxu0 %v9962_v57  ;;  %7540 = vmatpush1.bf16.msra.mxu1 %v9965_v58  ;;  %v10046_v57 = vld [vmem:[%s14760_s1 + $0x6e0] ss:$16 sps:$4 sm:$0xff]   ;;  %v10049_v58 = vld [vmem:[%s14760_s1 + $0x6e8] ss:$16 sps:$4 sm:$0xff]  }
  0xa8   :  { %6693 = vmatprep.subr.bf16.mxu0 %v9970_v59  ;;  %7541 = vmatprep.subr.bf16.mxu1 %v9973_v60  ;;  %v10054_v59 = vld [vmem:[%s14760_s1 + $0x704] ss:$16 sps:$4 sm:$0xff]   ;;  %v10057_v60 = vld [vmem:[%s14760_s1 + $0x70c] ss:$16 sps:$4 sm:$0xff]  }
  0xab   :  { %6694 = vmatpush1.bf16.msra.mxu0 %v9968_v61  ;;  %7542 = vmatpush1.bf16.msra.mxu1 %v9971_v62  ;;  %v10052_v61 = vld [vmem:[%s14760_s1 + $0x700] ss:$16 sps:$4 sm:$0xff]   ;;  %v10055_v62 = vld [vmem:[%s14760_s1 + $0x708] ss:$16 sps:$4 sm:$0xff]  }
  0xac   :  { %6695 = vmatprep.subr.bf16.mxu0 %v9976_v63  ;;  %7543 = vmatprep.subr.bf16.mxu1 %v9979_v0  ;;  %v10060_v63 = vld [vmem:[%s14760_s1 + $0x724] ss:$16 sps:$4 sm:$0xff]   ;;  %v10063_v0 = vld [vmem:[%s14760_s1 + $0x72c] ss:$16 sps:$4 sm:$0xff]  }
  0xaf   :  { %6696 = vmatpush1.bf16.msra.mxu0 %v9974_v1  ;;  %7544 = vmatpush1.bf16.msra.mxu1 %v9977_v2  ;;  %v10058_v1 = vld [vmem:[%s14760_s1 + $0x720] ss:$16 sps:$4 sm:$0xff]   ;;  %v10061_v2 = vld [vmem:[%s14760_s1 + $0x728] ss:$16 sps:$4 sm:$0xff]  }
  0xb0   :  { %6697 = vmatprep.subr.bf16.mxu0 %v9982_v3  ;;  %7545 = vmatprep.subr.bf16.mxu1 %v9985_v4  ;;  %v10066_v3 = vld [vmem:[%s14760_s1 + $0x744] ss:$16 sps:$4 sm:$0xff]   ;;  %v10069_v4 = vld [vmem:[%s14760_s1 + $0x74c] ss:$16 sps:$4 sm:$0xff]  }
  0xb3   :  { %6698 = vmatpush1.bf16.msra.mxu0 %v9980_v5  ;;  %7546 = vmatpush1.bf16.msra.mxu1 %v9983_v6  ;;  %v10064_v5 = vld [vmem:[%s14760_s1 + $0x740] ss:$16 sps:$4 sm:$0xff]   ;;  %v10067_v6 = vld [vmem:[%s14760_s1 + $0x748] ss:$16 sps:$4 sm:$0xff]  }
  0xb4   :  { %6699 = vmatprep.subr.bf16.mxu0 %v9988_v7  ;;  %7547 = vmatprep.subr.bf16.mxu1 %v9991_v8  ;;  %v10072_v7 = vld [vmem:[%s14760_s1 + $0x764] ss:$16 sps:$4 sm:$0xff]   ;;  %v10075_v8 = vld [vmem:[%s14760_s1 + $0x76c] ss:$16 sps:$4 sm:$0xff]  }
  0xb7   :  { %6700 = vmatpush1.bf16.msra.mxu0 %v9986_v9  ;;  %7548 = vmatpush1.bf16.msra.mxu1 %v9989_v10  ;;  %v10070_v9 = vld [vmem:[%s14760_s1 + $0x760] ss:$16 sps:$4 sm:$0xff]   ;;  %v10073_v10 = vld [vmem:[%s14760_s1 + $0x768] ss:$16 sps:$4 sm:$0xff]  }
  0xb8   :  { %6701 = vmatprep.subr.bf16.mxu0 %v9994_v11  ;;  %7549 = vmatprep.subr.bf16.mxu1 %v9997_v12  ;;  %v10078_v11 = vld [vmem:[%s14760_s1 + $0x784] ss:$16 sps:$4 sm:$0xff]   ;;  %v10081_v12 = vld [vmem:[%s14760_s1 + $0x78c] ss:$16 sps:$4 sm:$0xff]  }
  0xbb   :  { %6702 = vmatpush1.bf16.msra.mxu0 %v9992_v13  ;;  %7550 = vmatpush1.bf16.msra.mxu1 %v9995_v14  ;;  %v10076_v13 = vld [vmem:[%s14760_s1 + $0x780] ss:$16 sps:$4 sm:$0xff]   ;;  %v10079_v14 = vld [vmem:[%s14760_s1 + $0x788] ss:$16 sps:$4 sm:$0xff]  }
  0xbc   :  { %6703 = vmatprep.subr.bf16.mxu0 %v10000_v15  ;;  %7551 = vmatprep.subr.bf16.mxu1 %v10003_v16  ;;  %v10084_v15 = vld [vmem:[%s14760_s1 + $0x7a4] ss:$16 sps:$4 sm:$0xff]   ;;  %v10087_v16 = vld [vmem:[%s14760_s1 + $0x7ac] ss:$16 sps:$4 sm:$0xff]  }
  0xbf   :  { %6704 = vmatpush1.bf16.msra.mxu0 %v9998_v17  ;;  %7552 = vmatpush1.bf16.msra.mxu1 %v10001_v18  ;;  %v10082_v17 = vld [vmem:[%s14760_s1 + $0x7a0] ss:$16 sps:$4 sm:$0xff]   ;;  %v10085_v18 = vld [vmem:[%s14760_s1 + $0x7a8] ss:$16 sps:$4 sm:$0xff]  }
  0xc0   :  { %6726 = vmatprep.subr.bf16.mxu0 %v10006_v19  ;;  %7574 = vmatprep.subr.bf16.mxu1 %v10009_v20  ;;  %v10090_v19 = vld [vmem:[%s14760_s1 + $0x7c4] ss:$16 sps:$4 sm:$0xff]   ;;  %v10093_v20 = vld [vmem:[%s14760_s1 + $0x7cc] ss:$16 sps:$4 sm:$0xff]  }
  0xc2   :  { %6706 = vmatmul.mubr.bf16.vlgmr.msra.gmra.mrb[0].mxu0 %v8376_v22  ;;  %7554 = vmatmul.mubr.bf16.vlgmr.msra.gmra.mrb[0].mxu1 %v8376_v22  ;;  %v10091_v22 = vld [vmem:[%s14760_s1 + $0x7c8] ss:$16 sps:$4 sm:$0xff]  }
  0xc3   :  { %6727 = vmatpush1.bf16.msra.mxu0 %v10004_v24  ;;  %7575 = vmatpush1.bf16.msra.mxu1 %v10007_v26  ;;  %v10099_v24 = vld [vmem:[%s14760_s1 + $0x7ec] ss:$16 sps:$4 sm:$0xff]   ;;  %v10094_v26 = vld [vmem:[%s14760_s1 + $0x7e0] ss:$16 sps:$4 sm:$0xff]  }
  0xc4   :  { %6728 = vmatprep.subr.bf16.mxu0 %v10012_v25  ;;  %7576 = vmatprep.subr.bf16.mxu1 %v10015_v27  ;;  %v10097_v25 = vld [vmem:[%s14760_s1 + $0x7e8] ss:$16 sps:$4 sm:$0xff]   ;;  %v10102_v27 = vld [vmem:[%s14760_s1 + $0x804] ss:$16 sps:$4 sm:$0xff]  }
  0xc5   :  { %6715 = vmatprep.mubr.bf16.mxu0 %v8409_v28  ;;  %7563 = vmatprep.mubr.bf16.mxu1 %v8409_v28  ;;  %v10105_v28 = vld [vmem:[%s14760_s1 + $0x80c] ss:$16 sps:$4 sm:$0xff]  }
  0xc7   :  { %6729 = vmatpush1.bf16.msra.mxu0 %v10010_v29  ;;  %7577 = vmatpush1.bf16.msra.mxu1 %v10013_v30  ;;  %v52_v29 = vld [vmem:[%s14761_s0 + $0x118] sm:$0xff]  ;;  %v8378_v30 = vcombine.low %v11938_v33, %v11943_v35 }
  0xc8   :  { %6730 = vmatprep.subr.bf16.mxu0 %v10018_v31  ;;  %7578 = vmatprep.subr.bf16.mxu1 %v10021_v32  ;;  %v68_v31 = vld [vmem:[%s14761_s0 + $0x198] sm:$0xff]  ;;  %v10100_v32 = vld [vmem:[%s14760_s1 + $0x800] ss:$16 sps:$4 sm:$0xff]  }
  0xc9   :  { %v10111_v33 = vld [vmem:[%s14760_s1 + $0x82c] ss:$16 sps:$4 sm:$0xff]   ;;  %v8411_v35 = vcombine.high %v52_v29, %v68_v31 }
  0xca   :  { %6716 = vmatmul.mubr.bf16.gmra.mrb[4].mxu0 %v8408_v34  ;;  %7564 = vmatmul.mubr.bf16.gmra.mrb[4].mxu1 %v8408_v34  ;;  %v10103_v34 = vld [vmem:[%s14760_s1 + $0x808] ss:$16 sps:$4 sm:$0xff]  }
  0xcb   :  { %6731 = vmatpush1.bf16.msra.mxu0 %v10016_v36  ;;  %7579 = vmatpush1.bf16.msra.mxu1 %v10019_v37  ;;  %v10108_v36 = vld [vmem:[%s14760_s1 + $0x824] ss:$16 sps:$4 sm:$0xff]   ;;  %v10106_v37 = vld [vmem:[%s14760_s1 + $0x820] ss:$16 sps:$4 sm:$0xff]  }
  0xcc   :  { %6732 = vmatprep.subr.bf16.mxu0 %v10024_v38  ;;  %7580 = vmatprep.subr.bf16.mxu1 %v10027_v39  ;;  %v10109_v38 = vld [vmem:[%s14760_s1 + $0x828] ss:$16 sps:$4 sm:$0xff]   ;;  %v10114_v39 = vld [vmem:[%s14760_s1 + $0x844] ss:$16 sps:$4 sm:$0xff]  }
  0xcd   :  { %6758 = vmatprep.mubr.bf16.mxu0 %v8379_v40  ;;  %7606 = vmatprep.mubr.bf16.mxu1 %v8379_v40  ;;  %v10117_v40 = vld [vmem:[%s14760_s1 + $0x84c] ss:$16 sps:$4 sm:$0xff]  }
  0xcf   :  { %6733 = vmatpush1.bf16.msra.mxu0 %v10022_v41  ;;  %7581 = vmatpush1.bf16.msra.mxu1 %v10025_v42  ;;  %v12150_v41 = vld [vmem:[%s14761_s0 + $0x20] sm:$0xff]  ;;  %v8410_v42 = vcombine.low %v52_v29, %v68_v31 }
  0xd0   :  { %6734 = vmatprep.subr.bf16.mxu0 %v10030_v43  ;;  %7582 = vmatprep.subr.bf16.mxu1 %v10033_v44  ;;  %v12155_v43 = vld [vmem:[%s14761_s0 + $0xa0] sm:$0xff] }
  0xd1   :  { %v10112_v44 = vld [vmem:[%s14760_s1 + $0x840] ss:$16 sps:$4 sm:$0xff]   ;;  %v10192_v31 = vld [vmem:[%s14760_s1 + $0x9e4] ss:$16 sps:$4 sm:$0xff]  }
  0xd2   :  { %v10184_v29 = vld [vmem:[%s14760_s1 + $0x9c0] ss:$16 sps:$4 sm:$0xff]  }
  0xd3   :  { %6735 = vmatpush1.bf16.msra.mxu0 %v10028_v45  ;;  %7583 = vmatpush1.bf16.msra.mxu1 %v10031_v46  ;;  %v10115_v45 = vld [vmem:[%s14760_s1 + $0x848] ss:$16 sps:$4 sm:$0xff]   ;;  %v10120_v46 = vld [vmem:[%s14760_s1 + $0x864] ss:$16 sps:$4 sm:$0xff]  }
  0xd4   :  { %6736 = vmatprep.subr.bf16.mxu0 %v10036_v47  ;;  %7584 = vmatprep.subr.bf16.mxu1 %v10039_v48  ;;  %v10123_v47 = vld [vmem:[%s14760_s1 + $0x86c] ss:$16 sps:$4 sm:$0xff]   ;;  %v8381_v48 = vcombine.high %v12150_v41, %v12155_v43 }
  0xd7   :  { %6737 = vmatpush1.bf16.msra.mxu0 %v10034_v49  ;;  %7585 = vmatpush1.bf16.msra.mxu1 %v10037_v50  ;;  %v10118_v49 = vld [vmem:[%s14760_s1 + $0x860] ss:$16 sps:$4 sm:$0xff]   ;;  %v10121_v50 = vld [vmem:[%s14760_s1 + $0x868] ss:$16 sps:$4 sm:$0xff]  }
  0xd8   :  { %6738 = vmatprep.subr.bf16.mxu0 %v10042_v51  ;;  %7586 = vmatprep.subr.bf16.mxu1 %v10045_v52  ;;  %v10126_v51 = vld [vmem:[%s14760_s1 + $0x884] ss:$16 sps:$4 sm:$0xff]   ;;  %v10129_v52 = vld [vmem:[%s14760_s1 + $0x88c] ss:$16 sps:$4 sm:$0xff]  }
  0xdb   :  { %6739 = vmatpush1.bf16.msra.mxu0 %v10040_v53  ;;  %7587 = vmatpush1.bf16.msra.mxu1 %v10043_v54  ;;  %v10124_v53 = vld [vmem:[%s14760_s1 + $0x880] ss:$16 sps:$4 sm:$0xff]   ;;  %v10127_v54 = vld [vmem:[%s14760_s1 + $0x888] ss:$16 sps:$4 sm:$0xff]  }
  0xdc   :  { %6740 = vmatprep.subr.bf16.mxu0 %v10048_v55  ;;  %7588 = vmatprep.subr.bf16.mxu1 %v10051_v56  ;;  %v10132_v55 = vld [vmem:[%s14760_s1 + $0x8a4] ss:$16 sps:$4 sm:$0xff]   ;;  %v10135_v56 = vld [vmem:[%s14760_s1 + $0x8ac] ss:$16 sps:$4 sm:$0xff]  }
  0xdf   :  { %6741 = vmatpush1.bf16.msra.mxu0 %v10046_v57  ;;  %7589 = vmatpush1.bf16.msra.mxu1 %v10049_v58  ;;  %v10130_v57 = vld [vmem:[%s14760_s1 + $0x8a0] ss:$16 sps:$4 sm:$0xff]   ;;  %v10133_v58 = vld [vmem:[%s14760_s1 + $0x8a8] ss:$16 sps:$4 sm:$0xff]  }
  0xe0   :  { %6742 = vmatprep.subr.bf16.mxu0 %v10054_v59  ;;  %7590 = vmatprep.subr.bf16.mxu1 %v10057_v60  ;;  %v10138_v59 = vld [vmem:[%s14760_s1 + $0x8c4] ss:$16 sps:$4 sm:$0xff]   ;;  %v10141_v60 = vld [vmem:[%s14760_s1 + $0x8cc] ss:$16 sps:$4 sm:$0xff]  }
  0xe3   :  { %6743 = vmatpush1.bf16.msra.mxu0 %v10052_v61  ;;  %7591 = vmatpush1.bf16.msra.mxu1 %v10055_v62  ;;  %v10136_v61 = vld [vmem:[%s14760_s1 + $0x8c0] ss:$16 sps:$4 sm:$0xff]   ;;  %v10139_v62 = vld [vmem:[%s14760_s1 + $0x8c8] ss:$16 sps:$4 sm:$0xff]  }
  0xe4   :  { %6744 = vmatprep.subr.bf16.mxu0 %v10060_v63  ;;  %7592 = vmatprep.subr.bf16.mxu1 %v10063_v0  ;;  %v10144_v63 = vld [vmem:[%s14760_s1 + $0x8e4] ss:$16 sps:$4 sm:$0xff]   ;;  %v10147_v0 = vld [vmem:[%s14760_s1 + $0x8ec] ss:$16 sps:$4 sm:$0xff]  }
  0xe7   :  { %6745 = vmatpush1.bf16.msra.mxu0 %v10058_v1  ;;  %7593 = vmatpush1.bf16.msra.mxu1 %v10061_v2  ;;  %v10142_v1 = vld [vmem:[%s14760_s1 + $0x8e0] ss:$16 sps:$4 sm:$0xff]   ;;  %v10145_v2 = vld [vmem:[%s14760_s1 + $0x8e8] ss:$16 sps:$4 sm:$0xff]  }
  0xe8   :  { %6746 = vmatprep.subr.bf16.mxu0 %v10066_v3  ;;  %7594 = vmatprep.subr.bf16.mxu1 %v10069_v4  ;;  %v10150_v3 = vld [vmem:[%s14760_s1 + $0x904] ss:$16 sps:$4 sm:$0xff]   ;;  %v10153_v4 = vld [vmem:[%s14760_s1 + $0x90c] ss:$16 sps:$4 sm:$0xff]  }
  0xeb   :  { %6747 = vmatpush1.bf16.msra.mxu0 %v10064_v5  ;;  %7595 = vmatpush1.bf16.msra.mxu1 %v10067_v6  ;;  %v10148_v5 = vld [vmem:[%s14760_s1 + $0x900] ss:$16 sps:$4 sm:$0xff]   ;;  %v10151_v6 = vld [vmem:[%s14760_s1 + $0x908] ss:$16 sps:$4 sm:$0xff]  }
  0xec   :  { %6748 = vmatprep.subr.bf16.mxu0 %v10072_v7  ;;  %7596 = vmatprep.subr.bf16.mxu1 %v10075_v8  ;;  %v10156_v7 = vld [vmem:[%s14760_s1 + $0x924] ss:$16 sps:$4 sm:$0xff]   ;;  %v10159_v8 = vld [vmem:[%s14760_s1 + $0x92c] ss:$16 sps:$4 sm:$0xff]  }
  0xef   :  { %6749 = vmatpush1.bf16.msra.mxu0 %v10070_v9  ;;  %7597 = vmatpush1.bf16.msra.mxu1 %v10073_v10  ;;  %v10154_v9 = vld [vmem:[%s14760_s1 + $0x920] ss:$16 sps:$4 sm:$0xff]   ;;  %v10157_v10 = vld [vmem:[%s14760_s1 + $0x928] ss:$16 sps:$4 sm:$0xff]  }
  0xf0   :  { %6750 = vmatprep.subr.bf16.mxu0 %v10078_v11  ;;  %7598 = vmatprep.subr.bf16.mxu1 %v10081_v12  ;;  %v10162_v11 = vld [vmem:[%s14760_s1 + $0x944] ss:$16 sps:$4 sm:$0xff]   ;;  %v10165_v12 = vld [vmem:[%s14760_s1 + $0x94c] ss:$16 sps:$4 sm:$0xff]  }
  0xf3   :  { %6751 = vmatpush1.bf16.msra.mxu0 %v10076_v13  ;;  %7599 = vmatpush1.bf16.msra.mxu1 %v10079_v14  ;;  %v10160_v13 = vld [vmem:[%s14760_s1 + $0x940] ss:$16 sps:$4 sm:$0xff]   ;;  %v10163_v14 = vld [vmem:[%s14760_s1 + $0x948] ss:$16 sps:$4 sm:$0xff]  }
  0xf4   :  { %6752 = vmatprep.subr.bf16.mxu0 %v10084_v15  ;;  %7600 = vmatprep.subr.bf16.mxu1 %v10087_v16  ;;  %v10168_v15 = vld [vmem:[%s14760_s1 + $0x964] ss:$16 sps:$4 sm:$0xff]   ;;  %v10171_v16 = vld [vmem:[%s14760_s1 + $0x96c] ss:$16 sps:$4 sm:$0xff]  }
  0xf7   :  { %6753 = vmatpush1.bf16.msra.mxu0 %v10082_v17  ;;  %7601 = vmatpush1.bf16.msra.mxu1 %v10085_v18  ;;  %v10166_v17 = vld [vmem:[%s14760_s1 + $0x960] ss:$16 sps:$4 sm:$0xff]   ;;  %v10169_v18 = vld [vmem:[%s14760_s1 + $0x968] ss:$16 sps:$4 sm:$0xff]  }
  0xf8   :  { %6754 = vmatprep.subr.bf16.mxu0 %v10090_v19  ;;  %7602 = vmatprep.subr.bf16.mxu1 %v10093_v20  ;;  %v10174_v19 = vld [vmem:[%s14760_s1 + $0x984] ss:$16 sps:$4 sm:$0xff]   ;;  %v10177_v20 = vld [vmem:[%s14760_s1 + $0x98c] ss:$16 sps:$4 sm:$0xff]  }
  0xfb   :  { %6755 = vmatpush1.bf16.msra.mxu0 %v10088_v21  ;;  %7603 = vmatpush1.bf16.msra.mxu1 %v10091_v22  ;;  %v10172_v21 = vld [vmem:[%s14760_s1 + $0x980] ss:$16 sps:$4 sm:$0xff]   ;;  %v10175_v22 = vld [vmem:[%s14760_s1 + $0x988] ss:$16 sps:$4 sm:$0xff]  }
  0xfc   :  { %6756 = vmatprep.subr.bf16.mxu0 %v10096_v23  ;;  %7604 = vmatprep.subr.bf16.mxu1 %v10099_v24  ;;  %v10180_v23 = vld [vmem:[%s14760_s1 + $0x9a4] ss:$16 sps:$4 sm:$0xff]   ;;  %v10183_v24 = vld [vmem:[%s14760_s1 + $0x9ac] ss:$16 sps:$4 sm:$0xff]  }
  0xff   :  { %6757 = vmatpush1.bf16.msra.mxu0 %v10094_v26  ;;  %7605 = vmatpush1.bf16.msra.mxu1 %v10097_v25  ;;  %v10178_v26 = vld [vmem:[%s14760_s1 + $0x9a0] ss:$16 sps:$4 sm:$0xff]   ;;  %v10181_v25 = vld [vmem:[%s14760_s1 + $0x9a8] ss:$16 sps:$4 sm:$0xff]  }
 0x100   :  { %6779 = vmatprep.subr.bf16.mxu0 %v10102_v27  ;;  %7627 = vmatprep.subr.bf16.mxu1 %v10105_v28  ;;  %v10186_v27 = vld [vmem:[%s14760_s1 + $0x9c4] ss:$16 sps:$4 sm:$0xff]   ;;  %v10189_v28 = vld [vmem:[%s14760_s1 + $0x9cc] ss:$16 sps:$4 sm:$0xff]  }
 0x102   :  { %6759 = vmatmul.mubr.bf16.vlgmr.msra.gmra.mrb[0].mxu0 %v8378_v30  ;;  %7607 = vmatmul.mubr.bf16.vlgmr.msra.gmra.mrb[0].mxu1 %v8378_v30  ;;  %v10187_v30 = vld [vmem:[%s14760_s1 + $0x9c8] ss:$16 sps:$4 sm:$0xff]  }
 0x103   :  { %6780 = vmatpush1.bf16.msra.mxu0 %v10100_v32  ;;  %7628 = vmatpush1.bf16.msra.mxu1 %v10103_v34  ;;  %v10195_v32 = vld [vmem:[%s14760_s1 + $0x9ec] ss:$16 sps:$4 sm:$0xff]   ;;  %v10190_v34 = vld [vmem:[%s14760_s1 + $0x9e0] ss:$16 sps:$4 sm:$0xff]  }
 0x104   :  { %6781 = vmatprep.subr.bf16.mxu0 %v10108_v36  ;;  %7629 = vmatprep.subr.bf16.mxu1 %v10111_v33  ;;  %v10193_v36 = vld [vmem:[%s14760_s1 + $0x9e8] ss:$16 sps:$4 sm:$0xff]   ;;  %v10198_v33 = vld [vmem:[%s14760_s1 + $0xa04] ss:$16 sps:$4 sm:$0xff]  }
 0x105   :  { %6768 = vmatprep.mubr.bf16.mxu0 %v8411_v35  ;;  %7616 = vmatprep.mubr.bf16.mxu1 %v8411_v35  ;;  %v10201_v35 = vld [vmem:[%s14760_s1 + $0xa0c] ss:$16 sps:$4 sm:$0xff]  }
 0x107   :  { %6782 = vmatpush1.bf16.msra.mxu0 %v10106_v37  ;;  %7630 = vmatpush1.bf16.msra.mxu1 %v10109_v38  ;;  %v53_v37 = vld [vmem:[%s14761_s0 + $0x120] sm:$0xff] }
 0x108   :  { %6783 = vmatprep.subr.bf16.mxu0 %v10114_v39  ;;  %7631 = vmatprep.subr.bf16.mxu1 %v10117_v40  ;;  %v69_v38 = vld [vmem:[%s14761_s0 + $0x1a0] sm:$0xff]  ;;  %v8380_v39 = vcombine.low %v12150_v41, %v12155_v43  ;;  %v10207_v41 = vld [vmem:[%s14760_s1 + $0xa2c] ss:$16 sps:$4 sm:$0xff]  }
 0x109   :  { %v10196_v40 = vld [vmem:[%s14760_s1 + $0xa00] ss:$16 sps:$4 sm:$0xff]  }
 0x10a   :  { %6769 = vmatmul.mubr.bf16.gmra.mrb[4].mxu0 %v8410_v42  ;;  %7617 = vmatmul.mubr.bf16.gmra.mrb[4].mxu1 %v8410_v42  ;;  %v10199_v42 = vld [vmem:[%s14760_s1 + $0xa08] ss:$16 sps:$4 sm:$0xff]   ;;  %v10202_v43 = vld [vmem:[%s14760_s1 + $0xa20] ss:$16 sps:$4 sm:$0xff]  }
 0x10b   :  { %6784 = vmatpush1.bf16.msra.mxu0 %v10112_v44  ;;  %7632 = vmatpush1.bf16.msra.mxu1 %v10115_v45  ;;  %v10204_v44 = vld [vmem:[%s14760_s1 + $0xa24] ss:$16 sps:$4 sm:$0xff]   ;;  %v10205_v45 = vld [vmem:[%s14760_s1 + $0xa28] ss:$16 sps:$4 sm:$0xff]  }
 0x10c   :  { %6785 = vmatprep.subr.bf16.mxu0 %v10120_v46  ;;  %7633 = vmatprep.subr.bf16.mxu1 %v10123_v47  ;;  %v8413_v46 = vcombine.high %v53_v37, %v69_v38  ;;  %v10210_v47 = vld [vmem:[%s14760_s1 + $0xa44] ss:$16 sps:$4 sm:$0xff]  }
 0x10d   :  { %6811 = vmatprep.mubr.bf16.mxu0 %v8381_v48  ;;  %7659 = vmatprep.mubr.bf16.mxu1 %v8381_v48  ;;  %v10213_v48 = vld [vmem:[%s14760_s1 + $0xa4c] ss:$16 sps:$4 sm:$0xff]  }
 0x10f   :  { %6786 = vmatpush1.bf16.msra.mxu0 %v10118_v49  ;;  %7634 = vmatpush1.bf16.msra.mxu1 %v10121_v50  ;;  %v12362_v49 = vld [vmem:[%s14761_s0 + $0x28] sm:$0xff] }
 0x110   :  { %6787 = vmatprep.subr.bf16.mxu0 %v10126_v51  ;;  %7635 = vmatprep.subr.bf16.mxu1 %v10129_v52  ;;  %v12367_v50 = vld [vmem:[%s14761_s0 + $0xa8] sm:$0xff]  ;;  %v8412_v51 = vcombine.low %v53_v37, %v69_v38  ;;  %v10208_v52 = vld [vmem:[%s14760_s1 + $0xa40] ss:$16 sps:$4 sm:$0xff]  }
 0x111   :  { %v10280_v37 = vld [vmem:[%s14760_s1 + $0xbc0] ss:$16 sps:$4 sm:$0xff]   ;;  %v10283_v38 = vld [vmem:[%s14760_s1 + $0xbc8] ss:$16 sps:$4 sm:$0xff]  }
 0x113   :  { %6788 = vmatpush1.bf16.msra.mxu0 %v10124_v53  ;;  %7636 = vmatpush1.bf16.msra.mxu1 %v10127_v54  ;;  %v10211_v53 = vld [vmem:[%s14760_s1 + $0xa48] ss:$16 sps:$4 sm:$0xff]   ;;  %v10216_v54 = vld [vmem:[%s14760_s1 + $0xa64] ss:$16 sps:$4 sm:$0xff]  }
 0x114   :  { %6789 = vmatprep.subr.bf16.mxu0 %v10132_v55  ;;  %7637 = vmatprep.subr.bf16.mxu1 %v10135_v56  ;;  %v10219_v55 = vld [vmem:[%s14760_s1 + $0xa6c] ss:$16 sps:$4 sm:$0xff]   ;;  %v8383_v56 = vcombine.high %v12362_v49, %v12367_v50 }
 0x117   :  { %6790 = vmatpush1.bf16.msra.mxu0 %v10130_v57  ;;  %7638 = vmatpush1.bf16.msra.mxu1 %v10133_v58  ;;  %v10214_v57 = vld [vmem:[%s14760_s1 + $0xa60] ss:$16 sps:$4 sm:$0xff]   ;;  %v10217_v58 = vld [vmem:[%s14760_s1 + $0xa68] ss:$16 sps:$4 sm:$0xff]  }
 0x118   :  { %6791 = vmatprep.subr.bf16.mxu0 %v10138_v59  ;;  %7639 = vmatprep.subr.bf16.mxu1 %v10141_v60  ;;  %v10222_v59 = vld [vmem:[%s14760_s1 + $0xa84] ss:$16 sps:$4 sm:$0xff]   ;;  %v10225_v60 = vld [vmem:[%s14760_s1 + $0xa8c] ss:$16 sps:$4 sm:$0xff]  }
 0x11b   :  { %6792 = vmatpush1.bf16.msra.mxu0 %v10136_v61  ;;  %7640 = vmatpush1.bf16.msra.mxu1 %v10139_v62  ;;  %v10220_v61 = vld [vmem:[%s14760_s1 + $0xa80] ss:$16 sps:$4 sm:$0xff]   ;;  %v10223_v62 = vld [vmem:[%s14760_s1 + $0xa88] ss:$16 sps:$4 sm:$0xff]  }
 0x11c   :  { %6793 = vmatprep.subr.bf16.mxu0 %v10144_v63  ;;  %7641 = vmatprep.subr.bf16.mxu1 %v10147_v0  ;;  %v10228_v63 = vld [vmem:[%s14760_s1 + $0xaa4] ss:$16 sps:$4 sm:$0xff]   ;;  %v10231_v0 = vld [vmem:[%s14760_s1 + $0xaac] ss:$16 sps:$4 sm:$0xff]  }
 0x11f   :  { %6794 = vmatpush1.bf16.msra.mxu0 %v10142_v1  ;;  %7642 = vmatpush1.bf16.msra.mxu1 %v10145_v2  ;;  %v10226_v1 = vld [vmem:[%s14760_s1 + $0xaa0] ss:$16 sps:$4 sm:$0xff]   ;;  %v10229_v2 = vld [vmem:[%s14760_s1 + $0xaa8] ss:$16 sps:$4 sm:$0xff]  }
 0x120   :  { %6795 = vmatprep.subr.bf16.mxu0 %v10150_v3  ;;  %7643 = vmatprep.subr.bf16.mxu1 %v10153_v4  ;;  %v10234_v3 = vld [vmem:[%s14760_s1 + $0xac4] ss:$16 sps:$4 sm:$0xff]   ;;  %v10237_v4 = vld [vmem:[%s14760_s1 + $0xacc] ss:$16 sps:$4 sm:$0xff]  }
 0x123   :  { %6796 = vmatpush1.bf16.msra.mxu0 %v10148_v5  ;;  %7644 = vmatpush1.bf16.msra.mxu1 %v10151_v6  ;;  %v10232_v5 = vld [vmem:[%s14760_s1 + $0xac0] ss:$16 sps:$4 sm:$0xff]   ;;  %v10235_v6 = vld [vmem:[%s14760_s1 + $0xac8] ss:$16 sps:$4 sm:$0xff]  }
 0x124   :  { %6797 = vmatprep.subr.bf16.mxu0 %v10156_v7  ;;  %7645 = vmatprep.subr.bf16.mxu1 %v10159_v8  ;;  %v10240_v7 = vld [vmem:[%s14760_s1 + $0xae4] ss:$16 sps:$4 sm:$0xff]   ;;  %v10243_v8 = vld [vmem:[%s14760_s1 + $0xaec] ss:$16 sps:$4 sm:$0xff]  }
 0x127   :  { %6798 = vmatpush1.bf16.msra.mxu0 %v10154_v9  ;;  %7646 = vmatpush1.bf16.msra.mxu1 %v10157_v10  ;;  %v10238_v9 = vld [vmem:[%s14760_s1 + $0xae0] ss:$16 sps:$4 sm:$0xff]   ;;  %v10241_v10 = vld [vmem:[%s14760_s1 + $0xae8] ss:$16 sps:$4 sm:$0xff]  }
 0x128   :  { %6799 = vmatprep.subr.bf16.mxu0 %v10162_v11  ;;  %7647 = vmatprep.subr.bf16.mxu1 %v10165_v12  ;;  %v10246_v11 = vld [vmem:[%s14760_s1 + $0xb04] ss:$16 sps:$4 sm:$0xff]   ;;  %v10249_v12 = vld [vmem:[%s14760_s1 + $0xb0c] ss:$16 sps:$4 sm:$0xff]  }
 0x12b   :  { %6800 = vmatpush1.bf16.msra.mxu0 %v10160_v13  ;;  %7648 = vmatpush1.bf16.msra.mxu1 %v10163_v14  ;;  %v10244_v13 = vld [vmem:[%s14760_s1 + $0xb00] ss:$16 sps:$4 sm:$0xff]   ;;  %v10247_v14 = vld [vmem:[%s14760_s1 + $0xb08] ss:$16 sps:$4 sm:$0xff]  }
 0x12c   :  { %6801 = vmatprep.subr.bf16.mxu0 %v10168_v15  ;;  %7649 = vmatprep.subr.bf16.mxu1 %v10171_v16  ;;  %v10252_v15 = vld [vmem:[%s14760_s1 + $0xb24] ss:$16 sps:$4 sm:$0xff]   ;;  %v10255_v16 = vld [vmem:[%s14760_s1 + $0xb2c] ss:$16 sps:$4 sm:$0xff]  }
 0x12f   :  { %6802 = vmatpush1.bf16.msra.mxu0 %v10166_v17  ;;  %7650 = vmatpush1.bf16.msra.mxu1 %v10169_v18  ;;  %v10250_v17 = vld [vmem:[%s14760_s1 + $0xb20] ss:$16 sps:$4 sm:$0xff]   ;;  %v10253_v18 = vld [vmem:[%s14760_s1 + $0xb28] ss:$16 sps:$4 sm:$0xff]  }
 0x130   :  { %6803 = vmatprep.subr.bf16.mxu0 %v10174_v19  ;;  %7651 = vmatprep.subr.bf16.mxu1 %v10177_v20  ;;  %v10258_v19 = vld [vmem:[%s14760_s1 + $0xb44] ss:$16 sps:$4 sm:$0xff]   ;;  %v10261_v20 = vld [vmem:[%s14760_s1 + $0xb4c] ss:$16 sps:$4 sm:$0xff]  }
 0x133   :  { %6804 = vmatpush1.bf16.msra.mxu0 %v10172_v21  ;;  %7652 = vmatpush1.bf16.msra.mxu1 %v10175_v22  ;;  %v10256_v21 = vld [vmem:[%s14760_s1 + $0xb40] ss:$16 sps:$4 sm:$0xff]   ;;  %v10259_v22 = vld [vmem:[%s14760_s1 + $0xb48] ss:$16 sps:$4 sm:$0xff]  }
 0x134   :  { %6805 = vmatprep.subr.bf16.mxu0 %v10180_v23  ;;  %7653 = vmatprep.subr.bf16.mxu1 %v10183_v24  ;;  %v10264_v23 = vld [vmem:[%s14760_s1 + $0xb64] ss:$16 sps:$4 sm:$0xff]   ;;  %v10267_v24 = vld [vmem:[%s14760_s1 + $0xb6c] ss:$16 sps:$4 sm:$0xff]  }
 0x137   :  { %6806 = vmatpush1.bf16.msra.mxu0 %v10178_v26  ;;  %7654 = vmatpush1.bf16.msra.mxu1 %v10181_v25  ;;  %v10262_v26 = vld [vmem:[%s14760_s1 + $0xb60] ss:$16 sps:$4 sm:$0xff]   ;;  %v10265_v25 = vld [vmem:[%s14760_s1 + $0xb68] ss:$16 sps:$4 sm:$0xff]  }
 0x138   :  { %6807 = vmatprep.subr.bf16.mxu0 %v10186_v27  ;;  %7655 = vmatprep.subr.bf16.mxu1 %v10189_v28  ;;  %v10270_v27 = vld [vmem:[%s14760_s1 + $0xb84] ss:$16 sps:$4 sm:$0xff]   ;;  %v10273_v28 = vld [vmem:[%s14760_s1 + $0xb8c] ss:$16 sps:$4 sm:$0xff]  }
 0x13b   :  { %6808 = vmatpush1.bf16.msra.mxu0 %v10184_v29  ;;  %7656 = vmatpush1.bf16.msra.mxu1 %v10187_v30  ;;  %v10268_v29 = vld [vmem:[%s14760_s1 + $0xb80] ss:$16 sps:$4 sm:$0xff]   ;;  %v10271_v30 = vld [vmem:[%s14760_s1 + $0xb88] ss:$16 sps:$4 sm:$0xff]  }
 0x13c   :  { %6809 = vmatprep.subr.bf16.mxu0 %v10192_v31  ;;  %7657 = vmatprep.subr.bf16.mxu1 %v10195_v32  ;;  %v10276_v31 = vld [vmem:[%s14760_s1 + $0xba4] ss:$16 sps:$4 sm:$0xff]   ;;  %v10279_v32 = vld [vmem:[%s14760_s1 + $0xbac] ss:$16 sps:$4 sm:$0xff]  }
 0x13f   :  { %6810 = vmatpush1.bf16.msra.mxu0 %v10190_v34  ;;  %7658 = vmatpush1.bf16.msra.mxu1 %v10193_v36  ;;  %v10274_v34 = vld [vmem:[%s14760_s1 + $0xba0] ss:$16 sps:$4 sm:$0xff]   ;;  %v10277_v36 = vld [vmem:[%s14760_s1 + $0xba8] ss:$16 sps:$4 sm:$0xff]  }
 0x140   :  { %6832 = vmatprep.subr.bf16.mxu0 %v10198_v33  ;;  %7680 = vmatprep.subr.bf16.mxu1 %v10201_v35  ;;  %v10282_v33 = vld [vmem:[%s14760_s1 + $0xbc4] ss:$16 sps:$4 sm:$0xff]   ;;  %v10285_v35 = vld [vmem:[%s14760_s1 + $0xbcc] ss:$16 sps:$4 sm:$0xff]  }
 0x142   :  { %6812 = vmatmul.mubr.bf16.vlgmr.msra.gmra.mrb[0].mxu0 %v8380_v39  ;;  %7660 = vmatmul.mubr.bf16.vlgmr.msra.gmra.mrb[0].mxu1 %v8380_v39  ;;  %v10288_v39 = vld [vmem:[%s14760_s1 + $0xbe4] ss:$16 sps:$4 sm:$0xff]  }
 0x143   :  { %6833 = vmatpush1.bf16.msra.mxu0 %v10196_v40  ;;  %7681 = vmatpush1.bf16.msra.mxu1 %v10199_v42  ;;  %v10291_v40 = vld [vmem:[%s14760_s1 + $0xbec] ss:$16 sps:$4 sm:$0xff]   ;;  %v10286_v42 = vld [vmem:[%s14760_s1 + $0xbe0] ss:$16 sps:$4 sm:$0xff]  }
 0x144   :  { %6834 = vmatprep.subr.bf16.mxu0 %v10204_v44  ;;  %7682 = vmatprep.subr.bf16.mxu1 %v10207_v41  ;;  %v10289_v44 = vld [vmem:[%s14760_s1 + $0xbe8] ss:$16 sps:$4 sm:$0xff]   ;;  %v10294_v41 = vld [vmem:[%s14760_s1 + $0xc04] ss:$16 sps:$4 sm:$0xff]  }
 0x145   :  { %6821 = vmatprep.mubr.bf16.mxu0 %v8413_v46  ;;  %7669 = vmatprep.mubr.bf16.mxu1 %v8413_v46  ;;  %v70_v46 = vld [vmem:[%s14761_s0 + $0x1a8] sm:$0xff] }
 0x147   :  { %6835 = vmatpush1.bf16.msra.mxu0 %v10202_v43  ;;  %7683 = vmatpush1.bf16.msra.mxu1 %v10205_v45  ;;  %v10297_v43 = vld [vmem:[%s14760_s1 + $0xc0c] ss:$16 sps:$4 sm:$0xff]  }
 0x148   :  { %6836 = vmatprep.subr.bf16.mxu0 %v10210_v47  ;;  %7684 = vmatprep.subr.bf16.mxu1 %v10213_v48  ;;  %v54_v45 = vld [vmem:[%s14761_s0 + $0x128] sm:$0xff]  ;;  %v8382_v47 = vcombine.low %v12362_v49, %v12367_v50  ;;  %v10292_v48 = vld [vmem:[%s14760_s1 + $0xc00] ss:$16 sps:$4 sm:$0xff]  }
 0x149   :  { %v10303_v49 = vld [vmem:[%s14760_s1 + $0xc2c] ss:$16 sps:$4 sm:$0xff]   ;;  %v10298_v50 = vld [vmem:[%s14760_s1 + $0xc20] ss:$16 sps:$4 sm:$0xff]  }
 0x14a   :  { %6822 = vmatmul.mubr.bf16.gmra.mrb[4].mxu0 %v8412_v51  ;;  %7670 = vmatmul.mubr.bf16.gmra.mrb[4].mxu1 %v8412_v51  ;;  %v10295_v51 = vld [vmem:[%s14760_s1 + $0xc08] ss:$16 sps:$4 sm:$0xff]  }
 0x14b   :  { %6837 = vmatpush1.bf16.msra.mxu0 %v10208_v52  ;;  %7685 = vmatpush1.bf16.msra.mxu1 %v10211_v53  ;;  %v10300_v52 = vld [vmem:[%s14760_s1 + $0xc24] ss:$16 sps:$4 sm:$0xff]   ;;  %v10301_v53 = vld [vmem:[%s14760_s1 + $0xc28] ss:$16 sps:$4 sm:$0xff]  }
 0x14c   :  { %6838 = vmatprep.subr.bf16.mxu0 %v10216_v54  ;;  %7686 = vmatprep.subr.bf16.mxu1 %v10219_v55  ;;  %v8415_v54 = vcombine.high %v54_v45, %v70_v46  ;;  %v10306_v55 = vld [vmem:[%s14760_s1 + $0xc44] ss:$16 sps:$4 sm:$0xff]  }
 0x14d   :  { %6864 = vmatprep.mubr.bf16.mxu0 %v8383_v56  ;;  %7712 = vmatprep.mubr.bf16.mxu1 %v8383_v56  ;;  %v10309_v56 = vld [vmem:[%s14760_s1 + $0xc4c] ss:$16 sps:$4 sm:$0xff]  }
 0x14f   :  { %6839 = vmatpush1.bf16.msra.mxu0 %v10214_v57  ;;  %7687 = vmatpush1.bf16.msra.mxu1 %v10217_v58  ;;  %v12574_v57 = vld [vmem:[%s14761_s0 + $0x30] sm:$0xff] }
 0x150   :  { %6840 = vmatprep.subr.bf16.mxu0 %v10222_v59  ;;  %7688 = vmatprep.subr.bf16.mxu1 %v10225_v60  ;;  %v12579_v58 = vld [vmem:[%s14761_s0 + $0xb0] sm:$0xff]  ;;  %v8414_v59 = vcombine.low %v54_v45, %v70_v46  ;;  %v10379_v46 = vld [vmem:[%s14760_s1 + $0xdc8] ss:$16 sps:$4 sm:$0xff]  }
 0x151   :  { %v10304_v60 = vld [vmem:[%s14760_s1 + $0xc40] ss:$16 sps:$4 sm:$0xff]  }
 0x152   :  { %v10376_v45 = vld [vmem:[%s14760_s1 + $0xdc0] ss:$16 sps:$4 sm:$0xff]  }
 0x153   :  { %6841 = vmatpush1.bf16.msra.mxu0 %v10220_v61  ;;  %7689 = vmatpush1.bf16.msra.mxu1 %v10223_v62  ;;  %v10307_v61 = vld [vmem:[%s14760_s1 + $0xc48] ss:$16 sps:$4 sm:$0xff]   ;;  %v10312_v62 = vld [vmem:[%s14760_s1 + $0xc64] ss:$16 sps:$4 sm:$0xff]  }
 0x154   :  { %6842 = vmatprep.subr.bf16.mxu0 %v10228_v63  ;;  %7690 = vmatprep.subr.bf16.mxu1 %v10231_v0  ;;  %v10315_v63 = vld [vmem:[%s14760_s1 + $0xc6c] ss:$16 sps:$4 sm:$0xff]   ;;  %v8385_v0 = vcombine.high %v12574_v57, %v12579_v58 }
 0x157   :  { %6843 = vmatpush1.bf16.msra.mxu0 %v10226_v1  ;;  %7691 = vmatpush1.bf16.msra.mxu1 %v10229_v2  ;;  %v10310_v1 = vld [vmem:[%s14760_s1 + $0xc60] ss:$16 sps:$4 sm:$0xff]   ;;  %v10313_v2 = vld [vmem:[%s14760_s1 + $0xc68] ss:$16 sps:$4 sm:$0xff]  }
 0x158   :  { %6844 = vmatprep.subr.bf16.mxu0 %v10234_v3  ;;  %7692 = vmatprep.subr.bf16.mxu1 %v10237_v4  ;;  %v10318_v3 = vld [vmem:[%s14760_s1 + $0xc84] ss:$16 sps:$4 sm:$0xff]   ;;  %v10321_v4 = vld [vmem:[%s14760_s1 + $0xc8c] ss:$16 sps:$4 sm:$0xff]  }
 0x15b   :  { %6845 = vmatpush1.bf16.msra.mxu0 %v10232_v5  ;;  %7693 = vmatpush1.bf16.msra.mxu1 %v10235_v6  ;;  %v10316_v5 = vld [vmem:[%s14760_s1 + $0xc80] ss:$16 sps:$4 sm:$0xff]   ;;  %v10319_v6 = vld [vmem:[%s14760_s1 + $0xc88] ss:$16 sps:$4 sm:$0xff]  }
 0x15c   :  { %6846 = vmatprep.subr.bf16.mxu0 %v10240_v7  ;;  %7694 = vmatprep.subr.bf16.mxu1 %v10243_v8  ;;  %v10324_v7 = vld [vmem:[%s14760_s1 + $0xca4] ss:$16 sps:$4 sm:$0xff]   ;;  %v10327_v8 = vld [vmem:[%s14760_s1 + $0xcac] ss:$16 sps:$4 sm:$0xff]  }
 0x15f   :  { %6847 = vmatpush1.bf16.msra.mxu0 %v10238_v9  ;;  %7695 = vmatpush1.bf16.msra.mxu1 %v10241_v10  ;;  %v10322_v9 = vld [vmem:[%s14760_s1 + $0xca0] ss:$16 sps:$4 sm:$0xff]   ;;  %v10325_v10 = vld [vmem:[%s14760_s1 + $0xca8] ss:$16 sps:$4 sm:$0xff]  }
 0x160   :  { %6848 = vmatprep.subr.bf16.mxu0 %v10246_v11  ;;  %7696 = vmatprep.subr.bf16.mxu1 %v10249_v12  ;;  %v10330_v11 = vld [vmem:[%s14760_s1 + $0xcc4] ss:$16 sps:$4 sm:$0xff]   ;;  %v10333_v12 = vld [vmem:[%s14760_s1 + $0xccc] ss:$16 sps:$4 sm:$0xff]  }
 0x163   :  { %6849 = vmatpush1.bf16.msra.mxu0 %v10244_v13  ;;  %7697 = vmatpush1.bf16.msra.mxu1 %v10247_v14  ;;  %v10328_v13 = vld [vmem:[%s14760_s1 + $0xcc0] ss:$16 sps:$4 sm:$0xff]   ;;  %v10331_v14 = vld [vmem:[%s14760_s1 + $0xcc8] ss:$16 sps:$4 sm:$0xff]  }
 0x164   :  { %6850 = vmatprep.subr.bf16.mxu0 %v10252_v15  ;;  %7698 = vmatprep.subr.bf16.mxu1 %v10255_v16  ;;  %v10336_v15 = vld [vmem:[%s14760_s1 + $0xce4] ss:$16 sps:$4 sm:$0xff]   ;;  %v10339_v16 = vld [vmem:[%s14760_s1 + $0xcec] ss:$16 sps:$4 sm:$0xff]  }
 0x167   :  { %6851 = vmatpush1.bf16.msra.mxu0 %v10250_v17  ;;  %7699 = vmatpush1.bf16.msra.mxu1 %v10253_v18  ;;  %v10334_v17 = vld [vmem:[%s14760_s1 + $0xce0] ss:$16 sps:$4 sm:$0xff]   ;;  %v10337_v18 = vld [vmem:[%s14760_s1 + $0xce8] ss:$16 sps:$4 sm:$0xff]  }
 0x168   :  { %6852 = vmatprep.subr.bf16.mxu0 %v10258_v19  ;;  %7700 = vmatprep.subr.bf16.mxu1 %v10261_v20  ;;  %v10342_v19 = vld [vmem:[%s14760_s1 + $0xd04] ss:$16 sps:$4 sm:$0xff]   ;;  %v10345_v20 = vld [vmem:[%s14760_s1 + $0xd0c] ss:$16 sps:$4 sm:$0xff]  }
 0x16b   :  { %6853 = vmatpush1.bf16.msra.mxu0 %v10256_v21  ;;  %7701 = vmatpush1.bf16.msra.mxu1 %v10259_v22  ;;  %v10340_v21 = vld [vmem:[%s14760_s1 + $0xd00] ss:$16 sps:$4 sm:$0xff]   ;;  %v10343_v22 = vld [vmem:[%s14760_s1 + $0xd08] ss:$16 sps:$4 sm:$0xff]  }
 0x16c   :  { %6854 = vmatprep.subr.bf16.mxu0 %v10264_v23  ;;  %7702 = vmatprep.subr.bf16.mxu1 %v10267_v24  ;;  %v10348_v23 = vld [vmem:[%s14760_s1 + $0xd24] ss:$16 sps:$4 sm:$0xff]   ;;  %v10351_v24 = vld [vmem:[%s14760_s1 + $0xd2c] ss:$16 sps:$4 sm:$0xff]  }
 0x16f   :  { %6855 = vmatpush1.bf16.msra.mxu0 %v10262_v26  ;;  %7703 = vmatpush1.bf16.msra.mxu1 %v10265_v25  ;;  %v10346_v26 = vld [vmem:[%s14760_s1 + $0xd20] ss:$16 sps:$4 sm:$0xff]   ;;  %v10349_v25 = vld [vmem:[%s14760_s1 + $0xd28] ss:$16 sps:$4 sm:$0xff]  }
 0x170   :  { %6856 = vmatprep.subr.bf16.mxu0 %v10270_v27  ;;  %7704 = vmatprep.subr.bf16.mxu1 %v10273_v28  ;;  %v10354_v27 = vld [vmem:[%s14760_s1 + $0xd44] ss:$16 sps:$4 sm:$0xff]   ;;  %v10357_v28 = vld [vmem:[%s14760_s1 + $0xd4c] ss:$16 sps:$4 sm:$0xff]  }
 0x173   :  { %6857 = vmatpush1.bf16.msra.mxu0 %v10268_v29  ;;  %7705 = vmatpush1.bf16.msra.mxu1 %v10271_v30  ;;  %v10352_v29 = vld [vmem:[%s14760_s1 + $0xd40] ss:$16 sps:$4 sm:$0xff]   ;;  %v10355_v30 = vld [vmem:[%s14760_s1 + $0xd48] ss:$16 sps:$4 sm:$0xff]  }
 0x174   :  { %6858 = vmatprep.subr.bf16.mxu0 %v10276_v31  ;;  %7706 = vmatprep.subr.bf16.mxu1 %v10279_v32  ;;  %v10360_v31 = vld [vmem:[%s14760_s1 + $0xd64] ss:$16 sps:$4 sm:$0xff]   ;;  %v10363_v32 = vld [vmem:[%s14760_s1 + $0xd6c] ss:$16 sps:$4 sm:$0xff]  }
 0x177   :  { %6859 = vmatpush1.bf16.msra.mxu0 %v10274_v34  ;;  %7707 = vmatpush1.bf16.msra.mxu1 %v10277_v36  ;;  %v10358_v34 = vld [vmem:[%s14760_s1 + $0xd60] ss:$16 sps:$4 sm:$0xff]   ;;  %v10361_v36 = vld [vmem:[%s14760_s1 + $0xd68] ss:$16 sps:$4 sm:$0xff]  }
 0x178   :  { %6860 = vmatprep.subr.bf16.mxu0 %v10282_v33  ;;  %7708 = vmatprep.subr.bf16.mxu1 %v10285_v35  ;;  %v10366_v33 = vld [vmem:[%s14760_s1 + $0xd84] ss:$16 sps:$4 sm:$0xff]   ;;  %v10369_v35 = vld [vmem:[%s14760_s1 + $0xd8c] ss:$16 sps:$4 sm:$0xff]  }
 0x17b   :  { %6861 = vmatpush1.bf16.msra.mxu0 %v10280_v37  ;;  %7709 = vmatpush1.bf16.msra.mxu1 %v10283_v38  ;;  %v10364_v37 = vld [vmem:[%s14760_s1 + $0xd80] ss:$16 sps:$4 sm:$0xff]   ;;  %v10367_v38 = vld [vmem:[%s14760_s1 + $0xd88] ss:$16 sps:$4 sm:$0xff]  }
 0x17c   :  { %6862 = vmatprep.subr.bf16.mxu0 %v10288_v39  ;;  %7710 = vmatprep.subr.bf16.mxu1 %v10291_v40  ;;  %v10372_v39 = vld [vmem:[%s14760_s1 + $0xda4] ss:$16 sps:$4 sm:$0xff]   ;;  %v10375_v40 = vld [vmem:[%s14760_s1 + $0xdac] ss:$16 sps:$4 sm:$0xff]  }
 0x17f   :  { %6863 = vmatpush1.bf16.msra.mxu0 %v10286_v42  ;;  %7711 = vmatpush1.bf16.msra.mxu1 %v10289_v44  ;;  %v10370_v42 = vld [vmem:[%s14760_s1 + $0xda0] ss:$16 sps:$4 sm:$0xff]   ;;  %v10373_v44 = vld [vmem:[%s14760_s1 + $0xda8] ss:$16 sps:$4 sm:$0xff]  }
 0x180   :  { %6885 = vmatprep.subr.bf16.mxu0 %v10294_v41  ;;  %7733 = vmatprep.subr.bf16.mxu1 %v10297_v43  ;;  %v10378_v41 = vld [vmem:[%s14760_s1 + $0xdc4] ss:$16 sps:$4 sm:$0xff]   ;;  %v10381_v43 = vld [vmem:[%s14760_s1 + $0xdcc] ss:$16 sps:$4 sm:$0xff]  }
 0x182   :  { %6865 = vmatmul.mubr.bf16.vlgmr.msra.gmra.mrb[0].mxu0 %v8382_v47  ;;  %7713 = vmatmul.mubr.bf16.vlgmr.msra.gmra.mrb[0].mxu1 %v8382_v47  ;;  %v10384_v47 = vld [vmem:[%s14760_s1 + $0xde4] ss:$16 sps:$4 sm:$0xff]  }
 0x183   :  { %6886 = vmatpush1.bf16.msra.mxu0 %v10292_v48  ;;  %7734 = vmatpush1.bf16.msra.mxu1 %v10295_v51  ;;  %v10387_v48 = vld [vmem:[%s14760_s1 + $0xdec] ss:$16 sps:$4 sm:$0xff]   ;;  %v10382_v51 = vld [vmem:[%s14760_s1 + $0xde0] ss:$16 sps:$4 sm:$0xff]  }
 0x184   :  { %6887 = vmatprep.subr.bf16.mxu0 %v10300_v52  ;;  %7735 = vmatprep.subr.bf16.mxu1 %v10303_v49  ;;  %v10385_v52 = vld [vmem:[%s14760_s1 + $0xde8] ss:$16 sps:$4 sm:$0xff]   ;;  %v10390_v49 = vld [vmem:[%s14760_s1 + $0xe04] ss:$16 sps:$4 sm:$0xff]  }
 0x185   :  { %6874 = vmatprep.mubr.bf16.mxu0 %v8415_v54  ;;  %7722 = vmatprep.mubr.bf16.mxu1 %v8415_v54  ;;  %v71_v54 = vld [vmem:[%s14761_s0 + $0x1b0] sm:$0xff] }
 0x187   :  { %6888 = vmatpush1.bf16.msra.mxu0 %v10298_v50  ;;  %7736 = vmatpush1.bf16.msra.mxu1 %v10301_v53  ;;  %v10393_v50 = vld [vmem:[%s14760_s1 + $0xe0c] ss:$16 sps:$4 sm:$0xff]   ;;  %v55_v53 = vld [vmem:[%s14761_s0 + $0x130] sm:$0xff] }
 0x188   :  { %6889 = vmatprep.subr.bf16.mxu0 %v10306_v55  ;;  %7737 = vmatprep.subr.bf16.mxu1 %v10309_v56  ;;  %v8384_v55 = vcombine.low %v12574_v57, %v12579_v58  ;;  %v10388_v56 = vld [vmem:[%s14760_s1 + $0xe00] ss:$16 sps:$4 sm:$0xff]   ;;  %v10399_v57 = vld [vmem:[%s14760_s1 + $0xe2c] ss:$16 sps:$4 sm:$0xff]  }
 0x189   :  { %v10394_v58 = vld [vmem:[%s14760_s1 + $0xe20] ss:$16 sps:$4 sm:$0xff]  }
 0x18a   :  { %6875 = vmatmul.mubr.bf16.gmra.mrb[4].mxu0 %v8414_v59  ;;  %7723 = vmatmul.mubr.bf16.gmra.mrb[4].mxu1 %v8414_v59  ;;  %v10391_v59 = vld [vmem:[%s14760_s1 + $0xe08] ss:$16 sps:$4 sm:$0xff]  }
 0x18b   :  { %6890 = vmatpush1.bf16.msra.mxu0 %v10304_v60  ;;  %7738 = vmatpush1.bf16.msra.mxu1 %v10307_v61  ;;  %v10396_v60 = vld [vmem:[%s14760_s1 + $0xe24] ss:$16 sps:$4 sm:$0xff]   ;;  %v10397_v61 = vld [vmem:[%s14760_s1 + $0xe28] ss:$16 sps:$4 sm:$0xff]  }
 0x18c   :  { %6891 = vmatprep.subr.bf16.mxu0 %v10312_v62  ;;  %7739 = vmatprep.subr.bf16.mxu1 %v10315_v63  ;;  %v8417_v62 = vcombine.high %v55_v53, %v71_v54  ;;  %v10402_v63 = vld [vmem:[%s14760_s1 + $0xe44] ss:$16 sps:$4 sm:$0xff]  }
 0x18d   :  { %6917 = vmatprep.mubr.bf16.mxu0 %v8385_v0  ;;  %7765 = vmatprep.mubr.bf16.mxu1 %v8385_v0  ;;  %v10405_v0 = vld [vmem:[%s14760_s1 + $0xe4c] ss:$16 sps:$4 sm:$0xff]  }
 0x18f   :  { %6892 = vmatpush1.bf16.msra.mxu0 %v10310_v1  ;;  %7740 = vmatpush1.bf16.msra.mxu1 %v10313_v2  ;;  %v12786_v1 = vld [vmem:[%s14761_s0 + $0x38] sm:$0xff] }
 0x190   :  { %6893 = vmatprep.subr.bf16.mxu0 %v10318_v3  ;;  %7741 = vmatprep.subr.bf16.mxu1 %v10321_v4  ;;  %v12791_v2 = vld [vmem:[%s14761_s0 + $0xb8] sm:$0xff]  ;;  %v8416_v3 = vcombine.low %v55_v53, %v71_v54  ;;  %v10400_v4 = vld [vmem:[%s14760_s1 + $0xe40] ss:$16 sps:$4 sm:$0xff]  }
 0x191   :  { %v10472_v53 = vld [vmem:[%s14760_s1 + $0xfc0] ss:$16 sps:$4 sm:$0xff]   ;;  %v10475_v54 = vld [vmem:[%s14760_s1 + $0xfc8] ss:$16 sps:$4 sm:$0xff]  }
 0x193   :  { %6894 = vmatpush1.bf16.msra.mxu0 %v10316_v5  ;;  %7742 = vmatpush1.bf16.msra.mxu1 %v10319_v6  ;;  %v10403_v5 = vld [vmem:[%s14760_s1 + $0xe48] ss:$16 sps:$4 sm:$0xff]   ;;  %v10408_v6 = vld [vmem:[%s14760_s1 + $0xe64] ss:$16 sps:$4 sm:$0xff]  }
 0x194   :  { %6895 = vmatprep.subr.bf16.mxu0 %v10324_v7  ;;  %7743 = vmatprep.subr.bf16.mxu1 %v10327_v8  ;;  %v10411_v7 = vld [vmem:[%s14760_s1 + $0xe6c] ss:$16 sps:$4 sm:$0xff]   ;;  %v8387_v8 = vcombine.high %v12786_v1, %v12791_v2 }
 0x197   :  { %6896 = vmatpush1.bf16.msra.mxu0 %v10322_v9  ;;  %7744 = vmatpush1.bf16.msra.mxu1 %v10325_v10  ;;  %v10406_v9 = vld [vmem:[%s14760_s1 + $0xe60] ss:$16 sps:$4 sm:$0xff]   ;;  %v10409_v10 = vld [vmem:[%s14760_s1 + $0xe68] ss:$16 sps:$4 sm:$0xff]  }
 0x198   :  { %6897 = vmatprep.subr.bf16.mxu0 %v10330_v11  ;;  %7745 = vmatprep.subr.bf16.mxu1 %v10333_v12  ;;  %v10414_v11 = vld [vmem:[%s14760_s1 + $0xe84] ss:$16 sps:$4 sm:$0xff]   ;;  %v10417_v12 = vld [vmem:[%s14760_s1 + $0xe8c] ss:$16 sps:$4 sm:$0xff]  }
 0x19b   :  { %6898 = vmatpush1.bf16.msra.mxu0 %v10328_v13  ;;  %7746 = vmatpush1.bf16.msra.mxu1 %v10331_v14  ;;  %v10412_v13 = vld [vmem:[%s14760_s1 + $0xe80] ss:$16 sps:$4 sm:$0xff]   ;;  %v10415_v14 = vld [vmem:[%s14760_s1 + $0xe88] ss:$16 sps:$4 sm:$0xff]  }
 0x19c   :  { %6899 = vmatprep.subr.bf16.mxu0 %v10336_v15  ;;  %7747 = vmatprep.subr.bf16.mxu1 %v10339_v16  ;;  %v10420_v15 = vld [vmem:[%s14760_s1 + $0xea4] ss:$16 sps:$4 sm:$0xff]   ;;  %v10423_v16 = vld [vmem:[%s14760_s1 + $0xeac] ss:$16 sps:$4 sm:$0xff]  }
 0x19f   :  { %6900 = vmatpush1.bf16.msra.mxu0 %v10334_v17  ;;  %7748 = vmatpush1.bf16.msra.mxu1 %v10337_v18  ;;  %v10418_v17 = vld [vmem:[%s14760_s1 + $0xea0] ss:$16 sps:$4 sm:$0xff]   ;;  %v10421_v18 = vld [vmem:[%s14760_s1 + $0xea8] ss:$16 sps:$4 sm:$0xff]  }
 0x1a0   :  { %6901 = vmatprep.subr.bf16.mxu0 %v10342_v19  ;;  %7749 = vmatprep.subr.bf16.mxu1 %v10345_v20  ;;  %v10426_v19 = vld [vmem:[%s14760_s1 + $0xec4] ss:$16 sps:$4 sm:$0xff]   ;;  %v10429_v20 = vld [vmem:[%s14760_s1 + $0xecc] ss:$16 sps:$4 sm:$0xff]  }
 0x1a3   :  { %6902 = vmatpush1.bf16.msra.mxu0 %v10340_v21  ;;  %7750 = vmatpush1.bf16.msra.mxu1 %v10343_v22  ;;  %v10424_v21 = vld [vmem:[%s14760_s1 + $0xec0] ss:$16 sps:$4 sm:$0xff]   ;;  %v10427_v22 = vld [vmem:[%s14760_s1 + $0xec8] ss:$16 sps:$4 sm:$0xff]  }
 0x1a4   :  { %6903 = vmatprep.subr.bf16.mxu0 %v10348_v23  ;;  %7751 = vmatprep.subr.bf16.mxu1 %v10351_v24  ;;  %v10432_v23 = vld [vmem:[%s14760_s1 + $0xee4] ss:$16 sps:$4 sm:$0xff]   ;;  %v10435_v24 = vld [vmem:[%s14760_s1 + $0xeec] ss:$16 sps:$4 sm:$0xff]  }
 0x1a7   :  { %6904 = vmatpush1.bf16.msra.mxu0 %v10346_v26  ;;  %7752 = vmatpush1.bf16.msra.mxu1 %v10349_v25  ;;  %v10430_v26 = vld [vmem:[%s14760_s1 + $0xee0] ss:$16 sps:$4 sm:$0xff]   ;;  %v10433_v25 = vld [vmem:[%s14760_s1 + $0xee8] ss:$16 sps:$4 sm:$0xff]  }
 0x1a8   :  { %6905 = vmatprep.subr.bf16.mxu0 %v10354_v27  ;;  %7753 = vmatprep.subr.bf16.mxu1 %v10357_v28  ;;  %v10438_v27 = vld [vmem:[%s14760_s1 + $0xf04] ss:$16 sps:$4 sm:$0xff]   ;;  %v10441_v28 = vld [vmem:[%s14760_s1 + $0xf0c] ss:$16 sps:$4 sm:$0xff]  }
 0x1ab   :  { %6906 = vmatpush1.bf16.msra.mxu0 %v10352_v29  ;;  %7754 = vmatpush1.bf16.msra.mxu1 %v10355_v30  ;;  %v10436_v29 = vld [vmem:[%s14760_s1 + $0xf00] ss:$16 sps:$4 sm:$0xff]   ;;  %v10439_v30 = vld [vmem:[%s14760_s1 + $0xf08] ss:$16 sps:$4 sm:$0xff]  }
 0x1ac   :  { %6907 = vmatprep.subr.bf16.mxu0 %v10360_v31  ;;  %7755 = vmatprep.subr.bf16.mxu1 %v10363_v32  ;;  %v10444_v31 = vld [vmem:[%s14760_s1 + $0xf24] ss:$16 sps:$4 sm:$0xff]   ;;  %v10447_v32 = vld [vmem:[%s14760_s1 + $0xf2c] ss:$16 sps:$4 sm:$0xff]  }
 0x1af   :  { %6908 = vmatpush1.bf16.msra.mxu0 %v10358_v34  ;;  %7756 = vmatpush1.bf16.msra.mxu1 %v10361_v36  ;;  %v10442_v34 = vld [vmem:[%s14760_s1 + $0xf20] ss:$16 sps:$4 sm:$0xff]   ;;  %v10445_v36 = vld [vmem:[%s14760_s1 + $0xf28] ss:$16 sps:$4 sm:$0xff]  }
 0x1b0   :  { %6909 = vmatprep.subr.bf16.mxu0 %v10366_v33  ;;  %7757 = vmatprep.subr.bf16.mxu1 %v10369_v35  ;;  %v10450_v33 = vld [vmem:[%s14760_s1 + $0xf44] ss:$16 sps:$4 sm:$0xff]   ;;  %v10453_v35 = vld [vmem:[%s14760_s1 + $0xf4c] ss:$16 sps:$4 sm:$0xff]  }
 0x1b3   :  { %6910 = vmatpush1.bf16.msra.mxu0 %v10364_v37  ;;  %7758 = vmatpush1.bf16.msra.mxu1 %v10367_v38  ;;  %v10448_v37 = vld [vmem:[%s14760_s1 + $0xf40] ss:$16 sps:$4 sm:$0xff]   ;;  %v10451_v38 = vld [vmem:[%s14760_s1 + $0xf48] ss:$16 sps:$4 sm:$0xff]  }
 0x1b4   :  { %6911 = vmatprep.subr.bf16.mxu0 %v10372_v39  ;;  %7759 = vmatprep.subr.bf16.mxu1 %v10375_v40  ;;  %v10456_v39 = vld [vmem:[%s14760_s1 + $0xf64] ss:$16 sps:$4 sm:$0xff]   ;;  %v10459_v40 = vld [vmem:[%s14760_s1 + $0xf6c] ss:$16 sps:$4 sm:$0xff]  }
 0x1b7   :  { %6912 = vmatpush1.bf16.msra.mxu0 %v10370_v42  ;;  %7760 = vmatpush1.bf16.msra.mxu1 %v10373_v44  ;;  %v10454_v42 = vld [vmem:[%s14760_s1 + $0xf60] ss:$16 sps:$4 sm:$0xff]   ;;  %v10457_v44 = vld [vmem:[%s14760_s1 + $0xf68] ss:$16 sps:$4 sm:$0xff]  }
 0x1b8   :  { %6913 = vmatprep.subr.bf16.mxu0 %v10378_v41  ;;  %7761 = vmatprep.subr.bf16.mxu1 %v10381_v43  ;;  %v10462_v41 = vld [vmem:[%s14760_s1 + $0xf84] ss:$16 sps:$4 sm:$0xff]   ;;  %v10465_v43 = vld [vmem:[%s14760_s1 + $0xf8c] ss:$16 sps:$4 sm:$0xff]  }
 0x1bb   :  { %6914 = vmatpush1.bf16.msra.mxu0 %v10376_v45  ;;  %7762 = vmatpush1.bf16.msra.mxu1 %v10379_v46  ;;  %v10460_v45 = vld [vmem:[%s14760_s1 + $0xf80] ss:$16 sps:$4 sm:$0xff]   ;;  %v10463_v46 = vld [vmem:[%s14760_s1 + $0xf88] ss:$16 sps:$4 sm:$0xff]  }
 0x1bc   :  { %6915 = vmatprep.subr.bf16.mxu0 %v10384_v47  ;;  %7763 = vmatprep.subr.bf16.mxu1 %v10387_v48  ;;  %v10468_v47 = vld [vmem:[%s14760_s1 + $0xfa4] ss:$16 sps:$4 sm:$0xff]   ;;  %v10471_v48 = vld [vmem:[%s14760_s1 + $0xfac] ss:$16 sps:$4 sm:$0xff]  }
 0x1bf   :  { %6916 = vmatpush1.bf16.msra.mxu0 %v10382_v51  ;;  %7764 = vmatpush1.bf16.msra.mxu1 %v10385_v52  ;;  %v10466_v51 = vld [vmem:[%s14760_s1 + $0xfa0] ss:$16 sps:$4 sm:$0xff]   ;;  %v10469_v52 = vld [vmem:[%s14760_s1 + $0xfa8] ss:$16 sps:$4 sm:$0xff]  }
 0x1c0   :  { %6938 = vmatprep.subr.bf16.mxu0 %v10390_v49  ;;  %7786 = vmatprep.subr.bf16.mxu1 %v10393_v50  ;;  %v10474_v49 = vld [vmem:[%s14760_s1 + $0xfc4] ss:$16 sps:$4 sm:$0xff]   ;;  %v10477_v50 = vld [vmem:[%s14760_s1 + $0xfcc] ss:$16 sps:$4 sm:$0xff]  }
 0x1c2   :  { %6918 = vmatmul.mubr.bf16.vlgmr.msra.gmra.mrb[0].mxu0 %v8384_v55  ;;  %7766 = vmatmul.mubr.bf16.vlgmr.msra.gmra.mrb[0].mxu1 %v8384_v55  ;;  %v10480_v55 = vld [vmem:[%s14760_s1 + $0xfe4] ss:$16 sps:$4 sm:$0xff]  }
 0x1c3   :  { %6939 = vmatpush1.bf16.msra.mxu0 %v10388_v56  ;;  %7787 = vmatpush1.bf16.msra.mxu1 %v10391_v59  ;;  %v10483_v56 = vld [vmem:[%s14760_s1 + $0xfec] ss:$16 sps:$4 sm:$0xff]   ;;  %v10478_v59 = vld [vmem:[%s14760_s1 + $0xfe0] ss:$16 sps:$4 sm:$0xff]  }
 0x1c4   :  { %6940 = vmatprep.subr.bf16.mxu0 %v10396_v60  ;;  %7788 = vmatprep.subr.bf16.mxu1 %v10399_v57  ;;  %v10481_v60 = vld [vmem:[%s14760_s1 + $0xfe8] ss:$16 sps:$4 sm:$0xff]   ;;  %v10486_v57 = vld [vmem:[%s14760_s1 + $0x1004] ss:$16 sps:$4 sm:$0xff]  }
 0x1c5   :  { %6927 = vmatprep.mubr.bf16.mxu0 %v8417_v62  ;;  %7775 = vmatprep.mubr.bf16.mxu1 %v8417_v62  ;;  %v72_v62 = vld [vmem:[%s14761_s0 + $0x1b8] sm:$0xff] }
 0x1c7   :  { %6941 = vmatpush1.bf16.msra.mxu0 %v10394_v58  ;;  %7789 = vmatpush1.bf16.msra.mxu1 %v10397_v61  ;;  %v10489_v58 = vld [vmem:[%s14760_s1 + $0x100c] ss:$16 sps:$4 sm:$0xff]  }
 0x1c8   :  { %6942 = vmatprep.subr.bf16.mxu0 %v10402_v63  ;;  %7790 = vmatprep.subr.bf16.mxu1 %v10405_v0  ;;  %v56_v61 = vld [vmem:[%s14761_s0 + $0x138] sm:$0xff]  ;;  %v8386_v63 = vcombine.low %v12786_v1, %v12791_v2  ;;  %v10484_v0 = vld [vmem:[%s14760_s1 + $0x1000] ss:$16 sps:$4 sm:$0xff]  }
 0x1c9   :  { %v10495_v1 = vld [vmem:[%s14760_s1 + $0x102c] ss:$16 sps:$4 sm:$0xff]   ;;  %v10490_v2 = vld [vmem:[%s14760_s1 + $0x1020] ss:$16 sps:$4 sm:$0xff]  }
 0x1ca   :  { %6928 = vmatmul.mubr.bf16.gmra.mrb[4].mxu0 %v8416_v3  ;;  %7776 = vmatmul.mubr.bf16.gmra.mrb[4].mxu1 %v8416_v3  ;;  %v10487_v3 = vld [vmem:[%s14760_s1 + $0x1008] ss:$16 sps:$4 sm:$0xff]  }
 0x1cb   :  { %6943 = vmatpush1.bf16.msra.mxu0 %v10400_v4  ;;  %7791 = vmatpush1.bf16.msra.mxu1 %v10403_v5  ;;  %v10492_v4 = vld [vmem:[%s14760_s1 + $0x1024] ss:$16 sps:$4 sm:$0xff]   ;;  %v10493_v5 = vld [vmem:[%s14760_s1 + $0x1028] ss:$16 sps:$4 sm:$0xff]  }
 0x1cc   :  { %6944 = vmatprep.subr.bf16.mxu0 %v10408_v6  ;;  %7792 = vmatprep.subr.bf16.mxu1 %v10411_v7  ;;  %v8419_v6 = vcombine.high %v56_v61, %v72_v62  ;;  %v10498_v7 = vld [vmem:[%s14760_s1 + $0x1044] ss:$16 sps:$4 sm:$0xff]  }
 0x1cd   :  { %6970 = vmatprep.mubr.bf16.mxu0 %v8387_v8  ;;  %7818 = vmatprep.mubr.bf16.mxu1 %v8387_v8  ;;  %v10501_v8 = vld [vmem:[%s14760_s1 + $0x104c] ss:$16 sps:$4 sm:$0xff]  }
 0x1cf   :  { %6945 = vmatpush1.bf16.msra.mxu0 %v10406_v9  ;;  %7793 = vmatpush1.bf16.msra.mxu1 %v10409_v10  ;;  %v12998_v9 = vld [vmem:[%s14761_s0 + $0x40] sm:$0xff] }
 0x1d0   :  { %6946 = vmatprep.subr.bf16.mxu0 %v10414_v11  ;;  %7794 = vmatprep.subr.bf16.mxu1 %v10417_v12  ;;  %v13003_v10 = vld [vmem:[%s14761_s0 + $0xc0] sm:$0xff]  ;;  %v8418_v11 = vcombine.low %v56_v61, %v72_v62  ;;  %v10571_v62 = vld [vmem:[%s14760_s1 + $0x11c8] ss:$16 sps:$4 sm:$0xff]  }
 0x1d1   :  { %v10496_v12 = vld [vmem:[%s14760_s1 + $0x1040] ss:$16 sps:$4 sm:$0xff]  }
 0x1d2   :  { %v10568_v61 = vld [vmem:[%s14760_s1 + $0x11c0] ss:$16 sps:$4 sm:$0xff]  }
 0x1d3   :  { %6947 = vmatpush1.bf16.msra.mxu0 %v10412_v13  ;;  %7795 = vmatpush1.bf16.msra.mxu1 %v10415_v14  ;;  %v10499_v13 = vld [vmem:[%s14760_s1 + $0x1048] ss:$16 sps:$4 sm:$0xff]   ;;  %v10504_v14 = vld [vmem:[%s14760_s1 + $0x1064] ss:$16 sps:$4 sm:$0xff]  }
 0x1d4   :  { %6948 = vmatprep.subr.bf16.mxu0 %v10420_v15  ;;  %7796 = vmatprep.subr.bf16.mxu1 %v10423_v16  ;;  %v10507_v15 = vld [vmem:[%s14760_s1 + $0x106c] ss:$16 sps:$4 sm:$0xff]   ;;  %v8389_v16 = vcombine.high %v12998_v9, %v13003_v10 }
 0x1d7   :  { %6949 = vmatpush1.bf16.msra.mxu0 %v10418_v17  ;;  %7797 = vmatpush1.bf16.msra.mxu1 %v10421_v18  ;;  %v10502_v17 = vld [vmem:[%s14760_s1 + $0x1060] ss:$16 sps:$4 sm:$0xff]   ;;  %v10505_v18 = vld [vmem:[%s14760_s1 + $0x1068] ss:$16 sps:$4 sm:$0xff]  }
 0x1d8   :  { %6950 = vmatprep.subr.bf16.mxu0 %v10426_v19  ;;  %7798 = vmatprep.subr.bf16.mxu1 %v10429_v20  ;;  %v10510_v19 = vld [vmem:[%s14760_s1 + $0x1084] ss:$16 sps:$4 sm:$0xff]   ;;  %v10513_v20 = vld [vmem:[%s14760_s1 + $0x108c] ss:$16 sps:$4 sm:$0xff]  }
 0x1db   :  { %6951 = vmatpush1.bf16.msra.mxu0 %v10424_v21  ;;  %7799 = vmatpush1.bf16.msra.mxu1 %v10427_v22  ;;  %v10508_v21 = vld [vmem:[%s14760_s1 + $0x1080] ss:$16 sps:$4 sm:$0xff]   ;;  %v10511_v22 = vld [vmem:[%s14760_s1 + $0x1088] ss:$16 sps:$4 sm:$0xff]  }
 0x1dc   :  { %6952 = vmatprep.subr.bf16.mxu0 %v10432_v23  ;;  %7800 = vmatprep.subr.bf16.mxu1 %v10435_v24  ;;  %v10516_v23 = vld [vmem:[%s14760_s1 + $0x10a4] ss:$16 sps:$4 sm:$0xff]   ;;  %v10519_v24 = vld [vmem:[%s14760_s1 + $0x10ac] ss:$16 sps:$4 sm:$0xff]  }
 0x1df   :  { %6953 = vmatpush1.bf16.msra.mxu0 %v10430_v26  ;;  %7801 = vmatpush1.bf16.msra.mxu1 %v10433_v25  ;;  %v10514_v26 = vld [vmem:[%s14760_s1 + $0x10a0] ss:$16 sps:$4 sm:$0xff]   ;;  %v10517_v25 = vld [vmem:[%s14760_s1 + $0x10a8] ss:$16 sps:$4 sm:$0xff]  }
 0x1e0   :  { %6954 = vmatprep.subr.bf16.mxu0 %v10438_v27  ;;  %7802 = vmatprep.subr.bf16.mxu1 %v10441_v28  ;;  %v10522_v27 = vld [vmem:[%s14760_s1 + $0x10c4] ss:$16 sps:$4 sm:$0xff]   ;;  %v10525_v28 = vld [vmem:[%s14760_s1 + $0x10cc] ss:$16 sps:$4 sm:$0xff]  }
 0x1e3   :  { %6955 = vmatpush1.bf16.msra.mxu0 %v10436_v29  ;;  %7803 = vmatpush1.bf16.msra.mxu1 %v10439_v30  ;;  %v10520_v29 = vld [vmem:[%s14760_s1 + $0x10c0] ss:$16 sps:$4 sm:$0xff]   ;;  %v10523_v30 = vld [vmem:[%s14760_s1 + $0x10c8] ss:$16 sps:$4 sm:$0xff]  }
 0x1e4   :  { %6956 = vmatprep.subr.bf16.mxu0 %v10444_v31  ;;  %7804 = vmatprep.subr.bf16.mxu1 %v10447_v32  ;;  %v10528_v31 = vld [vmem:[%s14760_s1 + $0x10e4] ss:$16 sps:$4 sm:$0xff]   ;;  %v10531_v32 = vld [vmem:[%s14760_s1 + $0x10ec] ss:$16 sps:$4 sm:$0xff]  }
 0x1e7   :  { %6957 = vmatpush1.bf16.msra.mxu0 %v10442_v34  ;;  %7805 = vmatpush1.bf16.msra.mxu1 %v10445_v36  ;;  %v10526_v34 = vld [vmem:[%s14760_s1 + $0x10e0] ss:$16 sps:$4 sm:$0xff]   ;;  %v10529_v36 = vld [vmem:[%s14760_s1 + $0x10e8] ss:$16 sps:$4 sm:$0xff]  }
 0x1e8   :  { %6958 = vmatprep.subr.bf16.mxu0 %v10450_v33  ;;  %7806 = vmatprep.subr.bf16.mxu1 %v10453_v35  ;;  %v10534_v33 = vld [vmem:[%s14760_s1 + $0x1104] ss:$16 sps:$4 sm:$0xff]   ;;  %v10537_v35 = vld [vmem:[%s14760_s1 + $0x110c] ss:$16 sps:$4 sm:$0xff]  }
 0x1eb   :  { %6959 = vmatpush1.bf16.msra.mxu0 %v10448_v37  ;;  %7807 = vmatpush1.bf16.msra.mxu1 %v10451_v38  ;;  %v10532_v37 = vld [vmem:[%s14760_s1 + $0x1100] ss:$16 sps:$4 sm:$0xff]   ;;  %v10535_v38 = vld [vmem:[%s14760_s1 + $0x1108] ss:$16 sps:$4 sm:$0xff]  }
 0x1ec   :  { %6960 = vmatprep.subr.bf16.mxu0 %v10456_v39  ;;  %7808 = vmatprep.subr.bf16.mxu1 %v10459_v40  ;;  %v10540_v39 = vld [vmem:[%s14760_s1 + $0x1124] ss:$16 sps:$4 sm:$0xff]   ;;  %v10543_v40 = vld [vmem:[%s14760_s1 + $0x112c] ss:$16 sps:$4 sm:$0xff]  }
 0x1ef   :  { %6961 = vmatpush1.bf16.msra.mxu0 %v10454_v42  ;;  %7809 = vmatpush1.bf16.msra.mxu1 %v10457_v44  ;;  %v10538_v42 = vld [vmem:[%s14760_s1 + $0x1120] ss:$16 sps:$4 sm:$0xff]   ;;  %v10541_v44 = vld [vmem:[%s14760_s1 + $0x1128] ss:$16 sps:$4 sm:$0xff]  }
 0x1f0   :  { %6962 = vmatprep.subr.bf16.mxu0 %v10462_v41  ;;  %7810 = vmatprep.subr.bf16.mxu1 %v10465_v43  ;;  %v10546_v41 = vld [vmem:[%s14760_s1 + $0x1144] ss:$16 sps:$4 sm:$0xff]   ;;  %v10549_v43 = vld [vmem:[%s14760_s1 + $0x114c] ss:$16 sps:$4 sm:$0xff]  }
 0x1f3   :  { %6963 = vmatpush1.bf16.msra.mxu0 %v10460_v45  ;;  %7811 = vmatpush1.bf16.msra.mxu1 %v10463_v46  ;;  %v10544_v45 = vld [vmem:[%s14760_s1 + $0x1140] ss:$16 sps:$4 sm:$0xff]   ;;  %v10547_v46 = vld [vmem:[%s14760_s1 + $0x1148] ss:$16 sps:$4 sm:$0xff]  }
 0x1f4   :  { %6964 = vmatprep.subr.bf16.mxu0 %v10468_v47  ;;  %7812 = vmatprep.subr.bf16.mxu1 %v10471_v48  ;;  %v10552_v47 = vld [vmem:[%s14760_s1 + $0x1164] ss:$16 sps:$4 sm:$0xff]   ;;  %v10555_v48 = vld [vmem:[%s14760_s1 + $0x116c] ss:$16 sps:$4 sm:$0xff]  }
 0x1f7   :  { %6965 = vmatpush1.bf16.msra.mxu0 %v10466_v51  ;;  %7813 = vmatpush1.bf16.msra.mxu1 %v10469_v52  ;;  %v10550_v51 = vld [vmem:[%s14760_s1 + $0x1160] ss:$16 sps:$4 sm:$0xff]   ;;  %v10553_v52 = vld [vmem:[%s14760_s1 + $0x1168] ss:$16 sps:$4 sm:$0xff]  }
 0x1f8   :  { %6966 = vmatprep.subr.bf16.mxu0 %v10474_v49  ;;  %7814 = vmatprep.subr.bf16.mxu1 %v10477_v50  ;;  %v10558_v49 = vld [vmem:[%s14760_s1 + $0x1184] ss:$16 sps:$4 sm:$0xff]   ;;  %v10561_v50 = vld [vmem:[%s14760_s1 + $0x118c] ss:$16 sps:$4 sm:$0xff]  }
 0x1fb   :  { %6967 = vmatpush1.bf16.msra.mxu0 %v10472_v53  ;;  %7815 = vmatpush1.bf16.msra.mxu1 %v10475_v54  ;;  %v10556_v53 = vld [vmem:[%s14760_s1 + $0x1180] ss:$16 sps:$4 sm:$0xff]   ;;  %v10559_v54 = vld [vmem:[%s14760_s1 + $0x1188] ss:$16 sps:$4 sm:$0xff]  }
 0x1fc   :  { %6968 = vmatprep.subr.bf16.mxu0 %v10480_v55  ;;  %7816 = vmatprep.subr.bf16.mxu1 %v10483_v56  ;;  %v10564_v55 = vld [vmem:[%s14760_s1 + $0x11a4] ss:$16 sps:$4 sm:$0xff]   ;;  %v10567_v56 = vld [vmem:[%s14760_s1 + $0x11ac] ss:$16 sps:$4 sm:$0xff]  }
 0x1ff   :  { %6969 = vmatpush1.bf16.msra.mxu0 %v10478_v59  ;;  %7817 = vmatpush1.bf16.msra.mxu1 %v10481_v60  ;;  %v10562_v59 = vld [vmem:[%s14760_s1 + $0x11a0] ss:$16 sps:$4 sm:$0xff]   ;;  %v10565_v60 = vld [vmem:[%s14760_s1 + $0x11a8] ss:$16 sps:$4 sm:$0xff]  }
 0x200   :  { %6991 = vmatprep.subr.bf16.mxu0 %v10486_v57  ;;  %7839 = vmatprep.subr.bf16.mxu1 %v10489_v58  ;;  %v10570_v57 = vld [vmem:[%s14760_s1 + $0x11c4] ss:$16 sps:$4 sm:$0xff]   ;;  %v10573_v58 = vld [vmem:[%s14760_s1 + $0x11cc] ss:$16 sps:$4 sm:$0xff]  }
 0x202   :  { %6971 = vmatmul.mubr.bf16.vlgmr.msra.gmra.mrb[0].mxu0 %v8386_v63  ;;  %7819 = vmatmul.mubr.bf16.vlgmr.msra.gmra.mrb[0].mxu1 %v8386_v63  ;;  %v10576_v63 = vld [vmem:[%s14760_s1 + $0x11e4] ss:$16 sps:$4 sm:$0xff]  }
 0x203   :  { %6992 = vmatpush1.bf16.msra.mxu0 %v10484_v0  ;;  %7840 = vmatpush1.bf16.msra.mxu1 %v10487_v3  ;;  %v10579_v0 = vld [vmem:[%s14760_s1 + $0x11ec] ss:$16 sps:$4 sm:$0xff]   ;;  %v10574_v3 = vld [vmem:[%s14760_s1 + $0x11e0] ss:$16 sps:$4 sm:$0xff]  }
 0x204   :  { %6993 = vmatprep.subr.bf16.mxu0 %v10492_v4  ;;  %7841 = vmatprep.subr.bf16.mxu1 %v10495_v1  ;;  %v10577_v4 = vld [vmem:[%s14760_s1 + $0x11e8] ss:$16 sps:$4 sm:$0xff]   ;;  %v10582_v1 = vld [vmem:[%s14760_s1 + $0x1204] ss:$16 sps:$4 sm:$0xff]  }
 0x205   :  { %6980 = vmatprep.mubr.bf16.mxu0 %v8419_v6  ;;  %7828 = vmatprep.mubr.bf16.mxu1 %v8419_v6  ;;  %v73_v6 = vld [vmem:[%s14761_s0 + $0x1c0] sm:$0xff] }
 0x207   :  { %6994 = vmatpush1.bf16.msra.mxu0 %v10490_v2  ;;  %7842 = vmatpush1.bf16.msra.mxu1 %v10493_v5  ;;  %v10585_v2 = vld [vmem:[%s14760_s1 + $0x120c] ss:$16 sps:$4 sm:$0xff]   ;;  %v57_v5 = vld [vmem:[%s14761_s0 + $0x140] sm:$0xff] }
 0x208   :  { %6995 = vmatprep.subr.bf16.mxu0 %v10498_v7  ;;  %7843 = vmatprep.subr.bf16.mxu1 %v10501_v8  ;;  %v8388_v7 = vcombine.low %v12998_v9, %v13003_v10  ;;  %v10580_v8 = vld [vmem:[%s14760_s1 + $0x1200] ss:$16 sps:$4 sm:$0xff]   ;;  %v10591_v9 = vld [vmem:[%s14760_s1 + $0x122c] ss:$16 sps:$4 sm:$0xff]  }
 0x209   :  { %v10586_v10 = vld [vmem:[%s14760_s1 + $0x1220] ss:$16 sps:$4 sm:$0xff]  }
 0x20a   :  { %6981 = vmatmul.mubr.bf16.gmra.mrb[4].mxu0 %v8418_v11  ;;  %7829 = vmatmul.mubr.bf16.gmra.mrb[4].mxu1 %v8418_v11  ;;  %v10583_v11 = vld [vmem:[%s14760_s1 + $0x1208] ss:$16 sps:$4 sm:$0xff]  }
 0x20b   :  { %6996 = vmatpush1.bf16.msra.mxu0 %v10496_v12  ;;  %7844 = vmatpush1.bf16.msra.mxu1 %v10499_v13  ;;  %v10588_v12 = vld [vmem:[%s14760_s1 + $0x1224] ss:$16 sps:$4 sm:$0xff]   ;;  %v10589_v13 = vld [vmem:[%s14760_s1 + $0x1228] ss:$16 sps:$4 sm:$0xff]  }
 0x20c   :  { %6997 = vmatprep.subr.bf16.mxu0 %v10504_v14  ;;  %7845 = vmatprep.subr.bf16.mxu1 %v10507_v15  ;;  %v8421_v14 = vcombine.high %v57_v5, %v73_v6  ;;  %v10594_v15 = vld [vmem:[%s14760_s1 + $0x1244] ss:$16 sps:$4 sm:$0xff]  }
 0x20d   :  { %7023 = vmatprep.mubr.bf16.mxu0 %v8389_v16  ;;  %7871 = vmatprep.mubr.bf16.mxu1 %v8389_v16  ;;  %v10597_v16 = vld [vmem:[%s14760_s1 + $0x124c] ss:$16 sps:$4 sm:$0xff]  }
 0x20f   :  { %6998 = vmatpush1.bf16.msra.mxu0 %v10502_v17  ;;  %7846 = vmatpush1.bf16.msra.mxu1 %v10505_v18  ;;  %v13210_v17 = vld [vmem:[%s14761_s0 + $0x48] sm:$0xff] }
 0x210   :  { %6999 = vmatprep.subr.bf16.mxu0 %v10510_v19  ;;  %7847 = vmatprep.subr.bf16.mxu1 %v10513_v20  ;;  %v13215_v18 = vld [vmem:[%s14761_s0 + $0xc8] sm:$0xff]  ;;  %v8420_v19 = vcombine.low %v57_v5, %v73_v6  ;;  %v10592_v20 = vld [vmem:[%s14760_s1 + $0x1240] ss:$16 sps:$4 sm:$0xff]  }
 0x211   :  { %v10664_v5 = vld [vmem:[%s14760_s1 + $0x13c0] ss:$16 sps:$4 sm:$0xff]   ;;  %v10667_v6 = vld [vmem:[%s14760_s1 + $0x13c8] ss:$16 sps:$4 sm:$0xff]  }
 0x213   :  { %7000 = vmatpush1.bf16.msra.mxu0 %v10508_v21  ;;  %7848 = vmatpush1.bf16.msra.mxu1 %v10511_v22  ;;  %v10595_v21 = vld [vmem:[%s14760_s1 + $0x1248] ss:$16 sps:$4 sm:$0xff]   ;;  %v10600_v22 = vld [vmem:[%s14760_s1 + $0x1264] ss:$16 sps:$4 sm:$0xff]  }
 0x214   :  { %7001 = vmatprep.subr.bf16.mxu0 %v10516_v23  ;;  %7849 = vmatprep.subr.bf16.mxu1 %v10519_v24  ;;  %v10603_v23 = vld [vmem:[%s14760_s1 + $0x126c] ss:$16 sps:$4 sm:$0xff]   ;;  %v8391_v24 = vcombine.high %v13210_v17, %v13215_v18 }
 0x217   :  { %7002 = vmatpush1.bf16.msra.mxu0 %v10514_v26  ;;  %7850 = vmatpush1.bf16.msra.mxu1 %v10517_v25  ;;  %v10598_v26 = vld [vmem:[%s14760_s1 + $0x1260] ss:$16 sps:$4 sm:$0xff]   ;;  %v10601_v25 = vld [vmem:[%s14760_s1 + $0x1268] ss:$16 sps:$4 sm:$0xff]  }
 0x218   :  { %7003 = vmatprep.subr.bf16.mxu0 %v10522_v27  ;;  %7851 = vmatprep.subr.bf16.mxu1 %v10525_v28  ;;  %v10606_v27 = vld [vmem:[%s14760_s1 + $0x1284] ss:$16 sps:$4 sm:$0xff]   ;;  %v10609_v28 = vld [vmem:[%s14760_s1 + $0x128c] ss:$16 sps:$4 sm:$0xff]  }
 0x21b   :  { %7004 = vmatpush1.bf16.msra.mxu0 %v10520_v29  ;;  %7852 = vmatpush1.bf16.msra.mxu1 %v10523_v30  ;;  %v10604_v29 = vld [vmem:[%s14760_s1 + $0x1280] ss:$16 sps:$4 sm:$0xff]   ;;  %v10607_v30 = vld [vmem:[%s14760_s1 + $0x1288] ss:$16 sps:$4 sm:$0xff]  }
 0x21c   :  { %7005 = vmatprep.subr.bf16.mxu0 %v10528_v31  ;;  %7853 = vmatprep.subr.bf16.mxu1 %v10531_v32  ;;  %v10612_v31 = vld [vmem:[%s14760_s1 + $0x12a4] ss:$16 sps:$4 sm:$0xff]   ;;  %v10615_v32 = vld [vmem:[%s14760_s1 + $0x12ac] ss:$16 sps:$4 sm:$0xff]  }
 0x21f   :  { %7006 = vmatpush1.bf16.msra.mxu0 %v10526_v34  ;;  %7854 = vmatpush1.bf16.msra.mxu1 %v10529_v36  ;;  %v10610_v34 = vld [vmem:[%s14760_s1 + $0x12a0] ss:$16 sps:$4 sm:$0xff]   ;;  %v10613_v36 = vld [vmem:[%s14760_s1 + $0x12a8] ss:$16 sps:$4 sm:$0xff]  }
 0x220   :  { %7007 = vmatprep.subr.bf16.mxu0 %v10534_v33  ;;  %7855 = vmatprep.subr.bf16.mxu1 %v10537_v35  ;;  %v10618_v33 = vld [vmem:[%s14760_s1 + $0x12c4] ss:$16 sps:$4 sm:$0xff]   ;;  %v10621_v35 = vld [vmem:[%s14760_s1 + $0x12cc] ss:$16 sps:$4 sm:$0xff]  }
 0x223   :  { %7008 = vmatpush1.bf16.msra.mxu0 %v10532_v37  ;;  %7856 = vmatpush1.bf16.msra.mxu1 %v10535_v38  ;;  %v10616_v37 = vld [vmem:[%s14760_s1 + $0x12c0] ss:$16 sps:$4 sm:$0xff]   ;;  %v10619_v38 = vld [vmem:[%s14760_s1 + $0x12c8] ss:$16 sps:$4 sm:$0xff]  }
 0x224   :  { %7009 = vmatprep.subr.bf16.mxu0 %v10540_v39  ;;  %7857 = vmatprep.subr.bf16.mxu1 %v10543_v40  ;;  %v10624_v39 = vld [vmem:[%s14760_s1 + $0x12e4] ss:$16 sps:$4 sm:$0xff]   ;;  %v10627_v40 = vld [vmem:[%s14760_s1 + $0x12ec] ss:$16 sps:$4 sm:$0xff]  }
 0x227   :  { %7010 = vmatpush1.bf16.msra.mxu0 %v10538_v42  ;;  %7858 = vmatpush1.bf16.msra.mxu1 %v10541_v44  ;;  %v10622_v42 = vld [vmem:[%s14760_s1 + $0x12e0] ss:$16 sps:$4 sm:$0xff]   ;;  %v10625_v44 = vld [vmem:[%s14760_s1 + $0x12e8] ss:$16 sps:$4 sm:$0xff]  }
 0x228   :  { %7011 = vmatprep.subr.bf16.mxu0 %v10546_v41  ;;  %7859 = vmatprep.subr.bf16.mxu1 %v10549_v43  ;;  %v10630_v41 = vld [vmem:[%s14760_s1 + $0x1304] ss:$16 sps:$4 sm:$0xff]   ;;  %v10633_v43 = vld [vmem:[%s14760_s1 + $0x130c] ss:$16 sps:$4 sm:$0xff]  }
 0x22b   :  { %7012 = vmatpush1.bf16.msra.mxu0 %v10544_v45  ;;  %7860 = vmatpush1.bf16.msra.mxu1 %v10547_v46  ;;  %v10628_v45 = vld [vmem:[%s14760_s1 + $0x1300] ss:$16 sps:$4 sm:$0xff]   ;;  %v10631_v46 = vld [vmem:[%s14760_s1 + $0x1308] ss:$16 sps:$4 sm:$0xff]  }
 0x22c   :  { %7013 = vmatprep.subr.bf16.mxu0 %v10552_v47  ;;  %7861 = vmatprep.subr.bf16.mxu1 %v10555_v48  ;;  %v10636_v47 = vld [vmem:[%s14760_s1 + $0x1324] ss:$16 sps:$4 sm:$0xff]   ;;  %v10639_v48 = vld [vmem:[%s14760_s1 + $0x132c] ss:$16 sps:$4 sm:$0xff]  }
 0x22f   :  { %7014 = vmatpush1.bf16.msra.mxu0 %v10550_v51  ;;  %7862 = vmatpush1.bf16.msra.mxu1 %v10553_v52  ;;  %v10634_v51 = vld [vmem:[%s14760_s1 + $0x1320] ss:$16 sps:$4 sm:$0xff]   ;;  %v10637_v52 = vld [vmem:[%s14760_s1 + $0x1328] ss:$16 sps:$4 sm:$0xff]  }
 0x230   :  { %7015 = vmatprep.subr.bf16.mxu0 %v10558_v49  ;;  %7863 = vmatprep.subr.bf16.mxu1 %v10561_v50  ;;  %v10642_v49 = vld [vmem:[%s14760_s1 + $0x1344] ss:$16 sps:$4 sm:$0xff]   ;;  %v10645_v50 = vld [vmem:[%s14760_s1 + $0x134c] ss:$16 sps:$4 sm:$0xff]  }
 0x233   :  { %7016 = vmatpush1.bf16.msra.mxu0 %v10556_v53  ;;  %7864 = vmatpush1.bf16.msra.mxu1 %v10559_v54  ;;  %v10640_v53 = vld [vmem:[%s14760_s1 + $0x1340] ss:$16 sps:$4 sm:$0xff]   ;;  %v10643_v54 = vld [vmem:[%s14760_s1 + $0x1348] ss:$16 sps:$4 sm:$0xff]  }
 0x234   :  { %7017 = vmatprep.subr.bf16.mxu0 %v10564_v55  ;;  %7865 = vmatprep.subr.bf16.mxu1 %v10567_v56  ;;  %v10648_v55 = vld [vmem:[%s14760_s1 + $0x1364] ss:$16 sps:$4 sm:$0xff]   ;;  %v10651_v56 = vld [vmem:[%s14760_s1 + $0x136c] ss:$16 sps:$4 sm:$0xff]  }
 0x237   :  { %7018 = vmatpush1.bf16.msra.mxu0 %v10562_v59  ;;  %7866 = vmatpush1.bf16.msra.mxu1 %v10565_v60  ;;  %v10646_v59 = vld [vmem:[%s14760_s1 + $0x1360] ss:$16 sps:$4 sm:$0xff]   ;;  %v10649_v60 = vld [vmem:[%s14760_s1 + $0x1368] ss:$16 sps:$4 sm:$0xff]  }
 0x238   :  { %7019 = vmatprep.subr.bf16.mxu0 %v10570_v57  ;;  %7867 = vmatprep.subr.bf16.mxu1 %v10573_v58  ;;  %v10654_v57 = vld [vmem:[%s14760_s1 + $0x1384] ss:$16 sps:$4 sm:$0xff]   ;;  %v10657_v58 = vld [vmem:[%s14760_s1 + $0x138c] ss:$16 sps:$4 sm:$0xff]  }
 0x23b   :  { %7020 = vmatpush1.bf16.msra.mxu0 %v10568_v61  ;;  %7868 = vmatpush1.bf16.msra.mxu1 %v10571_v62  ;;  %v10652_v61 = vld [vmem:[%s14760_s1 + $0x1380] ss:$16 sps:$4 sm:$0xff]   ;;  %v10655_v62 = vld [vmem:[%s14760_s1 + $0x1388] ss:$16 sps:$4 sm:$0xff]  }
 0x23c   :  { %7021 = vmatprep.subr.bf16.mxu0 %v10576_v63  ;;  %7869 = vmatprep.subr.bf16.mxu1 %v10579_v0  ;;  %v10660_v63 = vld [vmem:[%s14760_s1 + $0x13a4] ss:$16 sps:$4 sm:$0xff]   ;;  %v10663_v0 = vld [vmem:[%s14760_s1 + $0x13ac] ss:$16 sps:$4 sm:$0xff]  }
 0x23f   :  { %7022 = vmatpush1.bf16.msra.mxu0 %v10574_v3  ;;  %7870 = vmatpush1.bf16.msra.mxu1 %v10577_v4  ;;  %v10658_v3 = vld [vmem:[%s14760_s1 + $0x13a0] ss:$16 sps:$4 sm:$0xff]   ;;  %v10661_v4 = vld [vmem:[%s14760_s1 + $0x13a8] ss:$16 sps:$4 sm:$0xff]  }
 0x240   :  { %7044 = vmatprep.subr.bf16.mxu0 %v10582_v1  ;;  %7892 = vmatprep.subr.bf16.mxu1 %v10585_v2  ;;  %v10666_v1 = vld [vmem:[%s14760_s1 + $0x13c4] ss:$16 sps:$4 sm:$0xff]   ;;  %v10669_v2 = vld [vmem:[%s14760_s1 + $0x13cc] ss:$16 sps:$4 sm:$0xff]  }
 0x242   :  { %7024 = vmatmul.mubr.bf16.vlgmr.msra.gmra.mrb[0].mxu0 %v8388_v7  ;;  %7872 = vmatmul.mubr.bf16.vlgmr.msra.gmra.mrb[0].mxu1 %v8388_v7  ;;  %v10672_v7 = vld [vmem:[%s14760_s1 + $0x13e4] ss:$16 sps:$4 sm:$0xff]  }
 0x243   :  { %7045 = vmatpush1.bf16.msra.mxu0 %v10580_v8  ;;  %7893 = vmatpush1.bf16.msra.mxu1 %v10583_v11  ;;  %v10675_v8 = vld [vmem:[%s14760_s1 + $0x13ec] ss:$16 sps:$4 sm:$0xff]   ;;  %v10670_v11 = vld [vmem:[%s14760_s1 + $0x13e0] ss:$16 sps:$4 sm:$0xff]  }
 0x244   :  { %7046 = vmatprep.subr.bf16.mxu0 %v10588_v12  ;;  %7894 = vmatprep.subr.bf16.mxu1 %v10591_v9  ;;  %v10673_v12 = vld [vmem:[%s14760_s1 + $0x13e8] ss:$16 sps:$4 sm:$0xff]   ;;  %v10678_v9 = vld [vmem:[%s14760_s1 + $0x1404] ss:$16 sps:$4 sm:$0xff]  }
 0x245   :  { %7033 = vmatprep.mubr.bf16.mxu0 %v8421_v14  ;;  %7881 = vmatprep.mubr.bf16.mxu1 %v8421_v14  ;;  %v58_v14 = vld [vmem:[%s14761_s0 + $0x148] sm:$0xff] }
 0x247   :  { %7047 = vmatpush1.bf16.msra.mxu0 %v10586_v10  ;;  %7895 = vmatpush1.bf16.msra.mxu1 %v10589_v13  ;;  %v10681_v10 = vld [vmem:[%s14760_s1 + $0x140c] ss:$16 sps:$4 sm:$0xff]   ;;  %v8390_v13 = vcombine.low %v13210_v17, %v13215_v18  ;;  %v10684_v17 = vld [vmem:[%s14760_s1 + $0x1424] ss:$16 sps:$4 sm:$0xff]  }
 0x248   :  { %7048 = vmatprep.subr.bf16.mxu0 %v10594_v15  ;;  %7896 = vmatprep.subr.bf16.mxu1 %v10597_v16  ;;  %v74_v15 = vld [vmem:[%s14761_s0 + $0x1c8] sm:$0xff]  ;;  %v10676_v16 = vld [vmem:[%s14760_s1 + $0x1400] ss:$16 sps:$4 sm:$0xff]  }
 0x249   :  { %v10687_v18 = vld [vmem:[%s14760_s1 + $0x142c] ss:$16 sps:$4 sm:$0xff]  }
 0x24a   :  { %7034 = vmatmul.mubr.bf16.gmra.mrb[4].mxu0 %v8420_v19  ;;  %7882 = vmatmul.mubr.bf16.gmra.mrb[4].mxu1 %v8420_v19  ;;  %v10679_v19 = vld [vmem:[%s14760_s1 + $0x1408] ss:$16 sps:$4 sm:$0xff]  }
 0x24b   :  { %7049 = vmatpush1.bf16.msra.mxu0 %v10592_v20  ;;  %7897 = vmatpush1.bf16.msra.mxu1 %v10595_v21  ;;  %v8423_v20 = vcombine.high %v58_v14, %v74_v15  ;;  %v10682_v21 = vld [vmem:[%s14760_s1 + $0x1420] ss:$16 sps:$4 sm:$0xff]  }
 0x24c   :  { %7050 = vmatprep.subr.bf16.mxu0 %v10600_v22  ;;  %7898 = vmatprep.subr.bf16.mxu1 %v10603_v23  ;;  %v10685_v22 = vld [vmem:[%s14760_s1 + $0x1428] ss:$16 sps:$4 sm:$0xff]   ;;  %v10690_v23 = vld [vmem:[%s14760_s1 + $0x1444] ss:$16 sps:$4 sm:$0xff]  }
 0x24d   :  { %7076 = vmatprep.mubr.bf16.mxu0 %v8391_v24  ;;  %7924 = vmatprep.mubr.bf16.mxu1 %v8391_v24  ;;  %v10693_v24 = vld [vmem:[%s14760_s1 + $0x144c] ss:$16 sps:$4 sm:$0xff]  }
 0x24f   :  { %7051 = vmatpush1.bf16.msra.mxu0 %v10598_v26  ;;  %7899 = vmatpush1.bf16.msra.mxu1 %v10601_v25  ;;  %v8422_v26 = vcombine.low %v58_v14, %v74_v15  ;;  %v13422_v25 = vld [vmem:[%s14761_s0 + $0x50] sm:$0xff]  ;;  %v10763_v14 = vld [vmem:[%s14760_s1 + $0x15c8] ss:$16 sps:$4 sm:$0xff]  }
 0x250   :  { %7052 = vmatprep.subr.bf16.mxu0 %v10606_v27  ;;  %7900 = vmatprep.subr.bf16.mxu1 %v10609_v28  ;;  %v13427_v27 = vld [vmem:[%s14761_s0 + $0xd0] sm:$0xff] }
 0x251   :  { %v10688_v28 = vld [vmem:[%s14760_s1 + $0x1440] ss:$16 sps:$4 sm:$0xff]   ;;  %v10768_v15 = vld [vmem:[%s14760_s1 + $0x15e4] ss:$16 sps:$4 sm:$0xff]  }
 0x253   :  { %7053 = vmatpush1.bf16.msra.mxu0 %v10604_v29  ;;  %7901 = vmatpush1.bf16.msra.mxu1 %v10607_v30  ;;  %v10691_v29 = vld [vmem:[%s14760_s1 + $0x1448] ss:$16 sps:$4 sm:$0xff]   ;;  %v10696_v30 = vld [vmem:[%s14760_s1 + $0x1464] ss:$16 sps:$4 sm:$0xff]  }
 0x254   :  { %7054 = vmatprep.subr.bf16.mxu0 %v10612_v31  ;;  %7902 = vmatprep.subr.bf16.mxu1 %v10615_v32  ;;  %v10699_v31 = vld [vmem:[%s14760_s1 + $0x146c] ss:$16 sps:$4 sm:$0xff]   ;;  %v8393_v32 = vcombine.high %v13422_v25, %v13427_v27 }
 0x257   :  { %7055 = vmatpush1.bf16.msra.mxu0 %v10610_v34  ;;  %7903 = vmatpush1.bf16.msra.mxu1 %v10613_v36  ;;  %v10694_v34 = vld [vmem:[%s14760_s1 + $0x1460] ss:$16 sps:$4 sm:$0xff]   ;;  %v10697_v36 = vld [vmem:[%s14760_s1 + $0x1468] ss:$16 sps:$4 sm:$0xff]  }
 0x258   :  { %7056 = vmatprep.subr.bf16.mxu0 %v10618_v33  ;;  %7904 = vmatprep.subr.bf16.mxu1 %v10621_v35  ;;  %v10702_v33 = vld [vmem:[%s14760_s1 + $0x1484] ss:$16 sps:$4 sm:$0xff]   ;;  %v10705_v35 = vld [vmem:[%s14760_s1 + $0x148c] ss:$16 sps:$4 sm:$0xff]  }
 0x25b   :  { %7057 = vmatpush1.bf16.msra.mxu0 %v10616_v37  ;;  %7905 = vmatpush1.bf16.msra.mxu1 %v10619_v38  ;;  %v10700_v37 = vld [vmem:[%s14760_s1 + $0x1480] ss:$16 sps:$4 sm:$0xff]   ;;  %v10703_v38 = vld [vmem:[%s14760_s1 + $0x1488] ss:$16 sps:$4 sm:$0xff]  }
 0x25c   :  { %7058 = vmatprep.subr.bf16.mxu0 %v10624_v39  ;;  %7906 = vmatprep.subr.bf16.mxu1 %v10627_v40  ;;  %v10708_v39 = vld [vmem:[%s14760_s1 + $0x14a4] ss:$16 sps:$4 sm:$0xff]   ;;  %v10711_v40 = vld [vmem:[%s14760_s1 + $0x14ac] ss:$16 sps:$4 sm:$0xff]  }
 0x25f   :  { %7059 = vmatpush1.bf16.msra.mxu0 %v10622_v42  ;;  %7907 = vmatpush1.bf16.msra.mxu1 %v10625_v44  ;;  %v10706_v42 = vld [vmem:[%s14760_s1 + $0x14a0] ss:$16 sps:$4 sm:$0xff]   ;;  %v10709_v44 = vld [vmem:[%s14760_s1 + $0x14a8] ss:$16 sps:$4 sm:$0xff]  }
 0x260   :  { %7060 = vmatprep.subr.bf16.mxu0 %v10630_v41  ;;  %7908 = vmatprep.subr.bf16.mxu1 %v10633_v43  ;;  %v10714_v41 = vld [vmem:[%s14760_s1 + $0x14c4] ss:$16 sps:$4 sm:$0xff]   ;;  %v10717_v43 = vld [vmem:[%s14760_s1 + $0x14cc] ss:$16 sps:$4 sm:$0xff]  }
 0x263   :  { %7061 = vmatpush1.bf16.msra.mxu0 %v10628_v45  ;;  %7909 = vmatpush1.bf16.msra.mxu1 %v10631_v46  ;;  %v10712_v45 = vld [vmem:[%s14760_s1 + $0x14c0] ss:$16 sps:$4 sm:$0xff]   ;;  %v10715_v46 = vld [vmem:[%s14760_s1 + $0x14c8] ss:$16 sps:$4 sm:$0xff]  }
 0x264   :  { %7062 = vmatprep.subr.bf16.mxu0 %v10636_v47  ;;  %7910 = vmatprep.subr.bf16.mxu1 %v10639_v48  ;;  %v10720_v47 = vld [vmem:[%s14760_s1 + $0x14e4] ss:$16 sps:$4 sm:$0xff]   ;;  %v10723_v48 = vld [vmem:[%s14760_s1 + $0x14ec] ss:$16 sps:$4 sm:$0xff]  }
 0x267   :  { %7063 = vmatpush1.bf16.msra.mxu0 %v10634_v51  ;;  %7911 = vmatpush1.bf16.msra.mxu1 %v10637_v52  ;;  %v10718_v51 = vld [vmem:[%s14760_s1 + $0x14e0] ss:$16 sps:$4 sm:$0xff]   ;;  %v10721_v52 = vld [vmem:[%s14760_s1 + $0x14e8] ss:$16 sps:$4 sm:$0xff]  }
 0x268   :  { %7064 = vmatprep.subr.bf16.mxu0 %v10642_v49  ;;  %7912 = vmatprep.subr.bf16.mxu1 %v10645_v50  ;;  %v10726_v49 = vld [vmem:[%s14760_s1 + $0x1504] ss:$16 sps:$4 sm:$0xff]   ;;  %v10729_v50 = vld [vmem:[%s14760_s1 + $0x150c] ss:$16 sps:$4 sm:$0xff]  }
 0x26b   :  { %7065 = vmatpush1.bf16.msra.mxu0 %v10640_v53  ;;  %7913 = vmatpush1.bf16.msra.mxu1 %v10643_v54  ;;  %v10724_v53 = vld [vmem:[%s14760_s1 + $0x1500] ss:$16 sps:$4 sm:$0xff]   ;;  %v10727_v54 = vld [vmem:[%s14760_s1 + $0x1508] ss:$16 sps:$4 sm:$0xff]  }
 0x26c   :  { %7066 = vmatprep.subr.bf16.mxu0 %v10648_v55  ;;  %7914 = vmatprep.subr.bf16.mxu1 %v10651_v56  ;;  %v10732_v55 = vld [vmem:[%s14760_s1 + $0x1524] ss:$16 sps:$4 sm:$0xff]   ;;  %v10735_v56 = vld [vmem:[%s14760_s1 + $0x152c] ss:$16 sps:$4 sm:$0xff]  }
 0x26f   :  { %7067 = vmatpush1.bf16.msra.mxu0 %v10646_v59  ;;  %7915 = vmatpush1.bf16.msra.mxu1 %v10649_v60  ;;  %v10730_v59 = vld [vmem:[%s14760_s1 + $0x1520] ss:$16 sps:$4 sm:$0xff]   ;;  %v10733_v60 = vld [vmem:[%s14760_s1 + $0x1528] ss:$16 sps:$4 sm:$0xff]  }
 0x270   :  { %7068 = vmatprep.subr.bf16.mxu0 %v10654_v57  ;;  %7916 = vmatprep.subr.bf16.mxu1 %v10657_v58  ;;  %v10738_v57 = vld [vmem:[%s14760_s1 + $0x1544] ss:$16 sps:$4 sm:$0xff]   ;;  %v10741_v58 = vld [vmem:[%s14760_s1 + $0x154c] ss:$16 sps:$4 sm:$0xff]  }
 0x273   :  { %7069 = vmatpush1.bf16.msra.mxu0 %v10652_v61  ;;  %7917 = vmatpush1.bf16.msra.mxu1 %v10655_v62  ;;  %v10736_v61 = vld [vmem:[%s14760_s1 + $0x1540] ss:$16 sps:$4 sm:$0xff]   ;;  %v10739_v62 = vld [vmem:[%s14760_s1 + $0x1548] ss:$16 sps:$4 sm:$0xff]  }
 0x274   :  { %7070 = vmatprep.subr.bf16.mxu0 %v10660_v63  ;;  %7918 = vmatprep.subr.bf16.mxu1 %v10663_v0  ;;  %v10744_v63 = vld [vmem:[%s14760_s1 + $0x1564] ss:$16 sps:$4 sm:$0xff]   ;;  %v10747_v0 = vld [vmem:[%s14760_s1 + $0x156c] ss:$16 sps:$4 sm:$0xff]  }
 0x277   :  { %7071 = vmatpush1.bf16.msra.mxu0 %v10658_v3  ;;  %7919 = vmatpush1.bf16.msra.mxu1 %v10661_v4  ;;  %v10742_v3 = vld [vmem:[%s14760_s1 + $0x1560] ss:$16 sps:$4 sm:$0xff]   ;;  %v10745_v4 = vld [vmem:[%s14760_s1 + $0x1568] ss:$16 sps:$4 sm:$0xff]  }
 0x278   :  { %7072 = vmatprep.subr.bf16.mxu0 %v10666_v1  ;;  %7920 = vmatprep.subr.bf16.mxu1 %v10669_v2  ;;  %v10750_v1 = vld [vmem:[%s14760_s1 + $0x1584] ss:$16 sps:$4 sm:$0xff]   ;;  %v10753_v2 = vld [vmem:[%s14760_s1 + $0x158c] ss:$16 sps:$4 sm:$0xff]  }
 0x27b   :  { %7073 = vmatpush1.bf16.msra.mxu0 %v10664_v5  ;;  %7921 = vmatpush1.bf16.msra.mxu1 %v10667_v6  ;;  %v10748_v5 = vld [vmem:[%s14760_s1 + $0x1580] ss:$16 sps:$4 sm:$0xff]   ;;  %v10751_v6 = vld [vmem:[%s14760_s1 + $0x1588] ss:$16 sps:$4 sm:$0xff]  }
 0x27c   :  { %7074 = vmatprep.subr.bf16.mxu0 %v10672_v7  ;;  %7922 = vmatprep.subr.bf16.mxu1 %v10675_v8  ;;  %v10756_v7 = vld [vmem:[%s14760_s1 + $0x15a4] ss:$16 sps:$4 sm:$0xff]   ;;  %v10759_v8 = vld [vmem:[%s14760_s1 + $0x15ac] ss:$16 sps:$4 sm:$0xff]  }
 0x27f   :  { %7075 = vmatpush1.bf16.msra.mxu0 %v10670_v11  ;;  %7923 = vmatpush1.bf16.msra.mxu1 %v10673_v12  ;;  %v10754_v11 = vld [vmem:[%s14760_s1 + $0x15a0] ss:$16 sps:$4 sm:$0xff]   ;;  %v10757_v12 = vld [vmem:[%s14760_s1 + $0x15a8] ss:$16 sps:$4 sm:$0xff]  }
 0x280   :  { %7097 = vmatprep.subr.bf16.mxu0 %v10678_v9  ;;  %7945 = vmatprep.subr.bf16.mxu1 %v10681_v10  ;;  %v10762_v9 = vld [vmem:[%s14760_s1 + $0x15c4] ss:$16 sps:$4 sm:$0xff]   ;;  %v10765_v10 = vld [vmem:[%s14760_s1 + $0x15cc] ss:$16 sps:$4 sm:$0xff]  }
 0x282   :  { %7077 = vmatmul.mubr.bf16.vlgmr.msra.gmra.mrb[0].mxu0 %v8390_v13  ;;  %7925 = vmatmul.mubr.bf16.vlgmr.msra.gmra.mrb[0].mxu1 %v8390_v13  ;;  %v10760_v13 = vld [vmem:[%s14760_s1 + $0x15c0] ss:$16 sps:$4 sm:$0xff]  }
 0x283   :  { %7098 = vmatpush1.bf16.msra.mxu0 %v10676_v16  ;;  %7946 = vmatpush1.bf16.msra.mxu1 %v10679_v19  ;;  %v10771_v16 = vld [vmem:[%s14760_s1 + $0x15ec] ss:$16 sps:$4 sm:$0xff]   ;;  %v10766_v19 = vld [vmem:[%s14760_s1 + $0x15e0] ss:$16 sps:$4 sm:$0xff]  }
 0x284   :  { %7099 = vmatprep.subr.bf16.mxu0 %v10684_v17  ;;  %7947 = vmatprep.subr.bf16.mxu1 %v10687_v18  ;;  %v10769_v17 = vld [vmem:[%s14760_s1 + $0x15e8] ss:$16 sps:$4 sm:$0xff]   ;;  %v10774_v18 = vld [vmem:[%s14760_s1 + $0x1604] ss:$16 sps:$4 sm:$0xff]  }
 0x285   :  { %7086 = vmatprep.mubr.bf16.mxu0 %v8423_v20  ;;  %7934 = vmatprep.mubr.bf16.mxu1 %v8423_v20  ;;  %v10777_v20 = vld [vmem:[%s14760_s1 + $0x160c] ss:$16 sps:$4 sm:$0xff]  }
 0x287   :  { %7100 = vmatpush1.bf16.msra.mxu0 %v10682_v21  ;;  %7948 = vmatpush1.bf16.msra.mxu1 %v10685_v22  ;;  %v8392_v21 = vcombine.low %v13422_v25, %v13427_v27  ;;  %v59_v22 = vld [vmem:[%s14761_s0 + $0x150] sm:$0xff]  ;;  %v10783_v27 = vld [vmem:[%s14760_s1 + $0x162c] ss:$16 sps:$4 sm:$0xff]  }
 0x288   :  { %7101 = vmatprep.subr.bf16.mxu0 %v10690_v23  ;;  %7949 = vmatprep.subr.bf16.mxu1 %v10693_v24  ;;  %v75_v23 = vld [vmem:[%s14761_s0 + $0x1d0] sm:$0xff] }
 0x289   :  { %v10772_v24 = vld [vmem:[%s14760_s1 + $0x1600] ss:$16 sps:$4 sm:$0xff]   ;;  %v10780_v25 = vld [vmem:[%s14760_s1 + $0x1624] ss:$16 sps:$4 sm:$0xff]  }
 0x28a   :  { %7087 = vmatmul.mubr.bf16.gmra.mrb[4].mxu0 %v8422_v26  ;;  %7935 = vmatmul.mubr.bf16.gmra.mrb[4].mxu1 %v8422_v26  ;;  %v10775_v26 = vld [vmem:[%s14760_s1 + $0x1608] ss:$16 sps:$4 sm:$0xff]  }
 0x28b   :  { %7102 = vmatpush1.bf16.msra.mxu0 %v10688_v28  ;;  %7950 = vmatpush1.bf16.msra.mxu1 %v10691_v29  ;;  %v8425_v28 = vcombine.high %v59_v22, %v75_v23  ;;  %v10778_v29 = vld [vmem:[%s14760_s1 + $0x1620] ss:$16 sps:$4 sm:$0xff]  }
 0x28c   :  { %7103 = vmatprep.subr.bf16.mxu0 %v10696_v30  ;;  %7951 = vmatprep.subr.bf16.mxu1 %v10699_v31  ;;  %v10781_v30 = vld [vmem:[%s14760_s1 + $0x1628] ss:$16 sps:$4 sm:$0xff]   ;;  %v10786_v31 = vld [vmem:[%s14760_s1 + $0x1644] ss:$16 sps:$4 sm:$0xff]  }
 0x28d   :  { %7129 = vmatprep.mubr.bf16.mxu0 %v8393_v32  ;;  %7977 = vmatprep.mubr.bf16.mxu1 %v8393_v32  ;;  %v10789_v32 = vld [vmem:[%s14760_s1 + $0x164c] ss:$16 sps:$4 sm:$0xff]  }
 0x28f   :  { %7104 = vmatpush1.bf16.msra.mxu0 %v10694_v34  ;;  %7952 = vmatpush1.bf16.msra.mxu1 %v10697_v36  ;;  %v8424_v34 = vcombine.low %v59_v22, %v75_v23  ;;  %v13634_v36 = vld [vmem:[%s14761_s0 + $0x58] sm:$0xff]  ;;  %v10864_v23 = vld [vmem:[%s14760_s1 + $0x17e4] ss:$16 sps:$4 sm:$0xff]  }
 0x290   :  { %7105 = vmatprep.subr.bf16.mxu0 %v10702_v33  ;;  %7953 = vmatprep.subr.bf16.mxu1 %v10705_v35  ;;  %v13639_v33 = vld [vmem:[%s14761_s0 + $0xd8] sm:$0xff]  ;;  %v10784_v35 = vld [vmem:[%s14760_s1 + $0x1640] ss:$16 sps:$4 sm:$0xff]  }
 0x291   :  { %v10859_v22 = vld [vmem:[%s14760_s1 + $0x17c8] ss:$16 sps:$4 sm:$0xff]  }
 0x293   :  { %7106 = vmatpush1.bf16.msra.mxu0 %v10700_v37  ;;  %7954 = vmatpush1.bf16.msra.mxu1 %v10703_v38  ;;  %v10787_v37 = vld [vmem:[%s14760_s1 + $0x1648] ss:$16 sps:$4 sm:$0xff]   ;;  %v10792_v38 = vld [vmem:[%s14760_s1 + $0x1664] ss:$16 sps:$4 sm:$0xff]  }
 0x294   :  { %7107 = vmatprep.subr.bf16.mxu0 %v10708_v39  ;;  %7955 = vmatprep.subr.bf16.mxu1 %v10711_v40  ;;  %v10795_v39 = vld [vmem:[%s14760_s1 + $0x166c] ss:$16 sps:$4 sm:$0xff]   ;;  %v8395_v40 = vcombine.high %v13634_v36, %v13639_v33 }
 0x297   :  { %7108 = vmatpush1.bf16.msra.mxu0 %v10706_v42  ;;  %7956 = vmatpush1.bf16.msra.mxu1 %v10709_v44  ;;  %v10790_v42 = vld [vmem:[%s14760_s1 + $0x1660] ss:$16 sps:$4 sm:$0xff]   ;;  %v10793_v44 = vld [vmem:[%s14760_s1 + $0x1668] ss:$16 sps:$4 sm:$0xff]  }
 0x298   :  { %7109 = vmatprep.subr.bf16.mxu0 %v10714_v41  ;;  %7957 = vmatprep.subr.bf16.mxu1 %v10717_v43  ;;  %v10798_v41 = vld [vmem:[%s14760_s1 + $0x1684] ss:$16 sps:$4 sm:$0xff]   ;;  %v10801_v43 = vld [vmem:[%s14760_s1 + $0x168c] ss:$16 sps:$4 sm:$0xff]  }
 0x29b   :  { %7110 = vmatpush1.bf16.msra.mxu0 %v10712_v45  ;;  %7958 = vmatpush1.bf16.msra.mxu1 %v10715_v46  ;;  %v10796_v45 = vld [vmem:[%s14760_s1 + $0x1680] ss:$16 sps:$4 sm:$0xff]   ;;  %v10799_v46 = vld [vmem:[%s14760_s1 + $0x1688] ss:$16 sps:$4 sm:$0xff]  }
 0x29c   :  { %7111 = vmatprep.subr.bf16.mxu0 %v10720_v47  ;;  %7959 = vmatprep.subr.bf16.mxu1 %v10723_v48  ;;  %v10804_v47 = vld [vmem:[%s14760_s1 + $0x16a4] ss:$16 sps:$4 sm:$0xff]   ;;  %v10807_v48 = vld [vmem:[%s14760_s1 + $0x16ac] ss:$16 sps:$4 sm:$0xff]  }
 0x29f   :  { %7112 = vmatpush1.bf16.msra.mxu0 %v10718_v51  ;;  %7960 = vmatpush1.bf16.msra.mxu1 %v10721_v52  ;;  %v10802_v51 = vld [vmem:[%s14760_s1 + $0x16a0] ss:$16 sps:$4 sm:$0xff]   ;;  %v10805_v52 = vld [vmem:[%s14760_s1 + $0x16a8] ss:$16 sps:$4 sm:$0xff]  }
 0x2a0   :  { %7113 = vmatprep.subr.bf16.mxu0 %v10726_v49  ;;  %7961 = vmatprep.subr.bf16.mxu1 %v10729_v50  ;;  %v10810_v49 = vld [vmem:[%s14760_s1 + $0x16c4] ss:$16 sps:$4 sm:$0xff]   ;;  %v10813_v50 = vld [vmem:[%s14760_s1 + $0x16cc] ss:$16 sps:$4 sm:$0xff]  }
 0x2a3   :  { %7114 = vmatpush1.bf16.msra.mxu0 %v10724_v53  ;;  %7962 = vmatpush1.bf16.msra.mxu1 %v10727_v54  ;;  %v10808_v53 = vld [vmem:[%s14760_s1 + $0x16c0] ss:$16 sps:$4 sm:$0xff]   ;;  %v10811_v54 = vld [vmem:[%s14760_s1 + $0x16c8] ss:$16 sps:$4 sm:$0xff]  }
 0x2a4   :  { %7115 = vmatprep.subr.bf16.mxu0 %v10732_v55  ;;  %7963 = vmatprep.subr.bf16.mxu1 %v10735_v56  ;;  %v10816_v55 = vld [vmem:[%s14760_s1 + $0x16e4] ss:$16 sps:$4 sm:$0xff]   ;;  %v10819_v56 = vld [vmem:[%s14760_s1 + $0x16ec] ss:$16 sps:$4 sm:$0xff]  }
 0x2a7   :  { %7116 = vmatpush1.bf16.msra.mxu0 %v10730_v59  ;;  %7964 = vmatpush1.bf16.msra.mxu1 %v10733_v60  ;;  %v10814_v59 = vld [vmem:[%s14760_s1 + $0x16e0] ss:$16 sps:$4 sm:$0xff]   ;;  %v10817_v60 = vld [vmem:[%s14760_s1 + $0x16e8] ss:$16 sps:$4 sm:$0xff]  }
 0x2a8   :  { %7117 = vmatprep.subr.bf16.mxu0 %v10738_v57  ;;  %7965 = vmatprep.subr.bf16.mxu1 %v10741_v58  ;;  %v10822_v57 = vld [vmem:[%s14760_s1 + $0x1704] ss:$16 sps:$4 sm:$0xff]   ;;  %v10825_v58 = vld [vmem:[%s14760_s1 + $0x170c] ss:$16 sps:$4 sm:$0xff]  }
 0x2ab   :  { %7118 = vmatpush1.bf16.msra.mxu0 %v10736_v61  ;;  %7966 = vmatpush1.bf16.msra.mxu1 %v10739_v62  ;;  %v10820_v61 = vld [vmem:[%s14760_s1 + $0x1700] ss:$16 sps:$4 sm:$0xff]   ;;  %v10823_v62 = vld [vmem:[%s14760_s1 + $0x1708] ss:$16 sps:$4 sm:$0xff]  }
 0x2ac   :  { %7119 = vmatprep.subr.bf16.mxu0 %v10744_v63  ;;  %7967 = vmatprep.subr.bf16.mxu1 %v10747_v0  ;;  %v10828_v63 = vld [vmem:[%s14760_s1 + $0x1724] ss:$16 sps:$4 sm:$0xff]   ;;  %v10831_v0 = vld [vmem:[%s14760_s1 + $0x172c] ss:$16 sps:$4 sm:$0xff]  }
 0x2af   :  { %7120 = vmatpush1.bf16.msra.mxu0 %v10742_v3  ;;  %7968 = vmatpush1.bf16.msra.mxu1 %v10745_v4  ;;  %v10826_v3 = vld [vmem:[%s14760_s1 + $0x1720] ss:$16 sps:$4 sm:$0xff]   ;;  %v10829_v4 = vld [vmem:[%s14760_s1 + $0x1728] ss:$16 sps:$4 sm:$0xff]  }
 0x2b0   :  { %7121 = vmatprep.subr.bf16.mxu0 %v10750_v1  ;;  %7969 = vmatprep.subr.bf16.mxu1 %v10753_v2  ;;  %v10834_v1 = vld [vmem:[%s14760_s1 + $0x1744] ss:$16 sps:$4 sm:$0xff]   ;;  %v10837_v2 = vld [vmem:[%s14760_s1 + $0x174c] ss:$16 sps:$4 sm:$0xff]  }
 0x2b3   :  { %7122 = vmatpush1.bf16.msra.mxu0 %v10748_v5  ;;  %7970 = vmatpush1.bf16.msra.mxu1 %v10751_v6  ;;  %v10832_v5 = vld [vmem:[%s14760_s1 + $0x1740] ss:$16 sps:$4 sm:$0xff]   ;;  %v10835_v6 = vld [vmem:[%s14760_s1 + $0x1748] ss:$16 sps:$4 sm:$0xff]  }
 0x2b4   :  { %7123 = vmatprep.subr.bf16.mxu0 %v10756_v7  ;;  %7971 = vmatprep.subr.bf16.mxu1 %v10759_v8  ;;  %v10840_v7 = vld [vmem:[%s14760_s1 + $0x1764] ss:$16 sps:$4 sm:$0xff]   ;;  %v10843_v8 = vld [vmem:[%s14760_s1 + $0x176c] ss:$16 sps:$4 sm:$0xff]  }
 0x2b7   :  { %7124 = vmatpush1.bf16.msra.mxu0 %v10754_v11  ;;  %7972 = vmatpush1.bf16.msra.mxu1 %v10757_v12  ;;  %v10838_v11 = vld [vmem:[%s14760_s1 + $0x1760] ss:$16 sps:$4 sm:$0xff]   ;;  %v10841_v12 = vld [vmem:[%s14760_s1 + $0x1768] ss:$16 sps:$4 sm:$0xff]  }
 0x2b8   :  { %7125 = vmatprep.subr.bf16.mxu0 %v10762_v9  ;;  %7973 = vmatprep.subr.bf16.mxu1 %v10765_v10  ;;  %v10846_v9 = vld [vmem:[%s14760_s1 + $0x1784] ss:$16 sps:$4 sm:$0xff]   ;;  %v10849_v10 = vld [vmem:[%s14760_s1 + $0x178c] ss:$16 sps:$4 sm:$0xff]  }
 0x2bb   :  { %7126 = vmatpush1.bf16.msra.mxu0 %v10760_v13  ;;  %7974 = vmatpush1.bf16.msra.mxu1 %v10763_v14  ;;  %v10844_v13 = vld [vmem:[%s14760_s1 + $0x1780] ss:$16 sps:$4 sm:$0xff]   ;;  %v10847_v14 = vld [vmem:[%s14760_s1 + $0x1788] ss:$16 sps:$4 sm:$0xff]  }
 0x2bc   :  { %7127 = vmatprep.subr.bf16.mxu0 %v10768_v15  ;;  %7975 = vmatprep.subr.bf16.mxu1 %v10771_v16  ;;  %v10852_v15 = vld [vmem:[%s14760_s1 + $0x17a4] ss:$16 sps:$4 sm:$0xff]   ;;  %v10855_v16 = vld [vmem:[%s14760_s1 + $0x17ac] ss:$16 sps:$4 sm:$0xff]  }
 0x2bf   :  { %7128 = vmatpush1.bf16.msra.mxu0 %v10766_v19  ;;  %7976 = vmatpush1.bf16.msra.mxu1 %v10769_v17  ;;  %v10850_v19 = vld [vmem:[%s14760_s1 + $0x17a0] ss:$16 sps:$4 sm:$0xff]   ;;  %v10853_v17 = vld [vmem:[%s14760_s1 + $0x17a8] ss:$16 sps:$4 sm:$0xff]  }
 0x2c0   :  { %7150 = vmatprep.subr.bf16.mxu0 %v10774_v18  ;;  %7998 = vmatprep.subr.bf16.mxu1 %v10777_v20  ;;  %v10858_v18 = vld [vmem:[%s14760_s1 + $0x17c4] ss:$16 sps:$4 sm:$0xff]   ;;  %v10861_v20 = vld [vmem:[%s14760_s1 + $0x17cc] ss:$16 sps:$4 sm:$0xff]  }
 0x2c2   :  { %7130 = vmatmul.mubr.bf16.vlgmr.msra.gmra.mrb[0].mxu0 %v8392_v21  ;;  %7978 = vmatmul.mubr.bf16.vlgmr.msra.gmra.mrb[0].mxu1 %v8392_v21  ;;  %v10856_v21 = vld [vmem:[%s14760_s1 + $0x17c0] ss:$16 sps:$4 sm:$0xff]  }
 0x2c3   :  { %7151 = vmatpush1.bf16.msra.mxu0 %v10772_v24  ;;  %7999 = vmatpush1.bf16.msra.mxu1 %v10775_v26  ;;  %v10867_v24 = vld [vmem:[%s14760_s1 + $0x17ec] ss:$16 sps:$4 sm:$0xff]   ;;  %v10862_v26 = vld [vmem:[%s14760_s1 + $0x17e0] ss:$16 sps:$4 sm:$0xff]  }
 0x2c4   :  { %7152 = vmatprep.subr.bf16.mxu0 %v10780_v25  ;;  %8000 = vmatprep.subr.bf16.mxu1 %v10783_v27  ;;  %v10865_v25 = vld [vmem:[%s14760_s1 + $0x17e8] ss:$16 sps:$4 sm:$0xff]   ;;  %v10870_v27 = vld [vmem:[%s14760_s1 + $0x1804] ss:$16 sps:$4 sm:$0xff]  }
 0x2c5   :  { %7139 = vmatprep.mubr.bf16.mxu0 %v8425_v28  ;;  %7987 = vmatprep.mubr.bf16.mxu1 %v8425_v28  ;;  %v10873_v28 = vld [vmem:[%s14760_s1 + $0x180c] ss:$16 sps:$4 sm:$0xff]  }
 0x2c7   :  { %7153 = vmatpush1.bf16.msra.mxu0 %v10778_v29  ;;  %8001 = vmatpush1.bf16.msra.mxu1 %v10781_v30  ;;  %v8394_v29 = vcombine.low %v13634_v36, %v13639_v33  ;;  %v60_v30 = vld [vmem:[%s14761_s0 + $0x158] sm:$0xff]  ;;  %v10876_v36 = vld [vmem:[%s14760_s1 + $0x1824] ss:$16 sps:$4 sm:$0xff]  }
 0x2c8   :  { %7154 = vmatprep.subr.bf16.mxu0 %v10786_v31  ;;  %8002 = vmatprep.subr.bf16.mxu1 %v10789_v32  ;;  %v76_v31 = vld [vmem:[%s14761_s0 + $0x1d8] sm:$0xff]  ;;  %v10868_v32 = vld [vmem:[%s14760_s1 + $0x1800] ss:$16 sps:$4 sm:$0xff]  }
 0x2c9   :  { %v10879_v33 = vld [vmem:[%s14760_s1 + $0x182c] ss:$16 sps:$4 sm:$0xff]  }
 0x2ca   :  { %7140 = vmatmul.mubr.bf16.gmra.mrb[4].mxu0 %v8424_v34  ;;  %7988 = vmatmul.mubr.bf16.gmra.mrb[4].mxu1 %v8424_v34  ;;  %v10871_v34 = vld [vmem:[%s14760_s1 + $0x1808] ss:$16 sps:$4 sm:$0xff]  }
 0x2cb   :  { %7155 = vmatpush1.bf16.msra.mxu0 %v10784_v35  ;;  %8003 = vmatpush1.bf16.msra.mxu1 %v10787_v37  ;;  %v8427_v35 = vcombine.high %v60_v30, %v76_v31  ;;  %v10874_v37 = vld [vmem:[%s14760_s1 + $0x1820] ss:$16 sps:$4 sm:$0xff]  }
 0x2cc   :  { %7156 = vmatprep.subr.bf16.mxu0 %v10792_v38  ;;  %8004 = vmatprep.subr.bf16.mxu1 %v10795_v39  ;;  %v10877_v38 = vld [vmem:[%s14760_s1 + $0x1828] ss:$16 sps:$4 sm:$0xff]   ;;  %v10882_v39 = vld [vmem:[%s14760_s1 + $0x1844] ss:$16 sps:$4 sm:$0xff]  }
 0x2cd   :  { %7182 = vmatprep.mubr.bf16.mxu0 %v8395_v40  ;;  %8030 = vmatprep.mubr.bf16.mxu1 %v8395_v40  ;;  %v10885_v40 = vld [vmem:[%s14760_s1 + $0x184c] ss:$16 sps:$4 sm:$0xff]  }
 0x2cf   :  { %7157 = vmatpush1.bf16.msra.mxu0 %v10790_v42  ;;  %8005 = vmatpush1.bf16.msra.mxu1 %v10793_v44  ;;  %v8426_v42 = vcombine.low %v60_v30, %v76_v31  ;;  %v13846_v44 = vld [vmem:[%s14761_s0 + $0x60] sm:$0xff]  ;;  %v10955_v30 = vld [vmem:[%s14760_s1 + $0x19c8] ss:$16 sps:$4 sm:$0xff]  }
 0x2d0   :  { %7158 = vmatprep.subr.bf16.mxu0 %v10798_v41  ;;  %8006 = vmatprep.subr.bf16.mxu1 %v10801_v43  ;;  %v13851_v41 = vld [vmem:[%s14761_s0 + $0xe0] sm:$0xff] }
 0x2d1   :  { %v10880_v43 = vld [vmem:[%s14760_s1 + $0x1840] ss:$16 sps:$4 sm:$0xff]   ;;  %v10960_v31 = vld [vmem:[%s14760_s1 + $0x19e4] ss:$16 sps:$4 sm:$0xff]  }
 0x2d3   :  { %7159 = vmatpush1.bf16.msra.mxu0 %v10796_v45  ;;  %8007 = vmatpush1.bf16.msra.mxu1 %v10799_v46  ;;  %v10883_v45 = vld [vmem:[%s14760_s1 + $0x1848] ss:$16 sps:$4 sm:$0xff]   ;;  %v10888_v46 = vld [vmem:[%s14760_s1 + $0x1864] ss:$16 sps:$4 sm:$0xff]  }
 0x2d4   :  { %7160 = vmatprep.subr.bf16.mxu0 %v10804_v47  ;;  %8008 = vmatprep.subr.bf16.mxu1 %v10807_v48  ;;  %v10891_v47 = vld [vmem:[%s14760_s1 + $0x186c] ss:$16 sps:$4 sm:$0xff]   ;;  %v8397_v48 = vcombine.high %v13846_v44, %v13851_v41 }
 0x2d7   :  { %7161 = vmatpush1.bf16.msra.mxu0 %v10802_v51  ;;  %8009 = vmatpush1.bf16.msra.mxu1 %v10805_v52  ;;  %v10886_v51 = vld [vmem:[%s14760_s1 + $0x1860] ss:$16 sps:$4 sm:$0xff]   ;;  %v10889_v52 = vld [vmem:[%s14760_s1 + $0x1868] ss:$16 sps:$4 sm:$0xff]  }
 0x2d8   :  { %7162 = vmatprep.subr.bf16.mxu0 %v10810_v49  ;;  %8010 = vmatprep.subr.bf16.mxu1 %v10813_v50  ;;  %v10894_v49 = vld [vmem:[%s14760_s1 + $0x1884] ss:$16 sps:$4 sm:$0xff]   ;;  %v10897_v50 = vld [vmem:[%s14760_s1 + $0x188c] ss:$16 sps:$4 sm:$0xff]  }
 0x2db   :  { %7163 = vmatpush1.bf16.msra.mxu0 %v10808_v53  ;;  %8011 = vmatpush1.bf16.msra.mxu1 %v10811_v54  ;;  %v10892_v53 = vld [vmem:[%s14760_s1 + $0x1880] ss:$16 sps:$4 sm:$0xff]   ;;  %v10895_v54 = vld [vmem:[%s14760_s1 + $0x1888] ss:$16 sps:$4 sm:$0xff]  }
 0x2dc   :  { %7164 = vmatprep.subr.bf16.mxu0 %v10816_v55  ;;  %8012 = vmatprep.subr.bf16.mxu1 %v10819_v56  ;;  %v10900_v55 = vld [vmem:[%s14760_s1 + $0x18a4] ss:$16 sps:$4 sm:$0xff]   ;;  %v10903_v56 = vld [vmem:[%s14760_s1 + $0x18ac] ss:$16 sps:$4 sm:$0xff]  }
 0x2df   :  { %7165 = vmatpush1.bf16.msra.mxu0 %v10814_v59  ;;  %8013 = vmatpush1.bf16.msra.mxu1 %v10817_v60  ;;  %v10898_v59 = vld [vmem:[%s14760_s1 + $0x18a0] ss:$16 sps:$4 sm:$0xff]   ;;  %v10901_v60 = vld [vmem:[%s14760_s1 + $0x18a8] ss:$16 sps:$4 sm:$0xff]  }
 0x2e0   :  { %7166 = vmatprep.subr.bf16.mxu0 %v10822_v57  ;;  %8014 = vmatprep.subr.bf16.mxu1 %v10825_v58  ;;  %v10906_v57 = vld [vmem:[%s14760_s1 + $0x18c4] ss:$16 sps:$4 sm:$0xff]   ;;  %v10909_v58 = vld [vmem:[%s14760_s1 + $0x18cc] ss:$16 sps:$4 sm:$0xff]  }
 0x2e3   :  { %7167 = vmatpush1.bf16.msra.mxu0 %v10820_v61  ;;  %8015 = vmatpush1.bf16.msra.mxu1 %v10823_v62  ;;  %v10904_v61 = vld [vmem:[%s14760_s1 + $0x18c0] ss:$16 sps:$4 sm:$0xff]   ;;  %v10907_v62 = vld [vmem:[%s14760_s1 + $0x18c8] ss:$16 sps:$4 sm:$0xff]  }
 0x2e4   :  { %7168 = vmatprep.subr.bf16.mxu0 %v10828_v63  ;;  %8016 = vmatprep.subr.bf16.mxu1 %v10831_v0  ;;  %v10912_v63 = vld [vmem:[%s14760_s1 + $0x18e4] ss:$16 sps:$4 sm:$0xff]   ;;  %v10915_v0 = vld [vmem:[%s14760_s1 + $0x18ec] ss:$16 sps:$4 sm:$0xff]  }
 0x2e7   :  { %7169 = vmatpush1.bf16.msra.mxu0 %v10826_v3  ;;  %8017 = vmatpush1.bf16.msra.mxu1 %v10829_v4  ;;  %v10910_v3 = vld [vmem:[%s14760_s1 + $0x18e0] ss:$16 sps:$4 sm:$0xff]   ;;  %v10913_v4 = vld [vmem:[%s14760_s1 + $0x18e8] ss:$16 sps:$4 sm:$0xff]  }
 0x2e8   :  { %7170 = vmatprep.subr.bf16.mxu0 %v10834_v1  ;;  %8018 = vmatprep.subr.bf16.mxu1 %v10837_v2  ;;  %v10918_v1 = vld [vmem:[%s14760_s1 + $0x1904] ss:$16 sps:$4 sm:$0xff]   ;;  %v10921_v2 = vld [vmem:[%s14760_s1 + $0x190c] ss:$16 sps:$4 sm:$0xff]  }
 0x2eb   :  { %7171 = vmatpush1.bf16.msra.mxu0 %v10832_v5  ;;  %8019 = vmatpush1.bf16.msra.mxu1 %v10835_v6  ;;  %v10916_v5 = vld [vmem:[%s14760_s1 + $0x1900] ss:$16 sps:$4 sm:$0xff]   ;;  %v10919_v6 = vld [vmem:[%s14760_s1 + $0x1908] ss:$16 sps:$4 sm:$0xff]  }
 0x2ec   :  { %7172 = vmatprep.subr.bf16.mxu0 %v10840_v7  ;;  %8020 = vmatprep.subr.bf16.mxu1 %v10843_v8  ;;  %v10924_v7 = vld [vmem:[%s14760_s1 + $0x1924] ss:$16 sps:$4 sm:$0xff]   ;;  %v10927_v8 = vld [vmem:[%s14760_s1 + $0x192c] ss:$16 sps:$4 sm:$0xff]  }
 0x2ef   :  { %7173 = vmatpush1.bf16.msra.mxu0 %v10838_v11  ;;  %8021 = vmatpush1.bf16.msra.mxu1 %v10841_v12  ;;  %v10922_v11 = vld [vmem:[%s14760_s1 + $0x1920] ss:$16 sps:$4 sm:$0xff]   ;;  %v10925_v12 = vld [vmem:[%s14760_s1 + $0x1928] ss:$16 sps:$4 sm:$0xff]  }
 0x2f0   :  { %7174 = vmatprep.subr.bf16.mxu0 %v10846_v9  ;;  %8022 = vmatprep.subr.bf16.mxu1 %v10849_v10  ;;  %v10930_v9 = vld [vmem:[%s14760_s1 + $0x1944] ss:$16 sps:$4 sm:$0xff]   ;;  %v10933_v10 = vld [vmem:[%s14760_s1 + $0x194c] ss:$16 sps:$4 sm:$0xff]  }
 0x2f3   :  { %7175 = vmatpush1.bf16.msra.mxu0 %v10844_v13  ;;  %8023 = vmatpush1.bf16.msra.mxu1 %v10847_v14  ;;  %v10928_v13 = vld [vmem:[%s14760_s1 + $0x1940] ss:$16 sps:$4 sm:$0xff]   ;;  %v10931_v14 = vld [vmem:[%s14760_s1 + $0x1948] ss:$16 sps:$4 sm:$0xff]  }
 0x2f4   :  { %7176 = vmatprep.subr.bf16.mxu0 %v10852_v15  ;;  %8024 = vmatprep.subr.bf16.mxu1 %v10855_v16  ;;  %v10936_v15 = vld [vmem:[%s14760_s1 + $0x1964] ss:$16 sps:$4 sm:$0xff]   ;;  %v10939_v16 = vld [vmem:[%s14760_s1 + $0x196c] ss:$16 sps:$4 sm:$0xff]  }
 0x2f7   :  { %7177 = vmatpush1.bf16.msra.mxu0 %v10850_v19  ;;  %8025 = vmatpush1.bf16.msra.mxu1 %v10853_v17  ;;  %v10934_v19 = vld [vmem:[%s14760_s1 + $0x1960] ss:$16 sps:$4 sm:$0xff]   ;;  %v10937_v17 = vld [vmem:[%s14760_s1 + $0x1968] ss:$16 sps:$4 sm:$0xff]  }
 0x2f8   :  { %7178 = vmatprep.subr.bf16.mxu0 %v10858_v18  ;;  %8026 = vmatprep.subr.bf16.mxu1 %v10861_v20  ;;  %v10942_v18 = vld [vmem:[%s14760_s1 + $0x1984] ss:$16 sps:$4 sm:$0xff]   ;;  %v10945_v20 = vld [vmem:[%s14760_s1 + $0x198c] ss:$16 sps:$4 sm:$0xff]  }
 0x2fb   :  { %7179 = vmatpush1.bf16.msra.mxu0 %v10856_v21  ;;  %8027 = vmatpush1.bf16.msra.mxu1 %v10859_v22  ;;  %v10940_v21 = vld [vmem:[%s14760_s1 + $0x1980] ss:$16 sps:$4 sm:$0xff]   ;;  %v10943_v22 = vld [vmem:[%s14760_s1 + $0x1988] ss:$16 sps:$4 sm:$0xff]  }
 0x2fc   :  { %7180 = vmatprep.subr.bf16.mxu0 %v10864_v23  ;;  %8028 = vmatprep.subr.bf16.mxu1 %v10867_v24  ;;  %v10948_v23 = vld [vmem:[%s14760_s1 + $0x19a4] ss:$16 sps:$4 sm:$0xff]   ;;  %v10951_v24 = vld [vmem:[%s14760_s1 + $0x19ac] ss:$16 sps:$4 sm:$0xff]  }
 0x2ff   :  { %7181 = vmatpush1.bf16.msra.mxu0 %v10862_v26  ;;  %8029 = vmatpush1.bf16.msra.mxu1 %v10865_v25  ;;  %v10946_v26 = vld [vmem:[%s14760_s1 + $0x19a0] ss:$16 sps:$4 sm:$0xff]   ;;  %v10949_v25 = vld [vmem:[%s14760_s1 + $0x19a8] ss:$16 sps:$4 sm:$0xff]  }
 0x300   :  { %7203 = vmatprep.subr.bf16.mxu0 %v10870_v27  ;;  %8051 = vmatprep.subr.bf16.mxu1 %v10873_v28  ;;  %v10954_v27 = vld [vmem:[%s14760_s1 + $0x19c4] ss:$16 sps:$4 sm:$0xff]   ;;  %v10957_v28 = vld [vmem:[%s14760_s1 + $0x19cc] ss:$16 sps:$4 sm:$0xff]  }
 0x302   :  { %7183 = vmatmul.mubr.bf16.vlgmr.msra.gmra.mrb[0].mxu0 %v8394_v29  ;;  %8031 = vmatmul.mubr.bf16.vlgmr.msra.gmra.mrb[0].mxu1 %v8394_v29  ;;  %v10952_v29 = vld [vmem:[%s14760_s1 + $0x19c0] ss:$16 sps:$4 sm:$0xff]  }
 0x303   :  { %7204 = vmatpush1.bf16.msra.mxu0 %v10868_v32  ;;  %8052 = vmatpush1.bf16.msra.mxu1 %v10871_v34  ;;  %v10963_v32 = vld [vmem:[%s14760_s1 + $0x19ec] ss:$16 sps:$4 sm:$0xff]   ;;  %v10958_v34 = vld [vmem:[%s14760_s1 + $0x19e0] ss:$16 sps:$4 sm:$0xff]  }
 0x304   :  { %7205 = vmatprep.subr.bf16.mxu0 %v10876_v36  ;;  %8053 = vmatprep.subr.bf16.mxu1 %v10879_v33  ;;  %v10961_v36 = vld [vmem:[%s14760_s1 + $0x19e8] ss:$16 sps:$4 sm:$0xff]   ;;  %v10966_v33 = vld [vmem:[%s14760_s1 + $0x1a04] ss:$16 sps:$4 sm:$0xff]  }
 0x305   :  { %7192 = vmatprep.mubr.bf16.mxu0 %v8427_v35  ;;  %8040 = vmatprep.mubr.bf16.mxu1 %v8427_v35  ;;  %v10969_v35 = vld [vmem:[%s14760_s1 + $0x1a0c] ss:$16 sps:$4 sm:$0xff]  }
 0x307   :  { %7206 = vmatpush1.bf16.msra.mxu0 %v10874_v37  ;;  %8054 = vmatpush1.bf16.msra.mxu1 %v10877_v38  ;;  %v8396_v37 = vcombine.low %v13846_v44, %v13851_v41  ;;  %v61_v38 = vld [vmem:[%s14761_s0 + $0x160] sm:$0xff]  ;;  %v10975_v41 = vld [vmem:[%s14760_s1 + $0x1a2c] ss:$16 sps:$4 sm:$0xff]  }
 0x308   :  { %7207 = vmatprep.subr.bf16.mxu0 %v10882_v39  ;;  %8055 = vmatprep.subr.bf16.mxu1 %v10885_v40  ;;  %v77_v39 = vld [vmem:[%s14761_s0 + $0x1e0] sm:$0xff] }
 0x309   :  { %v10964_v40 = vld [vmem:[%s14760_s1 + $0x1a00] ss:$16 sps:$4 sm:$0xff]   ;;  %v10972_v44 = vld [vmem:[%s14760_s1 + $0x1a24] ss:$16 sps:$4 sm:$0xff]  }
 0x30a   :  { %7193 = vmatmul.mubr.bf16.gmra.mrb[4].mxu0 %v8426_v42  ;;  %8041 = vmatmul.mubr.bf16.gmra.mrb[4].mxu1 %v8426_v42  ;;  %v10967_v42 = vld [vmem:[%s14760_s1 + $0x1a08] ss:$16 sps:$4 sm:$0xff]  }
 0x30b   :  { %7208 = vmatpush1.bf16.msra.mxu0 %v10880_v43  ;;  %8056 = vmatpush1.bf16.msra.mxu1 %v10883_v45  ;;  %v8429_v43 = vcombine.high %v61_v38, %v77_v39  ;;  %v10970_v45 = vld [vmem:[%s14760_s1 + $0x1a20] ss:$16 sps:$4 sm:$0xff]  }
 0x30c   :  { %7209 = vmatprep.subr.bf16.mxu0 %v10888_v46  ;;  %8057 = vmatprep.subr.bf16.mxu1 %v10891_v47  ;;  %v10973_v46 = vld [vmem:[%s14760_s1 + $0x1a28] ss:$16 sps:$4 sm:$0xff]   ;;  %v10978_v47 = vld [vmem:[%s14760_s1 + $0x1a44] ss:$16 sps:$4 sm:$0xff]  }
 0x30d   :  { %7235 = vmatprep.mubr.bf16.mxu0 %v8397_v48  ;;  %8083 = vmatprep.mubr.bf16.mxu1 %v8397_v48  ;;  %v10981_v48 = vld [vmem:[%s14760_s1 + $0x1a4c] ss:$16 sps:$4 sm:$0xff]  }
 0x30f   :  { %7210 = vmatpush1.bf16.msra.mxu0 %v10886_v51  ;;  %8058 = vmatpush1.bf16.msra.mxu1 %v10889_v52  ;;  %v8428_v51 = vcombine.low %v61_v38, %v77_v39  ;;  %v14058_v52 = vld [vmem:[%s14761_s0 + $0x68] sm:$0xff]  ;;  %v11056_v39 = vld [vmem:[%s14760_s1 + $0x1be4] ss:$16 sps:$4 sm:$0xff]  }
 0x310   :  { %7211 = vmatprep.subr.bf16.mxu0 %v10894_v49  ;;  %8059 = vmatprep.subr.bf16.mxu1 %v10897_v50  ;;  %v14063_v49 = vld [vmem:[%s14761_s0 + $0xe8] sm:$0xff]  ;;  %v10976_v50 = vld [vmem:[%s14760_s1 + $0x1a40] ss:$16 sps:$4 sm:$0xff]  }
 0x311   :  { %v11051_v38 = vld [vmem:[%s14760_s1 + $0x1bc8] ss:$16 sps:$4 sm:$0xff]  }
 0x313   :  { %7212 = vmatpush1.bf16.msra.mxu0 %v10892_v53  ;;  %8060 = vmatpush1.bf16.msra.mxu1 %v10895_v54  ;;  %v10979_v53 = vld [vmem:[%s14760_s1 + $0x1a48] ss:$16 sps:$4 sm:$0xff]   ;;  %v10984_v54 = vld [vmem:[%s14760_s1 + $0x1a64] ss:$16 sps:$4 sm:$0xff]  }
 0x314   :  { %7213 = vmatprep.subr.bf16.mxu0 %v10900_v55  ;;  %8061 = vmatprep.subr.bf16.mxu1 %v10903_v56  ;;  %v10987_v55 = vld [vmem:[%s14760_s1 + $0x1a6c] ss:$16 sps:$4 sm:$0xff]   ;;  %v8399_v56 = vcombine.high %v14058_v52, %v14063_v49 }
 0x317   :  { %7214 = vmatpush1.bf16.msra.mxu0 %v10898_v59  ;;  %8062 = vmatpush1.bf16.msra.mxu1 %v10901_v60  ;;  %v10982_v59 = vld [vmem:[%s14760_s1 + $0x1a60] ss:$16 sps:$4 sm:$0xff]   ;;  %v10985_v60 = vld [vmem:[%s14760_s1 + $0x1a68] ss:$16 sps:$4 sm:$0xff]  }
 0x318   :  { %7215 = vmatprep.subr.bf16.mxu0 %v10906_v57  ;;  %8063 = vmatprep.subr.bf16.mxu1 %v10909_v58  ;;  %v10990_v57 = vld [vmem:[%s14760_s1 + $0x1a84] ss:$16 sps:$4 sm:$0xff]   ;;  %v10993_v58 = vld [vmem:[%s14760_s1 + $0x1a8c] ss:$16 sps:$4 sm:$0xff]  }
 0x31b   :  { %7216 = vmatpush1.bf16.msra.mxu0 %v10904_v61  ;;  %8064 = vmatpush1.bf16.msra.mxu1 %v10907_v62  ;;  %v10988_v61 = vld [vmem:[%s14760_s1 + $0x1a80] ss:$16 sps:$4 sm:$0xff]   ;;  %v10991_v62 = vld [vmem:[%s14760_s1 + $0x1a88] ss:$16 sps:$4 sm:$0xff]  }
 0x31c   :  { %7217 = vmatprep.subr.bf16.mxu0 %v10912_v63  ;;  %8065 = vmatprep.subr.bf16.mxu1 %v10915_v0  ;;  %v10996_v63 = vld [vmem:[%s14760_s1 + $0x1aa4] ss:$16 sps:$4 sm:$0xff]   ;;  %v10999_v0 = vld [vmem:[%s14760_s1 + $0x1aac] ss:$16 sps:$4 sm:$0xff]  }
 0x31f   :  { %7218 = vmatpush1.bf16.msra.mxu0 %v10910_v3  ;;  %8066 = vmatpush1.bf16.msra.mxu1 %v10913_v4  ;;  %v10994_v3 = vld [vmem:[%s14760_s1 + $0x1aa0] ss:$16 sps:$4 sm:$0xff]   ;;  %v10997_v4 = vld [vmem:[%s14760_s1 + $0x1aa8] ss:$16 sps:$4 sm:$0xff]  }
 0x320   :  { %7219 = vmatprep.subr.bf16.mxu0 %v10918_v1  ;;  %8067 = vmatprep.subr.bf16.mxu1 %v10921_v2  ;;  %v11002_v1 = vld [vmem:[%s14760_s1 + $0x1ac4] ss:$16 sps:$4 sm:$0xff]   ;;  %v11005_v2 = vld [vmem:[%s14760_s1 + $0x1acc] ss:$16 sps:$4 sm:$0xff]  }
 0x323   :  { %7220 = vmatpush1.bf16.msra.mxu0 %v10916_v5  ;;  %8068 = vmatpush1.bf16.msra.mxu1 %v10919_v6  ;;  %v11000_v5 = vld [vmem:[%s14760_s1 + $0x1ac0] ss:$16 sps:$4 sm:$0xff]   ;;  %v11003_v6 = vld [vmem:[%s14760_s1 + $0x1ac8] ss:$16 sps:$4 sm:$0xff]  }
 0x324   :  { %7221 = vmatprep.subr.bf16.mxu0 %v10924_v7  ;;  %8069 = vmatprep.subr.bf16.mxu1 %v10927_v8  ;;  %v11008_v7 = vld [vmem:[%s14760_s1 + $0x1ae4] ss:$16 sps:$4 sm:$0xff]   ;;  %v11011_v8 = vld [vmem:[%s14760_s1 + $0x1aec] ss:$16 sps:$4 sm:$0xff]  }
 0x327   :  { %7222 = vmatpush1.bf16.msra.mxu0 %v10922_v11  ;;  %8070 = vmatpush1.bf16.msra.mxu1 %v10925_v12  ;;  %v11006_v11 = vld [vmem:[%s14760_s1 + $0x1ae0] ss:$16 sps:$4 sm:$0xff]   ;;  %v11009_v12 = vld [vmem:[%s14760_s1 + $0x1ae8] ss:$16 sps:$4 sm:$0xff]  }
 0x328   :  { %7223 = vmatprep.subr.bf16.mxu0 %v10930_v9  ;;  %8071 = vmatprep.subr.bf16.mxu1 %v10933_v10  ;;  %v11014_v9 = vld [vmem:[%s14760_s1 + $0x1b04] ss:$16 sps:$4 sm:$0xff]   ;;  %v11017_v10 = vld [vmem:[%s14760_s1 + $0x1b0c] ss:$16 sps:$4 sm:$0xff]  }
 0x32b   :  { %7224 = vmatpush1.bf16.msra.mxu0 %v10928_v13  ;;  %8072 = vmatpush1.bf16.msra.mxu1 %v10931_v14  ;;  %v11012_v13 = vld [vmem:[%s14760_s1 + $0x1b00] ss:$16 sps:$4 sm:$0xff]   ;;  %v11015_v14 = vld [vmem:[%s14760_s1 + $0x1b08] ss:$16 sps:$4 sm:$0xff]  }
 0x32c   :  { %7225 = vmatprep.subr.bf16.mxu0 %v10936_v15  ;;  %8073 = vmatprep.subr.bf16.mxu1 %v10939_v16  ;;  %v11020_v15 = vld [vmem:[%s14760_s1 + $0x1b24] ss:$16 sps:$4 sm:$0xff]   ;;  %v11023_v16 = vld [vmem:[%s14760_s1 + $0x1b2c] ss:$16 sps:$4 sm:$0xff]  }
 0x32f   :  { %7226 = vmatpush1.bf16.msra.mxu0 %v10934_v19  ;;  %8074 = vmatpush1.bf16.msra.mxu1 %v10937_v17  ;;  %v11018_v19 = vld [vmem:[%s14760_s1 + $0x1b20] ss:$16 sps:$4 sm:$0xff]   ;;  %v11021_v17 = vld [vmem:[%s14760_s1 + $0x1b28] ss:$16 sps:$4 sm:$0xff]  }
 0x330   :  { %7227 = vmatprep.subr.bf16.mxu0 %v10942_v18  ;;  %8075 = vmatprep.subr.bf16.mxu1 %v10945_v20  ;;  %v11026_v18 = vld [vmem:[%s14760_s1 + $0x1b44] ss:$16 sps:$4 sm:$0xff]   ;;  %v11029_v20 = vld [vmem:[%s14760_s1 + $0x1b4c] ss:$16 sps:$4 sm:$0xff]  }
 0x333   :  { %7228 = vmatpush1.bf16.msra.mxu0 %v10940_v21  ;;  %8076 = vmatpush1.bf16.msra.mxu1 %v10943_v22  ;;  %v11024_v21 = vld [vmem:[%s14760_s1 + $0x1b40] ss:$16 sps:$4 sm:$0xff]   ;;  %v11027_v22 = vld [vmem:[%s14760_s1 + $0x1b48] ss:$16 sps:$4 sm:$0xff]  }
 0x334   :  { %7229 = vmatprep.subr.bf16.mxu0 %v10948_v23  ;;  %8077 = vmatprep.subr.bf16.mxu1 %v10951_v24  ;;  %v11032_v23 = vld [vmem:[%s14760_s1 + $0x1b64] ss:$16 sps:$4 sm:$0xff]   ;;  %v11035_v24 = vld [vmem:[%s14760_s1 + $0x1b6c] ss:$16 sps:$4 sm:$0xff]  }
 0x337   :  { %7230 = vmatpush1.bf16.msra.mxu0 %v10946_v26  ;;  %8078 = vmatpush1.bf16.msra.mxu1 %v10949_v25  ;;  %v11030_v26 = vld [vmem:[%s14760_s1 + $0x1b60] ss:$16 sps:$4 sm:$0xff]   ;;  %v11033_v25 = vld [vmem:[%s14760_s1 + $0x1b68] ss:$16 sps:$4 sm:$0xff]  }
 0x338   :  { %7231 = vmatprep.subr.bf16.mxu0 %v10954_v27  ;;  %8079 = vmatprep.subr.bf16.mxu1 %v10957_v28  ;;  %v11038_v27 = vld [vmem:[%s14760_s1 + $0x1b84] ss:$16 sps:$4 sm:$0xff]   ;;  %v11041_v28 = vld [vmem:[%s14760_s1 + $0x1b8c] ss:$16 sps:$4 sm:$0xff]  }
 0x33b   :  { %7232 = vmatpush1.bf16.msra.mxu0 %v10952_v29  ;;  %8080 = vmatpush1.bf16.msra.mxu1 %v10955_v30  ;;  %v11036_v29 = vld [vmem:[%s14760_s1 + $0x1b80] ss:$16 sps:$4 sm:$0xff]   ;;  %v11039_v30 = vld [vmem:[%s14760_s1 + $0x1b88] ss:$16 sps:$4 sm:$0xff]  }
 0x33c   :  { %7233 = vmatprep.subr.bf16.mxu0 %v10960_v31  ;;  %8081 = vmatprep.subr.bf16.mxu1 %v10963_v32  ;;  %v11044_v31 = vld [vmem:[%s14760_s1 + $0x1ba4] ss:$16 sps:$4 sm:$0xff]   ;;  %v11047_v32 = vld [vmem:[%s14760_s1 + $0x1bac] ss:$16 sps:$4 sm:$0xff]  }
 0x33f   :  { %7234 = vmatpush1.bf16.msra.mxu0 %v10958_v34  ;;  %8082 = vmatpush1.bf16.msra.mxu1 %v10961_v36  ;;  %v11042_v34 = vld [vmem:[%s14760_s1 + $0x1ba0] ss:$16 sps:$4 sm:$0xff]   ;;  %v11045_v36 = vld [vmem:[%s14760_s1 + $0x1ba8] ss:$16 sps:$4 sm:$0xff]  }
 0x340   :  { %7256 = vmatprep.subr.bf16.mxu0 %v10966_v33  ;;  %8104 = vmatprep.subr.bf16.mxu1 %v10969_v35  ;;  %v11050_v33 = vld [vmem:[%s14760_s1 + $0x1bc4] ss:$16 sps:$4 sm:$0xff]   ;;  %v11053_v35 = vld [vmem:[%s14760_s1 + $0x1bcc] ss:$16 sps:$4 sm:$0xff]  }
 0x342   :  { %7236 = vmatmul.mubr.bf16.vlgmr.msra.gmra.mrb[0].mxu0 %v8396_v37  ;;  %8084 = vmatmul.mubr.bf16.vlgmr.msra.gmra.mrb[0].mxu1 %v8396_v37  ;;  %v11048_v37 = vld [vmem:[%s14760_s1 + $0x1bc0] ss:$16 sps:$4 sm:$0xff]  }
 0x343   :  { %7257 = vmatpush1.bf16.msra.mxu0 %v10964_v40  ;;  %8105 = vmatpush1.bf16.msra.mxu1 %v10967_v42  ;;  %v11059_v40 = vld [vmem:[%s14760_s1 + $0x1bec] ss:$16 sps:$4 sm:$0xff]   ;;  %v11054_v42 = vld [vmem:[%s14760_s1 + $0x1be0] ss:$16 sps:$4 sm:$0xff]  }
 0x344   :  { %7258 = vmatprep.subr.bf16.mxu0 %v10972_v44  ;;  %8106 = vmatprep.subr.bf16.mxu1 %v10975_v41  ;;  %v11057_v44 = vld [vmem:[%s14760_s1 + $0x1be8] ss:$16 sps:$4 sm:$0xff]   ;;  %v11062_v41 = vld [vmem:[%s14760_s1 + $0x1c04] ss:$16 sps:$4 sm:$0xff]  }
 0x345   :  { %7245 = vmatprep.mubr.bf16.mxu0 %v8429_v43  ;;  %8093 = vmatprep.mubr.bf16.mxu1 %v8429_v43  ;;  %v11065_v43 = vld [vmem:[%s14760_s1 + $0x1c0c] ss:$16 sps:$4 sm:$0xff]  }
 0x347   :  { %7259 = vmatpush1.bf16.msra.mxu0 %v10970_v45  ;;  %8107 = vmatpush1.bf16.msra.mxu1 %v10973_v46  ;;  %v8398_v45 = vcombine.low %v14058_v52, %v14063_v49  ;;  %v62_v46 = vld [vmem:[%s14761_s0 + $0x168] sm:$0xff]  ;;  %v11068_v52 = vld [vmem:[%s14760_s1 + $0x1c24] ss:$16 sps:$4 sm:$0xff]  }
 0x348   :  { %7260 = vmatprep.subr.bf16.mxu0 %v10978_v47  ;;  %8108 = vmatprep.subr.bf16.mxu1 %v10981_v48  ;;  %v78_v47 = vld [vmem:[%s14761_s0 + $0x1e8] sm:$0xff]  ;;  %v11060_v48 = vld [vmem:[%s14760_s1 + $0x1c00] ss:$16 sps:$4 sm:$0xff]  }
 0x349   :  { %v11071_v49 = vld [vmem:[%s14760_s1 + $0x1c2c] ss:$16 sps:$4 sm:$0xff]  }
 0x34a   :  { %7246 = vmatmul.mubr.bf16.gmra.mrb[4].mxu0 %v8428_v51  ;;  %8094 = vmatmul.mubr.bf16.gmra.mrb[4].mxu1 %v8428_v51  ;;  %v11063_v51 = vld [vmem:[%s14760_s1 + $0x1c08] ss:$16 sps:$4 sm:$0xff]  }
 0x34b   :  { %7261 = vmatpush1.bf16.msra.mxu0 %v10976_v50  ;;  %8109 = vmatpush1.bf16.msra.mxu1 %v10979_v53  ;;  %v8431_v50 = vcombine.high %v62_v46, %v78_v47  ;;  %v11066_v53 = vld [vmem:[%s14760_s1 + $0x1c20] ss:$16 sps:$4 sm:$0xff]  }
 0x34c   :  { %7262 = vmatprep.subr.bf16.mxu0 %v10984_v54  ;;  %8110 = vmatprep.subr.bf16.mxu1 %v10987_v55  ;;  %v11069_v54 = vld [vmem:[%s14760_s1 + $0x1c28] ss:$16 sps:$4 sm:$0xff]   ;;  %v11074_v55 = vld [vmem:[%s14760_s1 + $0x1c44] ss:$16 sps:$4 sm:$0xff]  }
 0x34d   :  { %7288 = vmatprep.mubr.bf16.mxu0 %v8399_v56  ;;  %8136 = vmatprep.mubr.bf16.mxu1 %v8399_v56  ;;  %v11077_v56 = vld [vmem:[%s14760_s1 + $0x1c4c] ss:$16 sps:$4 sm:$0xff]  }
 0x34f   :  { %7263 = vmatpush1.bf16.msra.mxu0 %v10982_v59  ;;  %8111 = vmatpush1.bf16.msra.mxu1 %v10985_v60  ;;  %v8430_v59 = vcombine.low %v62_v46, %v78_v47  ;;  %v14270_v60 = vld [vmem:[%s14761_s0 + $0x70] sm:$0xff]  ;;  %v11147_v46 = vld [vmem:[%s14760_s1 + $0x1dc8] ss:$16 sps:$4 sm:$0xff]  }
 0x350   :  { %7264 = vmatprep.subr.bf16.mxu0 %v10990_v57  ;;  %8112 = vmatprep.subr.bf16.mxu1 %v10993_v58  ;;  %v14275_v57 = vld [vmem:[%s14761_s0 + $0xf0] sm:$0xff] }
 0x351   :  { %v11072_v58 = vld [vmem:[%s14760_s1 + $0x1c40] ss:$16 sps:$4 sm:$0xff]   ;;  %v11152_v47 = vld [vmem:[%s14760_s1 + $0x1de4] ss:$16 sps:$4 sm:$0xff]  }
 0x353   :  { %7265 = vmatpush1.bf16.msra.mxu0 %v10988_v61  ;;  %8113 = vmatpush1.bf16.msra.mxu1 %v10991_v62  ;;  %v11075_v61 = vld [vmem:[%s14760_s1 + $0x1c48] ss:$16 sps:$4 sm:$0xff]   ;;  %v11080_v62 = vld [vmem:[%s14760_s1 + $0x1c64] ss:$16 sps:$4 sm:$0xff]  }
 0x354   :  { %7266 = vmatprep.subr.bf16.mxu0 %v10996_v63  ;;  %8114 = vmatprep.subr.bf16.mxu1 %v10999_v0  ;;  %v11083_v63 = vld [vmem:[%s14760_s1 + $0x1c6c] ss:$16 sps:$4 sm:$0xff]   ;;  %v8401_v0 = vcombine.high %v14270_v60, %v14275_v57 }
 0x357   :  { %7267 = vmatpush1.bf16.msra.mxu0 %v10994_v3  ;;  %8115 = vmatpush1.bf16.msra.mxu1 %v10997_v4  ;;  %v11078_v3 = vld [vmem:[%s14760_s1 + $0x1c60] ss:$16 sps:$4 sm:$0xff]   ;;  %v11081_v4 = vld [vmem:[%s14760_s1 + $0x1c68] ss:$16 sps:$4 sm:$0xff]  }
 0x358   :  { %7268 = vmatprep.subr.bf16.mxu0 %v11002_v1  ;;  %8116 = vmatprep.subr.bf16.mxu1 %v11005_v2  ;;  %v11086_v1 = vld [vmem:[%s14760_s1 + $0x1c84] ss:$16 sps:$4 sm:$0xff]   ;;  %v11089_v2 = vld [vmem:[%s14760_s1 + $0x1c8c] ss:$16 sps:$4 sm:$0xff]  }
 0x35b   :  { %7269 = vmatpush1.bf16.msra.mxu0 %v11000_v5  ;;  %8117 = vmatpush1.bf16.msra.mxu1 %v11003_v6  ;;  %v11084_v5 = vld [vmem:[%s14760_s1 + $0x1c80] ss:$16 sps:$4 sm:$0xff]   ;;  %v11087_v6 = vld [vmem:[%s14760_s1 + $0x1c88] ss:$16 sps:$4 sm:$0xff]  }
 0x35c   :  { %7270 = vmatprep.subr.bf16.mxu0 %v11008_v7  ;;  %8118 = vmatprep.subr.bf16.mxu1 %v11011_v8  ;;  %v11092_v7 = vld [vmem:[%s14760_s1 + $0x1ca4] ss:$16 sps:$4 sm:$0xff]   ;;  %v11095_v8 = vld [vmem:[%s14760_s1 + $0x1cac] ss:$16 sps:$4 sm:$0xff]  }
 0x35f   :  { %7271 = vmatpush1.bf16.msra.mxu0 %v11006_v11  ;;  %8119 = vmatpush1.bf16.msra.mxu1 %v11009_v12  ;;  %v11090_v11 = vld [vmem:[%s14760_s1 + $0x1ca0] ss:$16 sps:$4 sm:$0xff]   ;;  %v11093_v12 = vld [vmem:[%s14760_s1 + $0x1ca8] ss:$16 sps:$4 sm:$0xff]  }
 0x360   :  { %7272 = vmatprep.subr.bf16.mxu0 %v11014_v9  ;;  %8120 = vmatprep.subr.bf16.mxu1 %v11017_v10  ;;  %v11098_v9 = vld [vmem:[%s14760_s1 + $0x1cc4] ss:$16 sps:$4 sm:$0xff]   ;;  %v11101_v10 = vld [vmem:[%s14760_s1 + $0x1ccc] ss:$16 sps:$4 sm:$0xff]  }
 0x363   :  { %7273 = vmatpush1.bf16.msra.mxu0 %v11012_v13  ;;  %8121 = vmatpush1.bf16.msra.mxu1 %v11015_v14  ;;  %v11096_v13 = vld [vmem:[%s14760_s1 + $0x1cc0] ss:$16 sps:$4 sm:$0xff]   ;;  %v11099_v14 = vld [vmem:[%s14760_s1 + $0x1cc8] ss:$16 sps:$4 sm:$0xff]  }
 0x364   :  { %7274 = vmatprep.subr.bf16.mxu0 %v11020_v15  ;;  %8122 = vmatprep.subr.bf16.mxu1 %v11023_v16  ;;  %v11104_v15 = vld [vmem:[%s14760_s1 + $0x1ce4] ss:$16 sps:$4 sm:$0xff]   ;;  %v11107_v16 = vld [vmem:[%s14760_s1 + $0x1cec] ss:$16 sps:$4 sm:$0xff]  }
 0x367   :  { %7275 = vmatpush1.bf16.msra.mxu0 %v11018_v19  ;;  %8123 = vmatpush1.bf16.msra.mxu1 %v11021_v17  ;;  %v11102_v19 = vld [vmem:[%s14760_s1 + $0x1ce0] ss:$16 sps:$4 sm:$0xff]   ;;  %v11105_v17 = vld [vmem:[%s14760_s1 + $0x1ce8] ss:$16 sps:$4 sm:$0xff]  }
 0x368   :  { %7276 = vmatprep.subr.bf16.mxu0 %v11026_v18  ;;  %8124 = vmatprep.subr.bf16.mxu1 %v11029_v20  ;;  %v11110_v18 = vld [vmem:[%s14760_s1 + $0x1d04] ss:$16 sps:$4 sm:$0xff]   ;;  %v11113_v20 = vld [vmem:[%s14760_s1 + $0x1d0c] ss:$16 sps:$4 sm:$0xff]  }
 0x36b   :  { %7277 = vmatpush1.bf16.msra.mxu0 %v11024_v21  ;;  %8125 = vmatpush1.bf16.msra.mxu1 %v11027_v22  ;;  %v11108_v21 = vld [vmem:[%s14760_s1 + $0x1d00] ss:$16 sps:$4 sm:$0xff]   ;;  %v11111_v22 = vld [vmem:[%s14760_s1 + $0x1d08] ss:$16 sps:$4 sm:$0xff]  }
 0x36c   :  { %7278 = vmatprep.subr.bf16.mxu0 %v11032_v23  ;;  %8126 = vmatprep.subr.bf16.mxu1 %v11035_v24  ;;  %v11116_v23 = vld [vmem:[%s14760_s1 + $0x1d24] ss:$16 sps:$4 sm:$0xff]   ;;  %v11119_v24 = vld [vmem:[%s14760_s1 + $0x1d2c] ss:$16 sps:$4 sm:$0xff]  }
 0x36f   :  { %7279 = vmatpush1.bf16.msra.mxu0 %v11030_v26  ;;  %8127 = vmatpush1.bf16.msra.mxu1 %v11033_v25  ;;  %v11114_v26 = vld [vmem:[%s14760_s1 + $0x1d20] ss:$16 sps:$4 sm:$0xff]   ;;  %v11117_v25 = vld [vmem:[%s14760_s1 + $0x1d28] ss:$16 sps:$4 sm:$0xff]  }
 0x370   :  { %7280 = vmatprep.subr.bf16.mxu0 %v11038_v27  ;;  %8128 = vmatprep.subr.bf16.mxu1 %v11041_v28  ;;  %v11122_v27 = vld [vmem:[%s14760_s1 + $0x1d44] ss:$16 sps:$4 sm:$0xff]   ;;  %v11125_v28 = vld [vmem:[%s14760_s1 + $0x1d4c] ss:$16 sps:$4 sm:$0xff]  }
 0x373   :  { %7281 = vmatpush1.bf16.msra.mxu0 %v11036_v29  ;;  %8129 = vmatpush1.bf16.msra.mxu1 %v11039_v30  ;;  %v11120_v29 = vld [vmem:[%s14760_s1 + $0x1d40] ss:$16 sps:$4 sm:$0xff]   ;;  %v11123_v30 = vld [vmem:[%s14760_s1 + $0x1d48] ss:$16 sps:$4 sm:$0xff]  }
 0x374   :  { %7282 = vmatprep.subr.bf16.mxu0 %v11044_v31  ;;  %8130 = vmatprep.subr.bf16.mxu1 %v11047_v32  ;;  %v11128_v31 = vld [vmem:[%s14760_s1 + $0x1d64] ss:$16 sps:$4 sm:$0xff]   ;;  %v11131_v32 = vld [vmem:[%s14760_s1 + $0x1d6c] ss:$16 sps:$4 sm:$0xff]  }
 0x377   :  { %7283 = vmatpush1.bf16.msra.mxu0 %v11042_v34  ;;  %8131 = vmatpush1.bf16.msra.mxu1 %v11045_v36  ;;  %v11126_v34 = vld [vmem:[%s14760_s1 + $0x1d60] ss:$16 sps:$4 sm:$0xff]   ;;  %v11129_v36 = vld [vmem:[%s14760_s1 + $0x1d68] ss:$16 sps:$4 sm:$0xff]  }
 0x378   :  { %7284 = vmatprep.subr.bf16.mxu0 %v11050_v33  ;;  %8132 = vmatprep.subr.bf16.mxu1 %v11053_v35  ;;  %v11134_v33 = vld [vmem:[%s14760_s1 + $0x1d84] ss:$16 sps:$4 sm:$0xff]   ;;  %v11137_v35 = vld [vmem:[%s14760_s1 + $0x1d8c] ss:$16 sps:$4 sm:$0xff]  }
 0x37b   :  { %7285 = vmatpush1.bf16.msra.mxu0 %v11048_v37  ;;  %8133 = vmatpush1.bf16.msra.mxu1 %v11051_v38  ;;  %v11132_v37 = vld [vmem:[%s14760_s1 + $0x1d80] ss:$16 sps:$4 sm:$0xff]   ;;  %v11135_v38 = vld [vmem:[%s14760_s1 + $0x1d88] ss:$16 sps:$4 sm:$0xff]  }
 0x37c   :  { %7286 = vmatprep.subr.bf16.mxu0 %v11056_v39  ;;  %8134 = vmatprep.subr.bf16.mxu1 %v11059_v40  ;;  %v11140_v39 = vld [vmem:[%s14760_s1 + $0x1da4] ss:$16 sps:$4 sm:$0xff]   ;;  %v11143_v40 = vld [vmem:[%s14760_s1 + $0x1dac] ss:$16 sps:$4 sm:$0xff]  }
 0x37f   :  { %7287 = vmatpush1.bf16.msra.mxu0 %v11054_v42  ;;  %8135 = vmatpush1.bf16.msra.mxu1 %v11057_v44  ;;  %v11138_v42 = vld [vmem:[%s14760_s1 + $0x1da0] ss:$16 sps:$4 sm:$0xff]   ;;  %v11141_v44 = vld [vmem:[%s14760_s1 + $0x1da8] ss:$16 sps:$4 sm:$0xff]  }
 0x380   :  { %7309 = vmatprep.subr.bf16.mxu0 %v11062_v41  ;;  %8157 = vmatprep.subr.bf16.mxu1 %v11065_v43  ;;  %v11146_v41 = vld [vmem:[%s14760_s1 + $0x1dc4] ss:$16 sps:$4 sm:$0xff]   ;;  %v11149_v43 = vld [vmem:[%s14760_s1 + $0x1dcc] ss:$16 sps:$4 sm:$0xff]  }
 0x382   :  { %7289 = vmatmul.mubr.bf16.vlgmr.msra.gmra.mrb[0].mxu0 %v8398_v45  ;;  %8137 = vmatmul.mubr.bf16.vlgmr.msra.gmra.mrb[0].mxu1 %v8398_v45  ;;  %v11144_v45 = vld [vmem:[%s14760_s1 + $0x1dc0] ss:$16 sps:$4 sm:$0xff]  }
 0x383   :  { %7310 = vmatpush1.bf16.msra.mxu0 %v11060_v48  ;;  %8158 = vmatpush1.bf16.msra.mxu1 %v11063_v51  ;;  %v11155_v48 = vld [vmem:[%s14760_s1 + $0x1dec] ss:$16 sps:$4 sm:$0xff]   ;;  %v11150_v51 = vld [vmem:[%s14760_s1 + $0x1de0] ss:$16 sps:$4 sm:$0xff]  }
 0x384   :  { %7311 = vmatprep.subr.bf16.mxu0 %v11068_v52  ;;  %8159 = vmatprep.subr.bf16.mxu1 %v11071_v49  ;;  %v11153_v52 = vld [vmem:[%s14760_s1 + $0x1de8] ss:$16 sps:$4 sm:$0xff]   ;;  %v11158_v49 = vld [vmem:[%s14760_s1 + $0x1e04] ss:$16 sps:$4 sm:$0xff]  }
 0x385   :  { %7298 = vmatprep.mubr.bf16.mxu0 %v8431_v50  ;;  %8146 = vmatprep.mubr.bf16.mxu1 %v8431_v50  ;;  %v11161_v50 = vld [vmem:[%s14760_s1 + $0x1e0c] ss:$16 sps:$4 sm:$0xff]  }
 0x387   :  { %7312 = vmatpush1.bf16.msra.mxu0 %v11066_v53  ;;  %8160 = vmatpush1.bf16.msra.mxu1 %v11069_v54  ;;  %v8400_v53 = vcombine.low %v14270_v60, %v14275_v57  ;;  %v63_v54 = vld [vmem:[%s14761_s0 + $0x170] sm:$0xff]  ;;  %v11167_v57 = vld [vmem:[%s14760_s1 + $0x1e2c] ss:$16 sps:$4 sm:$0xff]  }
 0x388   :  { %7313 = vmatprep.subr.bf16.mxu0 %v11074_v55  ;;  %8161 = vmatprep.subr.bf16.mxu1 %v11077_v56  ;;  %v79_v55 = vld [vmem:[%s14761_s0 + $0x1f0] sm:$0xff] }
 0x389   :  { %v11156_v56 = vld [vmem:[%s14760_s1 + $0x1e00] ss:$16 sps:$4 sm:$0xff]   ;;  %v11164_v60 = vld [vmem:[%s14760_s1 + $0x1e24] ss:$16 sps:$4 sm:$0xff]  }
 0x38a   :  { %7299 = vmatmul.mubr.bf16.gmra.mrb[4].mxu0 %v8430_v59  ;;  %8147 = vmatmul.mubr.bf16.gmra.mrb[4].mxu1 %v8430_v59  ;;  %v11159_v59 = vld [vmem:[%s14760_s1 + $0x1e08] ss:$16 sps:$4 sm:$0xff]  }
 0x38b   :  { %7314 = vmatpush1.bf16.msra.mxu0 %v11072_v58  ;;  %8162 = vmatpush1.bf16.msra.mxu1 %v11075_v61  ;;  %v8433_v58 = vcombine.high %v63_v54, %v79_v55  ;;  %v11162_v61 = vld [vmem:[%s14760_s1 + $0x1e20] ss:$16 sps:$4 sm:$0xff]  }
 0x38c   :  { %7315 = vmatprep.subr.bf16.mxu0 %v11080_v62  ;;  %8163 = vmatprep.subr.bf16.mxu1 %v11083_v63  ;;  %v11165_v62 = vld [vmem:[%s14760_s1 + $0x1e28] ss:$16 sps:$4 sm:$0xff]   ;;  %v11170_v63 = vld [vmem:[%s14760_s1 + $0x1e44] ss:$16 sps:$4 sm:$0xff]  }
 0x38d   :  { %7341 = vmatprep.mubr.bf16.mxu0 %v8401_v0  ;;  %8189 = vmatprep.mubr.bf16.mxu1 %v8401_v0  ;;  %v11173_v0 = vld [vmem:[%s14760_s1 + $0x1e4c] ss:$16 sps:$4 sm:$0xff]  }
 0x38f   :  { %7316 = vmatpush1.bf16.msra.mxu0 %v11078_v3  ;;  %8164 = vmatpush1.bf16.msra.mxu1 %v11081_v4  ;;  %v8432_v3 = vcombine.low %v63_v54, %v79_v55  ;;  %v14482_v4 = vld [vmem:[%s14761_s0 + $0x78] sm:$0xff]  ;;  %v11248_v55 = vld [vmem:[%s14760_s1 + $0x1fe4] ss:$16 sps:$4 sm:$0xff]  }
 0x390   :  { %7317 = vmatprep.subr.bf16.mxu0 %v11086_v1  ;;  %8165 = vmatprep.subr.bf16.mxu1 %v11089_v2  ;;  %v14487_v1 = vld [vmem:[%s14761_s0 + $0xf8] sm:$0xff]  ;;  %v11168_v2 = vld [vmem:[%s14760_s1 + $0x1e40] ss:$16 sps:$4 sm:$0xff]  }
 0x391   :  { %v11243_v54 = vld [vmem:[%s14760_s1 + $0x1fc8] ss:$16 sps:$4 sm:$0xff]  }
 0x393   :  { %7318 = vmatpush1.bf16.msra.mxu0 %v11084_v5  ;;  %8166 = vmatpush1.bf16.msra.mxu1 %v11087_v6  ;;  %v11171_v5 = vld [vmem:[%s14760_s1 + $0x1e48] ss:$16 sps:$4 sm:$0xff]   ;;  %v11176_v6 = vld [vmem:[%s14760_s1 + $0x1e64] ss:$16 sps:$4 sm:$0xff]  }
 0x394   :  { %7319 = vmatprep.subr.bf16.mxu0 %v11092_v7  ;;  %8167 = vmatprep.subr.bf16.mxu1 %v11095_v8  ;;  %v11179_v7 = vld [vmem:[%s14760_s1 + $0x1e6c] ss:$16 sps:$4 sm:$0xff]   ;;  %v8403_v8 = vcombine.high %v14482_v4, %v14487_v1 }
 0x397   :  { %7320 = vmatpush1.bf16.msra.mxu0 %v11090_v11  ;;  %8168 = vmatpush1.bf16.msra.mxu1 %v11093_v12  ;;  %v11174_v11 = vld [vmem:[%s14760_s1 + $0x1e60] ss:$16 sps:$4 sm:$0xff]   ;;  %v11177_v12 = vld [vmem:[%s14760_s1 + $0x1e68] ss:$16 sps:$4 sm:$0xff]  }
 0x398   :  { %7321 = vmatprep.subr.bf16.mxu0 %v11098_v9  ;;  %8169 = vmatprep.subr.bf16.mxu1 %v11101_v10  ;;  %v11182_v9 = vld [vmem:[%s14760_s1 + $0x1e84] ss:$16 sps:$4 sm:$0xff]   ;;  %v11185_v10 = vld [vmem:[%s14760_s1 + $0x1e8c] ss:$16 sps:$4 sm:$0xff]  }
 0x39b   :  { %7322 = vmatpush1.bf16.msra.mxu0 %v11096_v13  ;;  %8170 = vmatpush1.bf16.msra.mxu1 %v11099_v14  ;;  %v11180_v13 = vld [vmem:[%s14760_s1 + $0x1e80] ss:$16 sps:$4 sm:$0xff]   ;;  %v11183_v14 = vld [vmem:[%s14760_s1 + $0x1e88] ss:$16 sps:$4 sm:$0xff]  }
 0x39c   :  { %7323 = vmatprep.subr.bf16.mxu0 %v11104_v15  ;;  %8171 = vmatprep.subr.bf16.mxu1 %v11107_v16  ;;  %v11188_v15 = vld [vmem:[%s14760_s1 + $0x1ea4] ss:$16 sps:$4 sm:$0xff]   ;;  %v11191_v16 = vld [vmem:[%s14760_s1 + $0x1eac] ss:$16 sps:$4 sm:$0xff]  }
 0x39f   :  { %7324 = vmatpush1.bf16.msra.mxu0 %v11102_v19  ;;  %8172 = vmatpush1.bf16.msra.mxu1 %v11105_v17  ;;  %v11186_v19 = vld [vmem:[%s14760_s1 + $0x1ea0] ss:$16 sps:$4 sm:$0xff]   ;;  %v11189_v17 = vld [vmem:[%s14760_s1 + $0x1ea8] ss:$16 sps:$4 sm:$0xff]  }
 0x3a0   :  { %7325 = vmatprep.subr.bf16.mxu0 %v11110_v18  ;;  %8173 = vmatprep.subr.bf16.mxu1 %v11113_v20  ;;  %v11194_v18 = vld [vmem:[%s14760_s1 + $0x1ec4] ss:$16 sps:$4 sm:$0xff]   ;;  %v11197_v20 = vld [vmem:[%s14760_s1 + $0x1ecc] ss:$16 sps:$4 sm:$0xff]  }
 0x3a3   :  { %7326 = vmatpush1.bf16.msra.mxu0 %v11108_v21  ;;  %8174 = vmatpush1.bf16.msra.mxu1 %v11111_v22  ;;  %v11192_v21 = vld [vmem:[%s14760_s1 + $0x1ec0] ss:$16 sps:$4 sm:$0xff]   ;;  %v11195_v22 = vld [vmem:[%s14760_s1 + $0x1ec8] ss:$16 sps:$4 sm:$0xff]  }
 0x3a4   :  { %7327 = vmatprep.subr.bf16.mxu0 %v11116_v23  ;;  %8175 = vmatprep.subr.bf16.mxu1 %v11119_v24  ;;  %v11200_v23 = vld [vmem:[%s14760_s1 + $0x1ee4] ss:$16 sps:$4 sm:$0xff]   ;;  %v11203_v24 = vld [vmem:[%s14760_s1 + $0x1eec] ss:$16 sps:$4 sm:$0xff]  }
 0x3a7   :  { %7328 = vmatpush1.bf16.msra.mxu0 %v11114_v26  ;;  %8176 = vmatpush1.bf16.msra.mxu1 %v11117_v25  ;;  %v11198_v26 = vld [vmem:[%s14760_s1 + $0x1ee0] ss:$16 sps:$4 sm:$0xff]   ;;  %v11201_v25 = vld [vmem:[%s14760_s1 + $0x1ee8] ss:$16 sps:$4 sm:$0xff]  }
 0x3a8   :  { %7329 = vmatprep.subr.bf16.mxu0 %v11122_v27  ;;  %8177 = vmatprep.subr.bf16.mxu1 %v11125_v28  ;;  %v11206_v27 = vld [vmem:[%s14760_s1 + $0x1f04] ss:$16 sps:$4 sm:$0xff]   ;;  %v11209_v28 = vld [vmem:[%s14760_s1 + $0x1f0c] ss:$16 sps:$4 sm:$0xff]  }
 0x3ab   :  { %7330 = vmatpush1.bf16.msra.mxu0 %v11120_v29  ;;  %8178 = vmatpush1.bf16.msra.mxu1 %v11123_v30  ;;  %v11204_v29 = vld [vmem:[%s14760_s1 + $0x1f00] ss:$16 sps:$4 sm:$0xff]   ;;  %v11207_v30 = vld [vmem:[%s14760_s1 + $0x1f08] ss:$16 sps:$4 sm:$0xff]  }
 0x3ac   :  { %7331 = vmatprep.subr.bf16.mxu0 %v11128_v31  ;;  %8179 = vmatprep.subr.bf16.mxu1 %v11131_v32  ;;  %v11212_v31 = vld [vmem:[%s14760_s1 + $0x1f24] ss:$16 sps:$4 sm:$0xff]   ;;  %v11215_v32 = vld [vmem:[%s14760_s1 + $0x1f2c] ss:$16 sps:$4 sm:$0xff]  }
 0x3af   :  { %7332 = vmatpush1.bf16.msra.mxu0 %v11126_v34  ;;  %8180 = vmatpush1.bf16.msra.mxu1 %v11129_v36  ;;  %v11210_v34 = vld [vmem:[%s14760_s1 + $0x1f20] ss:$16 sps:$4 sm:$0xff]   ;;  %v11213_v36 = vld [vmem:[%s14760_s1 + $0x1f28] ss:$16 sps:$4 sm:$0xff]  }
 0x3b0   :  { %7333 = vmatprep.subr.bf16.mxu0 %v11134_v33  ;;  %8181 = vmatprep.subr.bf16.mxu1 %v11137_v35  ;;  %v11218_v33 = vld [vmem:[%s14760_s1 + $0x1f44] ss:$16 sps:$4 sm:$0xff]   ;;  %v11221_v35 = vld [vmem:[%s14760_s1 + $0x1f4c] ss:$16 sps:$4 sm:$0xff]  }
 0x3b3   :  { %7334 = vmatpush1.bf16.msra.mxu0 %v11132_v37  ;;  %8182 = vmatpush1.bf16.msra.mxu1 %v11135_v38  ;;  %v11216_v37 = vld [vmem:[%s14760_s1 + $0x1f40] ss:$16 sps:$4 sm:$0xff]   ;;  %v11219_v38 = vld [vmem:[%s14760_s1 + $0x1f48] ss:$16 sps:$4 sm:$0xff]  }
 0x3b4   :  { %7335 = vmatprep.subr.bf16.mxu0 %v11140_v39  ;;  %8183 = vmatprep.subr.bf16.mxu1 %v11143_v40  ;;  %v11224_v39 = vld [vmem:[%s14760_s1 + $0x1f64] ss:$16 sps:$4 sm:$0xff]   ;;  %v11227_v40 = vld [vmem:[%s14760_s1 + $0x1f6c] ss:$16 sps:$4 sm:$0xff]  }
 0x3b7   :  { %7336 = vmatpush1.bf16.msra.mxu0 %v11138_v42  ;;  %8184 = vmatpush1.bf16.msra.mxu1 %v11141_v44  ;;  %v11222_v42 = vld [vmem:[%s14760_s1 + $0x1f60] ss:$16 sps:$4 sm:$0xff]   ;;  %v11225_v44 = vld [vmem:[%s14760_s1 + $0x1f68] ss:$16 sps:$4 sm:$0xff]  }
 0x3b8   :  { %7337 = vmatprep.subr.bf16.mxu0 %v11146_v41  ;;  %8185 = vmatprep.subr.bf16.mxu1 %v11149_v43  ;;  %v11230_v41 = vld [vmem:[%s14760_s1 + $0x1f84] ss:$16 sps:$4 sm:$0xff]   ;;  %v11233_v43 = vld [vmem:[%s14760_s1 + $0x1f8c] ss:$16 sps:$4 sm:$0xff]  }
 0x3bb   :  { %7338 = vmatpush1.bf16.msra.mxu0 %v11144_v45  ;;  %8186 = vmatpush1.bf16.msra.mxu1 %v11147_v46  ;;  %v11228_v45 = vld [vmem:[%s14760_s1 + $0x1f80] ss:$16 sps:$4 sm:$0xff]   ;;  %v11231_v46 = vld [vmem:[%s14760_s1 + $0x1f88] ss:$16 sps:$4 sm:$0xff]  }
 0x3bc   :  { %7339 = vmatprep.subr.bf16.mxu0 %v11152_v47  ;;  %8187 = vmatprep.subr.bf16.mxu1 %v11155_v48  ;;  %v11236_v47 = vld [vmem:[%s14760_s1 + $0x1fa4] ss:$16 sps:$4 sm:$0xff]   ;;  %v11239_v48 = vld [vmem:[%s14760_s1 + $0x1fac] ss:$16 sps:$4 sm:$0xff]  }
 0x3bf   :  { %7340 = vmatpush1.bf16.msra.mxu0 %v11150_v51  ;;  %8188 = vmatpush1.bf16.msra.mxu1 %v11153_v52  ;;  %v11234_v51 = vld [vmem:[%s14760_s1 + $0x1fa0] ss:$16 sps:$4 sm:$0xff]   ;;  %v11237_v52 = vld [vmem:[%s14760_s1 + $0x1fa8] ss:$16 sps:$4 sm:$0xff]  }
 0x3c0   :  { %7362 = vmatprep.subr.bf16.mxu0 %v11158_v49  ;;  %8210 = vmatprep.subr.bf16.mxu1 %v11161_v50  ;;  %v11242_v49 = vld [vmem:[%s14760_s1 + $0x1fc4] ss:$16 sps:$4 sm:$0xff]   ;;  %v11245_v50 = vld [vmem:[%s14760_s1 + $0x1fcc] ss:$16 sps:$4 sm:$0xff]  }
 0x3c2   :  { %7342 = vmatmul.mubr.bf16.vlgmr.msra.gmra.mrb[0].mxu0 %v8400_v53  ;;  %8190 = vmatmul.mubr.bf16.vlgmr.msra.gmra.mrb[0].mxu1 %v8400_v53  ;;  %v11240_v53 = vld [vmem:[%s14760_s1 + $0x1fc0] ss:$16 sps:$4 sm:$0xff]  }
 0x3c3   :  { %7363 = vmatpush1.bf16.msra.mxu0 %v11156_v56  ;;  %8211 = vmatpush1.bf16.msra.mxu1 %v11159_v59  ;;  %v11251_v56 = vld [vmem:[%s14760_s1 + $0x1fec] ss:$16 sps:$4 sm:$0xff]   ;;  %v11246_v59 = vld [vmem:[%s14760_s1 + $0x1fe0] ss:$16 sps:$4 sm:$0xff]  }
 0x3c4   :  { %7364 = vmatprep.subr.bf16.mxu0 %v11164_v60  ;;  %8212 = vmatprep.subr.bf16.mxu1 %v11167_v57  ;;  %v11249_v60 = vld [vmem:[%s14760_s1 + $0x1fe8] ss:$16 sps:$4 sm:$0xff]  }
 0x3c5   :  { %7351 = vmatprep.mubr.bf16.mxu0 %v8433_v58  ;;  %8199 = vmatprep.mubr.bf16.mxu1 %v8433_v58  ;;  %v64_v57 = vld [vmem:[%s14761_s0 + $0x178] sm:$0xff] }
 0x3c6   :  { %v80_v58 = vld [vmem:[%s14761_s0 + $0x1f8] sm:$0xff] }
 0x3c7   :  { %7365 = vmatpush1.bf16.msra.mxu0 %v11162_v61  ;;  %8213 = vmatpush1.bf16.msra.mxu1 %v11165_v62  ;;  %v8402_v61 = vcombine.low %v14482_v4, %v14487_v1  ;;  %v8435_v62 = vcombine.high %v64_v57, %v80_v58 }
 0x3c8   :  { %7366 = vmatprep.subr.bf16.mxu0 %v11170_v63  ;;  %8214 = vmatprep.subr.bf16.mxu1 %v11173_v0  ;;  %v8434_v63 = vcombine.low %v64_v57, %v80_v58  ;;  %v1107_v0 = vlaneseq }
 0x3ca   :  { %7352 = vmatmul.mubr.bf16.gmra.mrb[4].mxu0 %v8432_v3  ;;  %8200 = vmatmul.mubr.bf16.gmra.mrb[4].mxu1 %v8432_v3  ;;  %v1108_v3 = vshrl.u32 %v1107_v0, 7 }
 0x3cb   :  { %7367 = vmatpush1.bf16.msra.mxu0 %v11168_v2  ;;  %8215 = vmatpush1.bf16.msra.mxu1 %v11171_v5 }
 0x3cc   :  { %7368 = vmatprep.subr.bf16.mxu0 %v11176_v6  ;;  %8216 = vmatprep.subr.bf16.mxu1 %v11179_v7  ;;  %v1109_v2 = vsub.s32 0, %v1108_v3  ;;  %v1117_v5 = vsub.s32 2, %v1108_v3  ;;  %v1105_v6 = vld [vmem:[%s14762_s2] sm:$0xf]  ;;  %v1113_v7 = vsub.s32 1, %v1108_v3  ;;  %v1121_v4 = vsub.s32 3, %v1108_v3 }
 0x3cd   :  { %7394 = vmatprep.mubr.bf16.mxu0 %v8403_v8  ;;  %8242 = vmatprep.mubr.bf16.mxu1 %v8403_v8 }
 0x3ce   :  { %v14664_v1 = vrot.slane %v1105_v6, %v1109_v2  ;;  %v14666_v8 = vrot.slane %v1105_v6, %v1117_v5 }
 0x3cf   :  { %7369 = vmatpush1.bf16.msra.mxu0 %v11174_v11  ;;  %8217 = vmatpush1.bf16.msra.mxu1 %v11177_v12  ;;  %v14668_v11 = vrot.slane %v1105_v6, %v1113_v7  ;;  %v14670_v12 = vrot.slane %v1105_v6, %v1121_v4 }
 0x3d0   :  { %7370 = vmatprep.subr.bf16.mxu0 %v11182_v9  ;;  %8218 = vmatprep.subr.bf16.mxu1 %v11185_v10 }
 0x3d3   :  { %7371 = vmatpush1.bf16.msra.mxu0 %v11180_v13  ;;  %8219 = vmatpush1.bf16.msra.mxu1 %v11183_v14 }
 0x3d4   :  { %7372 = vmatprep.subr.bf16.mxu0 %v11188_v15  ;;  %8220 = vmatprep.subr.bf16.mxu1 %v11191_v16 }
 0x3d7   :  { %7373 = vmatpush1.bf16.msra.mxu0 %v11186_v19  ;;  %8221 = vmatpush1.bf16.msra.mxu1 %v11189_v17 }
 0x3d8   :  { %7374 = vmatprep.subr.bf16.mxu0 %v11194_v18  ;;  %8222 = vmatprep.subr.bf16.mxu1 %v11197_v20 }
 0x3db   :  { %7375 = vmatpush1.bf16.msra.mxu0 %v11192_v21  ;;  %8223 = vmatpush1.bf16.msra.mxu1 %v11195_v22 }
 0x3dc   :  { %7376 = vmatprep.subr.bf16.mxu0 %v11200_v23  ;;  %8224 = vmatprep.subr.bf16.mxu1 %v11203_v24 }
 0x3df   :  { %7377 = vmatpush1.bf16.msra.mxu0 %v11198_v26  ;;  %8225 = vmatpush1.bf16.msra.mxu1 %v11201_v25 }
 0x3e0   :  { %7378 = vmatprep.subr.bf16.mxu0 %v11206_v27  ;;  %8226 = vmatprep.subr.bf16.mxu1 %v11209_v28 }
 0x3e3   :  { %7379 = vmatpush1.bf16.msra.mxu0 %v11204_v29  ;;  %8227 = vmatpush1.bf16.msra.mxu1 %v11207_v30 }
 0x3e4   :  { %7380 = vmatprep.subr.bf16.mxu0 %v11212_v31  ;;  %8228 = vmatprep.subr.bf16.mxu1 %v11215_v32 }
 0x3e7   :  { %7381 = vmatpush1.bf16.msra.mxu0 %v11210_v34  ;;  %8229 = vmatpush1.bf16.msra.mxu1 %v11213_v36  ;;  %v8311_v36 = vld [vmem:[%s14763_s3] sm:$0xff] }
 0x3e8   :  { %7382 = vmatprep.subr.bf16.mxu0 %v11218_v33  ;;  %8230 = vmatprep.subr.bf16.mxu1 %v11221_v35  ;;  %v8312_v33 = vld [vmem:[%s14763_s3 + $0x8] sm:$0xff] }
 0x3eb   :  { %7383 = vmatpush1.bf16.msra.mxu0 %v11216_v37  ;;  %8231 = vmatpush1.bf16.msra.mxu1 %v11219_v38  ;;  %v8315_v38 = vld [vmem:[%s14763_s3 + $0x20] sm:$0xff] }
 0x3ec   :  { %7384 = vmatprep.subr.bf16.mxu0 %v11224_v39  ;;  %8232 = vmatprep.subr.bf16.mxu1 %v11227_v40  ;;  %v8316_v40 = vld [vmem:[%s14763_s3 + $0x28] sm:$0xff] }
 0x3ef   :  { %7385 = vmatpush1.bf16.msra.mxu0 %v11222_v42  ;;  %8233 = vmatpush1.bf16.msra.mxu1 %v11225_v44 }
 0x3f0   :  { %7386 = vmatprep.subr.bf16.mxu0 %v11230_v41  ;;  %8234 = vmatprep.subr.bf16.mxu1 %v11233_v43 }
 0x3f3   :  { %7387 = vmatpush1.bf16.msra.mxu0 %v11228_v45  ;;  %8235 = vmatpush1.bf16.msra.mxu1 %v11231_v46 }
 0x3f4   :  { %7388 = vmatprep.subr.bf16.mxu0 %v11236_v47  ;;  %8236 = vmatprep.subr.bf16.mxu1 %v11239_v48  ;;  %v8313_v47 = vld [vmem:[%s14763_s3 + $0x10] sm:$0xff] }
 0x3f7   :  { %7389 = vmatpush1.bf16.msra.mxu0 %v11234_v51  ;;  %8237 = vmatpush1.bf16.msra.mxu1 %v11237_v52 }
 0x3f8   :  { %7390 = vmatprep.subr.bf16.mxu0 %v11242_v49  ;;  %8238 = vmatprep.subr.bf16.mxu1 %v11245_v50 }
 0x3fb   :  { %7391 = vmatpush1.bf16.msra.mxu0 %v11240_v53  ;;  %8239 = vmatpush1.bf16.msra.mxu1 %v11243_v54 }
 0x3fc   :  { %7392 = vmatprep.subr.bf16.mxu0 %v11248_v55  ;;  %8240 = vmatprep.subr.bf16.mxu1 %v11251_v56 }
 0x3ff   :  { %7393 = vmatpush1.bf16.msra.mxu0 %v11246_v59  ;;  %8241 = vmatpush1.bf16.msra.mxu1 %v11249_v60 }
 0x402   :  { %7395 = vmatmul.mubr.bf16.vlgmr.msra.gmra.mrb[0].mxu0 %v8402_v61  ;;  %8243 = vmatmul.mubr.bf16.vlgmr.msra.gmra.mrb[0].mxu1 %v8402_v61 }
 0x403   :  { %7404 = vmatprep.mubr.bf16.mxu0 %v8435_v62  ;;  %8252 = vmatprep.mubr.bf16.mxu1 %v8435_v62  ;;  %v8314_v62 = vld [vmem:[%s14763_s3 + $0x18] sm:$0xff] }
 0x40a   :  { %7405 = vmatmul.mubr.bf16.gmra.mrb[4].mxu0 %v8434_v63  ;;  %8253 = vmatmul.mubr.bf16.gmra.mrb[4].mxu1 %v8434_v63 }
 0x4d5   :  { %v7396_v9 = vpop.f32.mrb[0].mxu0  ;;  %v8244_v10 = vpop.f32.mrb[0].mxu1 }
 0x4d6   :  { %v9460_v13 = vadd.f32 %v7396_v9, %v14664_v1  ;;  %v9468_v14 = vadd.f32 %v8244_v10, %v14666_v8  ;;  %v7398_v15 = vpop.f32.mrb[1].mxu0  ;;  %v8246_v16 = vpop.f32.mrb[1].mxu1  ;;  %v8323_v10 = vld [vmem:[%s14763_s3 + $0x60] sm:$0xff] }
 0x4d7   :  { %v9461_v19 = vadd.f32 %v7398_v15, %v14668_v11  ;;  %v9469_v17 = vadd.f32 %v8246_v16, %v14670_v12  ;;  %v7400_v18 = vpop.f32.mrb[2].mxu0  ;;  %v8248_v20 = vpop.f32.mrb[2].mxu1 }
 0x4d8   :  { %vm8263_vm0 = vcmp.ge.f32.partialorder %v9460_v13, 0.0  ;;  %v8279_v21 = vmul.f32 0.2, %v9460_v13  ;;  %vm8265_vm1 = vcmp.ge.f32.partialorder %v9468_v14, 0.0  ;;  %v8281_v22 = vmul.f32 0.2, %v9468_v14 }
 0x4d9   :  { %vm8264_vm2 = vcmp.ge.f32.partialorder %v9461_v19, 0.0  ;;  %v8280_v23 = vmul.f32 0.2, %v9461_v19  ;;  %v8282_v24 = vmul.f32 0.2, %v9469_v17  ;;  %vm8266_vm3 = vcmp.ge.f32.partialorder %v9469_v17, 0.0 }
 0x4da   :  { %v8295_v26 = vsel %vm8263_vm0, %v9460_v13, %v8279_v21  ;;  %v9462_v25 = vadd.f32 %v7400_v18, %v14664_v1  ;;  %v9470_v27 = vadd.f32 %v8248_v20, %v14666_v8  ;;  %v7402_v28 = vpop.f32.mrb[3].mxu0  ;;  %v8250_v29 = vpop.f32.mrb[3].mxu1  ;;  %v8297_v34 = vsel %vm8265_vm1, %v9468_v14, %v8281_v22 }
 0x4db   :  { %v8296_v30 = vsel %vm8264_vm2, %v9461_v19, %v8280_v23  ;;  %v9463_v31 = vadd.f32 %v7402_v28, %v14668_v11  ;;  %v14680_v32 = vadd.f32 %v8250_v29, %v14670_v12  ;;  %v8298_v42 = vsel %vm8266_vm3, %v9469_v17, %v8282_v24  ;;  %v8317_v19 = vld [vmem:[%s14763_s3 + $0x30] sm:$0xff]  ;;  %v8319_v23 = vld [vmem:[%s14763_s3 + $0x40] sm:$0xff]  ;;  %v8320_v24 = vld [vmem:[%s14763_s3 + $0x48] sm:$0xff] }
 0x4dc   :  { %vm8267_vm4 = vcmp.ge.f32.partialorder %v9462_v25, 0.0  ;;  %v8283_v35 = vmul.f32 0.2, %v9462_v25  ;;  %vm8269_vm5 = vcmp.ge.f32.partialorder %v9470_v27, 0.0  ;;  %v8285_v37 = vmul.f32 0.2, %v9470_v27 }
 0x4dd   :  { %vm8268_vm6 = vcmp.ge.f32.partialorder %v9463_v31, 0.0  ;;  %v8284_v39 = vmul.f32 0.2, %v9463_v31  ;;  %vm8270_vm7 = vcmp.ge.f32.partialorder %v14680_v32, 0.0  ;;  %v8286_v43 = vmul.f32 0.2, %v14680_v32 }
 0x4de   :  { %v8299_v44 = vsel %vm8267_vm4, %v9462_v25, %v8283_v35  ;;  %v8301_v41 = vsel %vm8269_vm5, %v9470_v27, %v8285_v37  ;;  %v7406_v45 = vpop.f32.mrb[4].mxu0  ;;  %v8254_v46 = vpop.f32.mrb[4].mxu1  ;;  %v8327_v48 = vmul.f32 %v8311_v36, %v8295_v26  ;;  %v8328_v54 = vmul.f32 %v8312_v33, %v8296_v30  ;;  %v8318_v28 = vld [vmem:[%s14763_s3 + $0x38] sm:$0xff]  ;;  %v8321_v33 = vld [vmem:[%s14763_s3 + $0x50] sm:$0xff] }
 0x4df   :  { %v8300_v51 = vsel %vm8268_vm6, %v9463_v31, %v8284_v39  ;;  %v9464_v52 = vadd.f32 %v7406_v45, %v14664_v1  ;;  %v9472_v49 = vadd.f32 %v8254_v46, %v14666_v8  ;;  %v7408_v50 = vpop.f32.mrb[5].mxu0  ;;  %v8256_v53 = vpop.f32.mrb[5].mxu1  ;;  %v8331_v55 = vmul.f32 %v8315_v38, %v8299_v44  ;;  %v8325_v35 = vld [vmem:[%s14763_s3 + $0x70] sm:$0xff] }
 0x4e0   :  { %v8332_v56 = vmul.f32 %v8316_v40, %v8300_v51  ;;  %v9465_v59 = vadd.f32 %v7408_v50, %v14668_v11  ;;  %v9473_v60 = vadd.f32 %v8256_v53, %v14670_v12  ;;  %v7410_v57 = vpop.f32.mrb[6].mxu0  ;;  %v8258_v58 = vpop.f32.mrb[6].mxu1  ;;  %v8329_v63 = vmul.f32 %v8313_v47, %v8297_v34 }
 0x4e1   :  { %vm8271_vm8 = vcmp.ge.f32.partialorder %v9464_v52, 0.0  ;;  %v8287_v61 = vmul.f32 0.2, %v9464_v52  ;;  %vm8273_vm9 = vcmp.ge.f32.partialorder %v9472_v49, 0.0  ;;  %v8289_v0 = vmul.f32 0.2, %v9472_v49 }
 0x4e2   :  { %vm8272_vm10 = vcmp.ge.f32.partialorder %v9465_v59, 0.0  ;;  %v8288_v3 = vmul.f32 0.2, %v9465_v59  ;;  %vm8274_vm11 = vcmp.ge.f32.partialorder %v9473_v60, 0.0  ;;  %v8290_v5 = vmul.f32 0.2, %v9473_v60 }
 0x4e3   :  { %v8303_v2 = vsel %vm8271_vm8, %v9464_v52, %v8287_v61  ;;  %v9466_v6 = vadd.f32 %v7410_v57, %v14664_v1  ;;  %v9474_v7 = vadd.f32 %v8258_v58, %v14666_v8  ;;  %v7412_v4 = vpop.f32.mrb[7].mxu0  ;;  %v8260_v9 = vpop.f32.mrb[7].mxu1  ;;  %v8330_v15 = vmul.f32 %v8314_v62, %v8298_v42  ;;  %v8322_v42 = vld [vmem:[%s14763_s3 + $0x58] sm:$0xff] }
 0x4e4   :  { %v9467_v13 = vadd.f32 %v7412_v4, %v14668_v11  ;;  %v9475_v14 = vadd.f32 %v8260_v9, %v14670_v12  ;;  %v8343_v16 = vadd.f32 %v8328_v54, %v8327_v48  ;;  %v8304_v17 = vsel %vm8272_vm10, %v9465_v59, %v8288_v3  ;;  %v8324_v11 = vld [vmem:[%s14763_s3 + $0x68] sm:$0xff] }
 0x4e5   :  { %vm8275_vm12 = vcmp.ge.f32.partialorder %v9466_v6, 0.0  ;;  %v8291_v1 = vmul.f32 0.2, %v9466_v6  ;;  %vm8277_vm13 = vcmp.ge.f32.partialorder %v9474_v7, 0.0  ;;  %v8293_v8 = vmul.f32 0.2, %v9474_v7 }
 0x4e6   :  { %vm8276_vm14 = vcmp.ge.f32.partialorder %v9467_v13, 0.0  ;;  %v8292_v18 = vmul.f32 0.2, %v9467_v13  ;;  %vm8278_vm15 = vcmp.ge.f32.partialorder %v9475_v14, 0.0  ;;  %v8294_v21 = vmul.f32 0.2, %v9475_v14 }
 0x4e7   :  { %v8307_v12 = vsel %vm8275_vm12, %v9466_v6, %v8291_v1  ;;  %v8309_v20 = vsel %vm8277_vm13, %v9474_v7, %v8293_v8  ;;  %v8344_v22 = vadd.f32 %v8343_v16, %v8329_v63  ;;  %v8302_v27 = vsel %vm8270_vm7, %v14680_v32, %v8286_v43 }
 0x4e8   :  { %v8339_v26 = vmul.f32 %v8323_v10, %v8307_v12  ;;  %v8308_v25 = vsel %vm8276_vm14, %v9467_v13, %v8292_v18  ;;  %v8333_v29 = vmul.f32 %v8317_v19, %v8301_v41  ;;  %v8348_v34 = vadd.f32 %v8332_v56, %v8331_v55  ;;  %v8326_v41 = vld [vmem:[%s14763_s3 + $0x78] sm:$0xff] }
 0x4e9   :  { %v8340_v30 = vmul.f32 %v8324_v11, %v8308_v25  ;;  %v8345_v31 = vadd.f32 %v8344_v22, %v8330_v15  ;;  %v8305_v36 = vsel %vm8273_vm9, %v9472_v49, %v8289_v0  ;;  %v8335_v37 = vmul.f32 %v8319_v23, %v8303_v2 }
 0x4ea   :  { %v8336_v32 = vmul.f32 %v8320_v24, %v8304_v17  ;;  %v8334_v38 = vmul.f32 %v8318_v28, %v8302_v27  ;;  %v8349_v39 = vadd.f32 %v8348_v34, %v8333_v29  ;;  %v8306_v40 = vsel %vm8274_vm11, %v9473_v60, %v8290_v5 }
 0x4eb   :  { %8346 = vadd.xlane.f32.xlu0 %v8345_v31  ;;  %v8310_v44 = vsel %vm8278_vm15, %v9475_v14, %v8294_v21  ;;  %v8337_v43 = vmul.f32 %v8321_v33, %v8305_v36  ;;  %v8341_v46 = vmul.f32 %v8325_v35, %v8309_v20  ;;  %v8358_v47 = vadd.f32 %v8340_v30, %v8339_v26 }
 0x4ec   :  { %v8353_v45 = vadd.f32 %v8336_v32, %v8335_v37  ;;  %v8350_v48 = vadd.f32 %v8349_v39, %v8334_v38  ;;  %v8338_v51 = vmul.f32 %v8322_v42, %v8306_v40  ;;  %v8342_v49 = vmul.f32 %v8326_v41, %v8310_v44 }
 0x4ed   :  { %v8359_v50 = vadd.f32 %v8358_v47, %v8341_v46  ;;  %vm8363_vm0 = vcmask 7168  }
 0x4ee   :  { %v8354_v52 = vadd.f32 %v8353_v45, %v8337_v43 }
 0x4ef   :  { %8351 = vadd.xlane.f32.xlu0 %v8350_v48  ;;  %v8360_v54 = vadd.f32 %v8359_v50, %v8342_v49 }
 0x4f0   :  { %v8355_v53 = vadd.f32 %v8354_v52, %v8338_v51 }
 0x4f2   :  { %8356 = vadd.xlane.f32.xlu1 %v8355_v53 }
 0x4f6   :  { %8361 = vadd.xlane.f32.xlu1 %v8360_v54 }
 0x578   :  { %v8347_v55 = vpop.xlane.xlu0 %8346 }
 0x579   :  { %8364 = vst.msk [vmem:[%s14764_s4] sm:$0xff] %vm8363_vm0, %v8347_v55 }
 0x57c   :  { %v8352_v56 = vpop.xlane.xlu0 %8351 }
 0x57d   :  { %8365 = vst.msk [vmem:[%s14764_s4 + $0x8] sm:$0xff] %vm8363_vm0, %v8352_v56 }
 0x57f   :  { %v8357_v59 = vpop.xlane.xlu1 %8356 }
 0x580   :  { %8366 = vst.msk [vmem:[%s14764_s4 + $0x10] sm:$0xff] %vm8363_vm0, %v8357_v59 }
 0x583   :  { %v8362_v60 = vpop.xlane.xlu1 %8361 }
 0x584   :  { %8367 = vst.msk [vmem:[%s14764_s4 + $0x18] sm:$0xff] %vm8363_vm0, %v8362_v60 }

</bundles_post_ra>
